<compile_context>
chip_gen: v7x
topology: tpu7x:2x2x1
jax: 0.10.0
libtpu: 0.0.40
codegen_flags: <defaults>
</compile_context>

<pallas_src>
import functools

import jax
import jax.numpy as jnp
from jax.experimental import pallas as pl
from jax.experimental.pallas import tpu as pltpu


# Fixed architecture of the torch module: conv1 3->6 (5x5), 2x2 maxpool,
# conv2 6->16 (5x5), 2x2 maxpool, fc 400 -> 120 -> 84 -> 1 (input 3x32x32).
_KH = _KW = 5
_C0, _C1, _C2 = 3, 6, 16
_F1, _F2, _F3 = 120, 84, 1
_PH2 = _PW2 = 5          # spatial size after the second pool  (16*5*5 = 400)


def _cnn_kernel(x_ref, w1_ref, b1_ref, w2_ref, b2_ref,
                fc1w_ref, fc1b_ref, fc2w_ref, fc2b_ref, fc3w_ref, fc3b_ref,
                o_ref,
                y1_s, p1_s, y2_s, p2_s, g_s,
                *, B, W, S, n_y1, n_p1, n_y2, n_p2):
    """Whole CNN forward on VMEM-resident data.

    Activations are (channels, flattened b*H*W columns): the valid conv output
    for spatial position (h, w) of sample b lives in column b*S + h*W + w.
    Columns whose (h, w) fall outside a stage's valid window hold finite
    garbage that is never read when producing later valid positions.
    """
    f32 = jnp.float32

    # ---------------- conv1 + bias + ReLU (shift-and-accumulate matmuls) ----
    acc1 = None
    for t in range(_KH * _KW):
        ki, kj = t // _KW, t % _KW
        off = ki * W + kj
        wk = w1_ref[t * _C1:(t + 1) * _C1, :]              # (6, 3)
        xs = x_ref[:, off:off + n_y1]                      # (3, n_y1)
        part = jnp.dot(wk, xs, preferred_element_type=f32)
        acc1 = part if acc1 is None else acc1 + part
    y1_s[...] = jnp.maximum(acc1 + b1_ref[...], 0.0)

    # ---------------- 2x2 / stride-2 maxpool: max of 4 lane-shifted slices --
    p1_s[...] = jnp.maximum(
        jnp.maximum(y1_s[:, 0:n_p1], y1_s[:, 1:1 + n_p1]),
        jnp.maximum(y1_s[:, W:W + n_p1], y1_s[:, W + 1:W + 1 + n_p1]))

    # ---------------- conv2 + bias + ReLU on the 2x-dilated pooled grid -----
    acc2 = None
    for t in range(_KH * _KW):
        ki, kj = t // _KW, t % _KW
        off = 2 * W * ki + 2 * kj
        wk = w2_ref[t * _C2:(t + 1) * _C2, :]              # (16, 6)
        ps = p1_s[:, off:off + n_y2]                       # (6, n_y2)
        part = jnp.dot(wk, ps, preferred_element_type=f32)
        acc2 = part if acc2 is None else acc2 + part
    y2_s[...] = jnp.maximum(acc2 + b2_ref[...], 0.0)

    # ---------------- second 2x2 maxpool (offsets doubled: grid is dilated) -
    p2_s[...] = jnp.maximum(
        jnp.maximum(y2_s[:, 0:n_p2], y2_s[:, 2:2 + n_p2]),
        jnp.maximum(y2_s[:, 2 * W:2 * W + n_p2],
                    y2_s[:, 2 * W + 2:2 * W + 2 + n_p2]))

    # -------- gather the 5x5x16 valid pooled columns into the fc1 input -----
    # g_s rows are ordered (p, q, c); fc1 weights were re-packed to match.
    for p in range(_PH2):
        for q in range(_PW2):
            pos = p * _PW2 + q
            for bb in range(B):
                col = bb * S + 4 * W * p + 4 * q
                g_s[pos * _C2:(pos + 1) * _C2, bb:bb + 1] = p2_s[:, col:col + 1]

    # ---------------- fc1 -> ReLU -> fc2 -> ReLU -> fc3 (batch in lanes) ----
    g = g_s[...]                                           # (400, B)
    h1 = jnp.maximum(
        jnp.dot(fc1w_ref[...], g, preferred_element_type=f32) + fc1b_ref[...],
        0.0)
    h2 = jnp.maximum(
        jnp.dot(fc2w_ref[...], h1, preferred_element_type=f32) + fc2b_ref[...],
        0.0)
    o_ref[...] = (jnp.dot(fc3w_ref[...], h2, preferred_element_type=f32)
                  + fc3b_ref[...])


def _full_spec(shape):
    return pl.BlockSpec(shape, lambda i: (0,) * len(shape))


@jax.jit
def cnn_forward(packed, x):
    B, C, H, W = x.shape
    assert C == _C0 and H == 32 and W == 32, "fc1 (16*5*5) implies 3x32x32 input"
    S = H * W

    # Number of columns each stage computes: exactly what any later valid
    # consumer can read, so every shifted slice below stays in-bounds.
    n_p2 = (B - 1) * S + 4 * W * (_PH2 - 1) + 4 * (_PW2 - 1) + 1
    n_y2 = n_p2 + 2 * W + 2
    n_p1 = n_y2 + 2 * W * (_KH - 1) + 2 * (_KW - 1)
    n_y1 = n_p1 + W + 1
    assert n_y1 + W * (_KH - 1) + (_KW - 1) <= B * S

    # Channels-first, spatial-flattened input layout (one cheap host relayout).
    x2 = jnp.transpose(x, (1, 0, 2, 3)).reshape(C, B * S)

    ops = (x2, packed["w1p"], packed["b1"], packed["w2p"], packed["b2"],
           packed["fc1w"], packed["fc1b"], packed["fc2w"], packed["fc2b"],
           packed["fc3w"], packed["fc3b"])

    flops = (2 * _KH * _KW * (_C1 * _C0 * n_y1 + _C2 * _C1 * n_y2)
             + 2 * B * (_PH2 * _PW2 * _C2 * _F1 + _F1 * _F2 + _F2 * _F3))
    bytes_accessed = 4 * (sum(int(a.size) for a in ops) + B)

    kernel = functools.partial(
        _cnn_kernel, B=B, W=W, S=S,
        n_y1=n_y1, n_p1=n_p1, n_y2=n_y2, n_p2=n_p2)

    out = pl.pallas_call(
        kernel,
        out_shape=jax.ShapeDtypeStruct((1, B), jnp.float32),
        grid=(1,),
        in_specs=[_full_spec(a.shape) for a in ops],
        out_specs=_full_spec((1, B)),
        scratch_shapes=[
            pltpu.VMEM((_C1, n_y1), jnp.float32),             # conv1 out
            pltpu.VMEM((_C1, n_p1), jnp.float32),             # pool1 out (dilated)
            pltpu.VMEM((_C2, n_y2), jnp.float32),             # conv2 out
            pltpu.VMEM((_C2, n_p2), jnp.float32),             # pool2 out (dilated)
            pltpu.VMEM((_PH2 * _PW2 * _C2, B), jnp.float32),  # fc1 input (400, B)
        ],
        compiler_params=pltpu.CompilerParams(
            dimension_semantics=("arbitrary",)),
        cost_estimate=pl.CostEstimate(
            flops=flops, transcendentals=0, bytes_accessed=bytes_accessed),
    )(*ops)

    return out.reshape(B, 1)   # (1, B) and (B, 1) share row-major element order


# ----------------------------------------------------------------------------
# Parameters: torch-like init, plus a one-time re-pack into kernel layouts.
# ----------------------------------------------------------------------------
def init_params(key):
    ks = jax.random.split(key, 10)

    def u(k, shape, fan_in):
        bound = 1.0 / jnp.sqrt(jnp.float32(fan_in))
        return jax.random.uniform(k, shape, jnp.float32, -bound, bound)

    return {
        "conv1_w": u(ks[0], (_C1, _C0, _KH, _KW), _C0 * _KH * _KW),
        "conv1_b": u(ks[1], (_C1,), _C0 * _KH * _KW),
        "conv2_w": u(ks[2], (_C2, _C1, _KH, _KW), _C1 * _KH * _KW),
        "conv2_b": u(ks[3], (_C2,), _C1 * _KH * _KW),
        "fc1_w": u(ks[4], (_F1, _C2 * _PH2 * _PW2), _C2 * _PH2 * _PW2),
        "fc1_b": u(ks[5], (_F1,), _C2 * _PH2 * _PW2),
        "fc2_w": u(ks[6], (_F2, _F1), _F1),
        "fc2_b": u(ks[7], (_F2,), _F1),
        "fc3_w": u(ks[8], (_F3, _F2), _F2),
        "fc3_b": u(ks[9], (_F3,), _F2),
    }


def pack_params(params):
    """One-time re-layout of torch-style weights into kernel-consumable layouts."""
    w1 = params["conv1_w"]                      # (6, 3, 5, 5)
    w2 = params["conv2_w"]                      # (16, 6, 5, 5)
    fc1 = params["fc1_w"]                       # (120, 400), cols = c*25 + p*5 + q
    # Per-tap (Cout, Cin) blocks stacked along rows, tap-major (ki*5 + kj).
    w1p = jnp.transpose(w1, (2, 3, 0, 1)).reshape(_KH * _KW * _C1, _C0)
    w2p = jnp.transpose(w2, (2, 3, 0, 1)).reshape(_KH * _KW * _C2, _C1)
    # fc1 columns re-ordered to (p, q, c) to match the kernel's gather order.
    fc1p = jnp.transpose(fc1.reshape(_F1, _C2, _PH2, _PW2),
                         (0, 2, 3, 1)).reshape(_F1, _PH2 * _PW2 * _C2)
    return {
        "w1p": w1p, "b1": params["conv1_b"].reshape(_C1, 1),
        "w2p": w2p, "b2": params["conv2_b"].reshape(_C2, 1),
        "fc1w": fc1p, "fc1b": params["fc1_b"].reshape(_F1, 1),
        "fc2w": params["fc2_w"], "fc2b": params["fc2_b"].reshape(_F2, 1),
        "fc3w": params["fc3_w"], "fc3b": params["fc3_b"].reshape(_F3, 1),
    }


def cnn_forward_reference(params, x):
    """Pure-JAX reference of the torch forward (numeric self-check)."""
    hp = jax.lax.Precision.HIGHEST
    dn = ("NCHW", "OIHW", "NCHW")

    def conv_relu(h, w, b):
        y = jax.lax.conv_general_dilated(h, w, (1, 1), "VALID",
                                         dimension_numbers=dn, precision=hp)
        return jnp.maximum(y + b[None, :, None, None], 0.0)

    def pool(h):
        return jax.lax.reduce_window(h, -jnp.inf, jax.lax.max,
                                     (1, 1, 2, 2), (1, 1, 2, 2), "VALID")

    h = pool(conv_relu(x, params["conv1_w"], params["conv1_b"]))
    h = pool(conv_relu(h, params["conv2_w"], params["conv2_b"]))
    h = h.reshape(x.shape[0], -1)
    h = jnp.maximum(jnp.dot(h, params["fc1_w"].T, precision=hp) + params["fc1_b"], 0.0)
    h = jnp.maximum(jnp.dot(h, params["fc2_w"].T, precision=hp) + params["fc2_b"], 0.0)
    return jnp.dot(h, params["fc3_w"].T, precision=hp) + params["fc3_b"]


if __name__ == "__main__":
    key = jax.random.PRNGKey(0)
    pkey, xkey = jax.random.split(key)
    params = init_params(pkey)
    packed = pack_params(params)

    # The module's flatten (16*5*5) implies 3-channel 32x32 inputs.
    x = jax.random.normal(xkey, (2, 3, 32, 32), dtype=jnp.float32)

    out = jax.block_until_ready(cnn_forward(packed, x))
    assert out.shape == (2, 1) and out.dtype == jnp.float32, (out.shape, out.dtype)

    ref = cnn_forward_reference(params, x)
    assert jnp.allclose(out, ref, rtol=1e-2, atol=1e-2), (out, ref)

    print("KERNEL_OK")
</pallas_src>

<mosaic_0001>
module attributes {stable_mosaic.version = 11 : i64} {
  func.func @_cnn_kernel(%arg0: i32, %arg1: memref<3x2048xf32, #tpu.memory_space<vmem>>, %arg2: memref<150x3xf32, #tpu.memory_space<vmem>>, %arg3: memref<6x1xf32, #tpu.memory_space<vmem>>, %arg4: memref<400x6xf32, #tpu.memory_space<vmem>>, %arg5: memref<16x1xf32, #tpu.memory_space<vmem>>, %arg6: memref<120x400xf32, #tpu.memory_space<vmem>>, %arg7: memref<120x1xf32, #tpu.memory_space<vmem>>, %arg8: memref<84x120xf32, #tpu.memory_space<vmem>>, %arg9: memref<84x1xf32, #tpu.memory_space<vmem>>, %arg10: memref<1x84xf32, #tpu.memory_space<vmem>>, %arg11: memref<1x1xf32, #tpu.memory_space<vmem>>, %arg12: memref<1x2xf32, #tpu.memory_space<vmem>>, %arg13: memref<6x1916xf32, #tpu.memory_space<vmem>>, %arg14: memref<6x1883xf32, #tpu.memory_space<vmem>>, %arg15: memref<16x1619xf32, #tpu.memory_space<vmem>>, %arg16: memref<16x1553xf32, #tpu.memory_space<vmem>>, %arg17: memref<400x2xf32, #tpu.memory_space<vmem>>) attributes {dimension_semantics = [#tpu.dimension_semantics<arbitrary>], iteration_bounds = array<i64: 1>, scalar_prefetch = 0 : i64, scratch_operands = 5 : i64, tpu.core_type = #tpu.core_type<tc>, window_params = [{pipeline_mode = #tpu.pipeline_mode<synchronous>, transform_indices = @transform_0, window_bounds = array<i64: 3, 2048>}, {pipeline_mode = #tpu.pipeline_mode<synchronous>, transform_indices = @transform_1, window_bounds = array<i64: 150, 3>}, {pipeline_mode = #tpu.pipeline_mode<synchronous>, transform_indices = @transform_2, window_bounds = array<i64: 6, 1>}, {pipeline_mode = #tpu.pipeline_mode<synchronous>, transform_indices = @transform_3, window_bounds = array<i64: 400, 6>}, {pipeline_mode = #tpu.pipeline_mode<synchronous>, transform_indices = @transform_4, window_bounds = array<i64: 16, 1>}, {pipeline_mode = #tpu.pipeline_mode<synchronous>, transform_indices = @transform_5, window_bounds = array<i64: 120, 400>}, {pipeline_mode = #tpu.pipeline_mode<synchronous>, transform_indices = @transform_6, window_bounds = array<i64: 120, 1>}, {pipeline_mode = #tpu.pipeline_mode<synchronous>, transform_indices = @transform_7, window_bounds = array<i64: 84, 120>}, {pipeline_mode = #tpu.pipeline_mode<synchronous>, transform_indices = @transform_8, window_bounds = array<i64: 84, 1>}, {pipeline_mode = #tpu.pipeline_mode<synchronous>, transform_indices = @transform_9, window_bounds = array<i64: 1, 84>}, {pipeline_mode = #tpu.pipeline_mode<synchronous>, transform_indices = @transform_10, window_bounds = array<i64: 1, 1>}, {pipeline_mode = #tpu.pipeline_mode<synchronous>, transform_indices = @transform_11, window_bounds = array<i64: 1, 2>}]} {
    %c0 = arith.constant 0 : index
    %c0_0 = arith.constant 0 : index
    %0 = vector.load %arg2[%c0, %c0_0] : memref<150x3xf32, #tpu.memory_space<vmem>>, vector<6x3xf32>
    %c0_1 = arith.constant 0 : index
    %c0_2 = arith.constant 0 : index
    %1 = vector.load %arg1[%c0_1, %c0_2] : memref<3x2048xf32, #tpu.memory_space<vmem>>, vector<3x1916xf32>
    %cst = arith.constant dense<0.000000e+00> : vector<6x1916xf32>
    %2 = tpu.matmul %0, %1, %cst {dimension_numbers = #tpu.dot_dimension_numbers<[1], [0], [0], [1], [0, 0, 1, 1], [], []>} : vector<6x3xf32>, vector<3x1916xf32>, vector<6x1916xf32> -> vector<6x1916xf32>
    %c6 = arith.constant 6 : index
    %c0_3 = arith.constant 0 : index
    %3 = vector.load %arg2[%c6, %c0_3] : memref<150x3xf32, #tpu.memory_space<vmem>>, vector<6x3xf32>
    %c0_4 = arith.constant 0 : index
    %c1 = arith.constant 1 : index
    %4 = vector.load %arg1[%c0_4, %c1] : memref<3x2048xf32, #tpu.memory_space<vmem>>, vector<3x1916xf32>
    %cst_5 = arith.constant dense<0.000000e+00> : vector<6x1916xf32>
    %5 = tpu.matmul %3, %4, %cst_5 {dimension_numbers = #tpu.dot_dimension_numbers<[1], [0], [0], [1], [0, 0, 1, 1], [], []>} : vector<6x3xf32>, vector<3x1916xf32>, vector<6x1916xf32> -> vector<6x1916xf32>
    %6 = arith.addf %2, %5 : vector<6x1916xf32>
    %c12 = arith.constant 12 : index
    %c0_6 = arith.constant 0 : index
    %7 = vector.load %arg2[%c12, %c0_6] : memref<150x3xf32, #tpu.memory_space<vmem>>, vector<6x3xf32>
    %c0_7 = arith.constant 0 : index
    %c2 = arith.constant 2 : index
    %8 = vector.load %arg1[%c0_7, %c2] : memref<3x2048xf32, #tpu.memory_space<vmem>>, vector<3x1916xf32>
    %cst_8 = arith.constant dense<0.000000e+00> : vector<6x1916xf32>
    %9 = tpu.matmul %7, %8, %cst_8 {dimension_numbers = #tpu.dot_dimension_numbers<[1], [0], [0], [1], [0, 0, 1, 1], [], []>} : vector<6x3xf32>, vector<3x1916xf32>, vector<6x1916xf32> -> vector<6x1916xf32>
    %10 = arith.addf %6, %9 : vector<6x1916xf32>
    %c18 = arith.constant 18 : index
    %c0_9 = arith.constant 0 : index
    %11 = vector.load %arg2[%c18, %c0_9] : memref<150x3xf32, #tpu.memory_space<vmem>>, vector<6x3xf32>
    %c0_10 = arith.constant 0 : index
    %c3 = arith.constant 3 : index
    %12 = vector.load %arg1[%c0_10, %c3] : memref<3x2048xf32, #tpu.memory_space<vmem>>, vector<3x1916xf32>
    %cst_11 = arith.constant dense<0.000000e+00> : vector<6x1916xf32>
    %13 = tpu.matmul %11, %12, %cst_11 {dimension_numbers = #tpu.dot_dimension_numbers<[1], [0], [0], [1], [0, 0, 1, 1], [], []>} : vector<6x3xf32>, vector<3x1916xf32>, vector<6x1916xf32> -> vector<6x1916xf32>
    %14 = arith.addf %10, %13 : vector<6x1916xf32>
    %c24 = arith.constant 24 : index
    %c0_12 = arith.constant 0 : index
    %15 = vector.load %arg2[%c24, %c0_12] : memref<150x3xf32, #tpu.memory_space<vmem>>, vector<6x3xf32>
    %c0_13 = arith.constant 0 : index
    %c4 = arith.constant 4 : index
    %16 = vector.load %arg1[%c0_13, %c4] : memref<3x2048xf32, #tpu.memory_space<vmem>>, vector<3x1916xf32>
    %cst_14 = arith.constant dense<0.000000e+00> : vector<6x1916xf32>
    %17 = tpu.matmul %15, %16, %cst_14 {dimension_numbers = #tpu.dot_dimension_numbers<[1], [0], [0], [1], [0, 0, 1, 1], [], []>} : vector<6x3xf32>, vector<3x1916xf32>, vector<6x1916xf32> -> vector<6x1916xf32>
    %18 = arith.addf %14, %17 : vector<6x1916xf32>
    %c30 = arith.constant 30 : index
    %c0_15 = arith.constant 0 : index
    %19 = vector.load %arg2[%c30, %c0_15] : memref<150x3xf32, #tpu.memory_space<vmem>>, vector<6x3xf32>
    %c0_16 = arith.constant 0 : index
    %c32 = arith.constant 32 : index
    %20 = vector.load %arg1[%c0_16, %c32] : memref<3x2048xf32, #tpu.memory_space<vmem>>, vector<3x1916xf32>
    %cst_17 = arith.constant dense<0.000000e+00> : vector<6x1916xf32>
    %21 = tpu.matmul %19, %20, %cst_17 {dimension_numbers = #tpu.dot_dimension_numbers<[1], [0], [0], [1], [0, 0, 1, 1], [], []>} : vector<6x3xf32>, vector<3x1916xf32>, vector<6x1916xf32> -> vector<6x1916xf32>
    %22 = arith.addf %18, %21 : vector<6x1916xf32>
    %c36 = arith.constant 36 : index
    %c0_18 = arith.constant 0 : index
    %23 = vector.load %arg2[%c36, %c0_18] : memref<150x3xf32, #tpu.memory_space<vmem>>, vector<6x3xf32>
    %c0_19 = arith.constant 0 : index
    %c33 = arith.constant 33 : index
    %24 = vector.load %arg1[%c0_19, %c33] : memref<3x2048xf32, #tpu.memory_space<vmem>>, vector<3x1916xf32>
    %cst_20 = arith.constant dense<0.000000e+00> : vector<6x1916xf32>
    %25 = tpu.matmul %23, %24, %cst_20 {dimension_numbers = #tpu.dot_dimension_numbers<[1], [0], [0], [1], [0, 0, 1, 1], [], []>} : vector<6x3xf32>, vector<3x1916xf32>, vector<6x1916xf32> -> vector<6x1916xf32>
    %26 = arith.addf %22, %25 : vector<6x1916xf32>
    %c42 = arith.constant 42 : index
    %c0_21 = arith.constant 0 : index
    %27 = vector.load %arg2[%c42, %c0_21] : memref<150x3xf32, #tpu.memory_space<vmem>>, vector<6x3xf32>
    %c0_22 = arith.constant 0 : index
    %c34 = arith.constant 34 : index
    %28 = vector.load %arg1[%c0_22, %c34] : memref<3x2048xf32, #tpu.memory_space<vmem>>, vector<3x1916xf32>
    %cst_23 = arith.constant dense<0.000000e+00> : vector<6x1916xf32>
    %29 = tpu.matmul %27, %28, %cst_23 {dimension_numbers = #tpu.dot_dimension_numbers<[1], [0], [0], [1], [0, 0, 1, 1], [], []>} : vector<6x3xf32>, vector<3x1916xf32>, vector<6x1916xf32> -> vector<6x1916xf32>
    %30 = arith.addf %26, %29 : vector<6x1916xf32>
    %c48 = arith.constant 48 : index
    %c0_24 = arith.constant 0 : index
    %31 = vector.load %arg2[%c48, %c0_24] : memref<150x3xf32, #tpu.memory_space<vmem>>, vector<6x3xf32>
    %c0_25 = arith.constant 0 : index
    %c35 = arith.constant 35 : index
    %32 = vector.load %arg1[%c0_25, %c35] : memref<3x2048xf32, #tpu.memory_space<vmem>>, vector<3x1916xf32>
    %cst_26 = arith.constant dense<0.000000e+00> : vector<6x1916xf32>
    %33 = tpu.matmul %31, %32, %cst_26 {dimension_numbers = #tpu.dot_dimension_numbers<[1], [0], [0], [1], [0, 0, 1, 1], [], []>} : vector<6x3xf32>, vector<3x1916xf32>, vector<6x1916xf32> -> vector<6x1916xf32>
    %34 = arith.addf %30, %33 : vector<6x1916xf32>
    %c54 = arith.constant 54 : index
    %c0_27 = arith.constant 0 : index
    %35 = vector.load %arg2[%c54, %c0_27] : memref<150x3xf32, #tpu.memory_space<vmem>>, vector<6x3xf32>
    %c0_28 = arith.constant 0 : index
    %c36_29 = arith.constant 36 : index
    %36 = vector.load %arg1[%c0_28, %c36_29] : memref<3x2048xf32, #tpu.memory_space<vmem>>, vector<3x1916xf32>
    %cst_30 = arith.constant dense<0.000000e+00> : vector<6x1916xf32>
    %37 = tpu.matmul %35, %36, %cst_30 {dimension_numbers = #tpu.dot_dimension_numbers<[1], [0], [0], [1], [0, 0, 1, 1], [], []>} : vector<6x3xf32>, vector<3x1916xf32>, vector<6x1916xf32> -> vector<6x1916xf32>
    %38 = arith.addf %34, %37 : vector<6x1916xf32>
    %c60 = arith.constant 60 : index
    %c0_31 = arith.constant 0 : index
    %39 = vector.load %arg2[%c60, %c0_31] : memref<150x3xf32, #tpu.memory_space<vmem>>, vector<6x3xf32>
    %c0_32 = arith.constant 0 : index
    %c64 = arith.constant 64 : index
    %40 = vector.load %arg1[%c0_32, %c64] : memref<3x2048xf32, #tpu.memory_space<vmem>>, vector<3x1916xf32>
    %cst_33 = arith.constant dense<0.000000e+00> : vector<6x1916xf32>
    %41 = tpu.matmul %39, %40, %cst_33 {dimension_numbers = #tpu.dot_dimension_numbers<[1], [0], [0], [1], [0, 0, 1, 1], [], []>} : vector<6x3xf32>, vector<3x1916xf32>, vector<6x1916xf32> -> vector<6x1916xf32>
    %42 = arith.addf %38, %41 : vector<6x1916xf32>
    %c66 = arith.constant 66 : index
    %c0_34 = arith.constant 0 : index
    %43 = vector.load %arg2[%c66, %c0_34] : memref<150x3xf32, #tpu.memory_space<vmem>>, vector<6x3xf32>
    %c0_35 = arith.constant 0 : index
    %c65 = arith.constant 65 : index
    %44 = vector.load %arg1[%c0_35, %c65] : memref<3x2048xf32, #tpu.memory_space<vmem>>, vector<3x1916xf32>
    %cst_36 = arith.constant dense<0.000000e+00> : vector<6x1916xf32>
    %45 = tpu.matmul %43, %44, %cst_36 {dimension_numbers = #tpu.dot_dimension_numbers<[1], [0], [0], [1], [0, 0, 1, 1], [], []>} : vector<6x3xf32>, vector<3x1916xf32>, vector<6x1916xf32> -> vector<6x1916xf32>
    %46 = arith.addf %42, %45 : vector<6x1916xf32>
    %c72 = arith.constant 72 : index
    %c0_37 = arith.constant 0 : index
    %47 = vector.load %arg2[%c72, %c0_37] : memref<150x3xf32, #tpu.memory_space<vmem>>, vector<6x3xf32>
    %c0_38 = arith.constant 0 : index
    %c66_39 = arith.constant 66 : index
    %48 = vector.load %arg1[%c0_38, %c66_39] : memref<3x2048xf32, #tpu.memory_space<vmem>>, vector<3x1916xf32>
    %cst_40 = arith.constant dense<0.000000e+00> : vector<6x1916xf32>
    %49 = tpu.matmul %47, %48, %cst_40 {dimension_numbers = #tpu.dot_dimension_numbers<[1], [0], [0], [1], [0, 0, 1, 1], [], []>} : vector<6x3xf32>, vector<3x1916xf32>, vector<6x1916xf32> -> vector<6x1916xf32>
    %50 = arith.addf %46, %49 : vector<6x1916xf32>
    %c78 = arith.constant 78 : index
    %c0_41 = arith.constant 0 : index
    %51 = vector.load %arg2[%c78, %c0_41] : memref<150x3xf32, #tpu.memory_space<vmem>>, vector<6x3xf32>
    %c0_42 = arith.constant 0 : index
    %c67 = arith.constant 67 : index
    %52 = vector.load %arg1[%c0_42, %c67] : memref<3x2048xf32, #tpu.memory_space<vmem>>, vector<3x1916xf32>
    %cst_43 = arith.constant dense<0.000000e+00> : vector<6x1916xf32>
    %53 = tpu.matmul %51, %52, %cst_43 {dimension_numbers = #tpu.dot_dimension_numbers<[1], [0], [0], [1], [0, 0, 1, 1], [], []>} : vector<6x3xf32>, vector<3x1916xf32>, vector<6x1916xf32> -> vector<6x1916xf32>
    %54 = arith.addf %50, %53 : vector<6x1916xf32>
    %c84 = arith.constant 84 : index
    %c0_44 = arith.constant 0 : index
    %55 = vector.load %arg2[%c84, %c0_44] : memref<150x3xf32, #tpu.memory_space<vmem>>, vector<6x3xf32>
    %c0_45 = arith.constant 0 : index
    %c68 = arith.constant 68 : index
    %56 = vector.load %arg1[%c0_45, %c68] : memref<3x2048xf32, #tpu.memory_space<vmem>>, vector<3x1916xf32>
    %cst_46 = arith.constant dense<0.000000e+00> : vector<6x1916xf32>
    %57 = tpu.matmul %55, %56, %cst_46 {dimension_numbers = #tpu.dot_dimension_numbers<[1], [0], [0], [1], [0, 0, 1, 1], [], []>} : vector<6x3xf32>, vector<3x1916xf32>, vector<6x1916xf32> -> vector<6x1916xf32>
    %58 = arith.addf %54, %57 : vector<6x1916xf32>
    %c90 = arith.constant 90 : index
    %c0_47 = arith.constant 0 : index
    %59 = vector.load %arg2[%c90, %c0_47] : memref<150x3xf32, #tpu.memory_space<vmem>>, vector<6x3xf32>
    %c0_48 = arith.constant 0 : index
    %c96 = arith.constant 96 : index
    %60 = vector.load %arg1[%c0_48, %c96] : memref<3x2048xf32, #tpu.memory_space<vmem>>, vector<3x1916xf32>
    %cst_49 = arith.constant dense<0.000000e+00> : vector<6x1916xf32>
    %61 = tpu.matmul %59, %60, %cst_49 {dimension_numbers = #tpu.dot_dimension_numbers<[1], [0], [0], [1], [0, 0, 1, 1], [], []>} : vector<6x3xf32>, vector<3x1916xf32>, vector<6x1916xf32> -> vector<6x1916xf32>
    %62 = arith.addf %58, %61 : vector<6x1916xf32>
    %c96_50 = arith.constant 96 : index
    %c0_51 = arith.constant 0 : index
    %63 = vector.load %arg2[%c96_50, %c0_51] : memref<150x3xf32, #tpu.memory_space<vmem>>, vector<6x3xf32>
    %c0_52 = arith.constant 0 : index
    %c97 = arith.constant 97 : index
    %64 = vector.load %arg1[%c0_52, %c97] : memref<3x2048xf32, #tpu.memory_space<vmem>>, vector<3x1916xf32>
    %cst_53 = arith.constant dense<0.000000e+00> : vector<6x1916xf32>
    %65 = tpu.matmul %63, %64, %cst_53 {dimension_numbers = #tpu.dot_dimension_numbers<[1], [0], [0], [1], [0, 0, 1, 1], [], []>} : vector<6x3xf32>, vector<3x1916xf32>, vector<6x1916xf32> -> vector<6x1916xf32>
    %66 = arith.addf %62, %65 : vector<6x1916xf32>
    %c102 = arith.constant 102 : index
    %c0_54 = arith.constant 0 : index
    %67 = vector.load %arg2[%c102, %c0_54] : memref<150x3xf32, #tpu.memory_space<vmem>>, vector<6x3xf32>
    %c0_55 = arith.constant 0 : index
    %c98 = arith.constant 98 : index
    %68 = vector.load %arg1[%c0_55, %c98] : memref<3x2048xf32, #tpu.memory_space<vmem>>, vector<3x1916xf32>
    %cst_56 = arith.constant dense<0.000000e+00> : vector<6x1916xf32>
    %69 = tpu.matmul %67, %68, %cst_56 {dimension_numbers = #tpu.dot_dimension_numbers<[1], [0], [0], [1], [0, 0, 1, 1], [], []>} : vector<6x3xf32>, vector<3x1916xf32>, vector<6x1916xf32> -> vector<6x1916xf32>
    %70 = arith.addf %66, %69 : vector<6x1916xf32>
    %c108 = arith.constant 108 : index
    %c0_57 = arith.constant 0 : index
    %71 = vector.load %arg2[%c108, %c0_57] : memref<150x3xf32, #tpu.memory_space<vmem>>, vector<6x3xf32>
    %c0_58 = arith.constant 0 : index
    %c99 = arith.constant 99 : index
    %72 = vector.load %arg1[%c0_58, %c99] : memref<3x2048xf32, #tpu.memory_space<vmem>>, vector<3x1916xf32>
    %cst_59 = arith.constant dense<0.000000e+00> : vector<6x1916xf32>
    %73 = tpu.matmul %71, %72, %cst_59 {dimension_numbers = #tpu.dot_dimension_numbers<[1], [0], [0], [1], [0, 0, 1, 1], [], []>} : vector<6x3xf32>, vector<3x1916xf32>, vector<6x1916xf32> -> vector<6x1916xf32>
    %74 = arith.addf %70, %73 : vector<6x1916xf32>
    %c114 = arith.constant 114 : index
    %c0_60 = arith.constant 0 : index
    %75 = vector.load %arg2[%c114, %c0_60] : memref<150x3xf32, #tpu.memory_space<vmem>>, vector<6x3xf32>
    %c0_61 = arith.constant 0 : index
    %c100 = arith.constant 100 : index
    %76 = vector.load %arg1[%c0_61, %c100] : memref<3x2048xf32, #tpu.memory_space<vmem>>, vector<3x1916xf32>
    %cst_62 = arith.constant dense<0.000000e+00> : vector<6x1916xf32>
    %77 = tpu.matmul %75, %76, %cst_62 {dimension_numbers = #tpu.dot_dimension_numbers<[1], [0], [0], [1], [0, 0, 1, 1], [], []>} : vector<6x3xf32>, vector<3x1916xf32>, vector<6x1916xf32> -> vector<6x1916xf32>
    %78 = arith.addf %74, %77 : vector<6x1916xf32>
    %c120 = arith.constant 120 : index
    %c0_63 = arith.constant 0 : index
    %79 = vector.load %arg2[%c120, %c0_63] : memref<150x3xf32, #tpu.memory_space<vmem>>, vector<6x3xf32>
    %c0_64 = arith.constant 0 : index
    %c128 = arith.constant 128 : index
    %80 = vector.load %arg1[%c0_64, %c128] : memref<3x2048xf32, #tpu.memory_space<vmem>>, vector<3x1916xf32>
    %cst_65 = arith.constant dense<0.000000e+00> : vector<6x1916xf32>
    %81 = tpu.matmul %79, %80, %cst_65 {dimension_numbers = #tpu.dot_dimension_numbers<[1], [0], [0], [1], [0, 0, 1, 1], [], []>} : vector<6x3xf32>, vector<3x1916xf32>, vector<6x1916xf32> -> vector<6x1916xf32>
    %82 = arith.addf %78, %81 : vector<6x1916xf32>
    %c126 = arith.constant 126 : index
    %c0_66 = arith.constant 0 : index
    %83 = vector.load %arg2[%c126, %c0_66] : memref<150x3xf32, #tpu.memory_space<vmem>>, vector<6x3xf32>
    %c0_67 = arith.constant 0 : index
    %c129 = arith.constant 129 : index
    %84 = vector.load %arg1[%c0_67, %c129] : memref<3x2048xf32, #tpu.memory_space<vmem>>, vector<3x1916xf32>
    %cst_68 = arith.constant dense<0.000000e+00> : vector<6x1916xf32>
    %85 = tpu.matmul %83, %84, %cst_68 {dimension_numbers = #tpu.dot_dimension_numbers<[1], [0], [0], [1], [0, 0, 1, 1], [], []>} : vector<6x3xf32>, vector<3x1916xf32>, vector<6x1916xf32> -> vector<6x1916xf32>
    %86 = arith.addf %82, %85 : vector<6x1916xf32>
    %c132 = arith.constant 132 : index
    %c0_69 = arith.constant 0 : index
    %87 = vector.load %arg2[%c132, %c0_69] : memref<150x3xf32, #tpu.memory_space<vmem>>, vector<6x3xf32>
    %c0_70 = arith.constant 0 : index
    %c130 = arith.constant 130 : index
    %88 = vector.load %arg1[%c0_70, %c130] : memref<3x2048xf32, #tpu.memory_space<vmem>>, vector<3x1916xf32>
    %cst_71 = arith.constant dense<0.000000e+00> : vector<6x1916xf32>
    %89 = tpu.matmul %87, %88, %cst_71 {dimension_numbers = #tpu.dot_dimension_numbers<[1], [0], [0], [1], [0, 0, 1, 1], [], []>} : vector<6x3xf32>, vector<3x1916xf32>, vector<6x1916xf32> -> vector<6x1916xf32>
    %90 = arith.addf %86, %89 : vector<6x1916xf32>
    %c138 = arith.constant 138 : index
    %c0_72 = arith.constant 0 : index
    %91 = vector.load %arg2[%c138, %c0_72] : memref<150x3xf32, #tpu.memory_space<vmem>>, vector<6x3xf32>
    %c0_73 = arith.constant 0 : index
    %c131 = arith.constant 131 : index
    %92 = vector.load %arg1[%c0_73, %c131] : memref<3x2048xf32, #tpu.memory_space<vmem>>, vector<3x1916xf32>
    %cst_74 = arith.constant dense<0.000000e+00> : vector<6x1916xf32>
    %93 = tpu.matmul %91, %92, %cst_74 {dimension_numbers = #tpu.dot_dimension_numbers<[1], [0], [0], [1], [0, 0, 1, 1], [], []>} : vector<6x3xf32>, vector<3x1916xf32>, vector<6x1916xf32> -> vector<6x1916xf32>
    %94 = arith.addf %90, %93 : vector<6x1916xf32>
    %c144 = arith.constant 144 : index
    %c0_75 = arith.constant 0 : index
    %95 = vector.load %arg2[%c144, %c0_75] : memref<150x3xf32, #tpu.memory_space<vmem>>, vector<6x3xf32>
    %c0_76 = arith.constant 0 : index
    %c132_77 = arith.constant 132 : index
    %96 = vector.load %arg1[%c0_76, %c132_77] : memref<3x2048xf32, #tpu.memory_space<vmem>>, vector<3x1916xf32>
    %cst_78 = arith.constant dense<0.000000e+00> : vector<6x1916xf32>
    %97 = tpu.matmul %95, %96, %cst_78 {dimension_numbers = #tpu.dot_dimension_numbers<[1], [0], [0], [1], [0, 0, 1, 1], [], []>} : vector<6x3xf32>, vector<3x1916xf32>, vector<6x1916xf32> -> vector<6x1916xf32>
    %98 = arith.addf %94, %97 : vector<6x1916xf32>
    %c0_79 = arith.constant 0 : index
    %c0_80 = arith.constant 0 : index
    %99 = vector.load %arg3[%c0_79, %c0_80] : memref<6x1xf32, #tpu.memory_space<vmem>>, vector<6x1xf32>
    %100 = vector.broadcast %99 : vector<6x1xf32> to vector<6x1916xf32>
    %101 = arith.addf %98, %100 : vector<6x1916xf32>
    %cst_81 = arith.constant 0.000000e+00 : f32
    %102 = vector.broadcast %cst_81 : f32 to vector<6x1916xf32>
    %103 = arith.maximumf %101, %102 : vector<6x1916xf32>
    %c0_82 = arith.constant 0 : index
    %c0_83 = arith.constant 0 : index
    %104 = vector.load %arg13[%c0_82, %c0_83] : memref<6x1916xf32, #tpu.memory_space<vmem>>, vector<6x1916xf32>
    tpu.vector_store %arg13[%c0_82, %c0_83], %103 {strides = array<i32>} : memref<6x1916xf32, #tpu.memory_space<vmem>>, vector<6x1916xf32>,
    %c0_84 = arith.constant 0 : index
    %c0_85 = arith.constant 0 : index
    %105 = vector.load %arg13[%c0_84, %c0_85] : memref<6x1916xf32, #tpu.memory_space<vmem>>, vector<6x1883xf32>
    %c0_86 = arith.constant 0 : index
    %c1_87 = arith.constant 1 : index
    %106 = vector.load %arg13[%c0_86, %c1_87] : memref<6x1916xf32, #tpu.memory_space<vmem>>, vector<6x1883xf32>
    %107 = arith.maximumf %105, %106 : vector<6x1883xf32>
    %c0_88 = arith.constant 0 : index
    %c32_89 = arith.constant 32 : index
    %108 = vector.load %arg13[%c0_88, %c32_89] : memref<6x1916xf32, #tpu.memory_space<vmem>>, vector<6x1883xf32>
    %c0_90 = arith.constant 0 : index
    %c33_91 = arith.constant 33 : index
    %109 = vector.load %arg13[%c0_90, %c33_91] : memref<6x1916xf32, #tpu.memory_space<vmem>>, vector<6x1883xf32>
    %110 = arith.maximumf %108, %109 : vector<6x1883xf32>
    %111 = arith.maximumf %107, %110 : vector<6x1883xf32>
    %c0_92 = arith.constant 0 : index
    %c0_93 = arith.constant 0 : index
    %112 = vector.load %arg14[%c0_92, %c0_93] : memref<6x1883xf32, #tpu.memory_space<vmem>>, vector<6x1883xf32>
    tpu.vector_store %arg14[%c0_92, %c0_93], %111 {strides = array<i32>} : memref<6x1883xf32, #tpu.memory_space<vmem>>, vector<6x1883xf32>,
    %c0_94 = arith.constant 0 : index
    %c0_95 = arith.constant 0 : index
    %113 = vector.load %arg4[%c0_94, %c0_95] : memref<400x6xf32, #tpu.memory_space<vmem>>, vector<16x6xf32>
    %c0_96 = arith.constant 0 : index
    %c0_97 = arith.constant 0 : index
    %114 = vector.load %arg14[%c0_96, %c0_97] : memref<6x1883xf32, #tpu.memory_space<vmem>>, vector<6x1619xf32>
    %cst_98 = arith.constant dense<0.000000e+00> : vector<16x1619xf32>
    %115 = tpu.matmul %113, %114, %cst_98 {dimension_numbers = #tpu.dot_dimension_numbers<[1], [0], [0], [1], [0, 0, 1, 1], [], []>} : vector<16x6xf32>, vector<6x1619xf32>, vector<16x1619xf32> -> vector<16x1619xf32>
    %c16 = arith.constant 16 : index
    %c0_99 = arith.constant 0 : index
    %116 = vector.load %arg4[%c16, %c0_99] : memref<400x6xf32, #tpu.memory_space<vmem>>, vector<16x6xf32>
    %c0_100 = arith.constant 0 : index
    %c2_101 = arith.constant 2 : index
    %117 = vector.load %arg14[%c0_100, %c2_101] : memref<6x1883xf32, #tpu.memory_space<vmem>>, vector<6x1619xf32>
    %cst_102 = arith.constant dense<0.000000e+00> : vector<16x1619xf32>
    %118 = tpu.matmul %116, %117, %cst_102 {dimension_numbers = #tpu.dot_dimension_numbers<[1], [0], [0], [1], [0, 0, 1, 1], [], []>} : vector<16x6xf32>, vector<6x1619xf32>, vector<16x1619xf32> -> vector<16x1619xf32>
    %119 = arith.addf %115, %118 : vector<16x1619xf32>
    %c32_103 = arith.constant 32 : index
    %c0_104 = arith.constant 0 : index
    %120 = vector.load %arg4[%c32_103, %c0_104] : memref<400x6xf32, #tpu.memory_space<vmem>>, vector<16x6xf32>
    %c0_105 = arith.constant 0 : index
    %c4_106 = arith.constant 4 : index
    %121 = vector.load %arg14[%c0_105, %c4_106] : memref<6x1883xf32, #tpu.memory_space<vmem>>, vector<6x1619xf32>
    %cst_107 = arith.constant dense<0.000000e+00> : vector<16x1619xf32>
    %122 = tpu.matmul %120, %121, %cst_107 {dimension_numbers = #tpu.dot_dimension_numbers<[1], [0], [0], [1], [0, 0, 1, 1], [], []>} : vector<16x6xf32>, vector<6x1619xf32>, vector<16x1619xf32> -> vector<16x1619xf32>
    %123 = arith.addf %119, %122 : vector<16x1619xf32>
    %c48_108 = arith.constant 48 : index
    %c0_109 = arith.constant 0 : index
    %124 = vector.load %arg4[%c48_108, %c0_109] : memref<400x6xf32, #tpu.memory_space<vmem>>, vector<16x6xf32>
    %c0_110 = arith.constant 0 : index
    %c6_111 = arith.constant 6 : index
    %125 = vector.load %arg14[%c0_110, %c6_111] : memref<6x1883xf32, #tpu.memory_space<vmem>>, vector<6x1619xf32>
    %cst_112 = arith.constant dense<0.000000e+00> : vector<16x1619xf32>
    %126 = tpu.matmul %124, %125, %cst_112 {dimension_numbers = #tpu.dot_dimension_numbers<[1], [0], [0], [1], [0, 0, 1, 1], [], []>} : vector<16x6xf32>, vector<6x1619xf32>, vector<16x1619xf32> -> vector<16x1619xf32>
    %127 = arith.addf %123, %126 : vector<16x1619xf32>
    %c64_113 = arith.constant 64 : index
    %c0_114 = arith.constant 0 : index
    %128 = vector.load %arg4[%c64_113, %c0_114] : memref<400x6xf32, #tpu.memory_space<vmem>>, vector<16x6xf32>
    %c0_115 = arith.constant 0 : index
    %c8 = arith.constant 8 : index
    %129 = vector.load %arg14[%c0_115, %c8] : memref<6x1883xf32, #tpu.memory_space<vmem>>, vector<6x1619xf32>
    %cst_116 = arith.constant dense<0.000000e+00> : vector<16x1619xf32>
    %130 = tpu.matmul %128, %129, %cst_116 {dimension_numbers = #tpu.dot_dimension_numbers<[1], [0], [0], [1], [0, 0, 1, 1], [], []>} : vector<16x6xf32>, vector<6x1619xf32>, vector<16x1619xf32> -> vector<16x1619xf32>
    %131 = arith.addf %127, %130 : vector<16x1619xf32>
    %c80 = arith.constant 80 : index
    %c0_117 = arith.constant 0 : index
    %132 = vector.load %arg4[%c80, %c0_117] : memref<400x6xf32, #tpu.memory_space<vmem>>, vector<16x6xf32>
    %c0_118 = arith.constant 0 : index
    %c64_119 = arith.constant 64 : index
    %133 = vector.load %arg14[%c0_118, %c64_119] : memref<6x1883xf32, #tpu.memory_space<vmem>>, vector<6x1619xf32>
    %cst_120 = arith.constant dense<0.000000e+00> : vector<16x1619xf32>
    %134 = tpu.matmul %132, %133, %cst_120 {dimension_numbers = #tpu.dot_dimension_numbers<[1], [0], [0], [1], [0, 0, 1, 1], [], []>} : vector<16x6xf32>, vector<6x1619xf32>, vector<16x1619xf32> -> vector<16x1619xf32>
    %135 = arith.addf %131, %134 : vector<16x1619xf32>
    %c96_121 = arith.constant 96 : index
    %c0_122 = arith.constant 0 : index
    %136 = vector.load %arg4[%c96_121, %c0_122] : memref<400x6xf32, #tpu.memory_space<vmem>>, vector<16x6xf32>
    %c0_123 = arith.constant 0 : index
    %c66_124 = arith.constant 66 : index
    %137 = vector.load %arg14[%c0_123, %c66_124] : memref<6x1883xf32, #tpu.memory_space<vmem>>, vector<6x1619xf32>
    %cst_125 = arith.constant dense<0.000000e+00> : vector<16x1619xf32>
    %138 = tpu.matmul %136, %137, %cst_125 {dimension_numbers = #tpu.dot_dimension_numbers<[1], [0], [0], [1], [0, 0, 1, 1], [], []>} : vector<16x6xf32>, vector<6x1619xf32>, vector<16x1619xf32> -> vector<16x1619xf32>
    %139 = arith.addf %135, %138 : vector<16x1619xf32>
    %c112 = arith.constant 112 : index
    %c0_126 = arith.constant 0 : index
    %140 = vector.load %arg4[%c112, %c0_126] : memref<400x6xf32, #tpu.memory_space<vmem>>, vector<16x6xf32>
    %c0_127 = arith.constant 0 : index
    %c68_128 = arith.constant 68 : index
    %141 = vector.load %arg14[%c0_127, %c68_128] : memref<6x1883xf32, #tpu.memory_space<vmem>>, vector<6x1619xf32>
    %cst_129 = arith.constant dense<0.000000e+00> : vector<16x1619xf32>
    %142 = tpu.matmul %140, %141, %cst_129 {dimension_numbers = #tpu.dot_dimension_numbers<[1], [0], [0], [1], [0, 0, 1, 1], [], []>} : vector<16x6xf32>, vector<6x1619xf32>, vector<16x1619xf32> -> vector<16x1619xf32>
    %143 = arith.addf %139, %142 : vector<16x1619xf32>
    %c128_130 = arith.constant 128 : index
    %c0_131 = arith.constant 0 : index
    %144 = vector.load %arg4[%c128_130, %c0_131] : memref<400x6xf32, #tpu.memory_space<vmem>>, vector<16x6xf32>
    %c0_132 = arith.constant 0 : index
    %c70 = arith.constant 70 : index
    %145 = vector.load %arg14[%c0_132, %c70] : memref<6x1883xf32, #tpu.memory_space<vmem>>, vector<6x1619xf32>
    %cst_133 = arith.constant dense<0.000000e+00> : vector<16x1619xf32>
    %146 = tpu.matmul %144, %145, %cst_133 {dimension_numbers = #tpu.dot_dimension_numbers<[1], [0], [0], [1], [0, 0, 1, 1], [], []>} : vector<16x6xf32>, vector<6x1619xf32>, vector<16x1619xf32> -> vector<16x1619xf32>
    %147 = arith.addf %143, %146 : vector<16x1619xf32>
    %c144_134 = arith.constant 144 : index
    %c0_135 = arith.constant 0 : index
    %148 = vector.load %arg4[%c144_134, %c0_135] : memref<400x6xf32, #tpu.memory_space<vmem>>, vector<16x6xf32>
    %c0_136 = arith.constant 0 : index
    %c72_137 = arith.constant 72 : index
    %149 = vector.load %arg14[%c0_136, %c72_137] : memref<6x1883xf32, #tpu.memory_space<vmem>>, vector<6x1619xf32>
    %cst_138 = arith.constant dense<0.000000e+00> : vector<16x1619xf32>
    %150 = tpu.matmul %148, %149, %cst_138 {dimension_numbers = #tpu.dot_dimension_numbers<[1], [0], [0], [1], [0, 0, 1, 1], [], []>} : vector<16x6xf32>, vector<6x1619xf32>, vector<16x1619xf32> -> vector<16x1619xf32>
    %151 = arith.addf %147, %150 : vector<16x1619xf32>
    %c160 = arith.constant 160 : index
    %c0_139 = arith.constant 0 : index
    %152 = vector.load %arg4[%c160, %c0_139] : memref<400x6xf32, #tpu.memory_space<vmem>>, vector<16x6xf32>
    %c0_140 = arith.constant 0 : index
    %c128_141 = arith.constant 128 : index
    %153 = vector.load %arg14[%c0_140, %c128_141] : memref<6x1883xf32, #tpu.memory_space<vmem>>, vector<6x1619xf32>
    %cst_142 = arith.constant dense<0.000000e+00> : vector<16x1619xf32>
    %154 = tpu.matmul %152, %153, %cst_142 {dimension_numbers = #tpu.dot_dimension_numbers<[1], [0], [0], [1], [0, 0, 1, 1], [], []>} : vector<16x6xf32>, vector<6x1619xf32>, vector<16x1619xf32> -> vector<16x1619xf32>
    %155 = arith.addf %151, %154 : vector<16x1619xf32>
    %c176 = arith.constant 176 : index
    %c0_143 = arith.constant 0 : index
    %156 = vector.load %arg4[%c176, %c0_143] : memref<400x6xf32, #tpu.memory_space<vmem>>, vector<16x6xf32>
    %c0_144 = arith.constant 0 : index
    %c130_145 = arith.constant 130 : index
    %157 = vector.load %arg14[%c0_144, %c130_145] : memref<6x1883xf32, #tpu.memory_space<vmem>>, vector<6x1619xf32>
    %cst_146 = arith.constant dense<0.000000e+00> : vector<16x1619xf32>
    %158 = tpu.matmul %156, %157, %cst_146 {dimension_numbers = #tpu.dot_dimension_numbers<[1], [0], [0], [1], [0, 0, 1, 1], [], []>} : vector<16x6xf32>, vector<6x1619xf32>, vector<16x1619xf32> -> vector<16x1619xf32>
    %159 = arith.addf %155, %158 : vector<16x1619xf32>
    %c192 = arith.constant 192 : index
    %c0_147 = arith.constant 0 : index
    %160 = vector.load %arg4[%c192, %c0_147] : memref<400x6xf32, #tpu.memory_space<vmem>>, vector<16x6xf32>
    %c0_148 = arith.constant 0 : index
    %c132_149 = arith.constant 132 : index
    %161 = vector.load %arg14[%c0_148, %c132_149] : memref<6x1883xf32, #tpu.memory_space<vmem>>, vector<6x1619xf32>
    %cst_150 = arith.constant dense<0.000000e+00> : vector<16x1619xf32>
    %162 = tpu.matmul %160, %161, %cst_150 {dimension_numbers = #tpu.dot_dimension_numbers<[1], [0], [0], [1], [0, 0, 1, 1], [], []>} : vector<16x6xf32>, vector<6x1619xf32>, vector<16x1619xf32> -> vector<16x1619xf32>
    %163 = arith.addf %159, %162 : vector<16x1619xf32>
    %c208 = arith.constant 208 : index
    %c0_151 = arith.constant 0 : index
    %164 = vector.load %arg4[%c208, %c0_151] : memref<400x6xf32, #tpu.memory_space<vmem>>, vector<16x6xf32>
    %c0_152 = arith.constant 0 : index
    %c134 = arith.constant 134 : index
    %165 = vector.load %arg14[%c0_152, %c134] : memref<6x1883xf32, #tpu.memory_space<vmem>>, vector<6x1619xf32>
    %cst_153 = arith.constant dense<0.000000e+00> : vector<16x1619xf32>
    %166 = tpu.matmul %164, %165, %cst_153 {dimension_numbers = #tpu.dot_dimension_numbers<[1], [0], [0], [1], [0, 0, 1, 1], [], []>} : vector<16x6xf32>, vector<6x1619xf32>, vector<16x1619xf32> -> vector<16x1619xf32>
    %167 = arith.addf %163, %166 : vector<16x1619xf32>
    %c224 = arith.constant 224 : index
    %c0_154 = arith.constant 0 : index
    %168 = vector.load %arg4[%c224, %c0_154] : memref<400x6xf32, #tpu.memory_space<vmem>>, vector<16x6xf32>
    %c0_155 = arith.constant 0 : index
    %c136 = arith.constant 136 : index
    %169 = vector.load %arg14[%c0_155, %c136] : memref<6x1883xf32, #tpu.memory_space<vmem>>, vector<6x1619xf32>
    %cst_156 = arith.constant dense<0.000000e+00> : vector<16x1619xf32>
    %170 = tpu.matmul %168, %169, %cst_156 {dimension_numbers = #tpu.dot_dimension_numbers<[1], [0], [0], [1], [0, 0, 1, 1], [], []>} : vector<16x6xf32>, vector<6x1619xf32>, vector<16x1619xf32> -> vector<16x1619xf32>
    %171 = arith.addf %167, %170 : vector<16x1619xf32>
    %c240 = arith.constant 240 : index
    %c0_157 = arith.constant 0 : index
    %172 = vector.load %arg4[%c240, %c0_157] : memref<400x6xf32, #tpu.memory_space<vmem>>, vector<16x6xf32>
    %c0_158 = arith.constant 0 : index
    %c192_159 = arith.constant 192 : index
    %173 = vector.load %arg14[%c0_158, %c192_159] : memref<6x1883xf32, #tpu.memory_space<vmem>>, vector<6x1619xf32>
    %cst_160 = arith.constant dense<0.000000e+00> : vector<16x1619xf32>
    %174 = tpu.matmul %172, %173, %cst_160 {dimension_numbers = #tpu.dot_dimension_numbers<[1], [0], [0], [1], [0, 0, 1, 1], [], []>} : vector<16x6xf32>, vector<6x1619xf32>, vector<16x1619xf32> -> vector<16x1619xf32>
    %175 = arith.addf %171, %174 : vector<16x1619xf32>
    %c256 = arith.constant 256 : index
    %c0_161 = arith.constant 0 : index
    %176 = vector.load %arg4[%c256, %c0_161] : memref<400x6xf32, #tpu.memory_space<vmem>>, vector<16x6xf32>
    %c0_162 = arith.constant 0 : index
    %c194 = arith.constant 194 : index
    %177 = vector.load %arg14[%c0_162, %c194] : memref<6x1883xf32, #tpu.memory_space<vmem>>, vector<6x1619xf32>
    %cst_163 = arith.constant dense<0.000000e+00> : vector<16x1619xf32>
    %178 = tpu.matmul %176, %177, %cst_163 {dimension_numbers = #tpu.dot_dimension_numbers<[1], [0], [0], [1], [0, 0, 1, 1], [], []>} : vector<16x6xf32>, vector<6x1619xf32>, vector<16x1619xf32> -> vector<16x1619xf32>
    %179 = arith.addf %175, %178 : vector<16x1619xf32>
    %c272 = arith.constant 272 : index
    %c0_164 = arith.constant 0 : index
    %180 = vector.load %arg4[%c272, %c0_164] : memref<400x6xf32, #tpu.memory_space<vmem>>, vector<16x6xf32>
    %c0_165 = arith.constant 0 : index
    %c196 = arith.constant 196 : index
    %181 = vector.load %arg14[%c0_165, %c196] : memref<6x1883xf32, #tpu.memory_space<vmem>>, vector<6x1619xf32>
    %cst_166 = arith.constant dense<0.000000e+00> : vector<16x1619xf32>
    %182 = tpu.matmul %180, %181, %cst_166 {dimension_numbers = #tpu.dot_dimension_numbers<[1], [0], [0], [1], [0, 0, 1, 1], [], []>} : vector<16x6xf32>, vector<6x1619xf32>, vector<16x1619xf32> -> vector<16x1619xf32>
    %183 = arith.addf %179, %182 : vector<16x1619xf32>
    %c288 = arith.constant 288 : index
    %c0_167 = arith.constant 0 : index
    %184 = vector.load %arg4[%c288, %c0_167] : memref<400x6xf32, #tpu.memory_space<vmem>>, vector<16x6xf32>
    %c0_168 = arith.constant 0 : index
    %c198 = arith.constant 198 : index
    %185 = vector.load %arg14[%c0_168, %c198] : memref<6x1883xf32, #tpu.memory_space<vmem>>, vector<6x1619xf32>
    %cst_169 = arith.constant dense<0.000000e+00> : vector<16x1619xf32>
    %186 = tpu.matmul %184, %185, %cst_169 {dimension_numbers = #tpu.dot_dimension_numbers<[1], [0], [0], [1], [0, 0, 1, 1], [], []>} : vector<16x6xf32>, vector<6x1619xf32>, vector<16x1619xf32> -> vector<16x1619xf32>
    %187 = arith.addf %183, %186 : vector<16x1619xf32>
    %c304 = arith.constant 304 : index
    %c0_170 = arith.constant 0 : index
    %188 = vector.load %arg4[%c304, %c0_170] : memref<400x6xf32, #tpu.memory_space<vmem>>, vector<16x6xf32>
    %c0_171 = arith.constant 0 : index
    %c200 = arith.constant 200 : index
    %189 = vector.load %arg14[%c0_171, %c200] : memref<6x1883xf32, #tpu.memory_space<vmem>>, vector<6x1619xf32>
    %cst_172 = arith.constant dense<0.000000e+00> : vector<16x1619xf32>
    %190 = tpu.matmul %188, %189, %cst_172 {dimension_numbers = #tpu.dot_dimension_numbers<[1], [0], [0], [1], [0, 0, 1, 1], [], []>} : vector<16x6xf32>, vector<6x1619xf32>, vector<16x1619xf32> -> vector<16x1619xf32>
    %191 = arith.addf %187, %190 : vector<16x1619xf32>
    %c320 = arith.constant 320 : index
    %c0_173 = arith.constant 0 : index
    %192 = vector.load %arg4[%c320, %c0_173] : memref<400x6xf32, #tpu.memory_space<vmem>>, vector<16x6xf32>
    %c0_174 = arith.constant 0 : index
    %c256_175 = arith.constant 256 : index
    %193 = vector.load %arg14[%c0_174, %c256_175] : memref<6x1883xf32, #tpu.memory_space<vmem>>, vector<6x1619xf32>
    %cst_176 = arith.constant dense<0.000000e+00> : vector<16x1619xf32>
    %194 = tpu.matmul %192, %193, %cst_176 {dimension_numbers = #tpu.dot_dimension_numbers<[1], [0], [0], [1], [0, 0, 1, 1], [], []>} : vector<16x6xf32>, vector<6x1619xf32>, vector<16x1619xf32> -> vector<16x1619xf32>
    %195 = arith.addf %191, %194 : vector<16x1619xf32>
    %c336 = arith.constant 336 : index
    %c0_177 = arith.constant 0 : index
    %196 = vector.load %arg4[%c336, %c0_177] : memref<400x6xf32, #tpu.memory_space<vmem>>, vector<16x6xf32>
    %c0_178 = arith.constant 0 : index
    %c258 = arith.constant 258 : index
    %197 = vector.load %arg14[%c0_178, %c258] : memref<6x1883xf32, #tpu.memory_space<vmem>>, vector<6x1619xf32>
    %cst_179 = arith.constant dense<0.000000e+00> : vector<16x1619xf32>
    %198 = tpu.matmul %196, %197, %cst_179 {dimension_numbers = #tpu.dot_dimension_numbers<[1], [0], [0], [1], [0, 0, 1, 1], [], []>} : vector<16x6xf32>, vector<6x1619xf32>, vector<16x1619xf32> -> vector<16x1619xf32>
    %199 = arith.addf %195, %198 : vector<16x1619xf32>
    %c352 = arith.constant 352 : index
    %c0_180 = arith.constant 0 : index
    %200 = vector.load %arg4[%c352, %c0_180] : memref<400x6xf32, #tpu.memory_space<vmem>>, vector<16x6xf32>
    %c0_181 = arith.constant 0 : index
    %c260 = arith.constant 260 : index
    %201 = vector.load %arg14[%c0_181, %c260] : memref<6x1883xf32, #tpu.memory_space<vmem>>, vector<6x1619xf32>
    %cst_182 = arith.constant dense<0.000000e+00> : vector<16x1619xf32>
    %202 = tpu.matmul %200, %201, %cst_182 {dimension_numbers = #tpu.dot_dimension_numbers<[1], [0], [0], [1], [0, 0, 1, 1], [], []>} : vector<16x6xf32>, vector<6x1619xf32>, vector<16x1619xf32> -> vector<16x1619xf32>
    %203 = arith.addf %199, %202 : vector<16x1619xf32>
    %c368 = arith.constant 368 : index
    %c0_183 = arith.constant 0 : index
    %204 = vector.load %arg4[%c368, %c0_183] : memref<400x6xf32, #tpu.memory_space<vmem>>, vector<16x6xf32>
    %c0_184 = arith.constant 0 : index
    %c262 = arith.constant 262 : index
    %205 = vector.load %arg14[%c0_184, %c262] : memref<6x1883xf32, #tpu.memory_space<vmem>>, vector<6x1619xf32>
    %cst_185 = arith.constant dense<0.000000e+00> : vector<16x1619xf32>
    %206 = tpu.matmul %204, %205, %cst_185 {dimension_numbers = #tpu.dot_dimension_numbers<[1], [0], [0], [1], [0, 0, 1, 1], [], []>} : vector<16x6xf32>, vector<6x1619xf32>, vector<16x1619xf32> -> vector<16x1619xf32>
    %207 = arith.addf %203, %206 : vector<16x1619xf32>
    %c384 = arith.constant 384 : index
    %c0_186 = arith.constant 0 : index
    %208 = vector.load %arg4[%c384, %c0_186] : memref<400x6xf32, #tpu.memory_space<vmem>>, vector<16x6xf32>
    %c0_187 = arith.constant 0 : index
    %c264 = arith.constant 264 : index
    %209 = vector.load %arg14[%c0_187, %c264] : memref<6x1883xf32, #tpu.memory_space<vmem>>, vector<6x1619xf32>
    %cst_188 = arith.constant dense<0.000000e+00> : vector<16x1619xf32>
    %210 = tpu.matmul %208, %209, %cst_188 {dimension_numbers = #tpu.dot_dimension_numbers<[1], [0], [0], [1], [0, 0, 1, 1], [], []>} : vector<16x6xf32>, vector<6x1619xf32>, vector<16x1619xf32> -> vector<16x1619xf32>
    %211 = arith.addf %207, %210 : vector<16x1619xf32>
    %c0_189 = arith.constant 0 : index
    %c0_190 = arith.constant 0 : index
    %212 = vector.load %arg5[%c0_189, %c0_190] : memref<16x1xf32, #tpu.memory_space<vmem>>, vector<16x1xf32>
    %213 = vector.broadcast %212 : vector<16x1xf32> to vector<16x1619xf32>
    %214 = arith.addf %211, %213 : vector<16x1619xf32>
    %cst_191 = arith.constant 0.000000e+00 : f32
    %215 = vector.broadcast %cst_191 : f32 to vector<16x1619xf32>
    %216 = arith.maximumf %214, %215 : vector<16x1619xf32>
    %c0_192 = arith.constant 0 : index
    %c0_193 = arith.constant 0 : index
    %217 = vector.load %arg15[%c0_192, %c0_193] : memref<16x1619xf32, #tpu.memory_space<vmem>>, vector<16x1619xf32>
    tpu.vector_store %arg15[%c0_192, %c0_193], %216 {strides = array<i32>} : memref<16x1619xf32, #tpu.memory_space<vmem>>, vector<16x1619xf32>,
    %c0_194 = arith.constant 0 : index
    %c0_195 = arith.constant 0 : index
    %218 = vector.load %arg15[%c0_194, %c0_195] : memref<16x1619xf32, #tpu.memory_space<vmem>>, vector<16x1553xf32>
    %c0_196 = arith.constant 0 : index
    %c2_197 = arith.constant 2 : index
    %219 = vector.load %arg15[%c0_196, %c2_197] : memref<16x1619xf32, #tpu.memory_space<vmem>>, vector<16x1553xf32>
    %220 = arith.maximumf %218, %219 : vector<16x1553xf32>
    %c0_198 = arith.constant 0 : index
    %c64_199 = arith.constant 64 : index
    %221 = vector.load %arg15[%c0_198, %c64_199] : memref<16x1619xf32, #tpu.memory_space<vmem>>, vector<16x1553xf32>
    %c0_200 = arith.constant 0 : index
    %c66_201 = arith.constant 66 : index
    %222 = vector.load %arg15[%c0_200, %c66_201] : memref<16x1619xf32, #tpu.memory_space<vmem>>, vector<16x1553xf32>
    %223 = arith.maximumf %221, %222 : vector<16x1553xf32>
    %224 = arith.maximumf %220, %223 : vector<16x1553xf32>
    %c0_202 = arith.constant 0 : index
    %c0_203 = arith.constant 0 : index
    %225 = vector.load %arg16[%c0_202, %c0_203] : memref<16x1553xf32, #tpu.memory_space<vmem>>, vector<16x1553xf32>
    tpu.vector_store %arg16[%c0_202, %c0_203], %224 {strides = array<i32>} : memref<16x1553xf32, #tpu.memory_space<vmem>>, vector<16x1553xf32>,
    %c0_204 = arith.constant 0 : index
    %c0_205 = arith.constant 0 : index
    %226 = vector.load %arg16[%c0_204, %c0_205] : memref<16x1553xf32, #tpu.memory_space<vmem>>, vector<16x1xf32>
    %c0_206 = arith.constant 0 : index
    %c0_207 = arith.constant 0 : index
    %227 = vector.load %arg17[%c0_206, %c0_207] : memref<400x2xf32, #tpu.memory_space<vmem>>, vector<16x1xf32>
    tpu.vector_store %arg17[%c0_206, %c0_207], %226 {strides = array<i32>} : memref<400x2xf32, #tpu.memory_space<vmem>>, vector<16x1xf32>,
    %c0_208 = arith.constant 0 : index
    %c1024 = arith.constant 1024 : index
    %228 = vector.load %arg16[%c0_208, %c1024] : memref<16x1553xf32, #tpu.memory_space<vmem>>, vector<16x1xf32>
    %c0_209 = arith.constant 0 : index
    %c1_210 = arith.constant 1 : index
    %229 = vector.load %arg17[%c0_209, %c1_210] : memref<400x2xf32, #tpu.memory_space<vmem>>, vector<16x1xf32>
    tpu.vector_store %arg17[%c0_209, %c1_210], %228 {strides = array<i32>} : memref<400x2xf32, #tpu.memory_space<vmem>>, vector<16x1xf32>,
    %c0_211 = arith.constant 0 : index
    %c4_212 = arith.constant 4 : index
    %230 = vector.load %arg16[%c0_211, %c4_212] : memref<16x1553xf32, #tpu.memory_space<vmem>>, vector<16x1xf32>
    %c16_213 = arith.constant 16 : index
    %c0_214 = arith.constant 0 : index
    %231 = vector.load %arg17[%c16_213, %c0_214] : memref<400x2xf32, #tpu.memory_space<vmem>>, vector<16x1xf32>
    tpu.vector_store %arg17[%c16_213, %c0_214], %230 {strides = array<i32>} : memref<400x2xf32, #tpu.memory_space<vmem>>, vector<16x1xf32>,
    %c0_215 = arith.constant 0 : index
    %c1028 = arith.constant 1028 : index
    %232 = vector.load %arg16[%c0_215, %c1028] : memref<16x1553xf32, #tpu.memory_space<vmem>>, vector<16x1xf32>
    %c16_216 = arith.constant 16 : index
    %c1_217 = arith.constant 1 : index
    %233 = vector.load %arg17[%c16_216, %c1_217] : memref<400x2xf32, #tpu.memory_space<vmem>>, vector<16x1xf32>
    tpu.vector_store %arg17[%c16_216, %c1_217], %232 {strides = array<i32>} : memref<400x2xf32, #tpu.memory_space<vmem>>, vector<16x1xf32>,
    %c0_218 = arith.constant 0 : index
    %c8_219 = arith.constant 8 : index
    %234 = vector.load %arg16[%c0_218, %c8_219] : memref<16x1553xf32, #tpu.memory_space<vmem>>, vector<16x1xf32>
    %c32_220 = arith.constant 32 : index
    %c0_221 = arith.constant 0 : index
    %235 = vector.load %arg17[%c32_220, %c0_221] : memref<400x2xf32, #tpu.memory_space<vmem>>, vector<16x1xf32>
    tpu.vector_store %arg17[%c32_220, %c0_221], %234 {strides = array<i32>} : memref<400x2xf32, #tpu.memory_space<vmem>>, vector<16x1xf32>,
    %c0_222 = arith.constant 0 : index
    %c1032 = arith.constant 1032 : index
    %236 = vector.load %arg16[%c0_222, %c1032] : memref<16x1553xf32, #tpu.memory_space<vmem>>, vector<16x1xf32>
    %c32_223 = arith.constant 32 : index
    %c1_224 = arith.constant 1 : index
    %237 = vector.load %arg17[%c32_223, %c1_224] : memref<400x2xf32, #tpu.memory_space<vmem>>, vector<16x1xf32>
    tpu.vector_store %arg17[%c32_223, %c1_224], %236 {strides = array<i32>} : memref<400x2xf32, #tpu.memory_space<vmem>>, vector<16x1xf32>,
    %c0_225 = arith.constant 0 : index
    %c12_226 = arith.constant 12 : index
    %238 = vector.load %arg16[%c0_225, %c12_226] : memref<16x1553xf32, #tpu.memory_space<vmem>>, vector<16x1xf32>
    %c48_227 = arith.constant 48 : index
    %c0_228 = arith.constant 0 : index
    %239 = vector.load %arg17[%c48_227, %c0_228] : memref<400x2xf32, #tpu.memory_space<vmem>>, vector<16x1xf32>
    tpu.vector_store %arg17[%c48_227, %c0_228], %238 {strides = array<i32>} : memref<400x2xf32, #tpu.memory_space<vmem>>, vector<16x1xf32>,
    %c0_229 = arith.constant 0 : index
    %c1036 = arith.constant 1036 : index
    %240 = vector.load %arg16[%c0_229, %c1036] : memref<16x1553xf32, #tpu.memory_space<vmem>>, vector<16x1xf32>
    %c48_230 = arith.constant 48 : index
    %c1_231 = arith.constant 1 : index
    %241 = vector.load %arg17[%c48_230, %c1_231] : memref<400x2xf32, #tpu.memory_space<vmem>>, vector<16x1xf32>
    tpu.vector_store %arg17[%c48_230, %c1_231], %240 {strides = array<i32>} : memref<400x2xf32, #tpu.memory_space<vmem>>, vector<16x1xf32>,
    %c0_232 = arith.constant 0 : index
    %c16_233 = arith.constant 16 : index
    %242 = vector.load %arg16[%c0_232, %c16_233] : memref<16x1553xf32, #tpu.memory_space<vmem>>, vector<16x1xf32>
    %c64_234 = arith.constant 64 : index
    %c0_235 = arith.constant 0 : index
    %243 = vector.load %arg17[%c64_234, %c0_235] : memref<400x2xf32, #tpu.memory_space<vmem>>, vector<16x1xf32>
    tpu.vector_store %arg17[%c64_234, %c0_235], %242 {strides = array<i32>} : memref<400x2xf32, #tpu.memory_space<vmem>>, vector<16x1xf32>,
    %c0_236 = arith.constant 0 : index
    %c1040 = arith.constant 1040 : index
    %244 = vector.load %arg16[%c0_236, %c1040] : memref<16x1553xf32, #tpu.memory_space<vmem>>, vector<16x1xf32>
    %c64_237 = arith.constant 64 : index
    %c1_238 = arith.constant 1 : index
    %245 = vector.load %arg17[%c64_237, %c1_238] : memref<400x2xf32, #tpu.memory_space<vmem>>, vector<16x1xf32>
    tpu.vector_store %arg17[%c64_237, %c1_238], %244 {strides = array<i32>} : memref<400x2xf32, #tpu.memory_space<vmem>>, vector<16x1xf32>,
    %c0_239 = arith.constant 0 : index
    %c128_240 = arith.constant 128 : index
    %246 = vector.load %arg16[%c0_239, %c128_240] : memref<16x1553xf32, #tpu.memory_space<vmem>>, vector<16x1xf32>
    %c80_241 = arith.constant 80 : index
    %c0_242 = arith.constant 0 : index
    %247 = vector.load %arg17[%c80_241, %c0_242] : memref<400x2xf32, #tpu.memory_space<vmem>>, vector<16x1xf32>
    tpu.vector_store %arg17[%c80_241, %c0_242], %246 {strides = array<i32>} : memref<400x2xf32, #tpu.memory_space<vmem>>, vector<16x1xf32>,
    %c0_243 = arith.constant 0 : index
    %c1152 = arith.constant 1152 : index
    %248 = vector.load %arg16[%c0_243, %c1152] : memref<16x1553xf32, #tpu.memory_space<vmem>>, vector<16x1xf32>
    %c80_244 = arith.constant 80 : index
    %c1_245 = arith.constant 1 : index
    %249 = vector.load %arg17[%c80_244, %c1_245] : memref<400x2xf32, #tpu.memory_space<vmem>>, vector<16x1xf32>
    tpu.vector_store %arg17[%c80_244, %c1_245], %248 {strides = array<i32>} : memref<400x2xf32, #tpu.memory_space<vmem>>, vector<16x1xf32>,
    %c0_246 = arith.constant 0 : index
    %c132_247 = arith.constant 132 : index
    %250 = vector.load %arg16[%c0_246, %c132_247] : memref<16x1553xf32, #tpu.memory_space<vmem>>, vector<16x1xf32>
    %c96_248 = arith.constant 96 : index
    %c0_249 = arith.constant 0 : index
    %251 = vector.load %arg17[%c96_248, %c0_249] : memref<400x2xf32, #tpu.memory_space<vmem>>, vector<16x1xf32>
    tpu.vector_store %arg17[%c96_248, %c0_249], %250 {strides = array<i32>} : memref<400x2xf32, #tpu.memory_space<vmem>>, vector<16x1xf32>,
    %c0_250 = arith.constant 0 : index
    %c1156 = arith.constant 1156 : index
    %252 = vector.load %arg16[%c0_250, %c1156] : memref<16x1553xf32, #tpu.memory_space<vmem>>, vector<16x1xf32>
    %c96_251 = arith.constant 96 : index
    %c1_252 = arith.constant 1 : index
    %253 = vector.load %arg17[%c96_251, %c1_252] : memref<400x2xf32, #tpu.memory_space<vmem>>, vector<16x1xf32>
    tpu.vector_store %arg17[%c96_251, %c1_252], %252 {strides = array<i32>} : memref<400x2xf32, #tpu.memory_space<vmem>>, vector<16x1xf32>,
    %c0_253 = arith.constant 0 : index
    %c136_254 = arith.constant 136 : index
    %254 = vector.load %arg16[%c0_253, %c136_254] : memref<16x1553xf32, #tpu.memory_space<vmem>>, vector<16x1xf32>
    %c112_255 = arith.constant 112 : index
    %c0_256 = arith.constant 0 : index
    %255 = vector.load %arg17[%c112_255, %c0_256] : memref<400x2xf32, #tpu.memory_space<vmem>>, vector<16x1xf32>
    tpu.vector_store %arg17[%c112_255, %c0_256], %254 {strides = array<i32>} : memref<400x2xf32, #tpu.memory_space<vmem>>, vector<16x1xf32>,
    %c0_257 = arith.constant 0 : index
    %c1160 = arith.constant 1160 : index
    %256 = vector.load %arg16[%c0_257, %c1160] : memref<16x1553xf32, #tpu.memory_space<vmem>>, vector<16x1xf32>
    %c112_258 = arith.constant 112 : index
    %c1_259 = arith.constant 1 : index
    %257 = vector.load %arg17[%c112_258, %c1_259] : memref<400x2xf32, #tpu.memory_space<vmem>>, vector<16x1xf32>
    tpu.vector_store %arg17[%c112_258, %c1_259], %256 {strides = array<i32>} : memref<400x2xf32, #tpu.memory_space<vmem>>, vector<16x1xf32>,
    %c0_260 = arith.constant 0 : index
    %c140 = arith.constant 140 : index
    %258 = vector.load %arg16[%c0_260, %c140] : memref<16x1553xf32, #tpu.memory_space<vmem>>, vector<16x1xf32>
    %c128_261 = arith.constant 128 : index
    %c0_262 = arith.constant 0 : index
    %259 = vector.load %arg17[%c128_261, %c0_262] : memref<400x2xf32, #tpu.memory_space<vmem>>, vector<16x1xf32>
    tpu.vector_store %arg17[%c128_261, %c0_262], %258 {strides = array<i32>} : memref<400x2xf32, #tpu.memory_space<vmem>>, vector<16x1xf32>,
    %c0_263 = arith.constant 0 : index
    %c1164 = arith.constant 1164 : index
    %260 = vector.load %arg16[%c0_263, %c1164] : memref<16x1553xf32, #tpu.memory_space<vmem>>, vector<16x1xf32>
    %c128_264 = arith.constant 128 : index
    %c1_265 = arith.constant 1 : index
    %261 = vector.load %arg17[%c128_264, %c1_265] : memref<400x2xf32, #tpu.memory_space<vmem>>, vector<16x1xf32>
    tpu.vector_store %arg17[%c128_264, %c1_265], %260 {strides = array<i32>} : memref<400x2xf32, #tpu.memory_space<vmem>>, vector<16x1xf32>,
    %c0_266 = arith.constant 0 : index
    %c144_267 = arith.constant 144 : index
    %262 = vector.load %arg16[%c0_266, %c144_267] : memref<16x1553xf32, #tpu.memory_space<vmem>>, vector<16x1xf32>
    %c144_268 = arith.constant 144 : index
    %c0_269 = arith.constant 0 : index
    %263 = vector.load %arg17[%c144_268, %c0_269] : memref<400x2xf32, #tpu.memory_space<vmem>>, vector<16x1xf32>
    tpu.vector_store %arg17[%c144_268, %c0_269], %262 {strides = array<i32>} : memref<400x2xf32, #tpu.memory_space<vmem>>, vector<16x1xf32>,
    %c0_270 = arith.constant 0 : index
    %c1168 = arith.constant 1168 : index
    %264 = vector.load %arg16[%c0_270, %c1168] : memref<16x1553xf32, #tpu.memory_space<vmem>>, vector<16x1xf32>
    %c144_271 = arith.constant 144 : index
    %c1_272 = arith.constant 1 : index
    %265 = vector.load %arg17[%c144_271, %c1_272] : memref<400x2xf32, #tpu.memory_space<vmem>>, vector<16x1xf32>
    tpu.vector_store %arg17[%c144_271, %c1_272], %264 {strides = array<i32>} : memref<400x2xf32, #tpu.memory_space<vmem>>, vector<16x1xf32>,
    %c0_273 = arith.constant 0 : index
    %c256_274 = arith.constant 256 : index
    %266 = vector.load %arg16[%c0_273, %c256_274] : memref<16x1553xf32, #tpu.memory_space<vmem>>, vector<16x1xf32>
    %c160_275 = arith.constant 160 : index
    %c0_276 = arith.constant 0 : index
    %267 = vector.load %arg17[%c160_275, %c0_276] : memref<400x2xf32, #tpu.memory_space<vmem>>, vector<16x1xf32>
    tpu.vector_store %arg17[%c160_275, %c0_276], %266 {strides = array<i32>} : memref<400x2xf32, #tpu.memory_space<vmem>>, vector<16x1xf32>,
    %c0_277 = arith.constant 0 : index
    %c1280 = arith.constant 1280 : index
    %268 = vector.load %arg16[%c0_277, %c1280] : memref<16x1553xf32, #tpu.memory_space<vmem>>, vector<16x1xf32>
    %c160_278 = arith.constant 160 : index
    %c1_279 = arith.constant 1 : index
    %269 = vector.load %arg17[%c160_278, %c1_279] : memref<400x2xf32, #tpu.memory_space<vmem>>, vector<16x1xf32>
    tpu.vector_store %arg17[%c160_278, %c1_279], %268 {strides = array<i32>} : memref<400x2xf32, #tpu.memory_space<vmem>>, vector<16x1xf32>,
    %c0_280 = arith.constant 0 : index
    %c260_281 = arith.constant 260 : index
    %270 = vector.load %arg16[%c0_280, %c260_281] : memref<16x1553xf32, #tpu.memory_space<vmem>>, vector<16x1xf32>
    %c176_282 = arith.constant 176 : index
    %c0_283 = arith.constant 0 : index
    %271 = vector.load %arg17[%c176_282, %c0_283] : memref<400x2xf32, #tpu.memory_space<vmem>>, vector<16x1xf32>
    tpu.vector_store %arg17[%c176_282, %c0_283], %270 {strides = array<i32>} : memref<400x2xf32, #tpu.memory_space<vmem>>, vector<16x1xf32>,
    %c0_284 = arith.constant 0 : index
    %c1284 = arith.constant 1284 : index
    %272 = vector.load %arg16[%c0_284, %c1284] : memref<16x1553xf32, #tpu.memory_space<vmem>>, vector<16x1xf32>
    %c176_285 = arith.constant 176 : index
    %c1_286 = arith.constant 1 : index
    %273 = vector.load %arg17[%c176_285, %c1_286] : memref<400x2xf32, #tpu.memory_space<vmem>>, vector<16x1xf32>
    tpu.vector_store %arg17[%c176_285, %c1_286], %272 {strides = array<i32>} : memref<400x2xf32, #tpu.memory_space<vmem>>, vector<16x1xf32>,
    %c0_287 = arith.constant 0 : index
    %c264_288 = arith.constant 264 : index
    %274 = vector.load %arg16[%c0_287, %c264_288] : memref<16x1553xf32, #tpu.memory_space<vmem>>, vector<16x1xf32>
    %c192_289 = arith.constant 192 : index
    %c0_290 = arith.constant 0 : index
    %275 = vector.load %arg17[%c192_289, %c0_290] : memref<400x2xf32, #tpu.memory_space<vmem>>, vector<16x1xf32>
    tpu.vector_store %arg17[%c192_289, %c0_290], %274 {strides = array<i32>} : memref<400x2xf32, #tpu.memory_space<vmem>>, vector<16x1xf32>,
    %c0_291 = arith.constant 0 : index
    %c1288 = arith.constant 1288 : index
    %276 = vector.load %arg16[%c0_291, %c1288] : memref<16x1553xf32, #tpu.memory_space<vmem>>, vector<16x1xf32>
    %c192_292 = arith.constant 192 : index
    %c1_293 = arith.constant 1 : index
    %277 = vector.load %arg17[%c192_292, %c1_293] : memref<400x2xf32, #tpu.memory_space<vmem>>, vector<16x1xf32>
    tpu.vector_store %arg17[%c192_292, %c1_293], %276 {strides = array<i32>} : memref<400x2xf32, #tpu.memory_space<vmem>>, vector<16x1xf32>,
    %c0_294 = arith.constant 0 : index
    %c268 = arith.constant 268 : index
    %278 = vector.load %arg16[%c0_294, %c268] : memref<16x1553xf32, #tpu.memory_space<vmem>>, vector<16x1xf32>
    %c208_295 = arith.constant 208 : index
    %c0_296 = arith.constant 0 : index
    %279 = vector.load %arg17[%c208_295, %c0_296] : memref<400x2xf32, #tpu.memory_space<vmem>>, vector<16x1xf32>
    tpu.vector_store %arg17[%c208_295, %c0_296], %278 {strides = array<i32>} : memref<400x2xf32, #tpu.memory_space<vmem>>, vector<16x1xf32>,
    %c0_297 = arith.constant 0 : index
    %c1292 = arith.constant 1292 : index
    %280 = vector.load %arg16[%c0_297, %c1292] : memref<16x1553xf32, #tpu.memory_space<vmem>>, vector<16x1xf32>
    %c208_298 = arith.constant 208 : index
    %c1_299 = arith.constant 1 : index
    %281 = vector.load %arg17[%c208_298, %c1_299] : memref<400x2xf32, #tpu.memory_space<vmem>>, vector<16x1xf32>
    tpu.vector_store %arg17[%c208_298, %c1_299], %280 {strides = array<i32>} : memref<400x2xf32, #tpu.memory_space<vmem>>, vector<16x1xf32>,
    %c0_300 = arith.constant 0 : index
    %c272_301 = arith.constant 272 : index
    %282 = vector.load %arg16[%c0_300, %c272_301] : memref<16x1553xf32, #tpu.memory_space<vmem>>, vector<16x1xf32>
    %c224_302 = arith.constant 224 : index
    %c0_303 = arith.constant 0 : index
    %283 = vector.load %arg17[%c224_302, %c0_303] : memref<400x2xf32, #tpu.memory_space<vmem>>, vector<16x1xf32>
    tpu.vector_store %arg17[%c224_302, %c0_303], %282 {strides = array<i32>} : memref<400x2xf32, #tpu.memory_space<vmem>>, vector<16x1xf32>,
    %c0_304 = arith.constant 0 : index
    %c1296 = arith.constant 1296 : index
    %284 = vector.load %arg16[%c0_304, %c1296] : memref<16x1553xf32, #tpu.memory_space<vmem>>, vector<16x1xf32>
    %c224_305 = arith.constant 224 : index
    %c1_306 = arith.constant 1 : index
    %285 = vector.load %arg17[%c224_305, %c1_306] : memref<400x2xf32, #tpu.memory_space<vmem>>, vector<16x1xf32>
    tpu.vector_store %arg17[%c224_305, %c1_306], %284 {strides = array<i32>} : memref<400x2xf32, #tpu.memory_space<vmem>>, vector<16x1xf32>,
    %c0_307 = arith.constant 0 : index
    %c384_308 = arith.constant 384 : index
    %286 = vector.load %arg16[%c0_307, %c384_308] : memref<16x1553xf32, #tpu.memory_space<vmem>>, vector<16x1xf32>
    %c240_309 = arith.constant 240 : index
    %c0_310 = arith.constant 0 : index
    %287 = vector.load %arg17[%c240_309, %c0_310] : memref<400x2xf32, #tpu.memory_space<vmem>>, vector<16x1xf32>
    tpu.vector_store %arg17[%c240_309, %c0_310], %286 {strides = array<i32>} : memref<400x2xf32, #tpu.memory_space<vmem>>, vector<16x1xf32>,
    %c0_311 = arith.constant 0 : index
    %c1408 = arith.constant 1408 : index
    %288 = vector.load %arg16[%c0_311, %c1408] : memref<16x1553xf32, #tpu.memory_space<vmem>>, vector<16x1xf32>
    %c240_312 = arith.constant 240 : index
    %c1_313 = arith.constant 1 : index
    %289 = vector.load %arg17[%c240_312, %c1_313] : memref<400x2xf32, #tpu.memory_space<vmem>>, vector<16x1xf32>
    tpu.vector_store %arg17[%c240_312, %c1_313], %288 {strides = array<i32>} : memref<400x2xf32, #tpu.memory_space<vmem>>, vector<16x1xf32>,
    %c0_314 = arith.constant 0 : index
    %c388 = arith.constant 388 : index
    %290 = vector.load %arg16[%c0_314, %c388] : memref<16x1553xf32, #tpu.memory_space<vmem>>, vector<16x1xf32>
    %c256_315 = arith.constant 256 : index
    %c0_316 = arith.constant 0 : index
    %291 = vector.load %arg17[%c256_315, %c0_316] : memref<400x2xf32, #tpu.memory_space<vmem>>, vector<16x1xf32>
    tpu.vector_store %arg17[%c256_315, %c0_316], %290 {strides = array<i32>} : memref<400x2xf32, #tpu.memory_space<vmem>>, vector<16x1xf32>,
    %c0_317 = arith.constant 0 : index
    %c1412 = arith.constant 1412 : index
    %292 = vector.load %arg16[%c0_317, %c1412] : memref<16x1553xf32, #tpu.memory_space<vmem>>, vector<16x1xf32>
    %c256_318 = arith.constant 256 : index
    %c1_319 = arith.constant 1 : index
    %293 = vector.load %arg17[%c256_318, %c1_319] : memref<400x2xf32, #tpu.memory_space<vmem>>, vector<16x1xf32>
    tpu.vector_store %arg17[%c256_318, %c1_319], %292 {strides = array<i32>} : memref<400x2xf32, #tpu.memory_space<vmem>>, vector<16x1xf32>,
    %c0_320 = arith.constant 0 : index
    %c392 = arith.constant 392 : index
    %294 = vector.load %arg16[%c0_320, %c392] : memref<16x1553xf32, #tpu.memory_space<vmem>>, vector<16x1xf32>
    %c272_321 = arith.constant 272 : index
    %c0_322 = arith.constant 0 : index
    %295 = vector.load %arg17[%c272_321, %c0_322] : memref<400x2xf32, #tpu.memory_space<vmem>>, vector<16x1xf32>
    tpu.vector_store %arg17[%c272_321, %c0_322], %294 {strides = array<i32>} : memref<400x2xf32, #tpu.memory_space<vmem>>, vector<16x1xf32>,
    %c0_323 = arith.constant 0 : index
    %c1416 = arith.constant 1416 : index
    %296 = vector.load %arg16[%c0_323, %c1416] : memref<16x1553xf32, #tpu.memory_space<vmem>>, vector<16x1xf32>
    %c272_324 = arith.constant 272 : index
    %c1_325 = arith.constant 1 : index
    %297 = vector.load %arg17[%c272_324, %c1_325] : memref<400x2xf32, #tpu.memory_space<vmem>>, vector<16x1xf32>
    tpu.vector_store %arg17[%c272_324, %c1_325], %296 {strides = array<i32>} : memref<400x2xf32, #tpu.memory_space<vmem>>, vector<16x1xf32>,
    %c0_326 = arith.constant 0 : index
    %c396 = arith.constant 396 : index
    %298 = vector.load %arg16[%c0_326, %c396] : memref<16x1553xf32, #tpu.memory_space<vmem>>, vector<16x1xf32>
    %c288_327 = arith.constant 288 : index
    %c0_328 = arith.constant 0 : index
    %299 = vector.load %arg17[%c288_327, %c0_328] : memref<400x2xf32, #tpu.memory_space<vmem>>, vector<16x1xf32>
    tpu.vector_store %arg17[%c288_327, %c0_328], %298 {strides = array<i32>} : memref<400x2xf32, #tpu.memory_space<vmem>>, vector<16x1xf32>,
    %c0_329 = arith.constant 0 : index
    %c1420 = arith.constant 1420 : index
    %300 = vector.load %arg16[%c0_329, %c1420] : memref<16x1553xf32, #tpu.memory_space<vmem>>, vector<16x1xf32>
    %c288_330 = arith.constant 288 : index
    %c1_331 = arith.constant 1 : index
    %301 = vector.load %arg17[%c288_330, %c1_331] : memref<400x2xf32, #tpu.memory_space<vmem>>, vector<16x1xf32>
    tpu.vector_store %arg17[%c288_330, %c1_331], %300 {strides = array<i32>} : memref<400x2xf32, #tpu.memory_space<vmem>>, vector<16x1xf32>,
    %c0_332 = arith.constant 0 : index
    %c400 = arith.constant 400 : index
    %302 = vector.load %arg16[%c0_332, %c400] : memref<16x1553xf32, #tpu.memory_space<vmem>>, vector<16x1xf32>
    %c304_333 = arith.constant 304 : index
    %c0_334 = arith.constant 0 : index
    %303 = vector.load %arg17[%c304_333, %c0_334] : memref<400x2xf32, #tpu.memory_space<vmem>>, vector<16x1xf32>
    tpu.vector_store %arg17[%c304_333, %c0_334], %302 {strides = array<i32>} : memref<400x2xf32, #tpu.memory_space<vmem>>, vector<16x1xf32>,
    %c0_335 = arith.constant 0 : index
    %c1424 = arith.constant 1424 : index
    %304 = vector.load %arg16[%c0_335, %c1424] : memref<16x1553xf32, #tpu.memory_space<vmem>>, vector<16x1xf32>
    %c304_336 = arith.constant 304 : index
    %c1_337 = arith.constant 1 : index
    %305 = vector.load %arg17[%c304_336, %c1_337] : memref<400x2xf32, #tpu.memory_space<vmem>>, vector<16x1xf32>
    tpu.vector_store %arg17[%c304_336, %c1_337], %304 {strides = array<i32>} : memref<400x2xf32, #tpu.memory_space<vmem>>, vector<16x1xf32>,
    %c0_338 = arith.constant 0 : index
    %c512 = arith.constant 512 : index
    %306 = vector.load %arg16[%c0_338, %c512] : memref<16x1553xf32, #tpu.memory_space<vmem>>, vector<16x1xf32>
    %c320_339 = arith.constant 320 : index
    %c0_340 = arith.constant 0 : index
    %307 = vector.load %arg17[%c320_339, %c0_340] : memref<400x2xf32, #tpu.memory_space<vmem>>, vector<16x1xf32>
    tpu.vector_store %arg17[%c320_339, %c0_340], %306 {strides = array<i32>} : memref<400x2xf32, #tpu.memory_space<vmem>>, vector<16x1xf32>,
    %c0_341 = arith.constant 0 : index
    %c1536 = arith.constant 1536 : index
    %308 = vector.load %arg16[%c0_341, %c1536] : memref<16x1553xf32, #tpu.memory_space<vmem>>, vector<16x1xf32>
    %c320_342 = arith.constant 320 : index
    %c1_343 = arith.constant 1 : index
    %309 = vector.load %arg17[%c320_342, %c1_343] : memref<400x2xf32, #tpu.memory_space<vmem>>, vector<16x1xf32>
    tpu.vector_store %arg17[%c320_342, %c1_343], %308 {strides = array<i32>} : memref<400x2xf32, #tpu.memory_space<vmem>>, vector<16x1xf32>,
    %c0_344 = arith.constant 0 : index
    %c516 = arith.constant 516 : index
    %310 = vector.load %arg16[%c0_344, %c516] : memref<16x1553xf32, #tpu.memory_space<vmem>>, vector<16x1xf32>
    %c336_345 = arith.constant 336 : index
    %c0_346 = arith.constant 0 : index
    %311 = vector.load %arg17[%c336_345, %c0_346] : memref<400x2xf32, #tpu.memory_space<vmem>>, vector<16x1xf32>
    tpu.vector_store %arg17[%c336_345, %c0_346], %310 {strides = array<i32>} : memref<400x2xf32, #tpu.memory_space<vmem>>, vector<16x1xf32>,
    %c0_347 = arith.constant 0 : index
    %c1540 = arith.constant 1540 : index
    %312 = vector.load %arg16[%c0_347, %c1540] : memref<16x1553xf32, #tpu.memory_space<vmem>>, vector<16x1xf32>
    %c336_348 = arith.constant 336 : index
    %c1_349 = arith.constant 1 : index
    %313 = vector.load %arg17[%c336_348, %c1_349] : memref<400x2xf32, #tpu.memory_space<vmem>>, vector<16x1xf32>
    tpu.vector_store %arg17[%c336_348, %c1_349], %312 {strides = array<i32>} : memref<400x2xf32, #tpu.memory_space<vmem>>, vector<16x1xf32>,
    %c0_350 = arith.constant 0 : index
    %c520 = arith.constant 520 : index
    %314 = vector.load %arg16[%c0_350, %c520] : memref<16x1553xf32, #tpu.memory_space<vmem>>, vector<16x1xf32>
    %c352_351 = arith.constant 352 : index
    %c0_352 = arith.constant 0 : index
    %315 = vector.load %arg17[%c352_351, %c0_352] : memref<400x2xf32, #tpu.memory_space<vmem>>, vector<16x1xf32>
    tpu.vector_store %arg17[%c352_351, %c0_352], %314 {strides = array<i32>} : memref<400x2xf32, #tpu.memory_space<vmem>>, vector<16x1xf32>,
    %c0_353 = arith.constant 0 : index
    %c1544 = arith.constant 1544 : index
    %316 = vector.load %arg16[%c0_353, %c1544] : memref<16x1553xf32, #tpu.memory_space<vmem>>, vector<16x1xf32>
    %c352_354 = arith.constant 352 : index
    %c1_355 = arith.constant 1 : index
    %317 = vector.load %arg17[%c352_354, %c1_355] : memref<400x2xf32, #tpu.memory_space<vmem>>, vector<16x1xf32>
    tpu.vector_store %arg17[%c352_354, %c1_355], %316 {strides = array<i32>} : memref<400x2xf32, #tpu.memory_space<vmem>>, vector<16x1xf32>,
    %c0_356 = arith.constant 0 : index
    %c524 = arith.constant 524 : index
    %318 = vector.load %arg16[%c0_356, %c524] : memref<16x1553xf32, #tpu.memory_space<vmem>>, vector<16x1xf32>
    %c368_357 = arith.constant 368 : index
    %c0_358 = arith.constant 0 : index
    %319 = vector.load %arg17[%c368_357, %c0_358] : memref<400x2xf32, #tpu.memory_space<vmem>>, vector<16x1xf32>
    tpu.vector_store %arg17[%c368_357, %c0_358], %318 {strides = array<i32>} : memref<400x2xf32, #tpu.memory_space<vmem>>, vector<16x1xf32>,
    %c0_359 = arith.constant 0 : index
    %c1548 = arith.constant 1548 : index
    %320 = vector.load %arg16[%c0_359, %c1548] : memref<16x1553xf32, #tpu.memory_space<vmem>>, vector<16x1xf32>
    %c368_360 = arith.constant 368 : index
    %c1_361 = arith.constant 1 : index
    %321 = vector.load %arg17[%c368_360, %c1_361] : memref<400x2xf32, #tpu.memory_space<vmem>>, vector<16x1xf32>
    tpu.vector_store %arg17[%c368_360, %c1_361], %320 {strides = array<i32>} : memref<400x2xf32, #tpu.memory_space<vmem>>, vector<16x1xf32>,
    %c0_362 = arith.constant 0 : index
    %c528 = arith.constant 528 : index
    %322 = vector.load %arg16[%c0_362, %c528] : memref<16x1553xf32, #tpu.memory_space<vmem>>, vector<16x1xf32>
    %c384_363 = arith.constant 384 : index
    %c0_364 = arith.constant 0 : index
    %323 = vector.load %arg17[%c384_363, %c0_364] : memref<400x2xf32, #tpu.memory_space<vmem>>, vector<16x1xf32>
    tpu.vector_store %arg17[%c384_363, %c0_364], %322 {strides = array<i32>} : memref<400x2xf32, #tpu.memory_space<vmem>>, vector<16x1xf32>,
    %c0_365 = arith.constant 0 : index
    %c1552 = arith.constant 1552 : index
    %324 = vector.load %arg16[%c0_365, %c1552] : memref<16x1553xf32, #tpu.memory_space<vmem>>, vector<16x1xf32>
    %c384_366 = arith.constant 384 : index
    %c1_367 = arith.constant 1 : index
    %325 = vector.load %arg17[%c384_366, %c1_367] : memref<400x2xf32, #tpu.memory_space<vmem>>, vector<16x1xf32>
    tpu.vector_store %arg17[%c384_366, %c1_367], %324 {strides = array<i32>} : memref<400x2xf32, #tpu.memory_space<vmem>>, vector<16x1xf32>,
    %c0_368 = arith.constant 0 : index
    %c0_369 = arith.constant 0 : index
    %326 = vector.load %arg17[%c0_368, %c0_369] : memref<400x2xf32, #tpu.memory_space<vmem>>, vector<400x2xf32>
    %c0_370 = arith.constant 0 : index
    %c0_371 = arith.constant 0 : index
    %327 = vector.load %arg6[%c0_370, %c0_371] : memref<120x400xf32, #tpu.memory_space<vmem>>, vector<120x400xf32>
    %cst_372 = arith.constant dense<0.000000e+00> : vector<120x2xf32>
    %328 = tpu.matmul %327, %326, %cst_372 {dimension_numbers = #tpu.dot_dimension_numbers<[1], [0], [0], [1], [0, 0, 1, 1], [], []>} : vector<120x400xf32>, vector<400x2xf32>, vector<120x2xf32> -> vector<120x2xf32>
    %c0_373 = arith.constant 0 : index
    %c0_374 = arith.constant 0 : index
    %329 = vector.load %arg7[%c0_373, %c0_374] : memref<120x1xf32, #tpu.memory_space<vmem>>, vector<120x1xf32>
    %330 = vector.broadcast %329 : vector<120x1xf32> to vector<120x2xf32>
    %331 = arith.addf %328, %330 : vector<120x2xf32>
    %cst_375 = arith.constant 0.000000e+00 : f32
    %332 = vector.broadcast %cst_375 : f32 to vector<120x2xf32>
    %333 = arith.maximumf %331, %332 : vector<120x2xf32>
    %c0_376 = arith.constant 0 : index
    %c0_377 = arith.constant 0 : index
    %334 = vector.load %arg8[%c0_376, %c0_377] : memref<84x120xf32, #tpu.memory_space<vmem>>, vector<84x120xf32>
    %cst_378 = arith.constant dense<0.000000e+00> : vector<84x2xf32>
    %335 = tpu.matmul %334, %333, %cst_378 {dimension_numbers = #tpu.dot_dimension_numbers<[1], [0], [0], [1], [0, 0, 1, 1], [], []>} : vector<84x120xf32>, vector<120x2xf32>, vector<84x2xf32> -> vector<84x2xf32>
    %c0_379 = arith.constant 0 : index
    %c0_380 = arith.constant 0 : index
    %336 = vector.load %arg9[%c0_379, %c0_380] : memref<84x1xf32, #tpu.memory_space<vmem>>, vector<84x1xf32>
    %337 = vector.broadcast %336 : vector<84x1xf32> to vector<84x2xf32>
    %338 = arith.addf %335, %337 : vector<84x2xf32>
    %cst_381 = arith.constant 0.000000e+00 : f32
    %339 = vector.broadcast %cst_381 : f32 to vector<84x2xf32>
    %340 = arith.maximumf %338, %339 : vector<84x2xf32>
    %c0_382 = arith.constant 0 : index
    %c0_383 = arith.constant 0 : index
    %341 = vector.load %arg10[%c0_382, %c0_383] : memref<1x84xf32, #tpu.memory_space<vmem>>, vector<1x84xf32>
    %cst_384 = arith.constant dense<0.000000e+00> : vector<1x2xf32>
    %342 = tpu.matmul %341, %340, %cst_384 {dimension_numbers = #tpu.dot_dimension_numbers<[1], [0], [0], [1], [0, 0, 1, 1], [], []>} : vector<1x84xf32>, vector<84x2xf32>, vector<1x2xf32> -> vector<1x2xf32>
    %c0_385 = arith.constant 0 : index
    %c0_386 = arith.constant 0 : index
    %343 = vector.load %arg11[%c0_385, %c0_386] : memref<1x1xf32, #tpu.memory_space<vmem>>, vector<1x1xf32>
    %344 = vector.broadcast %343 : vector<1x1xf32> to vector<1x2xf32>
    %345 = arith.addf %342, %344 : vector<1x2xf32>
    %c0_387 = arith.constant 0 : index
    %c0_388 = arith.constant 0 : index
    %346 = vector.load %arg12[%c0_387, %c0_388] : memref<1x2xf32, #tpu.memory_space<vmem>>, vector<1x2xf32>
    tpu.vector_store %arg12[%c0_387, %c0_388], %345 {strides = array<i32>} : memref<1x2xf32, #tpu.memory_space<vmem>>, vector<1x2xf32>,
    return
  }
  func.func @transform_0(%arg0: i32) -> (i32, i32) {
    %c0_i32 = arith.constant 0 : i32
    %c0_i32_0 = arith.constant 0 : i32
    %c0_i32_1 = arith.constant 0 : i32
    return %c0_i32, %c0_i32_0 : i32, i32
  }
  func.func @transform_1(%arg0: i32) -> (i32, i32) {
    %c0_i32 = arith.constant 0 : i32
    %c0_i32_0 = arith.constant 0 : i32
    %c0_i32_1 = arith.constant 0 : i32
    return %c0_i32, %c0_i32_0 : i32, i32
  }
  func.func @transform_2(%arg0: i32) -> (i32, i32) {
    %c0_i32 = arith.constant 0 : i32
    %c0_i32_0 = arith.constant 0 : i32
    %c0_i32_1 = arith.constant 0 : i32
    return %c0_i32, %c0_i32_0 : i32, i32
  }
  func.func @transform_3(%arg0: i32) -> (i32, i32) {
    %c0_i32 = arith.constant 0 : i32
    %c0_i32_0 = arith.constant 0 : i32
    %c0_i32_1 = arith.constant 0 : i32
    return %c0_i32, %c0_i32_0 : i32, i32
  }
  func.func @transform_4(%arg0: i32) -> (i32, i32) {
    %c0_i32 = arith.constant 0 : i32
    %c0_i32_0 = arith.constant 0 : i32
    %c0_i32_1 = arith.constant 0 : i32
    return %c0_i32, %c0_i32_0 : i32, i32
  }
  func.func @transform_5(%arg0: i32) -> (i32, i32) {
    %c0_i32 = arith.constant 0 : i32
    %c0_i32_0 = arith.constant 0 : i32
    %c0_i32_1 = arith.constant 0 : i32
    return %c0_i32, %c0_i32_0 : i32, i32
  }
  func.func @transform_6(%arg0: i32) -> (i32, i32) {
    %c0_i32 = arith.constant 0 : i32
    %c0_i32_0 = arith.constant 0 : i32
    %c0_i32_1 = arith.constant 0 : i32
    return %c0_i32, %c0_i32_0 : i32, i32
  }
  func.func @transform_7(%arg0: i32) -> (i32, i32) {
    %c0_i32 = arith.constant 0 : i32
    %c0_i32_0 = arith.constant 0 : i32
    %c0_i32_1 = arith.constant 0 : i32
    return %c0_i32, %c0_i32_0 : i32, i32
  }
  func.func @transform_8(%arg0: i32) -> (i32, i32) {
    %c0_i32 = arith.constant 0 : i32
    %c0_i32_0 = arith.constant 0 : i32
    %c0_i32_1 = arith.constant 0 : i32
    return %c0_i32, %c0_i32_0 : i32, i32
  }
  func.func @transform_9(%arg0: i32) -> (i32, i32) {
    %c0_i32 = arith.constant 0 : i32
    %c0_i32_0 = arith.constant 0 : i32
    %c0_i32_1 = arith.constant 0 : i32
    return %c0_i32, %c0_i32_0 : i32, i32
  }
  func.func @transform_10(%arg0: i32) -> (i32, i32) {
    %c0_i32 = arith.constant 0 : i32
    %c0_i32_0 = arith.constant 0 : i32
    %c0_i32_1 = arith.constant 0 : i32
    return %c0_i32, %c0_i32_0 : i32, i32
  }
  func.func @transform_11(%arg0: i32) -> (i32, i32) {
    %c0_i32 = arith.constant 0 : i32
    %c0_i32_0 = arith.constant 0 : i32
    %c0_i32_1 = arith.constant 0 : i32
    return %c0_i32, %c0_i32_0 : i32, i32
  }
}

</mosaic_0001>

<bundles_post_ra>
// kernel: cnn_forward.1
= control target key start
LH: loop header
LB: loop body
LE: loop exit
PB: predicated region body
PF: predicated region fallthrough
CT: control target
= control target key end

     0   :  { %s45634_s0 = inlined_call_operand.vmem [shape: f32[3,2048], index: 0, kind: input, shape index: {}]   ;;  %s45635_s1 = inlined_call_operand.vmem [shape: f32[150,3], index: 1, kind: input, shape index: {}]   ;;  %s45636_s2 = inlined_call_operand.vmem [shape: f32[6,1], index: 2, kind: input, shape index: {}]   ;;  %s45637_s3 = inlined_call_operand.vmem [shape: f32[400,6], index: 3, kind: input, shape index: {}]   ;;  %s45638_s4 = inlined_call_operand.vmem [shape: f32[16,1], index: 4, kind: input, shape index: {}]   ;;  %s45639_s5 = inlined_call_operand.vmem [shape: f32[120,400], index: 5, kind: input, shape index: {}]   ;;  %s45640_s6 = inlined_call_operand.vmem [shape: f32[120,1], index: 6, kind: input, shape index: {}]   ;;  %s45641_s7 = inlined_call_operand.vmem [shape: f32[84,120], index: 7, kind: input, shape index: {}]   ;;  %s45642_s8 = inlined_call_operand.vmem [shape: f32[84,1], index: 8, kind: input, shape index: {}]   ;;  %s45643_s9 = inlined_call_operand.vmem [shape: f32[1,84], index: 9, kind: input, shape index: {}]   ;;  %s45644_s10 = inlined_call_operand.<no memory space> [shape: f32[1,1], index: 10, kind: input, shape index: {}]   ;;  %s45645_s11 = inlined_call_operand.hbm [shape: f32[1,2], index: 11, kind: output, shape index: {}]  }
   0x1   :  { %v16_v0 = vstv %s45644_s10 }
   0x2   :  { %17 = vst [vmem:[#allocation7] sm:$0x1] %v16_v0 }
   0x3   :  { %v38327_v1 = vld [vmem:[%s45634_s0] sm:$0x77]  ;;  %v38332_v2 = vld [vmem:[%s45634_s0 + $0x8] sm:$0x77]  ;;  %s38227_s23 = smov 127   ;;  %v38228_v11 = vmov 0.0  }
   0x4   :  { %66 = vrot.lane.b32.xlu1 %v38327_v1, %s38227_s23  ;;  %v38338_v3 = vcombine.high %v38327_v1, %v38327_v1  ;;  %v38342_v4 = vcombine.high %v38332_v2, %v38332_v2  ;;  %v38347_v5 = vld [vmem:[%s45634_s0 + $0x10] sm:$0x77]  ;;  %v38360_v7 = vld [vmem:[%s45634_s0 + $0x18] sm:$0x77]  ;;  %v38373_v9 = vld [vmem:[%s45634_s0 + $0x20] sm:$0x77]  ;;  %210 = vmatprep.mubr.f32.mxu1 %v38228_v11 }
   0x5   :  { %v38355_v6 = vcombine.high %v38347_v5, %v38347_v5  ;;  %v38368_v8 = vcombine.high %v38360_v7, %v38360_v7  ;;  %v38381_v10 = vcombine.high %v38373_v9, %v38373_v9  ;;  %v38387_v12 = vld [vmem:[%s45634_s0 + $0x28] sm:$0x77]  ;;  %352 = vmatprep.mubr.f32.mxu0 %v38228_v11 }
   0x6   :  { %68 = vrot.lane.b32.xlu0 %v38338_v3, %s38227_s23 }
   0x8   :  { %72 = vrot.lane.b32.xlu1 %v38342_v4, %s38227_s23 }
   0xa   :  { %70 = vrot.lane.b32.xlu0 %v38332_v2, %s38227_s23 }
   0xc   :  { %76 = vrot.lane.b32.xlu1 %v38355_v6, %s38227_s23 }
   0xe   :  { %74 = vrot.lane.b32.xlu0 %v38347_v5, %s38227_s23 }
  0x10   :  { %80 = vrot.lane.b32.xlu1 %v38368_v8, %s38227_s23 }
  0x12   :  { %78 = vrot.lane.b32.xlu0 %v38360_v7, %s38227_s23 }
  0x13   :  { %18 = vsyncpa [#allocation9], 0  ;;  %v38396_v13 = vcombine.high %v38387_v12, %v38387_v12  ;;  %v38401_v14 = vld [vmem:[%s45634_s0 + $0x30] sm:$0x77]  ;;  %v1314_v16 = vld [vmem:[%s45634_s0] sm:$0x77] }
  0x14   :  { %84 = vrot.lane.b32.xlu1 %v38381_v10, %s38227_s23  ;;  %v38409_v15 = vcombine.high %v38401_v14, %v38401_v14  ;;  %v1330_v17 = vcombine.high %v1314_v16, %v1314_v16  ;;  %v38423_v18 = vld [vmem:[%s45634_s0 + $0x38] sm:$0x7]  ;;  %s38229_s18 = smov 126   ;;  %v1315_v19 = vld [vmem:[%s45634_s0 + $0x8] sm:$0x77]  ;;  %s38230_s19 = smov 125  }
  0x15   :  { %v1316_v20 = vld [vmem:[%s45634_s0 + $0x10] sm:$0x77]  ;;  %v1331_v21 = vcombine.high %v1315_v19, %v1315_v19  ;;  %v1317_v22 = vld [vmem:[%s45634_s0 + $0x18] sm:$0x77]  ;;  %v1318_v24 = vld [vmem:[%s45634_s0 + $0x20] sm:$0x77] }
  0x16   :  { %82 = vrot.lane.b32.xlu0 %v38373_v9, %s38227_s23  ;;  %v1332_v23 = vcombine.high %v1316_v20, %v1316_v20  ;;  %v1333_v25 = vcombine.high %v1317_v22, %v1317_v22  ;;  %v1319_v26 = vld [vmem:[%s45634_s0 + $0x28] sm:$0x77]  ;;  %v1334_v27 = vcombine.high %v1318_v24, %v1318_v24  ;;  %v1320_v28 = vld [vmem:[%s45634_s0 + $0x30] sm:$0x77]  ;;  %v1321_v30 = vld [vmem:[%s45634_s0 + $0x38] sm:$0x7] }
  0x17   :  { %v1335_v29 = vcombine.high %v1319_v26, %v1319_v26  ;;  %v1336_v31 = vcombine.high %v1320_v28, %v1320_v28  ;;  %v1998_v32 = vld [vmem:[%s45634_s0] sm:$0x77]  ;;  %v1999_v33 = vld [vmem:[%s45634_s0 + $0x8] sm:$0x77]  ;;  %v2000_v36 = vld [vmem:[%s45634_s0 + $0x10] sm:$0x77] }
  0x18   :  { %88 = vrot.lane.b32.xlu1 %v38396_v13, %s38227_s23  ;;  %v2014_v34 = vcombine.high %v1998_v32, %v1998_v32  ;;  %v2015_v35 = vcombine.high %v1999_v33, %v1999_v33  ;;  %v2016_v37 = vcombine.high %v2000_v36, %v2000_v36  ;;  %v2001_v38 = vld [vmem:[%s45634_s0 + $0x18] sm:$0x77]  ;;  %v2002_v40 = vld [vmem:[%s45634_s0 + $0x20] sm:$0x77]  ;;  %v2003_v42 = vld [vmem:[%s45634_s0 + $0x28] sm:$0x77] }
  0x19   :  { %v2017_v39 = vcombine.high %v2001_v38, %v2001_v38  ;;  %v2018_v41 = vcombine.high %v2002_v40, %v2002_v40  ;;  %v2019_v43 = vcombine.high %v2003_v42, %v2003_v42  ;;  %v2004_v44 = vld [vmem:[%s45634_s0 + $0x30] sm:$0x77]  ;;  %v2682_v46 = vld [vmem:[%s45634_s0] sm:$0x77]  ;;  %v2005_v48 = vld [vmem:[%s45634_s0 + $0x38] sm:$0x7] }
  0x1a   :  { %86 = vrot.lane.b32.xlu0 %v38387_v12, %s38227_s23  ;;  %v2020_v45 = vcombine.high %v2004_v44, %v2004_v44  ;;  %v2698_v47 = vcombine.high %v2682_v46, %v2682_v46  ;;  %s38231_s15 = smov 124   ;;  %v2683_v49 = vld [vmem:[%s45634_s0 + $0x8] sm:$0x77]  ;;  %v2684_v50 = vld [vmem:[%s45634_s0 + $0x10] sm:$0x77]  ;;  %vm96_vm0 = vcmask 1039360  }
  0x1b   :  { %v2699_v51 = vcombine.high %v2683_v49, %v2683_v49  ;;  %v2685_v52 = vld [vmem:[%s45634_s0 + $0x18] sm:$0x77]  ;;  %v2700_v53 = vcombine.high %v2684_v50, %v2684_v50  ;;  %v2686_v54 = vld [vmem:[%s45634_s0 + $0x20] sm:$0x77]  ;;  %v2687_v56 = vld [vmem:[%s45634_s0 + $0x28] sm:$0x77] }
  0x1c   :  { %92 = vrot.lane.b32.xlu1 %v38409_v15, %s38227_s23  ;;  %v2701_v55 = vcombine.high %v2685_v52, %v2685_v52  ;;  %v2702_v57 = vcombine.high %v2686_v54, %v2686_v54  ;;  %v2688_v58 = vld [vmem:[%s45634_s0 + $0x30] sm:$0x77]  ;;  %v2703_v59 = vcombine.high %v2687_v56, %v2687_v56  ;;  %v2689_v60 = vld [vmem:[%s45634_s0 + $0x38] sm:$0x7]  ;;  %v3366_v63 = vld [vmem:[%s45634_s0] sm:$0x77] }
  0x1d   :  { %v2704_v61 = vcombine.high %v2688_v58, %v2688_v58  ;;  %vm115_vm1 = vcmask 1042432   ;;  %s38232_s20 = smov 96   ;;  %vm111_vm2 = vcmask 23552   ;;  %vm38233_vm3 = vmmov 0   ;;  %s38234_s26 = smov 95  }
  0x1e   :  { %90 = vrot.lane.b32.xlu0 %v38401_v14, %s38227_s23  ;;  %vm1367_vm4 = vcmask 1031168   ;;  %vm2051_vm5 = vcmask 1022976   ;;  %vm2735_vm6 = vcmask 1014784   ;;  %s38236_s22 = smov 93   ;;  %vm3422_vm7 = vcmask 785408   ;;  %s38237_s27 = smov 92  }
  0x1f   :  { %vm4110_vm8 = vcmask 777216   ;;  %s38238_s12 = smov 64   ;;  %vm4798_vm9 = vcmask 769024   ;;  %s38239_s17 = smov 63   ;;  %vm5486_vm10 = vcmask 760832   ;;  %vm6174_vm11 = vcmask 752640  }
  0x20   :  { %1339 = vrot.lane.b32.xlu1 %v1330_v17, %s38229_s18  ;;  %s38240_s28 = smov 62   ;;  %s38241_s14 = smov 61   ;;  %vm6862_vm12 = vcmask 523264   ;;  %vm7550_vm13 = vcmask 515072   ;;  %vm8238_vm14 = vcmask 506880   ;;  %vm8926_vm15 = vcmask 498688  }
  0x21   :  { %s38242_s25 = smov 60   ;;  %s38245_s24 = smov 30  }
  0x22   :  { %94 = vrot.lane.b32.xlu0 %v38423_v18, %s38227_s23  ;;  %s38246_s13 = smov 29   ;;  %s38252_s10 = smov 56  }
  0x24   :  { %1337 = vrot.lane.b32.xlu1 %v1314_v16, %s38229_s18  ;;  %v3367_v16 = vld [vmem:[%s45634_s0 + $0x8] sm:$0x77] }
  0x26   :  { %1341 = vrot.lane.b32.xlu0 %v1315_v19, %s38229_s18  ;;  %v3382_v19 = vcombine.high %v3366_v63, %v3366_v63 }
  0x28   :  { %1345 = vrot.lane.b32.xlu1 %v1316_v20, %s38229_s18  ;;  %v3383_v20 = vcombine.high %v3367_v16, %v3367_v16 }
  0x2a   :  { %1343 = vrot.lane.b32.xlu0 %v1331_v21, %s38229_s18 }
  0x2c   :  { %1349 = vrot.lane.b32.xlu1 %v1317_v22, %s38229_s18 }
  0x2e   :  { %1347 = vrot.lane.b32.xlu0 %v1332_v23, %s38229_s18  ;;  %v38552_v23 = vld [vmem:[%s45635_s1 + $0x6] sm:$0x3f] }
  0x30   :  { %1353 = vrot.lane.b32.xlu1 %v1318_v24, %s38229_s18  ;;  %v3368_v24 = vld [vmem:[%s45634_s0 + $0x10] sm:$0x77] }
  0x32   :  { %1351 = vrot.lane.b32.xlu0 %v1333_v25, %s38229_s18 }
  0x34   :  { %1357 = vrot.lane.b32.xlu1 %v1319_v26, %s38229_s18 }
  0x36   :  { %1355 = vrot.lane.b32.xlu0 %v1334_v27, %s38229_s18 }
  0x38   :  { %1361 = vrot.lane.b32.xlu1 %v1320_v28, %s38229_s18  ;;  %v3384_v28 = vcombine.high %v3368_v24, %v3368_v24 }
  0x3a   :  { %1359 = vrot.lane.b32.xlu0 %v1335_v29, %s38229_s18 }
  0x3c   :  { %1365 = vrot.lane.b32.xlu1 %v1321_v30, %s38229_s18  ;;  %v3369_v30 = vld [vmem:[%s45634_s0 + $0x18] sm:$0x77] }
  0x3e   :  { %1363 = vrot.lane.b32.xlu0 %v1336_v31, %s38229_s18 }
  0x40   :  { %2025 = vrot.lane.b32.xlu1 %v1999_v33, %s38230_s19 }
  0x42   :  { %2023 = vrot.lane.b32.xlu0 %v2014_v34, %s38230_s19  ;;  %v3385_v34 = vcombine.high %v3369_v30, %v3369_v30 }
  0x44   :  { %2027 = vrot.lane.b32.xlu1 %v2015_v35, %s38230_s19 }
  0x46   :  { %2021 = vrot.lane.b32.xlu0 %v1998_v32, %s38230_s19 }
  0x48   :  { %2031 = vrot.lane.b32.xlu1 %v2016_v37, %s38230_s19 }
  0x4a   :  { %2029 = vrot.lane.b32.xlu0 %v2000_v36, %s38230_s19  ;;  %v3370_v36 = vld [vmem:[%s45634_s0 + $0x20] sm:$0x77] }
  0x4c   :  { %2035 = vrot.lane.b32.xlu1 %v2017_v39, %s38230_s19 }
  0x4e   :  { %2033 = vrot.lane.b32.xlu0 %v2001_v38, %s38230_s19 }
  0x50   :  { %2039 = vrot.lane.b32.xlu1 %v2018_v41, %s38230_s19 }
  0x52   :  { %2037 = vrot.lane.b32.xlu0 %v2002_v40, %s38230_s19  ;;  %v3386_v40 = vcombine.high %v3370_v36, %v3370_v36 }
  0x54   :  { %2043 = vrot.lane.b32.xlu1 %v2019_v43, %s38230_s19 }
  0x56   :  { %2041 = vrot.lane.b32.xlu0 %v2003_v42, %s38230_s19  ;;  %v3371_v42 = vld [vmem:[%s45634_s0 + $0x28] sm:$0x77] }
  0x58   :  { %2047 = vrot.lane.b32.xlu1 %v2020_v45, %s38230_s19 }
  0x5a   :  { %2045 = vrot.lane.b32.xlu0 %v2004_v44, %s38230_s19 }
  0x5c   :  { %2707 = vrot.lane.b32.xlu1 %v2698_v47, %s38231_s15 }
  0x5e   :  { %2049 = vrot.lane.b32.xlu0 %v2005_v48, %s38230_s19  ;;  %v3372_v48 = vld [vmem:[%s45634_s0 + $0x30] sm:$0x77] }
  0x60   :  { %2705 = vrot.lane.b32.xlu1 %v2682_v46, %s38231_s15  ;;  %v3387_v46 = vcombine.high %v3371_v42, %v3371_v42 }
  0x62   :  { %2709 = vrot.lane.b32.xlu0 %v2683_v49, %s38231_s15 }
  0x64   :  { %2713 = vrot.lane.b32.xlu1 %v2684_v50, %s38231_s15 }
  0x66   :  { %2711 = vrot.lane.b32.xlu0 %v2699_v51, %s38231_s15 }
  0x68   :  { %2717 = vrot.lane.b32.xlu1 %v2685_v52, %s38231_s15  ;;  %v3388_v52 = vcombine.high %v3372_v48, %v3372_v48 }
  0x6a   :  { %2715 = vrot.lane.b32.xlu0 %v2700_v53, %s38231_s15 }
  0x6c   :  { %2721 = vrot.lane.b32.xlu1 %v2686_v54, %s38231_s15  ;;  %v3373_v54 = vld [vmem:[%s45634_s0 + $0x38] sm:$0x77] }
  0x6e   :  { %2719 = vrot.lane.b32.xlu0 %v2701_v55, %s38231_s15 }
  0x70   :  { %2725 = vrot.lane.b32.xlu1 %v2687_v56, %s38231_s15 }
  0x72   :  { %2723 = vrot.lane.b32.xlu0 %v2702_v57, %s38231_s15 }
  0x74   :  { %2729 = vrot.lane.b32.xlu1 %v2688_v58, %s38231_s15  ;;  %v3389_v58 = vcombine.high %v3373_v54, %v3373_v54 }
  0x76   :  { %v67_v62 = vpop.permute.xlu1 %66  ;;  %2727 = vrot.lane.b32.xlu0 %v2703_v59, %s38231_s15 }
  0x78   :  { %2733 = vrot.lane.b32.xlu1 %v2689_v60, %s38231_s15  ;;  %v69_v0 = vpop.permute.xlu0 %68 }
  0x79   :  { %v97_v26 = vsel %vm96_vm0, %v67_v62, %v69_v0  ;;  %v4054_v62 = vld [vmem:[%s45634_s0] sm:$0x77] }
  0x7a   :  { %v73_v17 = vpop.permute.xlu1 %72  ;;  %2731 = vrot.lane.b32.xlu0 %v2704_v61, %s38231_s15 }
  0x7c   :  { %3394 = vrot.lane.b32.xlu1 %v3367_v16, %s38232_s20  ;;  %v71_v21 = vpop.permute.xlu0 %70  ;;  %v41_v16 = vld [vmem:[%s45635_s1] sm:$0x3f] }
  0x7d   :  { %v98_v22 = vsel %vm96_vm0, %v69_v0, %v71_v21  ;;  %v99_v31 = vsel %vm96_vm0, %v71_v21, %v73_v17 }
  0x7e   :  { %v77_v25 = vpop.permute.xlu1 %76  ;;  %3392 = vrot.lane.b32.xlu0 %v3382_v19, %s38232_s20  ;;  %35045 = vmatprep.subr.msk.mxu1 %vm115_vm1, %v98_v22 }
  0x7f   :  { %35046 = vmatpush1.msk.msra.mxu1 %vm115_vm1, %v97_v26 }
  0x80   :  { %3396 = vrot.lane.b32.xlu1 %v3383_v20, %s38232_s20  ;;  %v75_v27 = vpop.permute.xlu0 %74  ;;  %35047 = vmatmul.mubr.msk.f32.vlgmr.msra.gmra.mrb[0].mxu1 %vm111_vm2, %v38552_v23 }
  0x81   :  { %v100_v29 = vsel %vm96_vm0, %v73_v17, %v75_v27  ;;  %281 = vmatprep.mubr.f32.mxu1 %v38228_v11  ;;  %v101_v38 = vsel %vm96_vm0, %v75_v27, %v77_v25  ;;  %v4070_v17 = vcombine.high %v4054_v62, %v4054_v62 }
  0x82   :  { %v81_v32 = vpop.permute.xlu1 %80  ;;  %3390 = vrot.lane.b32.xlu0 %v3366_v63, %s38232_s20  ;;  %35048 = vmatprep.subr.msk.mxu1 %vm115_vm1, %v100_v29  ;;  %v4059_v29 = vld [vmem:[%s45634_s0 + $0x28] sm:$0x77] }
  0x83   :  { %35049 = vmatpush1.msk.msra.mxu1 %vm115_vm1, %v99_v31 }
  0x84   :  { %3400 = vrot.lane.b32.xlu1 %v3384_v28, %s38232_s20  ;;  %v79_v33 = vpop.permute.xlu0 %78  ;;  %35050 = vmatmul.mubr.msk.f32.vlgmr.msra.gmra.mrb[2].mxu1 %vm111_vm2, %v38552_v23  ;;  %v38750_v28 = vld [vmem:[%s45635_s1 + $0xc] sm:$0x3f] }
  0x85   :  { %v102_v35 = vsel %vm96_vm0, %v77_v25, %v79_v33  ;;  %423 = vmatprep.mubr.f32.mxu1 %v38228_v11  ;;  %v103_v43 = vsel %vm96_vm0, %v79_v33, %v81_v32 }
  0x86   :  { %v85_v37 = vpop.permute.xlu1 %84  ;;  %3398 = vrot.lane.b32.xlu0 %v3368_v24, %s38232_s20  ;;  %35051 = vmatprep.subr.msk.mxu0 %vm115_vm1, %v102_v35 }
  0x87   :  { %35052 = vmatpush1.msk.msra.mxu0 %vm115_vm1, %v101_v38  ;;  %v4060_v38 = vld [vmem:[%s45634_s0 + $0x30] sm:$0x77] }
  0x88   :  { %3404 = vrot.lane.b32.xlu1 %v3385_v34, %s38232_s20  ;;  %v83_v39 = vpop.permute.xlu0 %82  ;;  %35053 = vmatmul.mubr.msk.f32.vlgmr.msra.gmra.mrb[0].mxu0 %vm111_vm2, %v38552_v23 }
  0x89   :  { %v104_v41 = vsel %vm96_vm0, %v81_v32, %v83_v39  ;;  %494 = vmatprep.mubr.f32.mxu0 %v38228_v11  ;;  %v105_v49 = vsel %vm96_vm0, %v83_v39, %v85_v37 }
  0x8a   :  { %v89_v44 = vpop.permute.xlu1 %88  ;;  %3402 = vrot.lane.b32.xlu0 %v3369_v30, %s38232_s20  ;;  %35054 = vmatprep.subr.msk.mxu1 %vm115_vm1, %v104_v41 }
  0x8b   :  { %35055 = vmatpush1.msk.msra.mxu1 %vm115_vm1, %v103_v43  ;;  %v4076_v43 = vcombine.high %v4060_v38, %v4060_v38 }
  0x8c   :  { %3408 = vrot.lane.b32.xlu1 %v3386_v40, %s38232_s20  ;;  %v87_v45 = vpop.permute.xlu0 %86  ;;  %35056 = vmatmul.mubr.msk.f32.vlgmr.msra.gmra.mrb[4].mxu1 %vm111_vm2, %v38552_v23 }
  0x8d   :  { %v106_v47 = vsel %vm96_vm0, %v85_v37, %v87_v45  ;;  %565 = vmatprep.mubr.f32.mxu1 %v38228_v11  ;;  %v107_v55 = vsel %vm96_vm0, %v87_v45, %v89_v44  ;;  %v4061_v45 = vld [vmem:[%s45634_s0 + $0x38] sm:$0x77] }
  0x8e   :  { %v93_v50 = vpop.permute.xlu1 %92  ;;  %3406 = vrot.lane.b32.xlu0 %v3370_v36, %s38232_s20  ;;  %35057 = vmatprep.subr.msk.mxu0 %vm115_vm1, %v106_v47  ;;  %v4075_v36 = vcombine.high %v4059_v29, %v4059_v29 }
  0x8f   :  { %35058 = vmatpush1.msk.msra.mxu0 %vm115_vm1, %v105_v49  ;;  %v4077_v49 = vcombine.high %v4061_v45, %v4061_v45 }
  0x90   :  { %3412 = vrot.lane.b32.xlu1 %v3387_v46, %s38232_s20  ;;  %v91_v51 = vpop.permute.xlu0 %90  ;;  %35059 = vmatmul.mubr.msk.f32.vlgmr.msra.gmra.mrb[2].mxu0 %vm111_vm2, %v38552_v23 }
  0x91   :  { %v108_v53 = vsel %vm96_vm0, %v89_v44, %v91_v51  ;;  %636 = vmatprep.mubr.f32.mxu0 %v38228_v11  ;;  %v109_v61 = vsel %vm96_vm0, %v91_v51, %v93_v50 }
  0x92   :  { %v38618_v56 = vpop.permute.xlu1 %1339  ;;  %3410 = vrot.lane.b32.xlu0 %v3371_v42, %s38232_s20  ;;  %35060 = vmatprep.subr.msk.mxu1 %vm115_vm1, %v108_v53  ;;  %v4742_v53 = vld [vmem:[%s45634_s0] sm:$0x77] }
  0x93   :  { %35061 = vmatpush1.msk.msra.mxu1 %vm115_vm1, %v107_v55 }
  0x94   :  { %3416 = vrot.lane.b32.xlu1 %v3388_v52, %s38232_s20  ;;  %35062 = vmatmul.mubr.msk.f32.vlgmr.msra.gmra.mrb[6].mxu1 %vm111_vm2, %v38552_v23  ;;  %v95_v57 = vpop.permute.xlu0 %94 }
  0x95   :  { %36563 = vmatprep.subr.mxu1 %v38228_v11  ;;  %v110_v59 = vsel %vm96_vm0, %v93_v50, %v95_v57  ;;  %36565 = vmatprep.mubr.msk.f32.mxu1 %vm38233_vm3, %v38228_v11 }
  0x96   :  { %36564 = vmatpush3.msk.msra.mxu1 %vm115_vm1, %v95_v57  ;;  %v38631_v60 = vpop.permute.xlu1 %1337  ;;  %3414 = vrot.lane.b32.xlu0 %v3372_v48, %s38232_s20  ;;  %v4758_v57 = vcombine.high %v4742_v53, %v4742_v53 }
  0x97   :  { %35063 = vmatprep.subr.msk.mxu0 %vm115_vm1, %v110_v59  ;;  %35071 = vmatprep.subr.msk.mxu1 %vm115_vm1, %v38342_v4  ;;  %v4055_v4 = vld [vmem:[%s45634_s0 + $0x8] sm:$0x77]  ;;  %v1368_v22 = vsel %vm1367_vm4, %v38631_v60, %v38618_v56  ;;  %v38835_v60 = vld [vmem:[%s45635_s1 + $0x12] sm:$0x3f] }
  0x98   :  { %35064 = vmatpush1.msk.msra.mxu0 %vm115_vm1, %v109_v61  ;;  %3420 = vrot.lane.b32.xlu1 %v3389_v58, %s38232_s20  ;;  %v38643_v63 = vpop.permute.xlu0 %1341  ;;  %v4071_v19 = vcombine.high %v4055_v4, %v4055_v4 }
  0x99   :  { %35065 = vmatmul.mubr.msk.f32.vlgmr.msra.gmra.mrb[4].mxu0 %vm111_vm2, %v38552_v23  ;;  %36566 = vmatmul.mubr.msk.f32.vlgmr.msra.gmra.mrb[8].mxu1 %vm111_vm2, %v38552_v23 }
  0x9a   :  { %v38649_v0 = vpop.permute.xlu1 %1345  ;;  %3418 = vrot.lane.b32.xlu0 %v3373_v54, %s38232_s20  ;;  %35068 = vmatprep.subr.msk.mxu0 %vm115_vm1, %v38338_v3 }
  0x9b   :  { %35069 = vmatpush1.msk.msra.mxu0 %vm115_vm1, %v38327_v1  ;;  %810 = vmatprep.mubr.f32.mxu0 %v38228_v11 }
  0x9c   :  { %35072 = vmatpush1.msk.msra.mxu1 %vm115_vm1, %v38332_v2  ;;  %881 = vmatprep.mubr.f32.mxu1 %v38228_v11  ;;  %v1344_v3 = vpop.permute.xlu0 %1343  ;;  %v4056_v2 = vld [vmem:[%s45634_s0 + $0x10] sm:$0x77] }
  0x9d   :  { %4082 = vrot.lane.b32.xlu1 %v4055_v4, %s38234_s26  ;;  %35070 = vmatmul.mubr.msk.f32.vlgmr.msra.gmra.mrb[6].mxu0 %vm111_vm2, %v41_v16  ;;  %v1370_v23 = vsel %vm1367_vm4, %v38643_v63, %v1344_v3  ;;  %v4744_v4 = vld [vmem:[%s45634_s0 + $0x10] sm:$0x77] }
  0x9e   :  { %35073 = vmatmul.mubr.msk.f32.vlgmr.msra.gmra.mrb[2].mxu1 %vm111_vm2, %v41_v16  ;;  %v38669_v20 = vpop.permute.xlu1 %1349  ;;  %4080 = vrot.lane.b32.xlu0 %v4070_v17, %s38234_s26 }
  0x9f   :  { %35074 = vmatprep.subr.msk.mxu0 %vm115_vm1, %v38355_v6  ;;  %35077 = vmatprep.subr.msk.mxu1 %vm115_vm1, %v38368_v8 }
  0xa0   :  { %35075 = vmatpush1.msk.msra.mxu0 %vm115_vm1, %v38347_v5  ;;  %952 = vmatprep.mubr.f32.mxu0 %v38228_v11  ;;  %v1348_v1 = vpop.permute.xlu0 %1347  ;;  %v4072_v5 = vcombine.high %v4056_v2, %v4056_v2 }
  0xa1   :  { %35078 = vmatpush1.msk.msra.mxu1 %vm115_vm1, %v38360_v7  ;;  %1023 = vmatprep.mubr.f32.mxu1 %v38228_v11  ;;  %v1373_v24 = vsel %vm1367_vm4, %v1348_v1, %v38669_v20  ;;  %v1372_v31 = vsel %vm1367_vm4, %v38649_v0, %v1348_v1  ;;  %v4745_v1 = vld [vmem:[%s45634_s0 + $0x18] sm:$0x77] }
  0xa2   :  { %4084 = vrot.lane.b32.xlu1 %v4071_v19, %s38234_s26  ;;  %35076 = vmatmul.mubr.msk.f32.vlgmr.msra.gmra.mrb[0].mxu0 %vm111_vm2, %v41_v16  ;;  %v38687_v6 = vpop.permute.xlu1 %1353  ;;  %v4760_v19 = vcombine.high %v4744_v4, %v4744_v4 }
  0xa3   :  { %35079 = vmatmul.mubr.msk.f32.vlgmr.msra.gmra.mrb[4].mxu1 %vm111_vm2, %v41_v16  ;;  %35080 = vmatprep.subr.msk.mxu0 %vm115_vm1, %v38381_v10  ;;  %v4057_v10 = vld [vmem:[%s45634_s0 + $0x18] sm:$0x77] }
  0xa4   :  { %35083 = vmatprep.subr.msk.mxu1 %vm115_vm1, %v38396_v13  ;;  %4078 = vrot.lane.b32.xlu0 %v4054_v62, %s38234_s26  ;;  %v1352_v7 = vpop.permute.xlu0 %1351  ;;  %v4073_v13 = vcombine.high %v4057_v10, %v4057_v10 }
  0xa5   :  { %35081 = vmatpush1.msk.msra.mxu0 %vm115_vm1, %v38373_v9  ;;  %35084 = vmatpush1.msk.msra.mxu1 %vm115_vm1, %v38387_v12  ;;  %v1369_v12 = vsel %vm1367_vm4, %v38618_v56, %v38643_v63  ;;  %v1375_v27 = vsel %vm1367_vm4, %v1352_v7, %v38687_v6  ;;  %v1374_v34 = vsel %vm1367_vm4, %v38669_v20, %v1352_v7  ;;  %v4743_v56 = vld [vmem:[%s45634_s0 + $0x8] sm:$0x77] }
  0xa6   :  { %1094 = vmatprep.mubr.f32.mxu0 %v38228_v11  ;;  %1165 = vmatprep.mubr.f32.mxu1 %v38228_v11  ;;  %v38701_v8 = vpop.permute.xlu1 %1357  ;;  %v4759_v62 = vcombine.high %v4743_v56, %v4743_v56  ;;  %v4761_v7 = vcombine.high %v4745_v1, %v4745_v1 }
  0xa7   :  { %35086 = vmatprep.subr.msk.mxu0 %vm115_vm1, %v38409_v15  ;;  %36568 = vmatprep.subr.mxu1 %v38228_v11  ;;  %v1371_v15 = vsel %vm1367_vm4, %v1344_v3, %v38649_v0 }
  0xa8   :  { %4088 = vrot.lane.b32.xlu1 %v4072_v5, %s38234_s26  ;;  %35082 = vmatmul.mubr.msk.f32.vlgmr.msra.gmra.mrb[2].mxu0 %vm111_vm2, %v41_v16  ;;  %v1356_v9 = vpop.permute.xlu0 %1355 }
  0xa9   :  { %35085 = vmatmul.mubr.msk.f32.vlgmr.msra.gmra.mrb[6].mxu1 %vm111_vm2, %v41_v16  ;;  %35087 = vmatpush1.msk.msra.mxu0 %vm115_vm1, %v38401_v14  ;;  %v4058_v14 = vld [vmem:[%s45634_s0 + $0x20] sm:$0x77]  ;;  %v1377_v35 = vsel %vm1367_vm4, %v1356_v9, %v38701_v8  ;;  %v1376_v40 = vsel %vm1367_vm4, %v38687_v6, %v1356_v9 }
  0xaa   :  { %36569 = vmatpush3.msk.msra.mxu1 %vm115_vm1, %v38423_v18  ;;  %35091 = vmatprep.subr.msk.mxu0 %vm115_vm1, %v1369_v12  ;;  %v38722_v21 = vpop.permute.xlu1 %1361  ;;  %v4074_v25 = vcombine.high %v4058_v14, %v4058_v14 }
  0xab   :  { %35094 = vmatprep.subr.msk.mxu1 %vm115_vm1, %v1371_v15  ;;  %4086 = vrot.lane.b32.xlu0 %v4056_v2, %s38234_s26 }
  0xac   :  { %1236 = vmatprep.mubr.f32.mxu0 %v38228_v11  ;;  %36570 = vmatprep.mubr.msk.f32.mxu1 %vm38233_vm3, %v38228_v11  ;;  %v1360_v18 = vpop.permute.xlu0 %1359 }
  0xad   :  { %4092 = vrot.lane.b32.xlu1 %v4073_v13, %s38234_s26  ;;  %35088 = vmatmul.mubr.msk.f32.vlgmr.msra.gmra.mrb[4].mxu0 %vm111_vm2, %v41_v16  ;;  %v1379_v32 = vsel %vm1367_vm4, %v1360_v18, %v38722_v21  ;;  %v1378_v42 = vsel %vm1367_vm4, %v38701_v8, %v1360_v18 }
  0xae   :  { %36571 = vmatmul.mubr.msk.f32.vlgmr.msra.gmra.mrb[10].mxu1 %vm111_vm2, %v41_v16  ;;  %35092 = vmatpush1.msk.msra.mxu0 %vm115_vm1, %v1368_v22  ;;  %v1366_v26 = vpop.permute.xlu1 %1365 }
  0xaf   :  { %35095 = vmatpush1.msk.msra.mxu1 %vm115_vm1, %v1370_v23  ;;  %35097 = vmatprep.subr.msk.mxu0 %vm115_vm1, %v1373_v24 }
  0xb0   :  { %35100 = vmatprep.subr.msk.mxu1 %vm115_vm1, %v1375_v27  ;;  %4090 = vrot.lane.b32.xlu0 %v4057_v10, %s38234_s26  ;;  %v1364_v30 = vpop.permute.xlu0 %1363  ;;  %v4746_v10 = vld [vmem:[%s45634_s0 + $0x20] sm:$0x77] }
  0xb1   :  { %1479 = vmatprep.mubr.f32.mxu0 %v38228_v11  ;;  %1550 = vmatprep.mubr.f32.mxu1 %v38228_v11  ;;  %v1381_v41 = vsel %vm1367_vm4, %v1364_v30, %v1366_v26  ;;  %v1380_v47 = vsel %vm1367_vm4, %v38722_v21, %v1364_v30  ;;  %v4762_v15 = vcombine.high %v4746_v10, %v4746_v10  ;;  %v38916_v30 = vld [vmem:[%s45635_s1 + $0x18] sm:$0x3f] }
  0xb2   :  { %4096 = vrot.lane.b32.xlu1 %v4074_v25, %s38234_s26  ;;  %35093 = vmatmul.mubr.msk.f32.vlgmr.msra.gmra.mrb[6].mxu0 %vm111_vm2, %v38750_v28  ;;  %v2026_v33 = vpop.permute.xlu1 %2025 }
  0xb3   :  { %35096 = vmatmul.mubr.msk.f32.vlgmr.msra.gmra.mrb[2].mxu1 %vm111_vm2, %v38750_v28  ;;  %35098 = vmatpush1.msk.msra.mxu0 %vm115_vm1, %v1372_v31 }
  0xb4   :  { %35101 = vmatpush1.msk.msra.mxu1 %vm115_vm1, %v1374_v34  ;;  %35103 = vmatprep.subr.msk.mxu0 %vm115_vm1, %v1377_v35  ;;  %v2024_v37 = vpop.permute.xlu0 %2023 }
  0xb5   :  { %4094 = vrot.lane.b32.xlu0 %v4058_v14, %s38234_s26  ;;  %35106 = vmatprep.subr.msk.mxu1 %vm115_vm1, %v1379_v32  ;;  %v2053_v48 = vsel %vm2051_vm5, %v2024_v37, %v2026_v33  ;;  %v4747_v14 = vld [vmem:[%s45634_s0 + $0x28] sm:$0x77] }
  0xb6   :  { %1621 = vmatprep.mubr.f32.mxu0 %v38228_v11  ;;  %1692 = vmatprep.mubr.f32.mxu1 %v38228_v11  ;;  %v2028_v39 = vpop.permute.xlu1 %2027  ;;  %v4763_v24 = vcombine.high %v4747_v14, %v4747_v14 }
  0xb7   :  { %4100 = vrot.lane.b32.xlu1 %v4075_v36, %s38234_s26  ;;  %35099 = vmatmul.mubr.msk.f32.vlgmr.msra.gmra.mrb[0].mxu0 %vm111_vm2, %v38750_v28  ;;  %v2054_v61 = vsel %vm2051_vm5, %v2026_v33, %v2028_v39  ;;  %v4749_v33 = vld [vmem:[%s45634_s0 + $0x38] sm:$0x77] }
  0xb8   :  { %35102 = vmatmul.mubr.msk.f32.vlgmr.msra.gmra.mrb[4].mxu1 %vm111_vm2, %v38750_v28  ;;  %35104 = vmatpush1.msk.msra.mxu0 %vm115_vm1, %v1376_v40  ;;  %v2022_v44 = vpop.permute.xlu0 %2021 }
  0xb9   :  { %35107 = vmatpush1.msk.msra.mxu1 %vm115_vm1, %v1378_v42  ;;  %4098 = vrot.lane.b32.xlu0 %v4059_v29, %s38234_s26  ;;  %v2052_v51 = vsel %vm2051_vm5, %v2022_v44, %v2024_v37  ;;  %v4765_v37 = vcombine.high %v4749_v33, %v4749_v33  ;;  %v5430_v42 = vld [vmem:[%s45634_s0] sm:$0x77]  ;;  %v5431_v44 = vld [vmem:[%s45634_s0 + $0x8] sm:$0x77] }
  0xba   :  { %35109 = vmatprep.subr.msk.mxu0 %vm115_vm1, %v1381_v41  ;;  %1763 = vmatprep.mubr.f32.mxu0 %v38228_v11  ;;  %v2032_v46 = vpop.permute.xlu1 %2031 }
  0xbb   :  { %1834 = vmatprep.mubr.f32.mxu1 %v38228_v11  ;;  %36573 = vmatprep.subr.mxu1 %v38228_v11 }
  0xbc   :  { %4104 = vrot.lane.b32.xlu1 %v4076_v43, %s38234_s26  ;;  %35105 = vmatmul.mubr.msk.f32.vlgmr.msra.gmra.mrb[2].mxu0 %vm111_vm2, %v38750_v28  ;;  %v2030_v50 = vpop.permute.xlu0 %2029 }
  0xbd   :  { %35108 = vmatmul.mubr.msk.f32.vlgmr.msra.gmra.mrb[6].mxu1 %vm111_vm2, %v38750_v28  ;;  %35110 = vmatpush1.msk.msra.mxu0 %vm115_vm1, %v1380_v47  ;;  %v2055_v54 = vsel %vm2051_vm5, %v2028_v39, %v2030_v50  ;;  %v2056_v0 = vsel %vm2051_vm5, %v2030_v50, %v2032_v46  ;;  %v5446_v47 = vcombine.high %v5430_v42, %v5430_v42 }
  0xbe   :  { %36574 = vmatpush3.msk.msra.mxu1 %vm115_vm1, %v1366_v26  ;;  %4102 = vrot.lane.b32.xlu0 %v4060_v38, %s38234_s26  ;;  %v2036_v52 = vpop.permute.xlu1 %2035  ;;  %v4748_v26 = vld [vmem:[%s45634_s0 + $0x30] sm:$0x77] }
  0xbf   :  { %35114 = vmatprep.subr.msk.mxu0 %vm115_vm1, %v2053_v48  ;;  %1905 = vmatprep.mubr.f32.mxu0 %v38228_v11  ;;  %v4764_v31 = vcombine.high %v4748_v26, %v4748_v26 }
  0xc0   :  { %4108 = vrot.lane.b32.xlu1 %v4077_v49, %s38234_s26  ;;  %35111 = vmatmul.mubr.msk.f32.vlgmr.msra.gmra.mrb[4].mxu0 %vm111_vm2, %v38750_v28  ;;  %v2034_v55 = vpop.permute.xlu0 %2033  ;;  %v5447_v49 = vcombine.high %v5431_v44, %v5431_v44 }
  0xc1   :  { %35115 = vmatpush1.msk.msra.mxu0 %vm115_vm1, %v2052_v51  ;;  %36575 = vmatprep.mubr.msk.f32.mxu1 %vm38233_vm3, %v38228_v11  ;;  %v2057_v59 = vsel %vm2051_vm5, %v2032_v46, %v2034_v55  ;;  %v2058_v3 = vsel %vm2051_vm5, %v2034_v55, %v2036_v52  ;;  %v5432_v51 = vld [vmem:[%s45634_s0 + $0x10] sm:$0x77] }
  0xc2   :  { %4106 = vrot.lane.b32.xlu0 %v4061_v45, %s38234_s26  ;;  %35117 = vmatprep.subr.msk.mxu1 %vm115_vm1, %v2055_v54  ;;  %v2040_v58 = vpop.permute.xlu1 %2039  ;;  %s38235_s26 = smov 94   ;;  %v5448_v55 = vcombine.high %v5432_v51, %v5432_v51 }
  0xc3   :  { %36576 = vmatmul.mubr.msk.f32.vlgmr.msra.gmra.mrb[12].mxu1 %vm111_vm2, %v38750_v28  ;;  %2163 = vmatprep.mubr.f32.mxu0 %v38228_v11 }
  0xc4   :  { %4770 = vrot.lane.b32.xlu1 %v4743_v56, %s38235_s26  ;;  %35118 = vmatpush1.msk.msra.mxu1 %vm115_vm1, %v2054_v61  ;;  %v2038_v63 = vpop.permute.xlu0 %2037 }
  0xc5   :  { %35120 = vmatprep.subr.msk.mxu0 %vm115_vm1, %v2057_v59  ;;  %35116 = vmatmul.mubr.msk.f32.vlgmr.msra.gmra.mrb[6].mxu0 %vm111_vm2, %v38835_v60  ;;  %v2059_v16 = vsel %vm2051_vm5, %v2036_v52, %v2038_v63  ;;  %v2060_v5 = vsel %vm2051_vm5, %v2038_v63, %v2040_v58  ;;  %v5434_v63 = vld [vmem:[%s45634_s0 + $0x20] sm:$0x77] }
  0xc6   :  { %4768 = vrot.lane.b32.xlu0 %v4758_v57, %s38235_s26  ;;  %35121 = vmatpush1.msk.msra.mxu0 %vm115_vm1, %v2056_v0  ;;  %v2044_v17 = vpop.permute.xlu1 %2043  ;;  %v5433_v57 = vld [vmem:[%s45634_s0 + $0x18] sm:$0x77] }
  0xc7   :  { %2234 = vmatprep.mubr.f32.mxu1 %v38228_v11  ;;  %35123 = vmatprep.subr.msk.mxu1 %vm115_vm1, %v2059_v16  ;;  %v5449_v61 = vcombine.high %v5433_v57, %v5433_v57 }
  0xc8   :  { %4772 = vrot.lane.b32.xlu1 %v4759_v62, %s38235_s26  ;;  %35119 = vmatmul.mubr.msk.f32.vlgmr.msra.gmra.mrb[2].mxu1 %vm111_vm2, %v38835_v60  ;;  %v2042_v20 = vpop.permute.xlu0 %2041 }
  0xc9   :  { %35124 = vmatpush1.msk.msra.mxu1 %vm115_vm1, %v2058_v3  ;;  %2305 = vmatprep.mubr.f32.mxu0 %v38228_v11  ;;  %v2061_v2 = vsel %vm2051_vm5, %v2040_v58, %v2042_v20  ;;  %v2062_v12 = vsel %vm2051_vm5, %v2042_v20, %v2044_v17 }
  0xca   :  { %4766 = vrot.lane.b32.xlu0 %v4742_v53, %s38235_s26  ;;  %v2048_v6 = vpop.permute.xlu1 %2047  ;;  %35126 = vmatprep.subr.msk.mxu0 %vm115_vm1, %v2061_v2 }
  0xcb   :  { %35122 = vmatmul.mubr.msk.f32.vlgmr.msra.gmra.mrb[0].mxu0 %vm111_vm2, %v38835_v60  ;;  %2376 = vmatprep.mubr.f32.mxu1 %v38228_v11 }
  0xcc   :  { %4776 = vrot.lane.b32.xlu1 %v4760_v19, %s38235_s26  ;;  %35127 = vmatpush1.msk.msra.mxu0 %vm115_vm1, %v2060_v5  ;;  %v2046_v8 = vpop.permute.xlu0 %2045  ;;  %v5435_v19 = vld [vmem:[%s45634_s0 + $0x28] sm:$0x77]  ;;  %v39015_v5 = vld [vmem:[%s45635_s1 + $0x1e] sm:$0x3f] }
  0xcd   :  { %35125 = vmatmul.mubr.msk.f32.vlgmr.msra.gmra.mrb[4].mxu1 %vm111_vm2, %v38835_v60  ;;  %v2063_v9 = vsel %vm2051_vm5, %v2044_v17, %v2046_v8  ;;  %2447 = vmatprep.mubr.f32.mxu0 %v38228_v11  ;;  %v2064_v23 = vsel %vm2051_vm5, %v2046_v8, %v2048_v6  ;;  %v5450_v17 = vcombine.high %v5434_v63, %v5434_v63 }
  0xce   :  { %4774 = vrot.lane.b32.xlu0 %v4744_v4, %s38235_s26  ;;  %v2708_v13 = vpop.permute.xlu1 %2707  ;;  %35129 = vmatprep.subr.msk.mxu1 %vm115_vm1, %v2063_v9  ;;  %v5451_v2 = vcombine.high %v5435_v19, %v5435_v19 }
  0xcf   :  { %35130 = vmatpush1.msk.msra.mxu1 %vm115_vm1, %v2062_v12  ;;  %2518 = vmatprep.mubr.f32.mxu1 %v38228_v11 }
  0xd0   :  { %4780 = vrot.lane.b32.xlu1 %v4761_v7, %s38235_s26  ;;  %v2050_v21 = vpop.permute.xlu0 %2049  ;;  %36578 = vmatprep.subr.mxu1 %v38228_v11  ;;  %v5436_v7 = vld [vmem:[%s45634_s0 + $0x30] sm:$0x77] }
  0xd1   :  { %35131 = vmatmul.mubr.msk.f32.vlgmr.msra.gmra.mrb[6].mxu1 %vm111_vm2, %v38835_v60  ;;  %v2065_v18 = vsel %vm2051_vm5, %v2048_v6, %v2050_v21  ;;  %35128 = vmatmul.mubr.msk.f32.vlgmr.msra.gmra.mrb[2].mxu0 %vm111_vm2, %v38835_v60  ;;  %v5452_v9 = vcombine.high %v5436_v7, %v5436_v7 }
  0xd2   :  { %4778 = vrot.lane.b32.xlu0 %v4745_v1, %s38235_s26  ;;  %36579 = vmatpush3.msk.msra.mxu1 %vm115_vm1, %v2050_v21  ;;  %v2706_v22 = vpop.permute.xlu1 %2705 }
  0xd3   :  { %35132 = vmatprep.subr.msk.mxu0 %vm115_vm1, %v2065_v18  ;;  %2589 = vmatprep.mubr.f32.mxu0 %v38228_v11  ;;  %v2736_v28 = vsel %vm2735_vm6, %v2706_v22, %v2708_v13 }
  0xd4   :  { %4784 = vrot.lane.b32.xlu1 %v4762_v15, %s38235_s26  ;;  %35133 = vmatpush1.msk.msra.mxu0 %vm115_vm1, %v2064_v23  ;;  %v2710_v25 = vpop.permute.xlu0 %2709 }
  0xd5   :  { %v2737_v27 = vsel %vm2735_vm6, %v2708_v13, %v2710_v25  ;;  %35134 = vmatmul.mubr.msk.f32.vlgmr.msra.gmra.mrb[4].mxu0 %vm111_vm2, %v38835_v60  ;;  %36580 = vmatprep.mubr.msk.f32.mxu1 %vm38233_vm3, %v38228_v11  ;;  %v5437_v13 = vld [vmem:[%s45634_s0 + $0x38] sm:$0x77] }
  0xd6   :  { %4782 = vrot.lane.b32.xlu0 %v4746_v10, %s38235_s26  ;;  %v2714_v29 = vpop.permute.xlu1 %2713  ;;  %35137 = vmatprep.subr.msk.mxu0 %vm115_vm1, %v2737_v27  ;;  %v5453_v18 = vcombine.high %v5437_v13, %v5437_v13 }
  0xd7   :  { %35138 = vmatpush1.msk.msra.mxu0 %vm115_vm1, %v2736_v28  ;;  %36581 = vmatmul.mubr.msk.f32.vlgmr.msra.gmra.mrb[14].mxu1 %vm111_vm2, %v38835_v60  ;;  %v6119_v28 = vld [vmem:[%s45634_s0 + $0x8] sm:$0x77] }
  0xd8   :  { %4788 = vrot.lane.b32.xlu1 %v4763_v24, %s38235_s26  ;;  %v2712_v32 = vpop.permute.xlu0 %2711  ;;  %2847 = vmatprep.mubr.f32.mxu0 %v38228_v11 }
  0xd9   :  { %v2738_v34 = vsel %vm2735_vm6, %v2710_v25, %v2712_v32  ;;  %v2739_v35 = vsel %vm2735_vm6, %v2712_v32, %v2714_v29  ;;  %35139 = vmatmul.mubr.msk.f32.vlgmr.msra.gmra.mrb[6].mxu0 %vm111_vm2, %v38916_v30  ;;  %2918 = vmatprep.mubr.f32.mxu1 %v38228_v11 }
  0xda   :  { %4786 = vrot.lane.b32.xlu0 %v4747_v14, %s38235_s26  ;;  %v2718_v36 = vpop.permute.xlu1 %2717  ;;  %35140 = vmatprep.subr.msk.mxu1 %vm115_vm1, %v2739_v35  ;;  %v6120_v35 = vld [vmem:[%s45634_s0 + $0x10] sm:$0x77] }
  0xdb   :  { %35141 = vmatpush1.msk.msra.mxu1 %vm115_vm1, %v2738_v34  ;;  %2989 = vmatprep.mubr.f32.mxu0 %v38228_v11 }
  0xdc   :  { %4792 = vrot.lane.b32.xlu1 %v4764_v31, %s38235_s26  ;;  %v2716_v38 = vpop.permute.xlu0 %2715  ;;  %35142 = vmatmul.mubr.msk.f32.vlgmr.msra.gmra.mrb[2].mxu1 %vm111_vm2, %v38916_v30 }
  0xdd   :  { %v2740_v39 = vsel %vm2735_vm6, %v2714_v29, %v2716_v38  ;;  %v2741_v40 = vsel %vm2735_vm6, %v2716_v38, %v2718_v36  ;;  %3060 = vmatprep.mubr.f32.mxu1 %v38228_v11 }
  0xde   :  { %4790 = vrot.lane.b32.xlu0 %v4748_v26, %s38235_s26  ;;  %v2722_v41 = vpop.permute.xlu1 %2721  ;;  %35143 = vmatprep.subr.msk.mxu0 %vm115_vm1, %v2741_v40  ;;  %v6118_v26 = vld [vmem:[%s45634_s0] sm:$0x77] }
  0xdf   :  { %35144 = vmatpush1.msk.msra.mxu0 %vm115_vm1, %v2740_v39  ;;  %v6134_v31 = vcombine.high %v6118_v26, %v6118_v26  ;;  %v6136_v39 = vcombine.high %v6120_v35, %v6120_v35 }
  0xe0   :  { %4796 = vrot.lane.b32.xlu1 %v4765_v37, %s38235_s26  ;;  %v2720_v43 = vpop.permute.xlu0 %2719  ;;  %35145 = vmatmul.mubr.msk.f32.vlgmr.msra.gmra.mrb[0].mxu0 %vm111_vm2, %v38916_v30 }
  0xe1   :  { %v2742_v45 = vsel %vm2735_vm6, %v2718_v36, %v2720_v43  ;;  %v2743_v46 = vsel %vm2735_vm6, %v2720_v43, %v2722_v41  ;;  %3131 = vmatprep.mubr.f32.mxu0 %v38228_v11 }
  0xe2   :  { %4794 = vrot.lane.b32.xlu0 %v4749_v33, %s38235_s26  ;;  %v2726_v48 = vpop.permute.xlu1 %2725  ;;  %35146 = vmatprep.subr.msk.mxu1 %vm115_vm1, %v2743_v46  ;;  %v6135_v33 = vcombine.high %v6119_v28, %v6119_v28 }
  0xe3   :  { %35147 = vmatpush1.msk.msra.mxu1 %vm115_vm1, %v2742_v45 }
  0xe4   :  { %5458 = vrot.lane.b32.xlu1 %v5431_v44, %s38236_s22  ;;  %v2724_v50 = vpop.permute.xlu0 %2723  ;;  %35148 = vmatmul.mubr.msk.f32.vlgmr.msra.gmra.mrb[4].mxu1 %vm111_vm2, %v38916_v30 }
  0xe5   :  { %v2744_v52 = vsel %vm2735_vm6, %v2722_v41, %v2724_v50  ;;  %v2745_v53 = vsel %vm2735_vm6, %v2724_v50, %v2726_v48  ;;  %3202 = vmatprep.mubr.f32.mxu1 %v38228_v11  ;;  %v6121_v41 = vld [vmem:[%s45634_s0 + $0x18] sm:$0x77] }
  0xe6   :  { %5456 = vrot.lane.b32.xlu0 %v5446_v47, %s38236_s22  ;;  %v2730_v54 = vpop.permute.xlu1 %2729  ;;  %35149 = vmatprep.subr.msk.mxu0 %vm115_vm1, %v2745_v53  ;;  %v6137_v45 = vcombine.high %v6121_v41, %v6121_v41  ;;  %v6122_v47 = vld [vmem:[%s45634_s0 + $0x20] sm:$0x77] }
  0xe7   :  { %35150 = vmatpush1.msk.msra.mxu0 %vm115_vm1, %v2744_v52  ;;  %v6138_v52 = vcombine.high %v6122_v47, %v6122_v47 }
  0xe8   :  { %5460 = vrot.lane.b32.xlu1 %v5447_v49, %s38236_s22  ;;  %v2728_v56 = vpop.permute.xlu0 %2727  ;;  %35151 = vmatmul.mubr.msk.f32.vlgmr.msra.gmra.mrb[2].mxu0 %vm111_vm2, %v38916_v30 }
  0xe9   :  { %v2746_v58 = vsel %vm2735_vm6, %v2726_v48, %v2728_v56  ;;  %v2747_v59 = vsel %vm2735_vm6, %v2728_v56, %v2730_v54  ;;  %3273 = vmatprep.mubr.f32.mxu0 %v38228_v11 }
  0xea   :  { %5454 = vrot.lane.b32.xlu0 %v5430_v42, %s38236_s22  ;;  %v2734_v60 = vpop.permute.xlu1 %2733  ;;  %35152 = vmatprep.subr.msk.mxu1 %vm115_vm1, %v2747_v59 }
  0xeb   :  { %35153 = vmatpush1.msk.msra.mxu1 %vm115_vm1, %v2746_v58  ;;  %v6124_v58 = vld [vmem:[%s45634_s0 + $0x30] sm:$0x77] }
  0xec   :  { %5464 = vrot.lane.b32.xlu1 %v5448_v55, %s38236_s22  ;;  %v2732_v62 = vpop.permute.xlu0 %2731  ;;  %36583 = vmatprep.subr.mxu1 %v38228_v11 }
  0xed   :  { %v2748_v0 = vsel %vm2735_vm6, %v2730_v54, %v2732_v62  ;;  %35154 = vmatmul.mubr.msk.f32.vlgmr.msra.gmra.mrb[6].mxu1 %vm111_vm2, %v38916_v30  ;;  %v2749_v4 = vsel %vm2735_vm6, %v2732_v62, %v2734_v60  ;;  %v6123_v54 = vld [vmem:[%s45634_s0 + $0x28] sm:$0x77]  ;;  %v6140_v62 = vcombine.high %v6124_v58, %v6124_v58 }
  0xee   :  { %5462 = vrot.lane.b32.xlu0 %v5432_v51, %s38236_s22  ;;  %36584 = vmatpush3.msk.msra.mxu1 %vm115_vm1, %v2734_v60  ;;  %v3395_v16 = vpop.permute.xlu1 %3394  ;;  %v6139_v56 = vcombine.high %v6123_v54, %v6123_v54  ;;  %v39120_v60 = vld [vmem:[%s45635_s1 + $0x24] sm:$0x3f] }
  0xef   :  { %35155 = vmatprep.subr.msk.mxu0 %vm115_vm1, %v2749_v4  ;;  %36585 = vmatprep.mubr.msk.f32.mxu1 %vm38233_vm3, %v38228_v11 }
  0xf0   :  { %5468 = vrot.lane.b32.xlu1 %v5449_v61, %s38236_s22  ;;  %35156 = vmatpush1.msk.msra.mxu0 %vm115_vm1, %v2748_v0  ;;  %v3393_v3 = vpop.permute.xlu0 %3392 }
  0xf1   :  { %v3424_v20 = vsel %vm3422_vm7, %v3393_v3, %v3395_v16  ;;  %35157 = vmatmul.mubr.msk.f32.vlgmr.msra.gmra.mrb[4].mxu0 %vm111_vm2, %v38916_v30  ;;  %36586 = vmatmul.mubr.msk.f32.vlgmr.msra.gmra.mrb[16].mxu1 %vm111_vm2, %v38916_v30 }
  0xf2   :  { %5466 = vrot.lane.b32.xlu0 %v5433_v57, %s38236_s22  ;;  %v3397_v1 = vpop.permute.xlu1 %3396  ;;  %35160 = vmatprep.subr.msk.mxu0 %vm115_vm1, %v3424_v20  ;;  %v6806_v20 = vld [vmem:[%s45634_s0] sm:$0x77] }
  0xf3   :  { %3535 = vmatprep.mubr.f32.mxu0 %v38228_v11  ;;  %3606 = vmatprep.mubr.f32.mxu1 %v38228_v11  ;;  %v3425_v21 = vsel %vm3422_vm7, %v3395_v16, %v3397_v1 }
  0xf4   :  { %5472 = vrot.lane.b32.xlu1 %v5450_v17, %s38236_s22  ;;  %v3391_v6 = vpop.permute.xlu0 %3390 }
  0xf5   :  { %v3423_v8 = vsel %vm3422_vm7, %v3391_v6, %v3393_v3  ;;  %v6822_v6 = vcombine.high %v6806_v20, %v6806_v20 }
  0xf6   :  { %5470 = vrot.lane.b32.xlu0 %v5434_v63, %s38236_s22  ;;  %v3401_v10 = vpop.permute.xlu1 %3400  ;;  %35161 = vmatpush1.msk.msra.mxu0 %vm115_vm1, %v3423_v8  ;;  %v6125_v63 = vld [vmem:[%s45634_s0 + $0x38] sm:$0x77] }
  0xf7   :  { %35162 = vmatmul.mubr.msk.f32.vlgmr.msra.gmra.mrb[6].mxu0 %vm111_vm2, %v39015_v5  ;;  %v6141_v4 = vcombine.high %v6125_v63, %v6125_v63 }
  0xf8   :  { %5476 = vrot.lane.b32.xlu1 %v5451_v2, %s38236_s22  ;;  %v3399_v12 = vpop.permute.xlu0 %3398  ;;  %3677 = vmatprep.mubr.f32.mxu0 %v38228_v11 }
  0xf9   :  { %v3426_v15 = vsel %vm3422_vm7, %v3397_v1, %v3399_v12  ;;  %v3427_v24 = vsel %vm3422_vm7, %v3399_v12, %v3401_v10  ;;  %v6807_v1 = vld [vmem:[%s45634_s0 + $0x8] sm:$0x77] }
  0xfa   :  { %5474 = vrot.lane.b32.xlu0 %v5435_v19, %s38236_s22  ;;  %v3405_v14 = vpop.permute.xlu1 %3404  ;;  %35163 = vmatprep.subr.msk.mxu1 %vm115_vm1, %v3426_v15  ;;  %v6823_v8 = vcombine.high %v6807_v1, %v6807_v1 }
  0xfb   :  { %35164 = vmatpush1.msk.msra.mxu1 %vm115_vm1, %v3425_v21 }
  0xfc   :  { %5480 = vrot.lane.b32.xlu1 %v5452_v9, %s38236_s22  ;;  %v3403_v22 = vpop.permute.xlu0 %3402  ;;  %35165 = vmatmul.mubr.msk.f32.vlgmr.msra.gmra.mrb[2].mxu1 %vm111_vm2, %v39015_v5  ;;  %v6808_v9 = vld [vmem:[%s45634_s0 + $0x10] sm:$0x77] }
  0xfd   :  { %v3428_v23 = vsel %vm3422_vm7, %v3401_v10, %v3403_v22  ;;  %3748 = vmatprep.mubr.f32.mxu1 %v38228_v11  ;;  %v3429_v30 = vsel %vm3422_vm7, %v3403_v22, %v3405_v14  ;;  %v6824_v15 = vcombine.high %v6808_v9, %v6808_v9 }
  0xfe   :  { %5478 = vrot.lane.b32.xlu0 %v5436_v7, %s38236_s22  ;;  %v3409_v25 = vpop.permute.xlu1 %3408  ;;  %35166 = vmatprep.subr.msk.mxu0 %vm115_vm1, %v3428_v23 }
  0xff   :  { %35167 = vmatpush1.msk.msra.mxu0 %vm115_vm1, %v3427_v24 }
 0x100   :  { %5484 = vrot.lane.b32.xlu1 %v5453_v18, %s38236_s22  ;;  %v3407_v27 = vpop.permute.xlu0 %3406  ;;  %35168 = vmatmul.mubr.msk.f32.vlgmr.msra.gmra.mrb[0].mxu0 %vm111_vm2, %v39015_v5  ;;  %v6809_v18 = vld [vmem:[%s45634_s0 + $0x18] sm:$0x77] }
 0x101   :  { %v3430_v29 = vsel %vm3422_vm7, %v3405_v14, %v3407_v27  ;;  %3819 = vmatprep.mubr.f32.mxu0 %v38228_v11  ;;  %v3431_v37 = vsel %vm3422_vm7, %v3407_v27, %v3409_v25  ;;  %v6825_v24 = vcombine.high %v6809_v18, %v6809_v18 }
 0x102   :  { %5482 = vrot.lane.b32.xlu0 %v5437_v13, %s38236_s22  ;;  %v3413_v32 = vpop.permute.xlu1 %3412  ;;  %35169 = vmatprep.subr.msk.mxu1 %vm115_vm1, %v3430_v29  ;;  %s38247_s22 = smov 28  }
 0x103   :  { %35170 = vmatpush1.msk.msra.mxu1 %vm115_vm1, %v3429_v30 }
 0x104   :  { %6146 = vrot.lane.b32.xlu1 %v6119_v28, %s38237_s27  ;;  %v3411_v34 = vpop.permute.xlu0 %3410  ;;  %35171 = vmatmul.mubr.msk.f32.vlgmr.msra.gmra.mrb[4].mxu1 %vm111_vm2, %v39015_v5 }
 0x105   :  { %v3432_v36 = vsel %vm3422_vm7, %v3409_v25, %v3411_v34  ;;  %3890 = vmatprep.mubr.f32.mxu1 %v38228_v11  ;;  %v3433_v43 = vsel %vm3422_vm7, %v3411_v34, %v3413_v32 }
 0x106   :  { %6144 = vrot.lane.b32.xlu0 %v6134_v31, %s38237_s27  ;;  %v3417_v38 = vpop.permute.xlu1 %3416  ;;  %35172 = vmatprep.subr.msk.mxu0 %vm115_vm1, %v3432_v36  ;;  %v6811_v31 = vld [vmem:[%s45634_s0 + $0x28] sm:$0x77] }
 0x107   :  { %35173 = vmatpush1.msk.msra.mxu0 %vm115_vm1, %v3431_v37 }
 0x108   :  { %6148 = vrot.lane.b32.xlu1 %v6135_v33, %s38237_s27  ;;  %v3415_v40 = vpop.permute.xlu0 %3414  ;;  %35174 = vmatmul.mubr.msk.f32.vlgmr.msra.gmra.mrb[2].mxu0 %vm111_vm2, %v39015_v5 }
 0x109   :  { %v3434_v42 = vsel %vm3422_vm7, %v3413_v32, %v3415_v40  ;;  %3961 = vmatprep.mubr.f32.mxu0 %v38228_v11  ;;  %v3435_v50 = vsel %vm3422_vm7, %v3415_v40, %v3417_v38 }
 0x10a   :  { %6142 = vrot.lane.b32.xlu0 %v6118_v26, %s38237_s27  ;;  %v3421_v44 = vpop.permute.xlu1 %3420  ;;  %35175 = vmatprep.subr.msk.mxu1 %vm115_vm1, %v3434_v42  ;;  %v6810_v26 = vld [vmem:[%s45634_s0 + $0x20] sm:$0x77] }
 0x10b   :  { %35176 = vmatpush1.msk.msra.mxu1 %vm115_vm1, %v3433_v43  ;;  %v6826_v29 = vcombine.high %v6810_v26, %v6810_v26 }
 0x10c   :  { %6152 = vrot.lane.b32.xlu1 %v6136_v39, %s38237_s27  ;;  %v3419_v46 = vpop.permute.xlu0 %3418  ;;  %36588 = vmatprep.subr.mxu1 %v38228_v11 }
 0x10d   :  { %v3437_v48 = vsel %vm3422_vm7, %v3419_v46, %v3421_v44  ;;  %35177 = vmatmul.mubr.msk.f32.vlgmr.msra.gmra.mrb[6].mxu1 %vm111_vm2, %v39015_v5  ;;  %v3436_v49 = vsel %vm3422_vm7, %v3417_v38, %v3419_v46  ;;  %v6812_v38 = vld [vmem:[%s45634_s0 + $0x30] sm:$0x77]  ;;  %v6813_v44 = vld [vmem:[%s45634_s0 + $0x38] sm:$0x77] }
 0x10e   :  { %6150 = vrot.lane.b32.xlu0 %v6120_v35, %s38237_s27  ;;  %35178 = vmatprep.subr.msk.mxu0 %vm115_vm1, %v3436_v49  ;;  %v6827_v35 = vcombine.high %v6811_v31, %v6811_v31  ;;  %v6828_v42 = vcombine.high %v6812_v38, %v6812_v38 }
 0x10f   :  { %v4083_v51 = vpop.permute.xlu1 %4082  ;;  %36589 = vmatpush3.msk.msra.mxu1 %vm115_vm1, %v3437_v48  ;;  %35179 = vmatpush1.msk.msra.mxu0 %vm115_vm1, %v3435_v50  ;;  %v39226_v48 = vld [vmem:[%s45635_s1 + $0x2a] sm:$0x3f] }
 0x110   :  { %6156 = vrot.lane.b32.xlu1 %v6137_v45, %s38237_s27  ;;  %v4081_v53 = vpop.permute.xlu0 %4080  ;;  %35180 = vmatmul.mubr.msk.f32.vlgmr.msra.gmra.mrb[4].mxu0 %vm111_vm2, %v39015_v5 }
 0x111   :  { %v4112_v55 = vsel %vm4110_vm8, %v4081_v53, %v4083_v51  ;;  %36590 = vmatprep.mubr.msk.f32.mxu1 %vm38233_vm3, %v38228_v11  ;;  %4223 = vmatprep.mubr.f32.mxu0 %v38228_v11 }
 0x112   :  { %6154 = vrot.lane.b32.xlu0 %v6121_v41, %s38237_s27  ;;  %35183 = vmatprep.subr.msk.mxu0 %vm115_vm1, %v4112_v55 }
 0x113   :  { %36591 = vmatmul.mubr.msk.f32.vlgmr.msra.gmra.mrb[18].mxu1 %vm111_vm2, %v39015_v5 }
 0x114   :  { %6160 = vrot.lane.b32.xlu1 %v6138_v52, %s38237_s27  ;;  %v4085_v57 = vpop.permute.xlu1 %4084  ;;  %4294 = vmatprep.mubr.f32.mxu1 %v38228_v11 }
 0x115   :  { %v4113_v3 = vsel %vm4110_vm8, %v4083_v51, %v4085_v57  ;;  %v7494_v51 = vld [vmem:[%s45634_s0] sm:$0x77] }
 0x116   :  { %6158 = vrot.lane.b32.xlu0 %v6122_v47, %s38237_s27  ;;  %v4079_v59 = vpop.permute.xlu0 %4078  ;;  %v6829_v47 = vcombine.high %v6813_v44, %v6813_v44 }
 0x117   :  { %v4111_v61 = vsel %vm4110_vm8, %v4079_v59, %v4081_v53 }
 0x118   :  { %6164 = vrot.lane.b32.xlu1 %v6139_v56, %s38237_s27  ;;  %35184 = vmatpush1.msk.msra.mxu0 %vm115_vm1, %v4111_v61  ;;  %v7496_v61 = vld [vmem:[%s45634_s0 + $0x10] sm:$0x77] }
 0x119   :  { %35185 = vmatmul.mubr.msk.f32.vlgmr.msra.gmra.mrb[6].mxu0 %vm111_vm2, %v39120_v60 }
 0x11a   :  { %6162 = vrot.lane.b32.xlu0 %v6123_v54, %s38237_s27  ;;  %v4089_v0 = vpop.permute.xlu1 %4088  ;;  %4365 = vmatprep.mubr.f32.mxu0 %v38228_v11  ;;  %v7495_v54 = vld [vmem:[%s45634_s0 + $0x8] sm:$0x77] }
 0x11c   :  { %6168 = vrot.lane.b32.xlu1 %v6140_v62, %s38237_s27 }
 0x11d   :  { %v4087_v16 = vpop.permute.xlu0 %4086 }
 0x11e   :  { %6166 = vrot.lane.b32.xlu0 %v6124_v58, %s38237_s27  ;;  %v4114_v17 = vsel %vm4110_vm8, %v4085_v57, %v4087_v16  ;;  %v4115_v7 = vsel %vm4110_vm8, %v4087_v16, %v4089_v0  ;;  %v7510_v57 = vcombine.high %v7494_v51, %v7494_v51  ;;  %v7511_v58 = vcombine.high %v7495_v54, %v7495_v54 }
 0x11f   :  { %v4093_v19 = vpop.permute.xlu1 %4092  ;;  %35186 = vmatprep.subr.msk.mxu1 %vm115_vm1, %v4114_v17  ;;  %v7497_v17 = vld [vmem:[%s45634_s0 + $0x18] sm:$0x77] }
 0x120   :  { %6172 = vrot.lane.b32.xlu1 %v6141_v4, %s38237_s27  ;;  %35187 = vmatpush1.msk.msra.mxu1 %vm115_vm1, %v4113_v3  ;;  %v7512_v4 = vcombine.high %v7496_v61, %v7496_v61 }
 0x121   :  { %35188 = vmatmul.mubr.msk.f32.vlgmr.msra.gmra.mrb[2].mxu1 %vm111_vm2, %v39120_v60 }
 0x122   :  { %6170 = vrot.lane.b32.xlu0 %v6125_v63, %s38237_s27  ;;  %v4091_v2 = vpop.permute.xlu0 %4090  ;;  %4436 = vmatprep.mubr.f32.mxu1 %v38228_v11  ;;  %s38243_s27 = smov 32  }
 0x123   :  { %v4116_v5 = vsel %vm4110_vm8, %v4089_v0, %v4091_v2  ;;  %v4117_v21 = vsel %vm4110_vm8, %v4091_v2, %v4093_v19 }
 0x124   :  { %6834 = vrot.lane.b32.xlu1 %v6807_v1, %s38238_s12  ;;  %v4097_v10 = vpop.permute.xlu1 %4096  ;;  %35189 = vmatprep.subr.msk.mxu0 %vm115_vm1, %v4116_v5  ;;  %v7513_v1 = vcombine.high %v7497_v17, %v7497_v17 }
 0x125   :  { %35190 = vmatpush1.msk.msra.mxu0 %vm115_vm1, %v4115_v7 }
 0x126   :  { %6832 = vrot.lane.b32.xlu0 %v6822_v6, %s38238_s12  ;;  %35191 = vmatmul.mubr.msk.f32.vlgmr.msra.gmra.mrb[0].mxu0 %vm111_vm2, %v39120_v60  ;;  %v7498_v6 = vld [vmem:[%s45634_s0 + $0x20] sm:$0x77] }
 0x127   :  { %v4095_v12 = vpop.permute.xlu0 %4094  ;;  %4507 = vmatprep.mubr.f32.mxu0 %v38228_v11 }
 0x128   :  { %6836 = vrot.lane.b32.xlu1 %v6823_v8, %s38238_s12  ;;  %v4118_v13 = vsel %vm4110_vm8, %v4093_v19, %v4095_v12  ;;  %v4119_v25 = vsel %vm4110_vm8, %v4095_v12, %v4097_v10  ;;  %v7499_v12 = vld [vmem:[%s45634_s0 + $0x28] sm:$0x77] }
 0x129   :  { %v4101_v14 = vpop.permute.xlu1 %4100  ;;  %35192 = vmatprep.subr.msk.mxu1 %vm115_vm1, %v4118_v13 }
 0x12a   :  { %6830 = vrot.lane.b32.xlu0 %v6806_v20, %s38238_s12  ;;  %35193 = vmatpush1.msk.msra.mxu1 %vm115_vm1, %v4117_v21 }
 0x12b   :  { %v4099_v22 = vpop.permute.xlu0 %4098  ;;  %35194 = vmatmul.mubr.msk.f32.vlgmr.msra.gmra.mrb[4].mxu1 %vm111_vm2, %v39120_v60 }
 0x12c   :  { %6840 = vrot.lane.b32.xlu1 %v6824_v15, %s38238_s12  ;;  %v4120_v23 = vsel %vm4110_vm8, %v4097_v10, %v4099_v22  ;;  %4578 = vmatprep.mubr.f32.mxu1 %v38228_v11  ;;  %v4121_v32 = vsel %vm4110_vm8, %v4099_v22, %v4101_v14  ;;  %v7514_v10 = vcombine.high %v7498_v6, %v7498_v6 }
 0x12d   :  { %35195 = vmatprep.subr.msk.mxu0 %vm115_vm1, %v4120_v23  ;;  %v7500_v23 = vld [vmem:[%s45634_s0 + $0x30] sm:$0x77] }
 0x12e   :  { %v4105_v27 = vpop.permute.xlu1 %4104  ;;  %6838 = vrot.lane.b32.xlu0 %v6808_v9, %s38238_s12  ;;  %35196 = vmatpush1.msk.msra.mxu0 %vm115_vm1, %v4119_v25 }
 0x12f   :  { %35197 = vmatmul.mubr.msk.f32.vlgmr.msra.gmra.mrb[2].mxu0 %vm111_vm2, %v39120_v60 }
 0x130   :  { %6844 = vrot.lane.b32.xlu1 %v6825_v24, %s38238_s12  ;;  %v4103_v28 = vpop.permute.xlu0 %4102  ;;  %4649 = vmatprep.mubr.f32.mxu0 %v38228_v11 }
 0x131   :  { %v4122_v30 = vsel %vm4110_vm8, %v4101_v14, %v4103_v28  ;;  %v4123_v39 = vsel %vm4110_vm8, %v4103_v28, %v4105_v27  ;;  %v7515_v14 = vcombine.high %v7499_v12, %v7499_v12 }
 0x132   :  { %v4109_v33 = vpop.permute.xlu1 %4108  ;;  %6842 = vrot.lane.b32.xlu0 %v6809_v18, %s38238_s12  ;;  %35198 = vmatprep.subr.msk.mxu1 %vm115_vm1, %v4122_v30 }
 0x133   :  { %35199 = vmatpush1.msk.msra.mxu1 %vm115_vm1, %v4121_v32 }
 0x134   :  { %6848 = vrot.lane.b32.xlu1 %v6826_v29, %s38238_s12  ;;  %v4107_v34 = vpop.permute.xlu0 %4106  ;;  %36593 = vmatprep.subr.mxu1 %v38228_v11  ;;  %v7501_v29 = vld [vmem:[%s45634_s0 + $0x38] sm:$0x77] }
 0x135   :  { %v4125_v36 = vsel %vm4110_vm8, %v4107_v34, %v4109_v33  ;;  %35200 = vmatmul.mubr.msk.f32.vlgmr.msra.gmra.mrb[6].mxu1 %vm111_vm2, %v39120_v60  ;;  %v4124_v37 = vsel %vm4110_vm8, %v4105_v27, %v4107_v34  ;;  %v7516_v27 = vcombine.high %v7500_v23, %v7500_v23  ;;  %v7517_v32 = vcombine.high %v7501_v29, %v7501_v29  ;;  %v39327_v33 = vld [vmem:[%s45635_s1 + $0x30] sm:$0x3f] }
 0x136   :  { %v4771_v40 = vpop.permute.xlu1 %4770  ;;  %6846 = vrot.lane.b32.xlu0 %v6810_v26, %s38238_s12  ;;  %35201 = vmatprep.subr.msk.mxu0 %vm115_vm1, %v4124_v37  ;;  %vm9614_vm8 = vcmask 490496  }
 0x137   :  { %36594 = vmatpush3.msk.msra.mxu1 %vm115_vm1, %v4125_v36  ;;  %35202 = vmatpush1.msk.msra.mxu0 %vm115_vm1, %v4123_v39  ;;  %v8182_v36 = vld [vmem:[%s45634_s0] sm:$0x77]  ;;  %v8183_v39 = vld [vmem:[%s45634_s0 + $0x8] sm:$0x77] }
 0x138   :  { %6852 = vrot.lane.b32.xlu1 %v6827_v35, %s38238_s12  ;;  %v4769_v41 = vpop.permute.xlu0 %4768  ;;  %35203 = vmatmul.mubr.msk.f32.vlgmr.msra.gmra.mrb[4].mxu0 %vm111_vm2, %v39120_v60 }
 0x139   :  { %v4800_v43 = vsel %vm4798_vm9, %v4769_v41, %v4771_v40  ;;  %36595 = vmatprep.mubr.msk.f32.mxu1 %vm38233_vm3, %v38228_v11  ;;  %4911 = vmatprep.mubr.f32.mxu0 %v38228_v11 }
 0x13a   :  { %v4773_v45 = vpop.permute.xlu1 %4772  ;;  %6850 = vrot.lane.b32.xlu0 %v6811_v31, %s38238_s12  ;;  %35206 = vmatprep.subr.msk.mxu0 %vm115_vm1, %v4800_v43  ;;  %v8199_v43 = vcombine.high %v8183_v39, %v8183_v39 }
 0x13b   :  { %36596 = vmatmul.mubr.msk.f32.vlgmr.msra.gmra.mrb[20].mxu1 %vm111_vm2, %v39120_v60  ;;  %v4801_v55 = vsel %vm4798_vm9, %v4771_v40, %v4773_v45 }
 0x13c   :  { %6856 = vrot.lane.b32.xlu1 %v6828_v42, %s38238_s12  ;;  %v4767_v46 = vpop.permute.xlu0 %4766  ;;  %4982 = vmatprep.mubr.f32.mxu1 %v38228_v11  ;;  %v8198_v42 = vcombine.high %v8182_v36, %v8182_v36 }
 0x13d   :  { %v4799_v49 = vsel %vm4798_vm9, %v4767_v46, %v4769_v41  ;;  %v8184_v46 = vld [vmem:[%s45634_s0 + $0x10] sm:$0x77] }
 0x13e   :  { %v4777_v50 = vpop.permute.xlu1 %4776  ;;  %6854 = vrot.lane.b32.xlu0 %v6812_v38, %s38238_s12  ;;  %35207 = vmatpush1.msk.msra.mxu0 %vm115_vm1, %v4799_v49 }
 0x13f   :  { %35208 = vmatmul.mubr.msk.f32.vlgmr.msra.gmra.mrb[6].mxu0 %vm111_vm2, %v39226_v48 }
 0x140   :  { %6860 = vrot.lane.b32.xlu1 %v6829_v47, %s38238_s12  ;;  %v4775_v52 = vpop.permute.xlu0 %4774  ;;  %5053 = vmatprep.mubr.f32.mxu0 %v38228_v11 }
 0x141   :  { %v4802_v53 = vsel %vm4798_vm9, %v4773_v45, %v4775_v52  ;;  %v4803_v62 = vsel %vm4798_vm9, %v4775_v52, %v4777_v50  ;;  %v8185_v52 = vld [vmem:[%s45634_s0 + $0x18] sm:$0x77] }
 0x142   :  { %v4781_v56 = vpop.permute.xlu1 %4780  ;;  %6858 = vrot.lane.b32.xlu0 %v6813_v44, %s38238_s12  ;;  %35209 = vmatprep.subr.msk.mxu1 %vm115_vm1, %v4802_v53 }
 0x143   :  { %35210 = vmatpush1.msk.msra.mxu1 %vm115_vm1, %v4801_v55 }
 0x144   :  { %7522 = vrot.lane.b32.xlu1 %v7495_v54, %s38239_s17  ;;  %v4779_v59 = vpop.permute.xlu0 %4778  ;;  %35211 = vmatmul.mubr.msk.f32.vlgmr.msra.gmra.mrb[2].mxu1 %vm111_vm2, %v39226_v48 }
 0x145   :  { %v4804_v60 = vsel %vm4798_vm9, %v4777_v50, %v4779_v59  ;;  %5124 = vmatprep.mubr.f32.mxu1 %v38228_v11  ;;  %v4805_v3 = vsel %vm4798_vm9, %v4779_v59, %v4781_v56  ;;  %v8200_v50 = vcombine.high %v8184_v46, %v8184_v46 }
 0x146   :  { %v4785_v63 = vpop.permute.xlu1 %4784  ;;  %7520 = vrot.lane.b32.xlu0 %v7510_v57, %s38239_s17  ;;  %35212 = vmatprep.subr.msk.mxu0 %vm115_vm1, %v4804_v60 }
 0x147   :  { %35213 = vmatpush1.msk.msra.mxu0 %vm115_vm1, %v4803_v62 }
 0x148   :  { %7524 = vrot.lane.b32.xlu1 %v7511_v58, %s38239_s17  ;;  %v4783_v0 = vpop.permute.xlu0 %4782  ;;  %35214 = vmatmul.mubr.msk.f32.vlgmr.msra.gmra.mrb[0].mxu0 %vm111_vm2, %v39226_v48  ;;  %v8186_v58 = vld [vmem:[%s45634_s0 + $0x20] sm:$0x77] }
 0x149   :  { %v4806_v16 = vsel %vm4798_vm9, %v4781_v56, %v4783_v0  ;;  %5195 = vmatprep.mubr.f32.mxu0 %v38228_v11  ;;  %v4807_v5 = vsel %vm4798_vm9, %v4783_v0, %v4785_v63  ;;  %v8201_v56 = vcombine.high %v8185_v52, %v8185_v52  ;;  %v8202_v62 = vcombine.high %v8186_v58, %v8186_v58  ;;  %v8187_v0 = vld [vmem:[%s45634_s0 + $0x28] sm:$0x77] }
 0x14a   :  { %v4789_v19 = vpop.permute.xlu1 %4788  ;;  %7518 = vrot.lane.b32.xlu0 %v7494_v51, %s38239_s17  ;;  %35215 = vmatprep.subr.msk.mxu1 %vm115_vm1, %v4806_v16 }
 0x14b   :  { %35216 = vmatpush1.msk.msra.mxu1 %vm115_vm1, %v4805_v3  ;;  %v8203_v3 = vcombine.high %v8187_v0, %v8187_v0 }
 0x14c   :  { %7528 = vrot.lane.b32.xlu1 %v7512_v4, %s38239_s17  ;;  %v4787_v20 = vpop.permute.xlu0 %4786  ;;  %35217 = vmatmul.mubr.msk.f32.vlgmr.msra.gmra.mrb[4].mxu1 %vm111_vm2, %v39226_v48 }
 0x14d   :  { %v4808_v2 = vsel %vm4798_vm9, %v4785_v63, %v4787_v20  ;;  %5266 = vmatprep.mubr.f32.mxu1 %v38228_v11  ;;  %v4809_v13 = vsel %vm4798_vm9, %v4787_v20, %v4789_v19 }
 0x14e   :  { %v4793_v7 = vpop.permute.xlu1 %4792  ;;  %7526 = vrot.lane.b32.xlu0 %v7496_v61, %s38239_s17  ;;  %35218 = vmatprep.subr.msk.mxu0 %vm115_vm1, %v4808_v2 }
 0x14f   :  { %35219 = vmatpush1.msk.msra.mxu0 %vm115_vm1, %v4807_v5 }
 0x150   :  { %7532 = vrot.lane.b32.xlu1 %v7513_v1, %s38239_s17  ;;  %v4791_v8 = vpop.permute.xlu0 %4790  ;;  %35220 = vmatmul.mubr.msk.f32.vlgmr.msra.gmra.mrb[2].mxu0 %vm111_vm2, %v39226_v48  ;;  %v8188_v1 = vld [vmem:[%s45634_s0 + $0x30] sm:$0x77] }
 0x151   :  { %v4810_v9 = vsel %vm4798_vm9, %v4789_v19, %v4791_v8  ;;  %5337 = vmatprep.mubr.f32.mxu0 %v38228_v11  ;;  %v4811_v24 = vsel %vm4798_vm9, %v4791_v8, %v4793_v7 }
 0x152   :  { %v4797_v15 = vpop.permute.xlu1 %4796  ;;  %7530 = vrot.lane.b32.xlu0 %v7497_v17, %s38239_s17  ;;  %35221 = vmatprep.subr.msk.mxu1 %vm115_vm1, %v4810_v9 }
 0x153   :  { %35222 = vmatpush1.msk.msra.mxu1 %vm115_vm1, %v4809_v13 }
 0x154   :  { %7536 = vrot.lane.b32.xlu1 %v7514_v10, %s38239_s17  ;;  %v4795_v21 = vpop.permute.xlu0 %4794  ;;  %36598 = vmatprep.subr.mxu1 %v38228_v11  ;;  %v8189_v10 = vld [vmem:[%s45634_s0 + $0x38] sm:$0x77] }
 0x155   :  { %v4813_v18 = vsel %vm4798_vm9, %v4795_v21, %v4797_v15  ;;  %35223 = vmatmul.mubr.msk.f32.vlgmr.msra.gmra.mrb[6].mxu1 %vm111_vm2, %v39226_v48  ;;  %v4812_v22 = vsel %vm4798_vm9, %v4793_v7, %v4795_v21  ;;  %v8204_v7 = vcombine.high %v8188_v1, %v8188_v1  ;;  %v8205_v13 = vcombine.high %v8189_v10, %v8189_v10  ;;  %v39428_v15 = vld [vmem:[%s45635_s1 + $0x36] sm:$0x3f] }
 0x156   :  { %v5459_v25 = vpop.permute.xlu1 %5458  ;;  %7534 = vrot.lane.b32.xlu0 %v7498_v6, %s38239_s17  ;;  %35224 = vmatprep.subr.msk.mxu0 %vm115_vm1, %v4812_v22  ;;  %vm10302_vm9 = vcmask 261120  }
 0x157   :  { %36599 = vmatpush3.msk.msra.mxu1 %vm115_vm1, %v4813_v18  ;;  %35225 = vmatpush1.msk.msra.mxu0 %vm115_vm1, %v4811_v24  ;;  %v8870_v18 = vld [vmem:[%s45634_s0] sm:$0x77]  ;;  %v8871_v24 = vld [vmem:[%s45634_s0 + $0x8] sm:$0x77] }
 0x158   :  { %7540 = vrot.lane.b32.xlu1 %v7515_v14, %s38239_s17  ;;  %v5457_v26 = vpop.permute.xlu0 %5456  ;;  %35226 = vmatmul.mubr.msk.f32.vlgmr.msra.gmra.mrb[4].mxu0 %vm111_vm2, %v39226_v48 }
 0x159   :  { %v5488_v28 = vsel %vm5486_vm10, %v5457_v26, %v5459_v25  ;;  %36600 = vmatprep.mubr.msk.f32.mxu1 %vm38233_vm3, %v38228_v11  ;;  %5599 = vmatprep.mubr.f32.mxu0 %v38228_v11 }
 0x15a   :  { %v5461_v30 = vpop.permute.xlu1 %5460  ;;  %7538 = vrot.lane.b32.xlu0 %v7499_v12, %s38239_s17  ;;  %35229 = vmatprep.subr.msk.mxu0 %vm115_vm1, %v5488_v28  ;;  %v8887_v28 = vcombine.high %v8871_v24, %v8871_v24 }
 0x15b   :  { %36601 = vmatmul.mubr.msk.f32.vlgmr.msra.gmra.mrb[22].mxu1 %vm111_vm2, %v39226_v48  ;;  %v5489_v40 = vsel %vm5486_vm10, %v5459_v25, %v5461_v30 }
 0x15c   :  { %7544 = vrot.lane.b32.xlu1 %v7516_v27, %s38239_s17  ;;  %v5455_v31 = vpop.permute.xlu0 %5454  ;;  %5670 = vmatprep.mubr.f32.mxu1 %v38228_v11  ;;  %v8886_v27 = vcombine.high %v8870_v18, %v8870_v18 }
 0x15d   :  { %v5487_v34 = vsel %vm5486_vm10, %v5455_v31, %v5457_v26  ;;  %v8872_v31 = vld [vmem:[%s45634_s0 + $0x10] sm:$0x77] }
 0x15e   :  { %v5465_v35 = vpop.permute.xlu1 %5464  ;;  %7542 = vrot.lane.b32.xlu0 %v7500_v23, %s38239_s17  ;;  %35230 = vmatpush1.msk.msra.mxu0 %vm115_vm1, %v5487_v34 }
 0x15f   :  { %35231 = vmatmul.mubr.msk.f32.vlgmr.msra.gmra.mrb[6].mxu0 %vm111_vm2, %v39327_v33 }
 0x160   :  { %7548 = vrot.lane.b32.xlu1 %v7517_v32, %s38239_s17  ;;  %v5463_v37 = vpop.permute.xlu0 %5462  ;;  %5741 = vmatprep.mubr.f32.mxu0 %v38228_v11 }
 0x161   :  { %v5490_v38 = vsel %vm5486_vm10, %v5461_v30, %v5463_v37  ;;  %v5491_v47 = vsel %vm5486_vm10, %v5463_v37, %v5465_v35  ;;  %v8873_v37 = vld [vmem:[%s45634_s0 + $0x18] sm:$0x77] }
 0x162   :  { %v5469_v41 = vpop.permute.xlu1 %5468  ;;  %7546 = vrot.lane.b32.xlu0 %v7501_v29, %s38239_s17  ;;  %35232 = vmatprep.subr.msk.mxu1 %vm115_vm1, %v5490_v38  ;;  %s38255_s17 = smov 117  }
 0x163   :  { %35233 = vmatpush1.msk.msra.mxu1 %vm115_vm1, %v5489_v40 }
 0x164   :  { %8210 = vrot.lane.b32.xlu1 %v8183_v39, %s38240_s28  ;;  %v5467_v44 = vpop.permute.xlu0 %5466  ;;  %35234 = vmatmul.mubr.msk.f32.vlgmr.msra.gmra.mrb[2].mxu1 %vm111_vm2, %v39327_v33 }
 0x165   :  { %v5492_v45 = vsel %vm5486_vm10, %v5465_v35, %v5467_v44  ;;  %5812 = vmatprep.mubr.f32.mxu1 %v38228_v11  ;;  %v5493_v53 = vsel %vm5486_vm10, %v5467_v44, %v5469_v41  ;;  %v8888_v35 = vcombine.high %v8872_v31, %v8872_v31 }
 0x166   :  { %v5473_v48 = vpop.permute.xlu1 %5472  ;;  %8208 = vrot.lane.b32.xlu0 %v8198_v42, %s38240_s28  ;;  %35235 = vmatprep.subr.msk.mxu0 %vm115_vm1, %v5492_v45 }
 0x167   :  { %35236 = vmatpush1.msk.msra.mxu0 %vm115_vm1, %v5491_v47 }
 0x168   :  { %8212 = vrot.lane.b32.xlu1 %v8199_v43, %s38240_s28  ;;  %v5471_v49 = vpop.permute.xlu0 %5470  ;;  %35237 = vmatmul.mubr.msk.f32.vlgmr.msra.gmra.mrb[0].mxu0 %vm111_vm2, %v39327_v33  ;;  %v8874_v43 = vld [vmem:[%s45634_s0 + $0x20] sm:$0x77] }
 0x169   :  { %v5494_v51 = vsel %vm5486_vm10, %v5469_v41, %v5471_v49  ;;  %5883 = vmatprep.mubr.f32.mxu0 %v38228_v11  ;;  %v5495_v59 = vsel %vm5486_vm10, %v5471_v49, %v5473_v48  ;;  %v8889_v41 = vcombine.high %v8873_v37, %v8873_v37  ;;  %v8890_v47 = vcombine.high %v8874_v43, %v8874_v43  ;;  %v8875_v49 = vld [vmem:[%s45634_s0 + $0x28] sm:$0x77] }
 0x16a   :  { %v5477_v54 = vpop.permute.xlu1 %5476  ;;  %8206 = vrot.lane.b32.xlu0 %v8182_v36, %s38240_s28  ;;  %35238 = vmatprep.subr.msk.mxu1 %vm115_vm1, %v5494_v51 }
 0x16b   :  { %35239 = vmatpush1.msk.msra.mxu1 %vm115_vm1, %v5493_v53  ;;  %v8891_v53 = vcombine.high %v8875_v49, %v8875_v49 }
 0x16c   :  { %8216 = vrot.lane.b32.xlu1 %v8200_v50, %s38240_s28  ;;  %v5475_v55 = vpop.permute.xlu0 %5474  ;;  %35240 = vmatmul.mubr.msk.f32.vlgmr.msra.gmra.mrb[4].mxu1 %vm111_vm2, %v39327_v33 }
 0x16d   :  { %v5496_v57 = vsel %vm5486_vm10, %v5473_v48, %v5475_v55  ;;  %5954 = vmatprep.mubr.f32.mxu1 %v38228_v11  ;;  %v5497_v4 = vsel %vm5486_vm10, %v5475_v55, %v5477_v54 }
 0x16e   :  { %v5481_v60 = vpop.permute.xlu1 %5480  ;;  %8214 = vrot.lane.b32.xlu0 %v8184_v46, %s38240_s28  ;;  %35241 = vmatprep.subr.msk.mxu0 %vm115_vm1, %v5496_v57 }
 0x16f   :  { %35242 = vmatpush1.msk.msra.mxu0 %vm115_vm1, %v5495_v59 }
 0x170   :  { %8220 = vrot.lane.b32.xlu1 %v8201_v56, %s38240_s28  ;;  %v5479_v61 = vpop.permute.xlu0 %5478  ;;  %35243 = vmatmul.mubr.msk.f32.vlgmr.msra.gmra.mrb[2].mxu0 %vm111_vm2, %v39327_v33  ;;  %v8876_v56 = vld [vmem:[%s45634_s0 + $0x30] sm:$0x77] }
 0x171   :  { %v5498_v63 = vsel %vm5486_vm10, %v5477_v54, %v5479_v61  ;;  %6025 = vmatprep.mubr.f32.mxu0 %v38228_v11  ;;  %v5499_v2 = vsel %vm5486_vm10, %v5479_v61, %v5481_v60 }
 0x172   :  { %v5485_v16 = vpop.permute.xlu1 %5484  ;;  %8218 = vrot.lane.b32.xlu0 %v8185_v52, %s38240_s28  ;;  %35244 = vmatprep.subr.msk.mxu1 %vm115_vm1, %v5498_v63 }
 0x173   :  { %35245 = vmatpush1.msk.msra.mxu1 %vm115_vm1, %v5497_v4 }
 0x174   :  { %8224 = vrot.lane.b32.xlu1 %v8202_v62, %s38240_s28  ;;  %v5483_v17 = vpop.permute.xlu0 %5482  ;;  %36603 = vmatprep.subr.mxu1 %v38228_v11  ;;  %v8877_v62 = vld [vmem:[%s45634_s0 + $0x38] sm:$0x77] }
 0x175   :  { %v5501_v19 = vsel %vm5486_vm10, %v5483_v17, %v5485_v16  ;;  %35246 = vmatmul.mubr.msk.f32.vlgmr.msra.gmra.mrb[6].mxu1 %vm111_vm2, %v39327_v33  ;;  %v5500_v20 = vsel %vm5486_vm10, %v5481_v60, %v5483_v17  ;;  %v8892_v60 = vcombine.high %v8876_v56, %v8876_v56  ;;  %v8893_v4 = vcombine.high %v8877_v62, %v8877_v62  ;;  %v39529_v16 = vld [vmem:[%s45635_s1 + $0x3c] sm:$0x3f] }
 0x176   :  { %v6147_v6 = vpop.permute.xlu1 %6146  ;;  %8222 = vrot.lane.b32.xlu0 %v8186_v58, %s38240_s28  ;;  %35247 = vmatprep.subr.msk.mxu0 %vm115_vm1, %v5500_v20  ;;  %vm10990_vm10 = vcmask 252928  }
 0x177   :  { %36604 = vmatpush3.msk.msra.mxu1 %vm115_vm1, %v5501_v19  ;;  %35248 = vmatpush1.msk.msra.mxu0 %vm115_vm1, %v5499_v2  ;;  %v9558_v19 = vld [vmem:[%s45634_s0] sm:$0x77]  ;;  %v9559_v2 = vld [vmem:[%s45634_s0 + $0x8] sm:$0x77] }
 0x178   :  { %8228 = vrot.lane.b32.xlu1 %v8203_v3, %s38240_s28  ;;  %v6145_v5 = vpop.permute.xlu0 %6144  ;;  %35249 = vmatmul.mubr.msk.f32.vlgmr.msra.gmra.mrb[4].mxu0 %vm111_vm2, %v39327_v33 }
 0x179   :  { %v6176_v8 = vsel %vm6174_vm11, %v6145_v5, %v6147_v6  ;;  %36605 = vmatprep.mubr.msk.f32.mxu1 %vm38233_vm3, %v38228_v11  ;;  %6287 = vmatprep.mubr.f32.mxu0 %v38228_v11 }
 0x17a   :  { %v6149_v9 = vpop.permute.xlu1 %6148  ;;  %8226 = vrot.lane.b32.xlu0 %v8187_v0, %s38240_s28  ;;  %35252 = vmatprep.subr.msk.mxu0 %vm115_vm1, %v6176_v8  ;;  %v9575_v8 = vcombine.high %v9559_v2, %v9559_v2 }
 0x17b   :  { %36606 = vmatmul.mubr.msk.f32.vlgmr.msra.gmra.mrb[24].mxu1 %vm111_vm2, %v39327_v33  ;;  %v6177_v25 = vsel %vm6174_vm11, %v6147_v6, %v6149_v9 }
 0x17c   :  { %8232 = vrot.lane.b32.xlu1 %v8204_v7, %s38240_s28  ;;  %v6143_v12 = vpop.permute.xlu0 %6142  ;;  %6358 = vmatprep.mubr.f32.mxu1 %v38228_v11  ;;  %v9574_v7 = vcombine.high %v9558_v19, %v9558_v19 }
 0x17d   :  { %v6175_v21 = vsel %vm6174_vm11, %v6143_v12, %v6145_v5  ;;  %v9560_v12 = vld [vmem:[%s45634_s0 + $0x10] sm:$0x77] }
 0x17e   :  { %v6153_v14 = vpop.permute.xlu1 %6152  ;;  %8230 = vrot.lane.b32.xlu0 %v8188_v1, %s38240_s28  ;;  %35253 = vmatpush1.msk.msra.mxu0 %vm115_vm1, %v6175_v21 }
 0x17f   :  { %35254 = vmatmul.mubr.msk.f32.vlgmr.msra.gmra.mrb[6].mxu0 %vm111_vm2, %v39428_v15 }
 0x180   :  { %8236 = vrot.lane.b32.xlu1 %v8205_v13, %s38240_s28  ;;  %v6151_v22 = vpop.permute.xlu0 %6150  ;;  %6429 = vmatprep.mubr.f32.mxu0 %v38228_v11 }
 0x181   :  { %v6178_v23 = vsel %vm6174_vm11, %v6149_v9, %v6151_v22  ;;  %v6179_v32 = vsel %vm6174_vm11, %v6151_v22, %v6153_v14  ;;  %v9561_v22 = vld [vmem:[%s45634_s0 + $0x18] sm:$0x77] }
 0x182   :  { %v6157_v26 = vpop.permute.xlu1 %6156  ;;  %8234 = vrot.lane.b32.xlu0 %v8189_v10, %s38240_s28  ;;  %35255 = vmatprep.subr.msk.mxu1 %vm115_vm1, %v6178_v23 }
 0x183   :  { %35256 = vmatpush1.msk.msra.mxu1 %vm115_vm1, %v6177_v25 }
 0x184   :  { %8898 = vrot.lane.b32.xlu1 %v8871_v24, %s38241_s14  ;;  %v6155_v29 = vpop.permute.xlu0 %6154  ;;  %35257 = vmatmul.mubr.msk.f32.vlgmr.msra.gmra.mrb[2].mxu1 %vm111_vm2, %v39428_v15 }
 0x185   :  { %v6180_v30 = vsel %vm6174_vm11, %v6153_v14, %v6155_v29  ;;  %6500 = vmatprep.mubr.f32.mxu1 %v38228_v11  ;;  %v6181_v38 = vsel %vm6174_vm11, %v6155_v29, %v6157_v26  ;;  %v9576_v14 = vcombine.high %v9560_v12, %v9560_v12 }
 0x186   :  { %v6161_v33 = vpop.permute.xlu1 %6160  ;;  %8896 = vrot.lane.b32.xlu0 %v8886_v27, %s38241_s14  ;;  %35258 = vmatprep.subr.msk.mxu0 %vm115_vm1, %v6180_v30 }
 0x187   :  { %35259 = vmatpush1.msk.msra.mxu0 %vm115_vm1, %v6179_v32 }
 0x188   :  { %8900 = vrot.lane.b32.xlu1 %v8887_v28, %s38241_s14  ;;  %v6159_v34 = vpop.permute.xlu0 %6158  ;;  %35260 = vmatmul.mubr.msk.f32.vlgmr.msra.gmra.mrb[0].mxu0 %vm111_vm2, %v39428_v15  ;;  %v9562_v28 = vld [vmem:[%s45634_s0 + $0x20] sm:$0x77] }
 0x189   :  { %v6182_v36 = vsel %vm6174_vm11, %v6157_v26, %v6159_v34  ;;  %6571 = vmatprep.mubr.f32.mxu0 %v38228_v11  ;;  %v6183_v44 = vsel %vm6174_vm11, %v6159_v34, %v6161_v33  ;;  %v9577_v26 = vcombine.high %v9561_v22, %v9561_v22  ;;  %v9578_v32 = vcombine.high %v9562_v28, %v9562_v28  ;;  %v9563_v34 = vld [vmem:[%s45634_s0 + $0x28] sm:$0x77] }
 0x18a   :  { %v6165_v39 = vpop.permute.xlu1 %6164  ;;  %8894 = vrot.lane.b32.xlu0 %v8870_v18, %s38241_s14  ;;  %35261 = vmatprep.subr.msk.mxu1 %vm115_vm1, %v6182_v36 }
 0x18b   :  { %35262 = vmatpush1.msk.msra.mxu1 %vm115_vm1, %v6181_v38  ;;  %v9579_v38 = vcombine.high %v9563_v34, %v9563_v34 }
 0x18c   :  { %8904 = vrot.lane.b32.xlu1 %v8888_v35, %s38241_s14  ;;  %v6163_v40 = vpop.permute.xlu0 %6162  ;;  %35263 = vmatmul.mubr.msk.f32.vlgmr.msra.gmra.mrb[4].mxu1 %vm111_vm2, %v39428_v15 }
 0x18d   :  { %v6184_v42 = vsel %vm6174_vm11, %v6161_v33, %v6163_v40  ;;  %6642 = vmatprep.mubr.f32.mxu1 %v38228_v11  ;;  %v6185_v50 = vsel %vm6174_vm11, %v6163_v40, %v6165_v39 }
 0x18e   :  { %v6169_v45 = vpop.permute.xlu1 %6168  ;;  %8902 = vrot.lane.b32.xlu0 %v8872_v31, %s38241_s14  ;;  %35264 = vmatprep.subr.msk.mxu0 %vm115_vm1, %v6184_v42 }
 0x18f   :  { %35265 = vmatpush1.msk.msra.mxu0 %vm115_vm1, %v6183_v44 }
 0x190   :  { %8908 = vrot.lane.b32.xlu1 %v8889_v41, %s38241_s14  ;;  %v6167_v46 = vpop.permute.xlu0 %6166  ;;  %35266 = vmatmul.mubr.msk.f32.vlgmr.msra.gmra.mrb[2].mxu0 %vm111_vm2, %v39428_v15  ;;  %v9564_v41 = vld [vmem:[%s45634_s0 + $0x30] sm:$0x77] }
 0x191   :  { %v6186_v48 = vsel %vm6174_vm11, %v6165_v39, %v6167_v46  ;;  %6713 = vmatprep.mubr.f32.mxu0 %v38228_v11  ;;  %v6187_v57 = vsel %vm6174_vm11, %v6167_v46, %v6169_v45 }
 0x192   :  { %v6173_v51 = vpop.permute.xlu1 %6172  ;;  %8906 = vrot.lane.b32.xlu0 %v8873_v37, %s38241_s14  ;;  %35267 = vmatprep.subr.msk.mxu1 %vm115_vm1, %v6186_v48 }
 0x193   :  { %35268 = vmatpush1.msk.msra.mxu1 %vm115_vm1, %v6185_v50 }
 0x194   :  { %8912 = vrot.lane.b32.xlu1 %v8890_v47, %s38241_s14  ;;  %v6171_v52 = vpop.permute.xlu0 %6170  ;;  %36608 = vmatprep.subr.mxu1 %v38228_v11  ;;  %v9565_v47 = vld [vmem:[%s45634_s0 + $0x38] sm:$0x77] }
 0x195   :  { %v6189_v54 = vsel %vm6174_vm11, %v6171_v52, %v6173_v51  ;;  %35269 = vmatmul.mubr.msk.f32.vlgmr.msra.gmra.mrb[6].mxu1 %vm111_vm2, %v39428_v15  ;;  %v6188_v55 = vsel %vm6174_vm11, %v6169_v45, %v6171_v52  ;;  %v9580_v45 = vcombine.high %v9564_v41, %v9564_v41  ;;  %v9581_v50 = vcombine.high %v9565_v47, %v9565_v47  ;;  %v39630_v51 = vld [vmem:[%s45635_s1 + $0x42] sm:$0x3f] }
 0x196   :  { %v6835_v58 = vpop.permute.xlu1 %6834  ;;  %8910 = vrot.lane.b32.xlu0 %v8874_v43, %s38241_s14  ;;  %35270 = vmatprep.subr.msk.mxu0 %vm115_vm1, %v6188_v55  ;;  %vm11678_vm11 = vcmask 244736  }
 0x197   :  { %36609 = vmatpush3.msk.msra.mxu1 %vm115_vm1, %v6189_v54  ;;  %35271 = vmatpush1.msk.msra.mxu0 %vm115_vm1, %v6187_v57  ;;  %v10246_v54 = vld [vmem:[%s45634_s0] sm:$0x77]  ;;  %v10247_v57 = vld [vmem:[%s45634_s0 + $0x8] sm:$0x77] }
 0x198   :  { %8916 = vrot.lane.b32.xlu1 %v8891_v53, %s38241_s14  ;;  %v6833_v59 = vpop.permute.xlu0 %6832  ;;  %35272 = vmatmul.mubr.msk.f32.vlgmr.msra.gmra.mrb[4].mxu0 %vm111_vm2, %v39428_v15 }
 0x199   :  { %v6864_v61 = vsel %vm6862_vm12, %v6833_v59, %v6835_v58  ;;  %36610 = vmatprep.mubr.msk.f32.mxu1 %vm38233_vm3, %v38228_v11  ;;  %6975 = vmatprep.mubr.f32.mxu0 %v38228_v11 }
 0x19a   :  { %v6837_v63 = vpop.permute.xlu1 %6836  ;;  %8914 = vrot.lane.b32.xlu0 %v8875_v49, %s38241_s14  ;;  %35275 = vmatprep.subr.msk.mxu0 %vm115_vm1, %v6864_v61  ;;  %v10263_v61 = vcombine.high %v10247_v57, %v10247_v57 }
 0x19b   :  { %36611 = vmatmul.mubr.msk.f32.vlgmr.msra.gmra.mrb[26].mxu1 %vm111_vm2, %v39428_v15  ;;  %v6865_v6 = vsel %vm6862_vm12, %v6835_v58, %v6837_v63 }
 0x19c   :  { %8920 = vrot.lane.b32.xlu1 %v8892_v60, %s38241_s14  ;;  %v6831_v0 = vpop.permute.xlu0 %6830  ;;  %7046 = vmatprep.mubr.f32.mxu1 %v38228_v11  ;;  %v10262_v60 = vcombine.high %v10246_v54, %v10246_v54 }
 0x19d   :  { %v6863_v17 = vsel %vm6862_vm12, %v6831_v0, %v6833_v59  ;;  %v10248_v0 = vld [vmem:[%s45634_s0 + $0x10] sm:$0x77] }
 0x19e   :  { %v6841_v3 = vpop.permute.xlu1 %6840  ;;  %8918 = vrot.lane.b32.xlu0 %v8876_v56, %s38241_s14  ;;  %35276 = vmatpush1.msk.msra.mxu0 %vm115_vm1, %v6863_v17 }
 0x19f   :  { %35277 = vmatmul.mubr.msk.f32.vlgmr.msra.gmra.mrb[6].mxu0 %vm111_vm2, %v39529_v16 }
 0x1a0   :  { %8924 = vrot.lane.b32.xlu1 %v8893_v4, %s38241_s14  ;;  %v6839_v20 = vpop.permute.xlu0 %6838  ;;  %7117 = vmatprep.mubr.f32.mxu0 %v38228_v11 }
 0x1a1   :  { %v6866_v1 = vsel %vm6862_vm12, %v6837_v63, %v6839_v20  ;;  %v6867_v13 = vsel %vm6862_vm12, %v6839_v20, %v6841_v3  ;;  %v10249_v20 = vld [vmem:[%s45634_s0 + $0x18] sm:$0x77] }
 0x1a2   :  { %v6845_v5 = vpop.permute.xlu1 %6844  ;;  %8922 = vrot.lane.b32.xlu0 %v8877_v62, %s38241_s14  ;;  %35278 = vmatprep.subr.msk.mxu1 %vm115_vm1, %v6866_v1  ;;  %s38244_s14 = smov 31  }
 0x1a3   :  { %35279 = vmatpush1.msk.msra.mxu1 %vm115_vm1, %v6865_v6 }
 0x1a4   :  { %9586 = vrot.lane.b32.xlu1 %v9559_v2, %s38242_s25  ;;  %v6843_v10 = vpop.permute.xlu0 %6842  ;;  %35280 = vmatmul.mubr.msk.f32.vlgmr.msra.gmra.mrb[2].mxu1 %vm111_vm2, %v39529_v16 }
 0x1a5   :  { %v6868_v9 = vsel %vm6862_vm12, %v6841_v3, %v6843_v10  ;;  %7188 = vmatprep.mubr.f32.mxu1 %v38228_v11  ;;  %v6869_v23 = vsel %vm6862_vm12, %v6843_v10, %v6845_v5  ;;  %v10264_v3 = vcombine.high %v10248_v0, %v10248_v0 }
 0x1a6   :  { %v6849_v15 = vpop.permute.xlu1 %6848  ;;  %9584 = vrot.lane.b32.xlu0 %v9574_v7, %s38242_s25  ;;  %35281 = vmatprep.subr.msk.mxu0 %vm115_vm1, %v6868_v9 }
 0x1a7   :  { %35282 = vmatpush1.msk.msra.mxu0 %vm115_vm1, %v6867_v13 }
 0x1a8   :  { %9588 = vrot.lane.b32.xlu1 %v9575_v8, %s38242_s25  ;;  %v6847_v21 = vpop.permute.xlu0 %6846  ;;  %35283 = vmatmul.mubr.msk.f32.vlgmr.msra.gmra.mrb[0].mxu0 %vm111_vm2, %v39529_v16  ;;  %v10250_v8 = vld [vmem:[%s45634_s0 + $0x20] sm:$0x77] }
 0x1a9   :  { %v6870_v18 = vsel %vm6862_vm12, %v6845_v5, %v6847_v21  ;;  %7259 = vmatprep.mubr.f32.mxu0 %v38228_v11  ;;  %v6871_v29 = vsel %vm6862_vm12, %v6847_v21, %v6849_v15  ;;  %v10265_v5 = vcombine.high %v10249_v20, %v10249_v20  ;;  %v10266_v13 = vcombine.high %v10250_v8, %v10250_v8  ;;  %v10251_v21 = vld [vmem:[%s45634_s0 + $0x28] sm:$0x77] }
 0x1aa   :  { %v6853_v24 = vpop.permute.xlu1 %6852  ;;  %9582 = vrot.lane.b32.xlu0 %v9558_v19, %s38242_s25  ;;  %35284 = vmatprep.subr.msk.mxu1 %vm115_vm1, %v6870_v18 }
 0x1ab   :  { %35285 = vmatpush1.msk.msra.mxu1 %vm115_vm1, %v6869_v23  ;;  %v10267_v23 = vcombine.high %v10251_v21, %v10251_v21 }
 0x1ac   :  { %9592 = vrot.lane.b32.xlu1 %v9576_v14, %s38242_s25  ;;  %v6851_v25 = vpop.permute.xlu0 %6850  ;;  %35286 = vmatmul.mubr.msk.f32.vlgmr.msra.gmra.mrb[4].mxu1 %vm111_vm2, %v39529_v16 }
 0x1ad   :  { %v6872_v27 = vsel %vm6862_vm12, %v6849_v15, %v6851_v25  ;;  %7330 = vmatprep.mubr.f32.mxu1 %v38228_v11  ;;  %v6873_v35 = vsel %vm6862_vm12, %v6851_v25, %v6853_v24 }
 0x1ae   :  { %v6857_v30 = vpop.permute.xlu1 %6856  ;;  %9590 = vrot.lane.b32.xlu0 %v9560_v12, %s38242_s25  ;;  %35287 = vmatprep.subr.msk.mxu0 %vm115_vm1, %v6872_v27 }
 0x1af   :  { %35288 = vmatpush1.msk.msra.mxu0 %vm115_vm1, %v6871_v29 }
 0x1b0   :  { %9596 = vrot.lane.b32.xlu1 %v9577_v26, %s38242_s25  ;;  %v6855_v31 = vpop.permute.xlu0 %6854  ;;  %35289 = vmatmul.mubr.msk.f32.vlgmr.msra.gmra.mrb[2].mxu0 %vm111_vm2, %v39529_v16  ;;  %v10252_v26 = vld [vmem:[%s45634_s0 + $0x30] sm:$0x77] }
 0x1b1   :  { %v6874_v33 = vsel %vm6862_vm12, %v6853_v24, %v6855_v31  ;;  %7401 = vmatprep.mubr.f32.mxu0 %v38228_v11  ;;  %v6875_v42 = vsel %vm6862_vm12, %v6855_v31, %v6857_v30 }
 0x1b2   :  { %v6861_v36 = vpop.permute.xlu1 %6860  ;;  %9594 = vrot.lane.b32.xlu0 %v9561_v22, %s38242_s25  ;;  %35290 = vmatprep.subr.msk.mxu1 %vm115_vm1, %v6874_v33 }
 0x1b3   :  { %35291 = vmatpush1.msk.msra.mxu1 %vm115_vm1, %v6873_v35 }
 0x1b4   :  { %9600 = vrot.lane.b32.xlu1 %v9578_v32, %s38242_s25  ;;  %v6859_v37 = vpop.permute.xlu0 %6858  ;;  %36613 = vmatprep.subr.mxu1 %v38228_v11  ;;  %v10253_v32 = vld [vmem:[%s45634_s0 + $0x38] sm:$0x77] }
 0x1b5   :  { %v6877_v39 = vsel %vm6862_vm12, %v6859_v37, %v6861_v36  ;;  %35292 = vmatmul.mubr.msk.f32.vlgmr.msra.gmra.mrb[6].mxu1 %vm111_vm2, %v39529_v16  ;;  %v6876_v40 = vsel %vm6862_vm12, %v6857_v30, %v6859_v37  ;;  %v10268_v30 = vcombine.high %v10252_v26, %v10252_v26  ;;  %v10269_v35 = vcombine.high %v10253_v32, %v10253_v32  ;;  %v39731_v36 = vld [vmem:[%s45635_s1 + $0x48] sm:$0x3f] }
 0x1b6   :  { %v7523_v43 = vpop.permute.xlu1 %7522  ;;  %9598 = vrot.lane.b32.xlu0 %v9562_v28, %s38242_s25  ;;  %35293 = vmatprep.subr.msk.mxu0 %vm115_vm1, %v6876_v40 }
 0x1b7   :  { %36614 = vmatpush3.msk.msra.mxu1 %vm115_vm1, %v6877_v39  ;;  %35294 = vmatpush1.msk.msra.mxu0 %vm115_vm1, %v6875_v42  ;;  %v10934_v39 = vld [vmem:[%s45634_s0] sm:$0x77]  ;;  %v10935_v42 = vld [vmem:[%s45634_s0 + $0x8] sm:$0x77] }
 0x1b8   :  { %9604 = vrot.lane.b32.xlu1 %v9579_v38, %s38242_s25  ;;  %v7521_v44 = vpop.permute.xlu0 %7520  ;;  %35295 = vmatmul.mubr.msk.f32.vlgmr.msra.gmra.mrb[4].mxu0 %vm111_vm2, %v39529_v16 }
 0x1b9   :  { %v7552_v46 = vsel %vm7550_vm13, %v7521_v44, %v7523_v43  ;;  %36615 = vmatprep.mubr.msk.f32.mxu1 %vm38233_vm3, %v38228_v11  ;;  %7663 = vmatprep.mubr.f32.mxu0 %v38228_v11 }
 0x1ba   :  { %v7525_v48 = vpop.permute.xlu1 %7524  ;;  %9602 = vrot.lane.b32.xlu0 %v9563_v34, %s38242_s25  ;;  %35298 = vmatprep.subr.msk.mxu0 %vm115_vm1, %v7552_v46  ;;  %v10951_v46 = vcombine.high %v10935_v42, %v10935_v42 }
 0x1bb   :  { %36616 = vmatmul.mubr.msk.f32.vlgmr.msra.gmra.mrb[28].mxu1 %vm111_vm2, %v39529_v16  ;;  %v7553_v58 = vsel %vm7550_vm13, %v7523_v43, %v7525_v48 }
 0x1bc   :  { %9608 = vrot.lane.b32.xlu1 %v9580_v45, %s38242_s25  ;;  %v7519_v49 = vpop.permute.xlu0 %7518  ;;  %7734 = vmatprep.mubr.f32.mxu1 %v38228_v11  ;;  %v10950_v45 = vcombine.high %v10934_v39, %v10934_v39 }
 0x1bd   :  { %v7551_v52 = vsel %vm7550_vm13, %v7519_v49, %v7521_v44  ;;  %v10936_v49 = vld [vmem:[%s45634_s0 + $0x10] sm:$0x77] }
 0x1be   :  { %v7529_v53 = vpop.permute.xlu1 %7528  ;;  %9606 = vrot.lane.b32.xlu0 %v9564_v41, %s38242_s25  ;;  %35299 = vmatpush1.msk.msra.mxu0 %vm115_vm1, %v7551_v52 }
 0x1bf   :  { %35300 = vmatmul.mubr.msk.f32.vlgmr.msra.gmra.mrb[6].mxu0 %vm111_vm2, %v39630_v51 }
 0x1c0   :  { %9612 = vrot.lane.b32.xlu1 %v9581_v50, %s38242_s25  ;;  %v7527_v55 = vpop.permute.xlu0 %7526  ;;  %7805 = vmatprep.mubr.f32.mxu0 %v38228_v11 }
 0x1c1   :  { %v7554_v56 = vsel %vm7550_vm13, %v7525_v48, %v7527_v55  ;;  %v7555_v4 = vsel %vm7550_vm13, %v7527_v55, %v7529_v53  ;;  %v10937_v55 = vld [vmem:[%s45634_s0 + $0x18] sm:$0x77] }
 0x1c2   :  { %v7533_v59 = vpop.permute.xlu1 %7532  ;;  %9610 = vrot.lane.b32.xlu0 %v9565_v47, %s38242_s25  ;;  %35301 = vmatprep.subr.msk.mxu1 %vm115_vm1, %v7554_v56 }
 0x1c3   :  { %35302 = vmatpush1.msk.msra.mxu1 %vm115_vm1, %v7553_v58 }
 0x1c4   :  { %10274 = vrot.lane.b32.xlu1 %v10247_v57, %s38243_s27  ;;  %v7531_v62 = vpop.permute.xlu0 %7530  ;;  %35303 = vmatmul.mubr.msk.f32.vlgmr.msra.gmra.mrb[2].mxu1 %vm111_vm2, %v39630_v51 }
 0x1c5   :  { %v7556_v63 = vsel %vm7550_vm13, %v7529_v53, %v7531_v62  ;;  %7876 = vmatprep.mubr.f32.mxu1 %v38228_v11  ;;  %v7557_v1 = vsel %vm7550_vm13, %v7531_v62, %v7533_v59  ;;  %v10952_v53 = vcombine.high %v10936_v49, %v10936_v49 }
 0x1c6   :  { %v7537_v16 = vpop.permute.xlu1 %7536  ;;  %10272 = vrot.lane.b32.xlu0 %v10262_v60, %s38243_s27  ;;  %35304 = vmatprep.subr.msk.mxu0 %vm115_vm1, %v7556_v63 }
 0x1c7   :  { %35305 = vmatpush1.msk.msra.mxu0 %vm115_vm1, %v7555_v4 }
 0x1c8   :  { %10276 = vrot.lane.b32.xlu1 %v10263_v61, %s38243_s27  ;;  %v7535_v17 = vpop.permute.xlu0 %7534  ;;  %35306 = vmatmul.mubr.msk.f32.vlgmr.msra.gmra.mrb[0].mxu0 %vm111_vm2, %v39630_v51  ;;  %v10938_v61 = vld [vmem:[%s45634_s0 + $0x20] sm:$0x77] }
 0x1c9   :  { %v7558_v19 = vsel %vm7550_vm13, %v7533_v59, %v7535_v17  ;;  %7947 = vmatprep.mubr.f32.mxu0 %v38228_v11  ;;  %v7559_v10 = vsel %vm7550_vm13, %v7535_v17, %v7537_v16  ;;  %v10953_v59 = vcombine.high %v10937_v55, %v10937_v55  ;;  %v10954_v4 = vcombine.high %v10938_v61, %v10938_v61  ;;  %v10939_v17 = vld [vmem:[%s45634_s0 + $0x28] sm:$0x77] }
 0x1ca   :  { %v7541_v2 = vpop.permute.xlu1 %7540  ;;  %10270 = vrot.lane.b32.xlu0 %v10246_v54, %s38243_s27  ;;  %35307 = vmatprep.subr.msk.mxu1 %vm115_vm1, %v7558_v19 }
 0x1cb   :  { %35308 = vmatpush1.msk.msra.mxu1 %vm115_vm1, %v7557_v1  ;;  %v10955_v1 = vcombine.high %v10939_v17, %v10939_v17 }
 0x1cc   :  { %10280 = vrot.lane.b32.xlu1 %v10264_v3, %s38243_s27  ;;  %v7539_v6 = vpop.permute.xlu0 %7538  ;;  %35309 = vmatmul.mubr.msk.f32.vlgmr.msra.gmra.mrb[4].mxu1 %vm111_vm2, %v39630_v51 }
 0x1cd   :  { %v7560_v7 = vsel %vm7550_vm13, %v7537_v16, %v7539_v6  ;;  %8018 = vmatprep.mubr.f32.mxu1 %v38228_v11  ;;  %v7561_v14 = vsel %vm7550_vm13, %v7539_v6, %v7541_v2 }
 0x1ce   :  { %v7545_v9 = vpop.permute.xlu1 %7544  ;;  %10278 = vrot.lane.b32.xlu0 %v10248_v0, %s38243_s27  ;;  %35310 = vmatprep.subr.msk.mxu0 %vm115_vm1, %v7560_v7 }
 0x1cf   :  { %35311 = vmatpush1.msk.msra.mxu0 %vm115_vm1, %v7559_v10 }
 0x1d0   :  { %10284 = vrot.lane.b32.xlu1 %v10265_v5, %s38243_s27  ;;  %v7543_v12 = vpop.permute.xlu0 %7542  ;;  %35312 = vmatmul.mubr.msk.f32.vlgmr.msra.gmra.mrb[2].mxu0 %vm111_vm2, %v39630_v51  ;;  %v10940_v5 = vld [vmem:[%s45634_s0 + $0x30] sm:$0x77] }
 0x1d1   :  { %v7562_v15 = vsel %vm7550_vm13, %v7541_v2, %v7543_v12  ;;  %8089 = vmatprep.mubr.f32.mxu0 %v38228_v11  ;;  %v7563_v27 = vsel %vm7550_vm13, %v7543_v12, %v7545_v9 }
 0x1d2   :  { %v7549_v18 = vpop.permute.xlu1 %7548  ;;  %10282 = vrot.lane.b32.xlu0 %v10249_v20, %s38243_s27  ;;  %35313 = vmatprep.subr.msk.mxu1 %vm115_vm1, %v7562_v15 }
 0x1d3   :  { %35314 = vmatpush1.msk.msra.mxu1 %vm115_vm1, %v7561_v14 }
 0x1d4   :  { %10288 = vrot.lane.b32.xlu1 %v10266_v13, %s38243_s27  ;;  %v7547_v22 = vpop.permute.xlu0 %7546  ;;  %36618 = vmatprep.subr.mxu1 %v38228_v11  ;;  %v10941_v13 = vld [vmem:[%s45634_s0 + $0x38] sm:$0x77] }
 0x1d5   :  { %v7565_v24 = vsel %vm7550_vm13, %v7547_v22, %v7549_v18  ;;  %35315 = vmatmul.mubr.msk.f32.vlgmr.msra.gmra.mrb[6].mxu1 %vm111_vm2, %v39630_v51  ;;  %v7564_v25 = vsel %vm7550_vm13, %v7545_v9, %v7547_v22  ;;  %v10956_v9 = vcombine.high %v10940_v5, %v10940_v5  ;;  %v10957_v14 = vcombine.high %v10941_v13, %v10941_v13  ;;  %v39833_v18 = vld [vmem:[%s45635_s1 + $0x4e] sm:$0x3f] }
 0x1d6   :  { %v8211_v28 = vpop.permute.xlu1 %8210  ;;  %10286 = vrot.lane.b32.xlu0 %v10250_v8, %s38243_s27  ;;  %35316 = vmatprep.subr.msk.mxu0 %vm115_vm1, %v7564_v25  ;;  %vm12366_vm13 = vcmask 236544  }
 0x1d7   :  { %36619 = vmatpush3.msk.msra.mxu1 %vm115_vm1, %v7565_v24  ;;  %35317 = vmatpush1.msk.msra.mxu0 %vm115_vm1, %v7563_v27  ;;  %v11622_v24 = vld [vmem:[%s45634_s0] sm:$0x77]  ;;  %v11623_v27 = vld [vmem:[%s45634_s0 + $0x8] sm:$0x77] }
 0x1d8   :  { %10292 = vrot.lane.b32.xlu1 %v10267_v23, %s38243_s27  ;;  %v8209_v29 = vpop.permute.xlu0 %8208  ;;  %35318 = vmatmul.mubr.msk.f32.vlgmr.msra.gmra.mrb[4].mxu0 %vm111_vm2, %v39630_v51 }
 0x1d9   :  { %v8240_v31 = vsel %vm8238_vm14, %v8209_v29, %v8211_v28  ;;  %36620 = vmatprep.mubr.msk.f32.mxu1 %vm38233_vm3, %v38228_v11  ;;  %8351 = vmatprep.mubr.f32.mxu0 %v38228_v11 }
 0x1da   :  { %v8213_v33 = vpop.permute.xlu1 %8212  ;;  %10290 = vrot.lane.b32.xlu0 %v10251_v21, %s38243_s27  ;;  %35321 = vmatprep.subr.msk.mxu0 %vm115_vm1, %v8240_v31  ;;  %v11639_v31 = vcombine.high %v11623_v27, %v11623_v27 }
 0x1db   :  { %36621 = vmatmul.mubr.msk.f32.vlgmr.msra.gmra.mrb[30].mxu1 %vm111_vm2, %v39630_v51  ;;  %v8241_v43 = vsel %vm8238_vm14, %v8211_v28, %v8213_v33 }
 0x1dc   :  { %10296 = vrot.lane.b32.xlu1 %v10268_v30, %s38243_s27  ;;  %v8207_v34 = vpop.permute.xlu0 %8206  ;;  %8422 = vmatprep.mubr.f32.mxu1 %v38228_v11  ;;  %v11638_v30 = vcombine.high %v11622_v24, %v11622_v24 }
 0x1dd   :  { %v8239_v37 = vsel %vm8238_vm14, %v8207_v34, %v8209_v29  ;;  %v11624_v34 = vld [vmem:[%s45634_s0 + $0x10] sm:$0x77] }
 0x1de   :  { %v8217_v38 = vpop.permute.xlu1 %8216  ;;  %10294 = vrot.lane.b32.xlu0 %v10252_v26, %s38243_s27  ;;  %35322 = vmatpush1.msk.msra.mxu0 %vm115_vm1, %v8239_v37 }
 0x1df   :  { %35323 = vmatmul.mubr.msk.f32.vlgmr.msra.gmra.mrb[6].mxu0 %vm111_vm2, %v39731_v36 }
 0x1e0   :  { %10300 = vrot.lane.b32.xlu1 %v10269_v35, %s38243_s27  ;;  %v8215_v40 = vpop.permute.xlu0 %8214  ;;  %8493 = vmatprep.mubr.f32.mxu0 %v38228_v11 }
 0x1e1   :  { %v8242_v41 = vsel %vm8238_vm14, %v8213_v33, %v8215_v40  ;;  %v8243_v50 = vsel %vm8238_vm14, %v8215_v40, %v8217_v38  ;;  %v11625_v40 = vld [vmem:[%s45634_s0 + $0x18] sm:$0x77] }
 0x1e2   :  { %v8221_v44 = vpop.permute.xlu1 %8220  ;;  %10298 = vrot.lane.b32.xlu0 %v10253_v32, %s38243_s27  ;;  %35324 = vmatprep.subr.msk.mxu1 %vm115_vm1, %v8242_v41  ;;  %s38251_s27 = smov 58  }
 0x1e3   :  { %35325 = vmatpush1.msk.msra.mxu1 %vm115_vm1, %v8241_v43 }
 0x1e4   :  { %10962 = vrot.lane.b32.xlu1 %v10935_v42, %s38244_s14  ;;  %v8219_v47 = vpop.permute.xlu0 %8218  ;;  %35326 = vmatmul.mubr.msk.f32.vlgmr.msra.gmra.mrb[2].mxu1 %vm111_vm2, %v39731_v36 }
 0x1e5   :  { %v8244_v48 = vsel %vm8238_vm14, %v8217_v38, %v8219_v47  ;;  %8564 = vmatprep.mubr.f32.mxu1 %v38228_v11  ;;  %v8245_v56 = vsel %vm8238_vm14, %v8219_v47, %v8221_v44  ;;  %v11640_v38 = vcombine.high %v11624_v34, %v11624_v34 }
 0x1e6   :  { %v8225_v51 = vpop.permute.xlu1 %8224  ;;  %10960 = vrot.lane.b32.xlu0 %v10950_v45, %s38244_s14  ;;  %35327 = vmatprep.subr.msk.mxu0 %vm115_vm1, %v8244_v48 }
 0x1e7   :  { %35328 = vmatpush1.msk.msra.mxu0 %vm115_vm1, %v8243_v50 }
 0x1e8   :  { %10964 = vrot.lane.b32.xlu1 %v10951_v46, %s38244_s14  ;;  %v8223_v52 = vpop.permute.xlu0 %8222  ;;  %35329 = vmatmul.mubr.msk.f32.vlgmr.msra.gmra.mrb[0].mxu0 %vm111_vm2, %v39731_v36  ;;  %v11626_v46 = vld [vmem:[%s45634_s0 + $0x20] sm:$0x77] }
 0x1e9   :  { %v8246_v54 = vsel %vm8238_vm14, %v8221_v44, %v8223_v52  ;;  %8635 = vmatprep.mubr.f32.mxu0 %v38228_v11  ;;  %v8247_v62 = vsel %vm8238_vm14, %v8223_v52, %v8225_v51  ;;  %v11641_v44 = vcombine.high %v11625_v40, %v11625_v40  ;;  %v11642_v50 = vcombine.high %v11626_v46, %v11626_v46  ;;  %v11627_v52 = vld [vmem:[%s45634_s0 + $0x28] sm:$0x77] }
 0x1ea   :  { %v8229_v57 = vpop.permute.xlu1 %8228  ;;  %10958 = vrot.lane.b32.xlu0 %v10934_v39, %s38244_s14  ;;  %35330 = vmatprep.subr.msk.mxu1 %vm115_vm1, %v8246_v54 }
 0x1eb   :  { %35331 = vmatpush1.msk.msra.mxu1 %vm115_vm1, %v8245_v56  ;;  %v11643_v56 = vcombine.high %v11627_v52, %v11627_v52 }
 0x1ec   :  { %10968 = vrot.lane.b32.xlu1 %v10952_v53, %s38244_s14  ;;  %v8227_v58 = vpop.permute.xlu0 %8226  ;;  %35332 = vmatmul.mubr.msk.f32.vlgmr.msra.gmra.mrb[4].mxu1 %vm111_vm2, %v39731_v36 }
 0x1ed   :  { %v8248_v60 = vsel %vm8238_vm14, %v8225_v51, %v8227_v58  ;;  %8706 = vmatprep.mubr.f32.mxu1 %v38228_v11  ;;  %v8249_v3 = vsel %vm8238_vm14, %v8227_v58, %v8229_v57 }
 0x1ee   :  { %v8233_v63 = vpop.permute.xlu1 %8232  ;;  %10966 = vrot.lane.b32.xlu0 %v10936_v49, %s38244_s14  ;;  %35333 = vmatprep.subr.msk.mxu0 %vm115_vm1, %v8248_v60 }
 0x1ef   :  { %35334 = vmatpush1.msk.msra.mxu0 %vm115_vm1, %v8247_v62  ;;  %v39915_v62 = vpop.f32.mrb[0].mxu1 }
 0x1f0   :  { %10972 = vrot.lane.b32.xlu1 %v10953_v59, %s38244_s14  ;;  %v8231_v0 = vpop.permute.xlu0 %8230  ;;  %35335 = vmatmul.mubr.msk.f32.vlgmr.msra.gmra.mrb[2].mxu0 %vm111_vm2, %v39731_v36  ;;  %v11628_v59 = vld [vmem:[%s45634_s0 + $0x30] sm:$0x77] }
 0x1f1   :  { %v8250_v16 = vsel %vm8238_vm14, %v8229_v57, %v8231_v0  ;;  %8777 = vmatprep.mubr.f32.mxu0 %v38228_v11  ;;  %v8251_v7 = vsel %vm8238_vm14, %v8231_v0, %v8233_v63 }
 0x1f2   :  { %v8237_v19 = vpop.permute.xlu1 %8236  ;;  %10970 = vrot.lane.b32.xlu0 %v10937_v55, %s38244_s14  ;;  %35336 = vmatprep.subr.msk.mxu1 %vm115_vm1, %v8250_v16 }
 0x1f3   :  { %35337 = vmatpush1.msk.msra.mxu1 %vm115_vm1, %v8249_v3 }
 0x1f4   :  { %10976 = vrot.lane.b32.xlu1 %v10954_v4, %s38244_s14  ;;  %v8235_v20 = vpop.permute.xlu0 %8234  ;;  %35338 = vmatmul.mubr.msk.f32.vlgmr.msra.gmra.mrb[6].mxu1 %vm111_vm2, %v39731_v36  ;;  %v11644_v4 = vcombine.high %v11628_v59, %v11628_v59 }
 0x1f5   :  { %v8253_v2 = vsel %vm8238_vm14, %v8235_v20, %v8237_v19  ;;  %36623 = vmatprep.subr.mxu1 %v38228_v11  ;;  %v8252_v6 = vsel %vm8238_vm14, %v8233_v63, %v8235_v20  ;;  %36625 = vmatprep.mubr.msk.f32.mxu1 %vm38233_vm3, %v38228_v11  ;;  %v39919_v63 = vpop.f32.mrb[1].mxu1 }
 0x1f6   :  { %v8899_v8 = vpop.permute.xlu1 %8898  ;;  %10974 = vrot.lane.b32.xlu0 %v10938_v61, %s38244_s14  ;;  %35339 = vmatprep.subr.msk.mxu0 %vm115_vm1, %v8252_v6 }
 0x1f7   :  { %36624 = vmatpush3.msk.msra.mxu1 %vm115_vm1, %v8253_v2  ;;  %35340 = vmatpush1.msk.msra.mxu0 %vm115_vm1, %v8251_v7 }
 0x1f8   :  { %10980 = vrot.lane.b32.xlu1 %v10955_v1, %s38244_s14  ;;  %v8897_v10 = vpop.permute.xlu0 %8896  ;;  %36626 = vmatmul.mubr.msk.f32.vlgmr.msra.gmra.mrb[32].mxu1 %vm111_vm2, %v39731_v36  ;;  %v39938_v1 = vld [vmem:[%s45635_s1 + $0x54] sm:$0x3f] }
 0x1f9   :  { %v8928_v12 = vsel %vm8926_vm15, %v8897_v10, %v8899_v8  ;;  %35341 = vmatmul.mubr.msk.f32.vlgmr.msra.gmra.mrb[4].mxu0 %vm111_vm2, %v39731_v36  ;;  %9110 = vmatprep.mubr.f32.mxu1 %v38228_v11 }
 0x1fa   :  { %v8901_v15 = vpop.permute.xlu1 %8900  ;;  %10978 = vrot.lane.b32.xlu0 %v10939_v17, %s38244_s14  ;;  %35344 = vmatprep.subr.msk.mxu0 %vm115_vm1, %v8928_v12  ;;  %v11629_v17 = vld [vmem:[%s45634_s0 + $0x38] sm:$0x77] }
 0x1fb   :  { %9039 = vmatprep.mubr.f32.mxu0 %v38228_v11  ;;  %v8929_v28 = vsel %vm8926_vm15, %v8899_v8, %v8901_v15  ;;  %v11645_v20 = vcombine.high %v11629_v17, %v11629_v17 }
 0x1fc   :  { %10984 = vrot.lane.b32.xlu1 %v10956_v9, %s38244_s14  ;;  %v8895_v21 = vpop.permute.xlu0 %8894 }
 0x1fd   :  { %v8927_v22 = vsel %vm8926_vm15, %v8895_v21, %v8897_v10  ;;  %v12311_v10 = vld [vmem:[%s45634_s0 + $0x8] sm:$0x77] }
 0x1fe   :  { %v8905_v23 = vpop.permute.xlu1 %8904  ;;  %10982 = vrot.lane.b32.xlu0 %v10940_v5, %s38244_s14  ;;  %35345 = vmatpush1.msk.msra.mxu0 %vm115_vm1, %v8927_v22  ;;  %v12310_v5 = vld [vmem:[%s45634_s0] sm:$0x77]  ;;  %v709_v22 = vpop.f32.mrb[8].mxu1 }
 0x1ff   :  { %35346 = vmatmul.mubr.msk.f32.vlgmr.msra.gmra.mrb[6].mxu0 %vm111_vm2, %v39833_v18 }
 0x200   :  { %10988 = vrot.lane.b32.xlu1 %v10957_v14, %s38244_s14  ;;  %v8903_v25 = vpop.permute.xlu0 %8902  ;;  %9181 = vmatprep.mubr.f32.mxu0 %v38228_v11 }
 0x201   :  { %v8930_v26 = vsel %vm8926_vm15, %v8901_v15, %v8903_v25  ;;  %v8931_v35 = vsel %vm8926_vm15, %v8903_v25, %v8905_v23  ;;  %v12327_v15 = vcombine.high %v12311_v10, %v12311_v10  ;;  %v36567_v25 = vpop.f32.mrb[9].mxu1 }
 0x202   :  { %v8909_v29 = vpop.permute.xlu1 %8908  ;;  %10986 = vrot.lane.b32.xlu0 %v10941_v13, %s38244_s14  ;;  %35347 = vmatprep.subr.msk.mxu1 %vm115_vm1, %v8930_v26  ;;  %v12326_v13 = vcombine.high %v12310_v5, %v12310_v5  ;;  %v1309_v26 = vpop.f32.mrb[10].mxu1 }
 0x203   :  { %35348 = vmatpush1.msk.msra.mxu1 %vm115_vm1, %v8929_v28 }
 0x204   :  { %11650 = vrot.lane.b32.xlu1 %v11623_v27, %s38245_s24  ;;  %v8907_v32 = vpop.permute.xlu0 %8906  ;;  %35349 = vmatmul.mubr.msk.f32.vlgmr.msra.gmra.mrb[2].mxu1 %vm111_vm2, %v39833_v18 }
 0x205   :  { %v8932_v33 = vsel %vm8926_vm15, %v8905_v23, %v8907_v32  ;;  %9252 = vmatprep.mubr.f32.mxu1 %v38228_v11  ;;  %v8933_v41 = vsel %vm8926_vm15, %v8907_v32, %v8909_v29  ;;  %v12313_v32 = vld [vmem:[%s45634_s0 + $0x18] sm:$0x77] }
 0x206   :  { %v8913_v36 = vpop.permute.xlu1 %8912  ;;  %11648 = vrot.lane.b32.xlu0 %v11638_v30, %s38245_s24  ;;  %35350 = vmatprep.subr.msk.mxu0 %vm115_vm1, %v8932_v33  ;;  %v36572_v30 = vpop.f32.mrb[11].mxu1 }
 0x207   :  { %35351 = vmatpush1.msk.msra.mxu0 %vm115_vm1, %v8931_v35  ;;  %v1978_v33 = vpop.f32.mrb[12].mxu1 }
 0x208   :  { %11652 = vrot.lane.b32.xlu1 %v11639_v31, %s38245_s24  ;;  %v8911_v37 = vpop.permute.xlu0 %8910  ;;  %35352 = vmatmul.mubr.msk.f32.vlgmr.msra.gmra.mrb[0].mxu0 %vm111_vm2, %v39833_v18 }
 0x209   :  { %v8934_v39 = vsel %vm8926_vm15, %v8909_v29, %v8911_v37  ;;  %9323 = vmatprep.mubr.f32.mxu0 %v38228_v11  ;;  %v8935_v47 = vsel %vm8926_vm15, %v8911_v37, %v8913_v36  ;;  %v1310_v29 = vadd.f32 %v1309_v26, %v709_v22  ;;  %v36577_v37 = vpop.f32.mrb[13].mxu1 }
 0x20a   :  { %v8917_v42 = vpop.permute.xlu1 %8916  ;;  %11646 = vrot.lane.b32.xlu0 %v11622_v24, %s38245_s24  ;;  %35353 = vmatprep.subr.msk.mxu1 %vm115_vm1, %v8934_v39  ;;  %v13001_v37 = vld [vmem:[%s45634_s0 + $0x18] sm:$0x77] }
 0x20b   :  { %35354 = vmatpush1.msk.msra.mxu1 %vm115_vm1, %v8933_v41 }
 0x20c   :  { %11656 = vrot.lane.b32.xlu1 %v11640_v38, %s38245_s24  ;;  %v8915_v43 = vpop.permute.xlu0 %8914  ;;  %35355 = vmatmul.mubr.msk.f32.vlgmr.msra.gmra.mrb[4].mxu1 %vm111_vm2, %v39833_v18  ;;  %v2662_v38 = vpop.f32.mrb[14].mxu1 }
 0x20d   :  { %v8936_v45 = vsel %vm8926_vm15, %v8913_v36, %v8915_v43  ;;  %9394 = vmatprep.mubr.f32.mxu1 %v38228_v11  ;;  %v8937_v53 = vsel %vm8926_vm15, %v8915_v43, %v8917_v42  ;;  %v1996_v36 = vadd.f32 %v1978_v33, %v1310_v29 }
 0x20e   :  { %v8921_v48 = vpop.permute.xlu1 %8920  ;;  %11654 = vrot.lane.b32.xlu0 %v11624_v34, %s38245_s24  ;;  %35356 = vmatprep.subr.msk.mxu0 %vm115_vm1, %v8936_v45 }
 0x20f   :  { %35357 = vmatpush1.msk.msra.mxu0 %vm115_vm1, %v8935_v47  ;;  %v2680_v41 = vadd.f32 %v2662_v38, %v1996_v36 }
 0x210   :  { %11660 = vrot.lane.b32.xlu1 %v11641_v44, %s38245_s24  ;;  %v8919_v49 = vpop.permute.xlu0 %8918  ;;  %35358 = vmatmul.mubr.msk.f32.vlgmr.msra.gmra.mrb[2].mxu0 %vm111_vm2, %v39833_v18  ;;  %v12314_v44 = vld [vmem:[%s45634_s0 + $0x20] sm:$0x77] }
 0x211   :  { %v8938_v51 = vsel %vm8926_vm15, %v8917_v42, %v8919_v49  ;;  %9465 = vmatprep.mubr.f32.mxu0 %v38228_v11  ;;  %v8939_v60 = vsel %vm8926_vm15, %v8919_v49, %v8921_v48  ;;  %v36582_v42 = vpop.f32.mrb[15].mxu1 }
 0x212   :  { %v8925_v54 = vpop.permute.xlu1 %8924  ;;  %11658 = vrot.lane.b32.xlu0 %v11625_v40, %s38245_s24  ;;  %35359 = vmatprep.subr.msk.mxu1 %vm115_vm1, %v8938_v51  ;;  %v12329_v40 = vcombine.high %v12313_v32, %v12313_v32  ;;  %v3346_v45 = vpop.f32.mrb[16].mxu1 }
 0x213   :  { %35360 = vmatpush1.msk.msra.mxu1 %vm115_vm1, %v8937_v53  ;;  %v36587_v49 = vpop.f32.mrb[17].mxu1 }
 0x214   :  { %11664 = vrot.lane.b32.xlu1 %v11642_v50, %s38245_s24  ;;  %v8923_v55 = vpop.permute.xlu0 %8922  ;;  %35361 = vmatmul.mubr.msk.f32.vlgmr.msra.gmra.mrb[6].mxu1 %vm111_vm2, %v39833_v18  ;;  %v4034_v50 = vpop.f32.mrb[18].mxu1 }
 0x215   :  { %v8941_v57 = vsel %vm8926_vm15, %v8923_v55, %v8925_v54  ;;  %36628 = vmatprep.subr.mxu1 %v38228_v11  ;;  %v8940_v58 = vsel %vm8926_vm15, %v8921_v48, %v8923_v55  ;;  %36630 = vmatprep.mubr.msk.f32.mxu1 %vm38233_vm3, %v38228_v11  ;;  %v3364_v48 = vadd.f32 %v3346_v45, %v2680_v41  ;;  %v36592_v54 = vpop.f32.mrb[19].mxu1  ;;  %vm13054_vm15 = vcmask 228352  }
 0x216   :  { %v9587_v61 = vpop.permute.xlu1 %9586  ;;  %11662 = vrot.lane.b32.xlu0 %v11626_v46, %s38245_s24  ;;  %35362 = vmatprep.subr.msk.mxu0 %vm115_vm1, %v8940_v58  ;;  %v13017_v41 = vcombine.high %v13001_v37, %v13001_v37 }
 0x217   :  { %36629 = vmatpush3.msk.msra.mxu1 %vm115_vm1, %v8941_v57  ;;  %35363 = vmatpush1.msk.msra.mxu0 %vm115_vm1, %v8939_v60  ;;  %v4052_v53 = vadd.f32 %v4034_v50, %v3364_v48  ;;  %v4722_v57 = vpop.f32.mrb[20].mxu1 }
 0x218   :  { %11668 = vrot.lane.b32.xlu1 %v11643_v56, %s38245_s24  ;;  %v9585_v0 = vpop.permute.xlu0 %9584  ;;  %36631 = vmatmul.mubr.msk.f32.vlgmr.msra.gmra.mrb[34].mxu1 %vm111_vm2, %v39833_v18  ;;  %v12315_v56 = vld [vmem:[%s45634_s0 + $0x28] sm:$0x77] }
 0x219   :  { %v9616_v16 = vsel %vm9614_vm8, %v9585_v0, %v9587_v61  ;;  %35364 = vmatmul.mubr.msk.f32.vlgmr.msra.gmra.mrb[4].mxu0 %vm111_vm2, %v39833_v18  ;;  %9798 = vmatprep.mubr.f32.mxu1 %v38228_v11  ;;  %v12312_v18 = vld [vmem:[%s45634_s0 + $0x10] sm:$0x77]  ;;  %v4740_v60 = vadd.f32 %v4722_v57, %v4052_v53 }
 0x21a   :  { %v9589_v3 = vpop.permute.xlu1 %9588  ;;  %11666 = vrot.lane.b32.xlu0 %v11627_v52, %s38245_s24  ;;  %35367 = vmatprep.subr.msk.mxu0 %vm115_vm1, %v9616_v16  ;;  %v12328_v28 = vcombine.high %v12312_v18, %v12312_v18  ;;  %v12330_v52 = vcombine.high %v12314_v44, %v12314_v44  ;;  %v12331_v16 = vcombine.high %v12315_v56, %v12315_v56 }
 0x21b   :  { %9727 = vmatprep.mubr.f32.mxu0 %v38228_v11  ;;  %v9617_v9 = vsel %vm9614_vm8, %v9587_v61, %v9589_v3  ;;  %v36597_v61 = vpop.f32.mrb[21].mxu1 }
 0x21c   :  { %11672 = vrot.lane.b32.xlu1 %v11644_v4, %s38245_s24  ;;  %v9583_v19 = vpop.permute.xlu0 %9582 }
 0x21d   :  { %v9615_v2 = vsel %vm9614_vm8, %v9583_v19, %v9585_v0 }
 0x21e   :  { %v9593_v6 = vpop.permute.xlu1 %9592  ;;  %11670 = vrot.lane.b32.xlu0 %v11628_v59, %s38245_s24  ;;  %35368 = vmatpush1.msk.msra.mxu0 %vm115_vm1, %v9615_v2  ;;  %v12316_v2 = vld [vmem:[%s45634_s0 + $0x30] sm:$0x77] }
 0x21f   :  { %35369 = vmatmul.mubr.msk.f32.vlgmr.msra.gmra.mrb[6].mxu0 %vm111_vm2, %v39938_v1 }
 0x220   :  { %11676 = vrot.lane.b32.xlu1 %v11645_v20, %s38245_s24  ;;  %v9591_v7 = vpop.permute.xlu0 %9590  ;;  %9869 = vmatprep.mubr.f32.mxu0 %v38228_v11 }
 0x221   :  { %v9618_v8 = vsel %vm9614_vm8, %v9589_v3, %v9591_v7  ;;  %v9619_v23 = vsel %vm9614_vm8, %v9591_v7, %v9593_v6 }
 0x222   :  { %v9597_v12 = vpop.permute.xlu1 %9596  ;;  %11674 = vrot.lane.b32.xlu0 %v11629_v17, %s38245_s24  ;;  %35370 = vmatprep.subr.msk.mxu1 %vm115_vm1, %v9618_v8  ;;  %v12332_v8 = vcombine.high %v12316_v2, %v12316_v2 }
 0x223   :  { %35371 = vmatpush1.msk.msra.mxu1 %vm115_vm1, %v9617_v9  ;;  %v12317_v9 = vld [vmem:[%s45634_s0 + $0x38] sm:$0x77] }
 0x224   :  { %12338 = vrot.lane.b32.xlu1 %v12311_v10, %s38246_s13  ;;  %v9595_v21 = vpop.permute.xlu0 %9594  ;;  %35372 = vmatmul.mubr.msk.f32.vlgmr.msra.gmra.mrb[2].mxu1 %vm111_vm2, %v39938_v1 }
 0x225   :  { %v9620_v14 = vsel %vm9614_vm8, %v9593_v6, %v9595_v21  ;;  %9940 = vmatprep.mubr.f32.mxu1 %v38228_v11  ;;  %v9621_v34 = vsel %vm9614_vm8, %v9595_v21, %v9597_v12 }
 0x226   :  { %v9601_v24 = vpop.permute.xlu1 %9600  ;;  %12336 = vrot.lane.b32.xlu0 %v12326_v13, %s38246_s13  ;;  %35373 = vmatprep.subr.msk.mxu0 %vm115_vm1, %v9620_v14 }
 0x227   :  { %35374 = vmatpush1.msk.msra.mxu0 %vm115_vm1, %v9619_v23 }
 0x228   :  { %12340 = vrot.lane.b32.xlu1 %v12327_v15, %s38246_s13  ;;  %v9599_v27 = vpop.permute.xlu0 %9598  ;;  %35375 = vmatmul.mubr.msk.f32.vlgmr.msra.gmra.mrb[0].mxu0 %vm111_vm2, %v39938_v1  ;;  %v12333_v15 = vcombine.high %v12317_v9, %v12317_v9 }
 0x229   :  { %v9622_v31 = vsel %vm9614_vm8, %v9597_v12, %v9599_v27  ;;  %10011 = vmatprep.mubr.f32.mxu0 %v38228_v11  ;;  %v9623_v46 = vsel %vm9614_vm8, %v9599_v27, %v9601_v24 }
 0x22a   :  { %v9605_v35 = vpop.permute.xlu1 %9604  ;;  %12334 = vrot.lane.b32.xlu0 %v12310_v5, %s38246_s13  ;;  %35376 = vmatprep.subr.msk.mxu1 %vm115_vm1, %v9622_v31  ;;  %v13000_v31 = vld [vmem:[%s45634_s0 + $0x10] sm:$0x77] }
 0x22b   :  { %35377 = vmatpush1.msk.msra.mxu1 %vm115_vm1, %v9621_v34 }
 0x22c   :  { %12344 = vrot.lane.b32.xlu1 %v12328_v28, %s38246_s13  ;;  %v9603_v39 = vpop.permute.xlu0 %9602  ;;  %35378 = vmatmul.mubr.msk.f32.vlgmr.msra.gmra.mrb[4].mxu1 %vm111_vm2, %v39938_v1 }
 0x22d   :  { %v9624_v43 = vsel %vm9614_vm8, %v9601_v24, %v9603_v39  ;;  %10082 = vmatprep.mubr.f32.mxu1 %v38228_v11  ;;  %v9625_v58 = vsel %vm9614_vm8, %v9603_v39, %v9605_v35  ;;  %v12999_v24 = vld [vmem:[%s45634_s0 + $0x8] sm:$0x77] }
 0x22e   :  { %v9609_v47 = vpop.permute.xlu1 %9608  ;;  %12342 = vrot.lane.b32.xlu0 %v12312_v18, %s38246_s13  ;;  %35379 = vmatprep.subr.msk.mxu0 %vm115_vm1, %v9624_v43  ;;  %v5410_v0 = vpop.f32.mrb[22].mxu1  ;;  %v12998_v18 = vld [vmem:[%s45634_s0] sm:$0x77]  ;;  %v13015_v28 = vcombine.high %v12999_v24, %v12999_v24 }
 0x22f   :  { %35380 = vmatpush1.msk.msra.mxu0 %vm115_vm1, %v9623_v46  ;;  %v40009_v17 = vadd.f32 %v5410_v0, %v4740_v60  ;;  %v36602_v3 = vpop.f32.mrb[23].mxu1  ;;  %v13014_v27 = vcombine.high %v12998_v18, %v12998_v18  ;;  %v13002_v43 = vld [vmem:[%s45634_s0 + $0x20] sm:$0x77] }
 0x230   :  { %12348 = vrot.lane.b32.xlu1 %v12329_v40, %s38246_s13  ;;  %v9607_v51 = vpop.permute.xlu0 %9606  ;;  %35381 = vmatmul.mubr.msk.f32.vlgmr.msra.gmra.mrb[2].mxu0 %vm111_vm2, %v39938_v1  ;;  %v13018_v50 = vcombine.high %v13002_v43, %v13002_v43 }
 0x231   :  { %v9626_v55 = vsel %vm9614_vm8, %v9605_v35, %v9607_v51  ;;  %10153 = vmatprep.mubr.f32.mxu0 %v38228_v11  ;;  %v9627_v6 = vsel %vm9614_vm8, %v9607_v51, %v9609_v47  ;;  %v13016_v35 = vcombine.high %v13000_v31, %v13000_v31 }
 0x232   :  { %v9613_v59 = vpop.permute.xlu1 %9612  ;;  %12346 = vrot.lane.b32.xlu0 %v12313_v32, %s38246_s13  ;;  %35382 = vmatprep.subr.msk.mxu1 %vm115_vm1, %v9626_v55 }
 0x233   :  { %35383 = vmatpush1.msk.msra.mxu1 %vm115_vm1, %v9625_v58 }
 0x234   :  { %12352 = vrot.lane.b32.xlu1 %v12330_v52, %s38246_s13  ;;  %v9611_v4 = vpop.permute.xlu0 %9610  ;;  %35384 = vmatmul.mubr.msk.f32.vlgmr.msra.gmra.mrb[6].mxu1 %vm111_vm2, %v39938_v1  ;;  %v13003_v52 = vld [vmem:[%s45634_s0 + $0x28] sm:$0x77] }
 0x235   :  { %v9629_v19 = vsel %vm9614_vm8, %v9611_v4, %v9613_v59  ;;  %36633 = vmatprep.subr.mxu1 %v38228_v11  ;;  %v9628_v20 = vsel %vm9614_vm8, %v9609_v47, %v9611_v4  ;;  %36635 = vmatprep.mubr.msk.f32.mxu1 %vm38233_vm3, %v38228_v11  ;;  %v13004_v59 = vld [vmem:[%s45634_s0 + $0x30] sm:$0x77] }
 0x236   :  { %v10275_v5 = vpop.permute.xlu1 %10274  ;;  %12350 = vrot.lane.b32.xlu0 %v12314_v44, %s38246_s13  ;;  %35385 = vmatprep.subr.msk.mxu0 %vm115_vm1, %v9628_v20  ;;  %v13020_v4 = vcombine.high %v13004_v59, %v13004_v59 }
 0x237   :  { %36634 = vmatpush3.msk.msra.mxu1 %vm115_vm1, %v9629_v19  ;;  %35386 = vmatpush1.msk.msra.mxu0 %vm115_vm1, %v9627_v6 }
 0x238   :  { %12356 = vrot.lane.b32.xlu1 %v12331_v16, %s38246_s13  ;;  %v10273_v7 = vpop.permute.xlu0 %10272  ;;  %36636 = vmatmul.mubr.msk.f32.vlgmr.msra.gmra.mrb[36].mxu1 %vm111_vm2, %v39938_v1 }
 0x239   :  { %v10304_v10 = vsel %vm10302_vm9, %v10273_v7, %v10275_v5  ;;  %35387 = vmatmul.mubr.msk.f32.vlgmr.msra.gmra.mrb[4].mxu0 %vm111_vm2, %v39938_v1  ;;  %10486 = vmatprep.mubr.f32.mxu1 %v38228_v11  ;;  %v40041_v1 = vld [vmem:[%s45635_s1 + $0x5a] sm:$0x3f] }
 0x23a   :  { %v10277_v12 = vpop.permute.xlu1 %10276  ;;  %12354 = vrot.lane.b32.xlu0 %v12315_v56, %s38246_s13  ;;  %35390 = vmatprep.subr.msk.mxu0 %vm115_vm1, %v10304_v10  ;;  %v13019_v56 = vcombine.high %v13003_v52, %v13003_v52 }
 0x23b   :  { %10415 = vmatprep.mubr.f32.mxu0 %v38228_v11  ;;  %v10305_v25 = vsel %vm10302_vm9, %v10275_v5, %v10277_v12 }
 0x23c   :  { %12360 = vrot.lane.b32.xlu1 %v12332_v8, %s38246_s13  ;;  %v10271_v13 = vpop.permute.xlu0 %10270 }
 0x23d   :  { %v10303_v21 = vsel %vm10302_vm9, %v10271_v13, %v10273_v7  ;;  %v14325_v7 = vld [vmem:[%s45634_s0 + $0x4] sm:$0x77] }
 0x23e   :  { %v10281_v14 = vpop.permute.xlu1 %10280  ;;  %12358 = vrot.lane.b32.xlu0 %v12316_v2, %s38246_s13  ;;  %35391 = vmatpush1.msk.msra.mxu0 %vm115_vm1, %v10303_v21  ;;  %v40145_v2 = vld [vmem:[%s45635_s1 + $0x60] sm:$0x3f] }
 0x23f   :  { %35392 = vmatmul.mubr.msk.f32.vlgmr.msra.gmra.mrb[6].mxu0 %vm111_vm2, %v40041_v1 }
 0x240   :  { %12364 = vrot.lane.b32.xlu1 %v12333_v15, %s38246_s13  ;;  %v10279_v22 = vpop.permute.xlu0 %10278  ;;  %10557 = vmatprep.mubr.f32.mxu0 %v38228_v11  ;;  %v14341_v15 = vcombine.high %v14325_v7, %v14325_v7 }
 0x241   :  { %v10306_v23 = vsel %vm10302_vm9, %v10277_v12, %v10279_v22  ;;  %v10307_v32 = vsel %vm10302_vm9, %v10279_v22, %v10281_v14 }
 0x242   :  { %v10285_v26 = vpop.permute.xlu1 %10284  ;;  %12362 = vrot.lane.b32.xlu0 %v12317_v9, %s38246_s13  ;;  %35393 = vmatprep.subr.msk.mxu1 %vm115_vm1, %v10306_v23  ;;  %v14326_v9 = vld [vmem:[%s45634_s0 + $0xc] sm:$0x77] }
 0x243   :  { %35394 = vmatpush1.msk.msra.mxu1 %vm115_vm1, %v10305_v25 }
 0x244   :  { %13026 = vrot.lane.b32.xlu1 %v12999_v24, %s38247_s22  ;;  %v10283_v29 = vpop.permute.xlu0 %10282  ;;  %35395 = vmatmul.mubr.msk.f32.vlgmr.msra.gmra.mrb[2].mxu1 %vm111_vm2, %v40041_v1 }
 0x245   :  { %v10308_v30 = vsel %vm10302_vm9, %v10281_v14, %v10283_v29  ;;  %10628 = vmatprep.mubr.f32.mxu1 %v38228_v11  ;;  %v10309_v38 = vsel %vm10302_vm9, %v10283_v29, %v10285_v26 }
 0x246   :  { %v10289_v33 = vpop.permute.xlu1 %10288  ;;  %13024 = vrot.lane.b32.xlu0 %v13014_v27, %s38247_s22  ;;  %35396 = vmatprep.subr.msk.mxu0 %vm115_vm1, %v10308_v30  ;;  %v14328_v27 = vld [vmem:[%s45634_s0 + $0x1c] sm:$0x77] }
 0x247   :  { %35397 = vmatpush1.msk.msra.mxu0 %vm115_vm1, %v10307_v32 }
 0x248   :  { %13028 = vrot.lane.b32.xlu1 %v13015_v28, %s38247_s22  ;;  %v10287_v34 = vpop.permute.xlu0 %10286  ;;  %35398 = vmatmul.mubr.msk.f32.vlgmr.msra.gmra.mrb[0].mxu0 %vm111_vm2, %v40041_v1 }
 0x249   :  { %v10310_v36 = vsel %vm10302_vm9, %v10285_v26, %v10287_v34  ;;  %10699 = vmatprep.mubr.f32.mxu0 %v38228_v11  ;;  %v10311_v44 = vsel %vm10302_vm9, %v10287_v34, %v10289_v33 }
 0x24a   :  { %v10293_v39 = vpop.permute.xlu1 %10292  ;;  %13022 = vrot.lane.b32.xlu0 %v12998_v18, %s38247_s22  ;;  %35399 = vmatprep.subr.msk.mxu1 %vm115_vm1, %v10310_v36  ;;  %v14327_v18 = vld [vmem:[%s45634_s0 + $0x14] sm:$0x77] }
 0x24b   :  { %35400 = vmatpush1.msk.msra.mxu1 %vm115_vm1, %v10309_v38  ;;  %v14343_v25 = vcombine.high %v14327_v18, %v14327_v18 }
 0x24c   :  { %13032 = vrot.lane.b32.xlu1 %v13016_v35, %s38247_s22  ;;  %v10291_v40 = vpop.permute.xlu0 %10290  ;;  %35401 = vmatmul.mubr.msk.f32.vlgmr.msra.gmra.mrb[4].mxu1 %vm111_vm2, %v40041_v1 }
 0x24d   :  { %v10312_v42 = vsel %vm10302_vm9, %v10289_v33, %v10291_v40  ;;  %10770 = vmatprep.mubr.f32.mxu1 %v38228_v11  ;;  %v10313_v53 = vsel %vm10302_vm9, %v10291_v40, %v10293_v39  ;;  %v14329_v33 = vld [vmem:[%s45634_s0 + $0x24] sm:$0x77] }
 0x24e   :  { %v10297_v45 = vpop.permute.xlu1 %10296  ;;  %13030 = vrot.lane.b32.xlu0 %v13000_v31, %s38247_s22  ;;  %35402 = vmatprep.subr.msk.mxu0 %vm115_vm1, %v10312_v42  ;;  %v6098_v46 = vpop.f32.mrb[24].mxu1  ;;  %v14344_v31 = vcombine.high %v14328_v27, %v14328_v27  ;;  %v14345_v40 = vcombine.high %v14329_v33, %v14329_v33  ;;  %v14330_v42 = vld [vmem:[%s45634_s0 + $0x2c] sm:$0x77] }
 0x24f   :  { %35403 = vmatpush1.msk.msra.mxu0 %vm115_vm1, %v10311_v44  ;;  %v40098_v47 = vadd.f32 %v6098_v46, %v40009_v17  ;;  %v36607_v48 = vpop.f32.mrb[25].mxu1  ;;  %v13005_v17 = vld [vmem:[%s45634_s0 + $0x38] sm:$0x77]  ;;  %v14346_v46 = vcombine.high %v14330_v42, %v14330_v42 }
 0x250   :  { %13036 = vrot.lane.b32.xlu1 %v13017_v41, %s38247_s22  ;;  %v10295_v49 = vpop.permute.xlu0 %10294  ;;  %35404 = vmatmul.mubr.msk.f32.vlgmr.msra.gmra.mrb[2].mxu0 %vm111_vm2, %v40041_v1  ;;  %v13021_v20 = vcombine.high %v13005_v17, %v13005_v17 }
 0x251   :  { %v10314_v51 = vsel %vm10302_vm9, %v10293_v39, %v10295_v49  ;;  %10841 = vmatprep.mubr.f32.mxu0 %v38228_v11  ;;  %v10315_v60 = vsel %vm10302_vm9, %v10295_v49, %v10297_v45  ;;  %v14331_v49 = vld [vmem:[%s45634_s0 + $0x34] sm:$0x77] }
 0x252   :  { %v10301_v54 = vpop.permute.xlu1 %10300  ;;  %13034 = vrot.lane.b32.xlu0 %v13001_v37, %s38247_s22  ;;  %35405 = vmatprep.subr.msk.mxu1 %vm115_vm1, %v10314_v51 }
 0x253   :  { %35406 = vmatpush1.msk.msra.mxu1 %vm115_vm1, %v10313_v53  ;;  %v14347_v53 = vcombine.high %v14331_v49, %v14331_v49 }
 0x254   :  { %13040 = vrot.lane.b32.xlu1 %v13018_v50, %s38247_s22  ;;  %v10299_v55 = vpop.permute.xlu0 %10298  ;;  %35407 = vmatmul.mubr.msk.f32.vlgmr.msra.gmra.mrb[6].mxu1 %vm111_vm2, %v40041_v1 }
 0x255   :  { %v10317_v57 = vsel %vm10302_vm9, %v10299_v55, %v10301_v54  ;;  %36638 = vmatprep.subr.mxu1 %v38228_v11  ;;  %v10316_v58 = vsel %vm10302_vm9, %v10297_v45, %v10299_v55  ;;  %36640 = vmatprep.mubr.msk.f32.mxu1 %vm38233_vm3, %v38228_v11  ;;  %v15008_v55 = vld [vmem:[%s45634_s0 + $0x4] sm:$0x77]  ;;  %vm19824_vm9 = vcmask 982016  }
 0x256   :  { %v10963_v61 = vpop.permute.xlu1 %10962  ;;  %13038 = vrot.lane.b32.xlu0 %v13002_v43, %s38247_s22  ;;  %35408 = vmatprep.subr.msk.mxu0 %vm115_vm1, %v10316_v58  ;;  %v15024_v58 = vcombine.high %v15008_v55, %v15008_v55 }
 0x257   :  { %36639 = vmatpush3.msk.msra.mxu1 %vm115_vm1, %v10317_v57  ;;  %35409 = vmatpush1.msk.msra.mxu0 %vm115_vm1, %v10315_v60 }
 0x258   :  { %13044 = vrot.lane.b32.xlu1 %v13019_v56, %s38247_s22  ;;  %v10961_v0 = vpop.permute.xlu0 %10960  ;;  %36641 = vmatmul.mubr.msk.f32.vlgmr.msra.gmra.mrb[38].mxu1 %vm111_vm2, %v40041_v1 }
 0x259   :  { %v10992_v16 = vsel %vm10990_vm10, %v10961_v0, %v10963_v61  ;;  %35410 = vmatmul.mubr.msk.f32.vlgmr.msra.gmra.mrb[4].mxu0 %vm111_vm2, %v40041_v1  ;;  %11174 = vmatprep.mubr.f32.mxu1 %v38228_v11  ;;  %v14342_v1 = vcombine.high %v14326_v9, %v14326_v9 }
 0x25a   :  { %v10965_v3 = vpop.permute.xlu1 %10964  ;;  %13042 = vrot.lane.b32.xlu0 %v13003_v52, %s38247_s22  ;;  %35413 = vmatprep.subr.msk.mxu0 %vm115_vm1, %v10992_v16 }
 0x25b   :  { %11103 = vmatprep.mubr.f32.mxu0 %v38228_v11  ;;  %v10993_v12 = vsel %vm10990_vm10, %v10963_v61, %v10965_v3 }
 0x25c   :  { %13048 = vrot.lane.b32.xlu1 %v13020_v4, %s38247_s22  ;;  %v10959_v19 = vpop.permute.xlu0 %10958 }
 0x25d   :  { %v10991_v6 = vsel %vm10990_vm10, %v10959_v19, %v10961_v0  ;;  %v14332_v0 = vld [vmem:[%s45634_s0 + $0x3c] sm:$0x7]  ;;  %v15009_v19 = vld [vmem:[%s45634_s0 + $0xc] sm:$0x77] }
 0x25e   :  { %v10969_v5 = vpop.permute.xlu1 %10968  ;;  %13046 = vrot.lane.b32.xlu0 %v13004_v59, %s38247_s22  ;;  %35414 = vmatpush1.msk.msra.mxu0 %vm115_vm1, %v10991_v6  ;;  %v40249_v59 = vld [vmem:[%s45635_s1 + $0x66] sm:$0x3f]  ;;  %v15010_v6 = vld [vmem:[%s45634_s0 + $0x14] sm:$0x77] }
 0x25f   :  { %35415 = vmatmul.mubr.msk.f32.vlgmr.msra.gmra.mrb[6].mxu0 %vm111_vm2, %v40145_v2 }
 0x260   :  { %13052 = vrot.lane.b32.xlu1 %v13021_v20, %s38247_s22  ;;  %v10967_v8 = vpop.permute.xlu0 %10966  ;;  %11245 = vmatprep.mubr.f32.mxu0 %v38228_v11 }
 0x261   :  { %v10994_v10 = vsel %vm10990_vm10, %v10965_v3, %v10967_v8  ;;  %v10995_v22 = vsel %vm10990_vm10, %v10967_v8, %v10969_v5  ;;  %v15025_v8 = vcombine.high %v15009_v19, %v15009_v19 }
 0x262   :  { %v10973_v13 = vpop.permute.xlu1 %10972  ;;  %13050 = vrot.lane.b32.xlu0 %v13005_v17, %s38247_s22  ;;  %35416 = vmatprep.subr.msk.mxu1 %vm115_vm1, %v10994_v10  ;;  %s38260_s22 = smov [#allocation8]  }
 0x263   :  { %35417 = vmatpush1.msk.msra.mxu1 %vm115_vm1, %v10993_v12  ;;  %v15011_v12 = vld [vmem:[%s45634_s0 + $0x1c] sm:$0x77] }
 0x264   :  { %14352 = vrot.lane.b32.xlu1 %v14326_v9, %s38227_s23  ;;  %v10971_v21 = vpop.permute.xlu0 %10970  ;;  %35418 = vmatmul.mubr.msk.f32.vlgmr.msra.gmra.mrb[2].mxu1 %vm111_vm2, %v40145_v2 }
 0x265   :  { %v10996_v14 = vsel %vm10990_vm10, %v10969_v5, %v10971_v21  ;;  %11316 = vmatprep.mubr.f32.mxu1 %v38228_v11  ;;  %v10997_v28 = vsel %vm10990_vm10, %v10971_v21, %v10973_v13 }
 0x266   :  { %v10977_v23 = vpop.permute.xlu1 %10976  ;;  %14350 = vrot.lane.b32.xlu0 %v14341_v15, %s38227_s23  ;;  %35419 = vmatprep.subr.msk.mxu0 %vm115_vm1, %v10996_v14  ;;  %v15026_v15 = vcombine.high %v15010_v6, %v15010_v6 }
 0x267   :  { %35420 = vmatpush1.msk.msra.mxu0 %vm115_vm1, %v10995_v22 }
 0x268   :  { %14354 = vrot.lane.b32.xlu1 %v14342_v1, %s38227_s23  ;;  %v10975_v24 = vpop.permute.xlu0 %10974  ;;  %35421 = vmatmul.mubr.msk.f32.vlgmr.msra.gmra.mrb[0].mxu0 %vm111_vm2, %v40145_v2 }
 0x269   :  { %v10998_v26 = vsel %vm10990_vm10, %v10973_v13, %v10975_v24  ;;  %11387 = vmatprep.mubr.f32.mxu0 %v38228_v11  ;;  %v10999_v34 = vsel %vm10990_vm10, %v10975_v24, %v10977_v23 }
 0x26a   :  { %v10981_v29 = vpop.permute.xlu1 %10980  ;;  %14348 = vrot.lane.b32.xlu0 %v14325_v7, %s38227_s23  ;;  %35422 = vmatprep.subr.msk.mxu1 %vm115_vm1, %v10998_v26 }
 0x26b   :  { %35423 = vmatpush1.msk.msra.mxu1 %vm115_vm1, %v10997_v28 }
 0x26c   :  { %14358 = vrot.lane.b32.xlu1 %v14343_v25, %s38227_s23  ;;  %v10979_v30 = vpop.permute.xlu0 %10978  ;;  %35424 = vmatmul.mubr.msk.f32.vlgmr.msra.gmra.mrb[4].mxu1 %vm111_vm2, %v40145_v2 }
 0x26d   :  { %v11000_v32 = vsel %vm10990_vm10, %v10977_v23, %v10979_v30  ;;  %11458 = vmatprep.mubr.f32.mxu1 %v38228_v11  ;;  %v11001_v43 = vsel %vm10990_vm10, %v10979_v30, %v10981_v29  ;;  %v15027_v23 = vcombine.high %v15011_v12, %v15011_v12  ;;  %v15013_v30 = vld [vmem:[%s45634_s0 + $0x2c] sm:$0x77] }
 0x26e   :  { %v10985_v35 = vpop.permute.xlu1 %10984  ;;  %14356 = vrot.lane.b32.xlu0 %v14327_v18, %s38227_s23  ;;  %35425 = vmatprep.subr.msk.mxu0 %vm115_vm1, %v11000_v32  ;;  %v6786_v36 = vpop.f32.mrb[26].mxu1  ;;  %v15012_v18 = vld [vmem:[%s45634_s0 + $0x24] sm:$0x77] }
 0x26f   :  { %35426 = vmatpush1.msk.msra.mxu0 %vm115_vm1, %v10999_v34  ;;  %v40202_v37 = vadd.f32 %v6786_v36, %v40098_v47  ;;  %v36612_v38 = vpop.f32.mrb[27].mxu1  ;;  %v15028_v32 = vcombine.high %v15012_v18, %v15012_v18 }
 0x270   :  { %14362 = vrot.lane.b32.xlu1 %v14344_v31, %s38227_s23  ;;  %v10983_v39 = vpop.permute.xlu0 %10982  ;;  %35427 = vmatmul.mubr.msk.f32.vlgmr.msra.gmra.mrb[2].mxu0 %vm111_vm2, %v40145_v2 }
 0x271   :  { %v11002_v41 = vsel %vm10990_vm10, %v10981_v29, %v10983_v39  ;;  %11529 = vmatprep.mubr.f32.mxu0 %v38228_v11  ;;  %v11003_v50 = vsel %vm10990_vm10, %v10983_v39, %v10985_v35  ;;  %v15029_v39 = vcombine.high %v15013_v30, %v15013_v30 }
 0x272   :  { %v10989_v44 = vpop.permute.xlu1 %10988  ;;  %14360 = vrot.lane.b32.xlu0 %v14328_v27, %s38227_s23  ;;  %35428 = vmatprep.subr.msk.mxu1 %vm115_vm1, %v11002_v41 }
 0x273   :  { %35429 = vmatpush1.msk.msra.mxu1 %vm115_vm1, %v11001_v43  ;;  %v15015_v43 = vld [vmem:[%s45634_s0 + $0x3c] sm:$0x7] }
 0x274   :  { %14366 = vrot.lane.b32.xlu1 %v14345_v40, %s38227_s23  ;;  %v10987_v45 = vpop.permute.xlu0 %10986  ;;  %35430 = vmatmul.mubr.msk.f32.vlgmr.msra.gmra.mrb[6].mxu1 %vm111_vm2, %v40145_v2 }
 0x275   :  { %v11005_v47 = vsel %vm10990_vm10, %v10987_v45, %v10989_v44  ;;  %36643 = vmatprep.subr.mxu1 %v38228_v11  ;;  %v11004_v48 = vsel %vm10990_vm10, %v10985_v35, %v10987_v45  ;;  %36645 = vmatprep.mubr.msk.f32.mxu1 %vm38233_vm3, %v38228_v11  ;;  %vm22404_vm10 = vcmask 474112  }
 0x276   :  { %v11651_v51 = vpop.permute.xlu1 %11650  ;;  %14364 = vrot.lane.b32.xlu0 %v14329_v33, %s38227_s23  ;;  %35431 = vmatprep.subr.msk.mxu0 %vm115_vm1, %v11004_v48  ;;  %v40356_v48 = vld [vmem:[%s45635_s1 + $0x6c] sm:$0x3f] }
 0x277   :  { %36644 = vmatpush3.msk.msra.mxu1 %vm115_vm1, %v11005_v47  ;;  %35432 = vmatpush1.msk.msra.mxu0 %vm115_vm1, %v11003_v50  ;;  %v15692_v50 = vld [vmem:[%s45634_s0 + $0xc] sm:$0x77] }
 0x278   :  { %14370 = vrot.lane.b32.xlu1 %v14346_v46, %s38227_s23  ;;  %v11649_v52 = vpop.permute.xlu0 %11648  ;;  %36646 = vmatmul.mubr.msk.f32.vlgmr.msra.gmra.mrb[40].mxu1 %vm111_vm2, %v40145_v2  ;;  %v15691_v46 = vld [vmem:[%s45634_s0 + $0x4] sm:$0x77] }
 0x279   :  { %v11680_v54 = vsel %vm11678_vm11, %v11649_v52, %v11651_v51  ;;  %35433 = vmatmul.mubr.msk.f32.vlgmr.msra.gmra.mrb[4].mxu0 %vm111_vm2, %v40145_v2  ;;  %11862 = vmatprep.mubr.f32.mxu1 %v38228_v11 }
 0x27a   :  { %v11653_v56 = vpop.permute.xlu1 %11652  ;;  %14368 = vrot.lane.b32.xlu0 %v14330_v42, %s38227_s23  ;;  %35436 = vmatprep.subr.msk.mxu0 %vm115_vm1, %v11680_v54 }
 0x27b   :  { %11791 = vmatprep.mubr.f32.mxu0 %v38228_v11  ;;  %v11681_v17 = vsel %vm11678_vm11, %v11651_v51, %v11653_v56 }
 0x27c   :  { %14374 = vrot.lane.b32.xlu1 %v14347_v53, %s38227_s23  ;;  %v11647_v57 = vpop.permute.xlu0 %11646  ;;  %v15708_v53 = vcombine.high %v15692_v50, %v15692_v50 }
 0x27d   :  { %v11679_v60 = vsel %vm11678_vm11, %v11647_v57, %v11649_v52  ;;  %v15707_v52 = vcombine.high %v15691_v46, %v15691_v46 }
 0x27e   :  { %v11657_v61 = vpop.permute.xlu1 %11656  ;;  %14372 = vrot.lane.b32.xlu0 %v14331_v49, %s38227_s23  ;;  %35437 = vmatpush1.msk.msra.mxu0 %vm115_vm1, %v11679_v60 }
 0x27f   :  { %35438 = vmatmul.mubr.msk.f32.vlgmr.msra.gmra.mrb[6].mxu0 %vm111_vm2, %v40249_v59 }
 0x280   :  { %15033 = vrot.lane.b32.xlu1 %v15024_v58, %s38229_s18  ;;  %v11655_v4 = vpop.permute.xlu0 %11654  ;;  %11933 = vmatprep.mubr.f32.mxu0 %v38228_v11 }
 0x281   :  { %v11682_v16 = vsel %vm11678_vm11, %v11653_v56, %v11655_v4  ;;  %v11683_v5 = vsel %vm11678_vm11, %v11655_v4, %v11657_v61  ;;  %v15693_v56 = vld [vmem:[%s45634_s0 + $0x14] sm:$0x77] }
 0x282   :  { %v11661_v3 = vpop.permute.xlu1 %11660  ;;  %14376 = vrot.lane.b32.xlu0 %v14332_v0, %s38227_s23  ;;  %35439 = vmatprep.subr.msk.mxu1 %vm115_vm1, %v11682_v16  ;;  %v15709_v60 = vcombine.high %v15693_v56, %v15693_v56  ;;  %v15694_v0 = vld [vmem:[%s45634_s0 + $0x1c] sm:$0x77] }
 0x283   :  { %35440 = vmatpush1.msk.msra.mxu1 %vm115_vm1, %v11681_v17 }
 0x284   :  { %15031 = vrot.lane.b32.xlu1 %v15008_v55, %s38229_s18  ;;  %v11659_v20 = vpop.permute.xlu0 %11658  ;;  %35441 = vmatmul.mubr.msk.f32.vlgmr.msra.gmra.mrb[2].mxu1 %vm111_vm2, %v40249_v59 }
 0x285   :  { %v11684_v2 = vsel %vm11678_vm11, %v11657_v61, %v11659_v20  ;;  %12004 = vmatprep.mubr.f32.mxu1 %v38228_v11  ;;  %v11685_v13 = vsel %vm11678_vm11, %v11659_v20, %v11661_v3  ;;  %v15695_v20 = vld [vmem:[%s45634_s0 + $0x24] sm:$0x77] }
 0x286   :  { %v11665_v7 = vpop.permute.xlu1 %11664  ;;  %15035 = vrot.lane.b32.xlu0 %v15009_v19, %s38229_s18  ;;  %35442 = vmatprep.subr.msk.mxu0 %vm115_vm1, %v11684_v2 }
 0x287   :  { %35443 = vmatpush1.msk.msra.mxu0 %vm115_vm1, %v11683_v5 }
 0x288   :  { %15039 = vrot.lane.b32.xlu1 %v15010_v6, %s38229_s18  ;;  %v11663_v10 = vpop.permute.xlu0 %11662  ;;  %35444 = vmatmul.mubr.msk.f32.vlgmr.msra.gmra.mrb[0].mxu0 %vm111_vm2, %v40249_v59 }
 0x289   :  { %v11686_v9 = vsel %vm11678_vm11, %v11661_v3, %v11663_v10  ;;  %12075 = vmatprep.mubr.f32.mxu0 %v38228_v11  ;;  %v11687_v22 = vsel %vm11678_vm11, %v11663_v10, %v11665_v7  ;;  %v15710_v3 = vcombine.high %v15694_v0, %v15694_v0  ;;  %v15696_v10 = vld [vmem:[%s45634_s0 + $0x2c] sm:$0x77] }
 0x28a   :  { %v11669_v1 = vpop.permute.xlu1 %11668  ;;  %15037 = vrot.lane.b32.xlu0 %v15025_v8, %s38229_s18  ;;  %35445 = vmatprep.subr.msk.mxu1 %vm115_vm1, %v11686_v9 }
 0x28b   :  { %35446 = vmatpush1.msk.msra.mxu1 %vm115_vm1, %v11685_v13 }
 0x28c   :  { %15043 = vrot.lane.b32.xlu1 %v15011_v12, %s38229_s18  ;;  %v11667_v21 = vpop.permute.xlu0 %11666  ;;  %35447 = vmatmul.mubr.msk.f32.vlgmr.msra.gmra.mrb[4].mxu1 %vm111_vm2, %v40249_v59 }
 0x28d   :  { %v11688_v14 = vsel %vm11678_vm11, %v11665_v7, %v11667_v21  ;;  %12146 = vmatprep.mubr.f32.mxu1 %v38228_v11  ;;  %v11689_v31 = vsel %vm11678_vm11, %v11667_v21, %v11669_v1  ;;  %v15711_v7 = vcombine.high %v15695_v20, %v15695_v20 }
 0x28e   :  { %v11673_v24 = vpop.permute.xlu1 %11672  ;;  %15041 = vrot.lane.b32.xlu0 %v15026_v15, %s38229_s18  ;;  %35448 = vmatprep.subr.msk.mxu0 %vm115_vm1, %v11688_v14  ;;  %v7474_v25 = vpop.f32.mrb[28].mxu1  ;;  %v15712_v14 = vcombine.high %v15696_v10, %v15696_v10 }
 0x28f   :  { %35449 = vmatpush1.msk.msra.mxu0 %vm115_vm1, %v11687_v22  ;;  %v40306_v26 = vadd.f32 %v7474_v25, %v40202_v37  ;;  %v36617_v27 = vpop.f32.mrb[29].mxu1  ;;  %v15014_v37 = vld [vmem:[%s45634_s0 + $0x34] sm:$0x77] }
 0x290   :  { %15047 = vrot.lane.b32.xlu1 %v15012_v18, %s38229_s18  ;;  %v11671_v28 = vpop.permute.xlu0 %11670  ;;  %35450 = vmatmul.mubr.msk.f32.vlgmr.msra.gmra.mrb[2].mxu0 %vm111_vm2, %v40249_v59  ;;  %v15030_v44 = vcombine.high %v15014_v37, %v15014_v37  ;;  %v15697_v22 = vld [vmem:[%s45634_s0 + $0x34] sm:$0x77] }
 0x291   :  { %v11690_v29 = vsel %vm11678_vm11, %v11669_v1, %v11671_v28  ;;  %12217 = vmatprep.mubr.f32.mxu0 %v38228_v11  ;;  %v11691_v38 = vsel %vm11678_vm11, %v11671_v28, %v11673_v24 }
 0x292   :  { %v11677_v33 = vpop.permute.xlu1 %11676  ;;  %15045 = vrot.lane.b32.xlu0 %v15027_v23, %s38229_s18  ;;  %35451 = vmatprep.subr.msk.mxu1 %vm115_vm1, %v11690_v29  ;;  %v16374_v29 = vld [vmem:[%s45634_s0 + $0x4] sm:$0x77] }
 0x293   :  { %35452 = vmatpush1.msk.msra.mxu1 %vm115_vm1, %v11689_v31 }
 0x294   :  { %15051 = vrot.lane.b32.xlu1 %v15013_v30, %s38229_s18  ;;  %v11675_v34 = vpop.permute.xlu0 %11674  ;;  %35453 = vmatmul.mubr.msk.f32.vlgmr.msra.gmra.mrb[6].mxu1 %vm111_vm2, %v40249_v59 }
 0x295   :  { %v11693_v35 = vsel %vm11678_vm11, %v11675_v34, %v11677_v33  ;;  %36648 = vmatprep.subr.mxu1 %v38228_v11  ;;  %v11692_v36 = vsel %vm11678_vm11, %v11673_v24, %v11675_v34  ;;  %36650 = vmatprep.mubr.msk.f32.mxu1 %vm38233_vm3, %v38228_v11  ;;  %v16390_v33 = vcombine.high %v16374_v29, %v16374_v29  ;;  %vm23043_vm11 = vcmask 457728  }
 0x296   :  { %v12339_v40 = vpop.permute.xlu1 %12338  ;;  %15049 = vrot.lane.b32.xlu0 %v15028_v32, %s38229_s18  ;;  %35454 = vmatprep.subr.msk.mxu0 %vm115_vm1, %v11692_v36  ;;  %v15698_v36 = vld [vmem:[%s45634_s0 + $0x3c] sm:$0x7] }
 0x297   :  { %36649 = vmatpush3.msk.msra.mxu1 %vm115_vm1, %v11693_v35  ;;  %35455 = vmatpush1.msk.msra.mxu0 %vm115_vm1, %v11691_v38  ;;  %v40460_v38 = vld [vmem:[%s45635_s1 + $0x72] sm:$0x3f] }
 0x298   :  { %15055 = vrot.lane.b32.xlu1 %v15014_v37, %s38229_s18  ;;  %v12337_v41 = vpop.permute.xlu0 %12336  ;;  %36651 = vmatmul.mubr.msk.f32.vlgmr.msra.gmra.mrb[42].mxu1 %vm111_vm2, %v40249_v59 }
 0x299   :  { %v12368_v42 = vsel %vm12366_vm13, %v12337_v41, %v12339_v40  ;;  %35456 = vmatmul.mubr.msk.f32.vlgmr.msra.gmra.mrb[4].mxu0 %vm111_vm2, %v40249_v59  ;;  %12550 = vmatprep.mubr.f32.mxu1 %v38228_v11 }
 0x29a   :  { %v12341_v45 = vpop.permute.xlu1 %12340  ;;  %15053 = vrot.lane.b32.xlu0 %v15029_v39, %s38229_s18  ;;  %35459 = vmatprep.subr.msk.mxu0 %vm115_vm1, %v12368_v42 }
 0x29b   :  { %12479 = vmatprep.mubr.f32.mxu0 %v38228_v11  ;;  %v12369_v57 = vsel %vm12366_vm13, %v12339_v40, %v12341_v45 }
 0x29c   :  { %15059 = vrot.lane.b32.xlu1 %v15015_v43, %s38229_s18  ;;  %v12335_v47 = vpop.permute.xlu0 %12334 }
 0x29d   :  { %v12367_v49 = vsel %vm12366_vm13, %v12335_v47, %v12337_v41  ;;  %v16375_v41 = vld [vmem:[%s45634_s0 + $0xc] sm:$0x77] }
 0x29e   :  { %v12345_v51 = vpop.permute.xlu1 %12344  ;;  %15057 = vrot.lane.b32.xlu0 %v15030_v44, %s38229_s18  ;;  %35460 = vmatpush1.msk.msra.mxu0 %vm115_vm1, %v12367_v49  ;;  %v16376_v44 = vld [vmem:[%s45634_s0 + $0x14] sm:$0x77]  ;;  %v16391_v47 = vcombine.high %v16375_v41, %v16375_v41 }
 0x29f   :  { %35461 = vmatmul.mubr.msk.f32.vlgmr.msra.gmra.mrb[6].mxu0 %vm111_vm2, %v40356_v48 }
 0x2a0   :  { %15718 = vrot.lane.b32.xlu1 %v15692_v50, %s38230_s19  ;;  %v12343_v54 = vpop.permute.xlu0 %12342  ;;  %12621 = vmatprep.mubr.f32.mxu0 %v38228_v11  ;;  %v16377_v50 = vld [vmem:[%s45634_s0 + $0x1c] sm:$0x77] }
 0x2a1   :  { %v12370_v55 = vsel %vm12366_vm13, %v12341_v45, %v12343_v54  ;;  %v12371_v4 = vsel %vm12366_vm13, %v12343_v54, %v12345_v51 }
 0x2a2   :  { %v12349_v58 = vpop.permute.xlu1 %12348  ;;  %15716 = vrot.lane.b32.xlu0 %v15707_v52, %s38230_s19  ;;  %35462 = vmatprep.subr.msk.mxu1 %vm115_vm1, %v12370_v55  ;;  %v16392_v52 = vcombine.high %v16376_v44, %v16376_v44 }
 0x2a3   :  { %35463 = vmatpush1.msk.msra.mxu1 %vm115_vm1, %v12369_v57 }
 0x2a4   :  { %15720 = vrot.lane.b32.xlu1 %v15708_v53, %s38230_s19  ;;  %v12347_v59 = vpop.permute.xlu0 %12346  ;;  %35464 = vmatmul.mubr.msk.f32.vlgmr.msra.gmra.mrb[2].mxu1 %vm111_vm2, %v40356_v48 }
 0x2a5   :  { %v12372_v61 = vsel %vm12366_vm13, %v12345_v51, %v12347_v59  ;;  %12692 = vmatprep.mubr.f32.mxu1 %v38228_v11  ;;  %v12373_v2 = vsel %vm12366_vm13, %v12347_v59, %v12349_v58 }
 0x2a6   :  { %v12353_v16 = vpop.permute.xlu1 %12352  ;;  %15714 = vrot.lane.b32.xlu0 %v15691_v46, %s38230_s19  ;;  %35465 = vmatprep.subr.msk.mxu0 %vm115_vm1, %v12372_v61 }
 0x2a7   :  { %35466 = vmatpush1.msk.msra.mxu0 %vm115_vm1, %v12371_v4 }
 0x2a8   :  { %15724 = vrot.lane.b32.xlu1 %v15709_v60, %s38230_s19  ;;  %v12351_v17 = vpop.permute.xlu0 %12350  ;;  %35467 = vmatmul.mubr.msk.f32.vlgmr.msra.gmra.mrb[0].mxu0 %vm111_vm2, %v40356_v48 }
 0x2a9   :  { %v12374_v19 = vsel %vm12366_vm13, %v12349_v58, %v12351_v17  ;;  %12763 = vmatprep.mubr.f32.mxu0 %v38228_v11  ;;  %v12375_v9 = vsel %vm12366_vm13, %v12351_v17, %v12353_v16  ;;  %v16393_v58 = vcombine.high %v16377_v50, %v16377_v50  ;;  %v16379_v17 = vld [vmem:[%s45634_s0 + $0x2c] sm:$0x77] }
 0x2aa   :  { %v12357_v6 = vpop.permute.xlu1 %12356  ;;  %15722 = vrot.lane.b32.xlu0 %v15693_v56, %s38230_s19  ;;  %35468 = vmatprep.subr.msk.mxu1 %vm115_vm1, %v12374_v19  ;;  %v16378_v56 = vld [vmem:[%s45634_s0 + $0x24] sm:$0x77] }
 0x2ab   :  { %35469 = vmatpush1.msk.msra.mxu1 %vm115_vm1, %v12373_v2  ;;  %v16394_v19 = vcombine.high %v16378_v56, %v16378_v56 }
 0x2ac   :  { %15728 = vrot.lane.b32.xlu1 %v15710_v3, %s38230_s19  ;;  %v12355_v5 = vpop.permute.xlu0 %12354  ;;  %35470 = vmatmul.mubr.msk.f32.vlgmr.msra.gmra.mrb[4].mxu1 %vm111_vm2, %v40356_v48 }
 0x2ad   :  { %v12376_v8 = vsel %vm12366_vm13, %v12353_v16, %v12355_v5  ;;  %12834 = vmatprep.mubr.f32.mxu1 %v38228_v11  ;;  %v12377_v23 = vsel %vm12366_vm13, %v12355_v5, %v12357_v6 }
 0x2ae   :  { %v12361_v12 = vpop.permute.xlu1 %12360  ;;  %15726 = vrot.lane.b32.xlu0 %v15694_v0, %s38230_s19  ;;  %35471 = vmatprep.subr.msk.mxu0 %vm115_vm1, %v12376_v8  ;;  %v8162_v13 = vpop.f32.mrb[30].mxu1 }
 0x2af   :  { %35472 = vmatpush1.msk.msra.mxu0 %vm115_vm1, %v12375_v9  ;;  %v40413_v15 = vadd.f32 %v8162_v13, %v40306_v26  ;;  %v36622_v1 = vpop.f32.mrb[31].mxu1  ;;  %v15713_v26 = vcombine.high %v15697_v22, %v15697_v22  ;;  %v13686_v9 = vld [vmem:[%s45634_s0 + $0x4] sm:$0x77] }
 0x2b0   :  { %15732 = vrot.lane.b32.xlu1 %v15711_v7, %s38230_s19  ;;  %v12359_v21 = vpop.permute.xlu0 %12358  ;;  %35473 = vmatmul.mubr.msk.f32.vlgmr.msra.gmra.mrb[2].mxu0 %vm111_vm2, %v40356_v48  ;;  %v16395_v7 = vcombine.high %v16379_v17, %v16379_v17 }
 0x2b1   :  { %v12378_v18 = vsel %vm12366_vm13, %v12357_v6, %v12359_v21  ;;  %12905 = vmatprep.mubr.f32.mxu0 %v38228_v11  ;;  %v12379_v30 = vsel %vm12366_vm13, %v12359_v21, %v12361_v12  ;;  %v13702_v21 = vcombine.high %v13686_v9, %v13686_v9 }
 0x2b2   :  { %v12365_v24 = vpop.permute.xlu1 %12364  ;;  %15730 = vrot.lane.b32.xlu0 %v15695_v20, %s38230_s19  ;;  %35474 = vmatprep.subr.msk.mxu1 %vm115_vm1, %v12378_v18 }
 0x2b3   :  { %35475 = vmatpush1.msk.msra.mxu1 %vm115_vm1, %v12377_v23  ;;  %v16381_v23 = vld [vmem:[%s45634_s0 + $0x3c] sm:$0x7] }
 0x2b4   :  { %15736 = vrot.lane.b32.xlu1 %v15712_v14, %s38230_s19  ;;  %v12363_v25 = vpop.permute.xlu0 %12362  ;;  %35476 = vmatmul.mubr.msk.f32.vlgmr.msra.gmra.mrb[6].mxu1 %vm111_vm2, %v40356_v48 }
 0x2b5   :  { %v12381_v27 = vsel %vm12366_vm13, %v12363_v25, %v12365_v24  ;;  %36653 = vmatprep.subr.mxu1 %v38228_v11  ;;  %v12380_v28 = vsel %vm12366_vm13, %v12361_v12, %v12363_v25  ;;  %36655 = vmatprep.mubr.msk.f32.mxu1 %vm38233_vm3, %v38228_v11  ;;  %v13687_v12 = vld [vmem:[%s45634_s0 + $0xc] sm:$0x77]  ;;  %v13688_v25 = vld [vmem:[%s45634_s0 + $0x14] sm:$0x77]  ;;  %vm34358_vm13 = vcmask 130048  }
 0x2b6   :  { %v13027_v31 = vpop.permute.xlu1 %13026  ;;  %15734 = vrot.lane.b32.xlu0 %v15696_v10, %s38230_s19  ;;  %35477 = vmatprep.subr.msk.mxu0 %vm115_vm1, %v12380_v28  ;;  %v16380_v10 = vld [vmem:[%s45634_s0 + $0x34] sm:$0x77]  ;;  %v13703_v24 = vcombine.high %v13687_v12, %v13687_v12 }
 0x2b7   :  { %36654 = vmatpush3.msk.msra.mxu1 %vm115_vm1, %v12381_v27  ;;  %35478 = vmatpush1.msk.msra.mxu0 %vm115_vm1, %v12379_v30  ;;  %v16396_v18 = vcombine.high %v16380_v10, %v16380_v10  ;;  %v13704_v30 = vcombine.high %v13688_v25, %v13688_v25 }
 0x2b8   :  { %15740 = vrot.lane.b32.xlu1 %v15713_v26, %s38230_s19  ;;  %v13025_v32 = vpop.permute.xlu0 %13024  ;;  %36656 = vmatmul.mubr.msk.f32.vlgmr.msra.gmra.mrb[44].mxu1 %vm111_vm2, %v40356_v48  ;;  %v13689_v26 = vld [vmem:[%s45634_s0 + $0x1c] sm:$0x77] }
 0x2b9   :  { %v13056_v34 = vsel %vm13054_vm15, %v13025_v32, %v13027_v31  ;;  %35479 = vmatmul.mubr.msk.f32.vlgmr.msra.gmra.mrb[4].mxu0 %vm111_vm2, %v40356_v48  ;;  %13238 = vmatprep.mubr.f32.mxu1 %v38228_v11 }
 0x2ba   :  { %v13029_v35 = vpop.permute.xlu1 %13028  ;;  %15738 = vrot.lane.b32.xlu0 %v15697_v22, %s38230_s19  ;;  %35482 = vmatprep.subr.msk.mxu0 %vm115_vm1, %v13056_v34 }
 0x2bb   :  { %13167 = vmatprep.mubr.f32.mxu0 %v38228_v11  ;;  %v13057_v45 = vsel %vm13054_vm15, %v13027_v31, %v13029_v35  ;;  %v13705_v31 = vcombine.high %v13689_v26, %v13689_v26 }
 0x2bc   :  { %16399 = vrot.lane.b32.xlu1 %v16390_v33, %s38231_s15  ;;  %v13023_v37 = vpop.permute.xlu0 %13022  ;;  %v13691_v33 = vld [vmem:[%s45634_s0 + $0x2c] sm:$0x77] }
 0x2bd   :  { %v13055_v39 = vsel %vm13054_vm15, %v13023_v37, %v13025_v32  ;;  %v13690_v32 = vld [vmem:[%s45634_s0 + $0x24] sm:$0x77]  ;;  %v13707_v37 = vcombine.high %v13691_v33, %v13691_v33 }
 0x2be   :  { %v13033_v40 = vpop.permute.xlu1 %13032  ;;  %15742 = vrot.lane.b32.xlu0 %v15698_v36, %s38230_s19  ;;  %35483 = vmatpush1.msk.msra.mxu0 %vm115_vm1, %v13055_v39  ;;  %v13706_v36 = vcombine.high %v13690_v32, %v13690_v32 }
 0x2bf   :  { %35484 = vmatmul.mubr.msk.f32.vlgmr.msra.gmra.mrb[6].mxu0 %vm111_vm2, %v40460_v38 }
 0x2c0   :  { %16397 = vrot.lane.b32.xlu1 %v16374_v29, %s38231_s15  ;;  %v13031_v42 = vpop.permute.xlu0 %13030  ;;  %13309 = vmatprep.mubr.f32.mxu0 %v38228_v11  ;;  %v13685_v29 = vld [vmem:[%s45635_s1 + $0x78] sm:$0x3f] }
 0x2c1   :  { %v13058_v43 = vsel %vm13054_vm15, %v13029_v35, %v13031_v42  ;;  %v13059_v51 = vsel %vm13054_vm15, %v13031_v42, %v13033_v40 }
 0x2c2   :  { %v13037_v46 = vpop.permute.xlu1 %13036  ;;  %16401 = vrot.lane.b32.xlu0 %v16375_v41, %s38231_s15  ;;  %35485 = vmatprep.subr.msk.mxu1 %vm115_vm1, %v13058_v43  ;;  %v13693_v43 = vld [vmem:[%s45634_s0 + $0x3c] sm:$0x7] }
 0x2c3   :  { %35486 = vmatpush1.msk.msra.mxu1 %vm115_vm1, %v13057_v45 }
 0x2c4   :  { %v13035_v48 = vpop.permute.xlu0 %13034  ;;  %16405 = vrot.lane.b32.xlu1 %v16376_v44, %s38231_s15  ;;  %35487 = vmatmul.mubr.msk.f32.vlgmr.msra.gmra.mrb[2].mxu1 %vm111_vm2, %v40460_v38 }
 0x2c5   :  { %v13060_v49 = vsel %vm13054_vm15, %v13033_v40, %v13035_v48  ;;  %13380 = vmatprep.mubr.f32.mxu1 %v38228_v11  ;;  %v13061_v57 = vsel %vm13054_vm15, %v13035_v48, %v13037_v46 }
 0x2c6   :  { %v13041_v53 = vpop.permute.xlu1 %13040  ;;  %16403 = vrot.lane.b32.xlu0 %v16391_v47, %s38231_s15  ;;  %35488 = vmatprep.subr.msk.mxu0 %vm115_vm1, %v13060_v49 }
 0x2c7   :  { %35489 = vmatpush1.msk.msra.mxu0 %vm115_vm1, %v13059_v51 }
 0x2c8   :  { %v13039_v54 = vpop.permute.xlu0 %13038  ;;  %16409 = vrot.lane.b32.xlu1 %v16377_v50, %s38231_s15  ;;  %35490 = vmatmul.mubr.msk.f32.vlgmr.msra.gmra.mrb[0].mxu0 %vm111_vm2, %v40460_v38 }
 0x2c9   :  { %v13062_v55 = vsel %vm13054_vm15, %v13037_v46, %v13039_v54  ;;  %13451 = vmatprep.mubr.f32.mxu0 %v38228_v11  ;;  %v13063_v3 = vsel %vm13054_vm15, %v13039_v54, %v13041_v53  ;;  %v14324_v54 = vld [vmem:[%s45635_s1 + $0x7e] sm:$0x3f] }
 0x2ca   :  { %v13045_v59 = vpop.permute.xlu1 %13044  ;;  %16407 = vrot.lane.b32.xlu0 %v16392_v52, %s38231_s15  ;;  %35491 = vmatprep.subr.msk.mxu1 %vm115_vm1, %v13062_v55 }
 0x2cb   :  { %v8850_v60 = vpop.f32.mrb[32].mxu1  ;;  %35492 = vmatpush1.msk.msra.mxu1 %vm115_vm1, %v13061_v57 }
 0x2cc   :  { %v40505_v61 = vadd.f32 %v8850_v60, %v40413_v15  ;;  %v13043_v0 = vpop.permute.xlu0 %13042  ;;  %16413 = vrot.lane.b32.xlu1 %v16378_v56, %s38231_s15  ;;  %35493 = vmatmul.mubr.msk.f32.vlgmr.msra.gmra.mrb[4].mxu1 %vm111_vm2, %v40460_v38  ;;  %v36627_v4 = vpop.f32.mrb[33].mxu1 }
 0x2cd   :  { %v13064_v16 = vsel %vm13054_vm15, %v13041_v53, %v13043_v0  ;;  %13522 = vmatprep.mubr.f32.mxu1 %v38228_v11  ;;  %v13065_v5 = vsel %vm13054_vm15, %v13043_v0, %v13045_v59 }
 0x2ce   :  { %v13049_v20 = vpop.permute.xlu1 %13048  ;;  %16411 = vrot.lane.b32.xlu0 %v16393_v58, %s38231_s15  ;;  %35494 = vmatprep.subr.msk.mxu0 %vm115_vm1, %v13064_v16 }
 0x2cf   :  { %35495 = vmatpush1.msk.msra.mxu0 %vm115_vm1, %v13063_v3 }
 0x2d0   :  { %v13047_v2 = vpop.permute.xlu0 %13046  ;;  %16417 = vrot.lane.b32.xlu1 %v16379_v17, %s38231_s15  ;;  %35496 = vmatmul.mubr.msk.f32.vlgmr.msra.gmra.mrb[2].mxu0 %vm111_vm2, %v40460_v38 }
 0x2d1   :  { %v13066_v6 = vsel %vm13054_vm15, %v13045_v59, %v13047_v2  ;;  %13593 = vmatprep.mubr.f32.mxu0 %v38228_v11  ;;  %v13067_v14 = vsel %vm13054_vm15, %v13047_v2, %v13049_v20 }
 0x2d2   :  { %v13053_v8 = vpop.permute.xlu1 %13052  ;;  %16415 = vrot.lane.b32.xlu0 %v16394_v19, %s38231_s15  ;;  %35497 = vmatprep.subr.msk.mxu1 %vm115_vm1, %v13066_v6 }
 0x2d3   :  { %35498 = vmatpush1.msk.msra.mxu1 %vm115_vm1, %v13065_v5 }
 0x2d4   :  { %v13051_v13 = vpop.permute.xlu0 %13050  ;;  %35499 = vmatmul.mubr.msk.f32.vlgmr.msra.gmra.mrb[6].mxu1 %vm111_vm2, %v40460_v38  ;;  %36658 = vmatprep.subr.mxu1 %v38228_v11 }
 0x2d5   :  { %v13069_v15 = vsel %vm13054_vm15, %v13051_v13, %v13053_v8  ;;  %16421 = vrot.lane.b32.xlu1 %v16380_v10, %s38231_s15  ;;  %v13068_v1 = vsel %vm13054_vm15, %v13049_v20, %v13051_v13  ;;  %36660 = vmatprep.mubr.msk.f32.mxu1 %vm38233_vm3, %v38228_v11  ;;  %vm35029_vm15 = vcmask 8192  }
 0x2d6   :  { %v40546_v22 = vpop.permute.xlu1 %14352  ;;  %16419 = vrot.lane.b32.xlu0 %v16395_v7, %s38231_s15  ;;  %35500 = vmatprep.subr.msk.mxu0 %vm115_vm1, %v13068_v1 }
 0x2d7   :  { %36659 = vmatpush3.msk.msra.mxu1 %vm115_vm1, %v13069_v15  ;;  %35501 = vmatpush1.msk.msra.mxu0 %vm115_vm1, %v13067_v14 }
 0x2d8   :  { %v14351_v27 = vpop.permute.xlu0 %14350  ;;  %35502 = vmatmul.mubr.msk.f32.vlgmr.msra.gmra.mrb[4].mxu0 %vm111_vm2, %v40460_v38  ;;  %36661 = vmatmul.mubr.msk.f32.vlgmr.msra.gmra.mrb[46].mxu1 %vm111_vm2, %v40460_v38  ;;  %v13692_v38 = vld [vmem:[%s45634_s0 + $0x34] sm:$0x77] }
 0x2d9   :  { %16425 = vrot.lane.b32.xlu1 %v16381_v23, %s38231_s15  ;;  %35505 = vmatprep.subr.msk.mxu0 %vm115_vm1, %v13702_v21  ;;  %v13708_v40 = vcombine.high %v13692_v38, %v13692_v38  ;;  %v14379_v45 = vsel %vm96_vm0, %v14351_v27, %v40546_v22 }
 0x2da   :  { %v14355_v28 = vpop.permute.xlu1 %14354  ;;  %16423 = vrot.lane.b32.xlu0 %v16396_v18, %s38231_s15  ;;  %35508 = vmatprep.subr.msk.mxu1 %vm115_vm1, %v13703_v24 }
 0x2db   :  { %35506 = vmatpush1.msk.msra.mxu0 %vm115_vm1, %v13686_v9  ;;  %13806 = vmatprep.mubr.f32.mxu0 %v38228_v11  ;;  %v14380_v49 = vsel %vm96_vm0, %v40546_v22, %v14355_v28 }
 0x2dc   :  { %35509 = vmatpush1.msk.msra.mxu1 %vm115_vm1, %v13687_v12  ;;  %13877 = vmatprep.mubr.f32.mxu1 %v38228_v11  ;;  %v14349_v34 = vpop.permute.xlu0 %14348  ;;  %v15007_v12 = vld [vmem:[%s45635_s1 + $0x84] sm:$0x3f] }
 0x2dd   :  { %35507 = vmatmul.mubr.msk.f32.vlgmr.msra.gmra.mrb[6].mxu0 %vm111_vm2, %v13685_v29  ;;  %35510 = vmatmul.mubr.msk.f32.vlgmr.msra.gmra.mrb[2].mxu1 %vm111_vm2, %v13685_v29  ;;  %v14378_v50 = vsel %vm96_vm0, %v14349_v34, %v14351_v27 }
 0x2de   :  { %v14359_v35 = vpop.permute.xlu1 %14358  ;;  %35511 = vmatprep.subr.msk.mxu0 %vm115_vm1, %v13704_v30  ;;  %35514 = vmatprep.subr.msk.mxu1 %vm115_vm1, %v13705_v31 }
 0x2df   :  { %35512 = vmatpush1.msk.msra.mxu0 %vm115_vm1, %v13688_v25  ;;  %13948 = vmatprep.mubr.f32.mxu0 %v38228_v11 }
 0x2e0   :  { %35515 = vmatpush1.msk.msra.mxu1 %vm115_vm1, %v13689_v26  ;;  %14019 = vmatprep.mubr.f32.mxu1 %v38228_v11  ;;  %v14357_v39 = vpop.permute.xlu0 %14356 }
 0x2e1   :  { %35513 = vmatmul.mubr.msk.f32.vlgmr.msra.gmra.mrb[0].mxu0 %vm111_vm2, %v13685_v29  ;;  %35516 = vmatmul.mubr.msk.f32.vlgmr.msra.gmra.mrb[4].mxu1 %vm111_vm2, %v13685_v29  ;;  %v14381_v46 = vsel %vm96_vm0, %v14355_v28, %v14357_v39  ;;  %v14382_v59 = vsel %vm96_vm0, %v14357_v39, %v14359_v35 }
 0x2e2   :  { %35517 = vmatprep.subr.msk.mxu0 %vm115_vm1, %v13706_v36  ;;  %35520 = vmatprep.subr.msk.mxu1 %vm115_vm1, %v13707_v37  ;;  %v14363_v41 = vpop.permute.xlu1 %14362 }
 0x2e3   :  { %35518 = vmatpush1.msk.msra.mxu0 %vm115_vm1, %v13690_v32  ;;  %35521 = vmatpush1.msk.msra.mxu1 %vm115_vm1, %v13691_v33 }
 0x2e4   :  { %14090 = vmatprep.mubr.f32.mxu0 %v38228_v11  ;;  %14161 = vmatprep.mubr.f32.mxu1 %v38228_v11  ;;  %v14361_v42 = vpop.permute.xlu0 %14360 }
 0x2e5   :  { %35523 = vmatprep.subr.msk.mxu0 %vm115_vm1, %v13708_v40  ;;  %36663 = vmatprep.subr.mxu1 %v38228_v11  ;;  %v14383_v52 = vsel %vm96_vm0, %v14359_v35, %v14361_v42  ;;  %v14384_v60 = vsel %vm96_vm0, %v14361_v42, %v14363_v41  ;;  %v17056_v35 = vld [vmem:[%s45636_s2] sm:$0x3f]  ;;  %s38254_s2 = smov 112  }
 0x2e6   :  { %35519 = vmatmul.mubr.msk.f32.vlgmr.msra.gmra.mrb[2].mxu0 %vm111_vm2, %v13685_v29  ;;  %35522 = vmatmul.mubr.msk.f32.vlgmr.msra.gmra.mrb[6].mxu1 %vm111_vm2, %v13685_v29  ;;  %v14367_v44 = vpop.permute.xlu1 %14366 }
 0x2e7   :  { %35524 = vmatpush1.msk.msra.mxu0 %vm115_vm1, %v13692_v38  ;;  %36664 = vmatpush3.msk.msra.mxu1 %vm115_vm1, %v13693_v43  ;;  %v38248_v38 = vmov 0  }
 0x2e8   :  { %35528 = vmatprep.subr.msk.mxu0 %vm115_vm1, %v14379_v45  ;;  %35531 = vmatprep.subr.msk.mxu1 %vm115_vm1, %v14381_v46  ;;  %v14365_v47 = vpop.permute.xlu0 %14364 }
 0x2e9   :  { %14232 = vmatprep.mubr.f32.mxu0 %v38228_v11  ;;  %36665 = vmatprep.mubr.msk.f32.mxu1 %vm38233_vm3, %v38228_v11  ;;  %v14385_v48 = vsel %vm96_vm0, %v14363_v41, %v14365_v47  ;;  %v14386_v16 = vsel %vm96_vm0, %v14365_v47, %v14367_v44 }
 0x2ea   :  { %35525 = vmatmul.mubr.msk.f32.vlgmr.msra.gmra.mrb[4].mxu0 %vm111_vm2, %v13685_v29  ;;  %36666 = vmatmul.mubr.msk.f32.vlgmr.msra.gmra.mrb[48].mxu1 %vm111_vm2, %v13685_v29  ;;  %v14371_v51 = vpop.permute.xlu1 %14370 }
 0x2eb   :  { %35529 = vmatpush1.msk.msra.mxu0 %vm115_vm1, %v14378_v50  ;;  %35532 = vmatpush1.msk.msra.mxu1 %vm115_vm1, %v14380_v49  ;;  %v9538_v53 = vpop.f32.mrb[34].mxu1 }
 0x2ec   :  { %35534 = vmatprep.subr.msk.mxu0 %vm115_vm1, %v14383_v52  ;;  %35537 = vmatprep.subr.msk.mxu1 %vm115_vm1, %v14385_v48  ;;  %v40633_v55 = vadd.f32 %v9538_v53, %v40505_v61  ;;  %v14369_v56 = vpop.permute.xlu0 %14368  ;;  %v36632_v57 = vpop.f32.mrb[35].mxu1  ;;  %v15690_v48 = vld [vmem:[%s45635_s1 + $0x8a] sm:$0x3f] }
 0x2ed   :  { %14489 = vmatprep.mubr.f32.mxu0 %v38228_v11  ;;  %14560 = vmatprep.mubr.f32.mxu1 %v38228_v11  ;;  %v14387_v58 = vsel %vm96_vm0, %v14367_v44, %v14369_v56  ;;  %v14388_v3 = vsel %vm96_vm0, %v14369_v56, %v14371_v51 }
 0x2ee   :  { %35530 = vmatmul.mubr.msk.f32.vlgmr.msra.gmra.mrb[6].mxu0 %vm111_vm2, %v14324_v54  ;;  %35533 = vmatmul.mubr.msk.f32.vlgmr.msra.gmra.mrb[2].mxu1 %vm111_vm2, %v14324_v54  ;;  %v14375_v0 = vpop.permute.xlu1 %14374 }
 0x2ef   :  { %35535 = vmatpush1.msk.msra.mxu0 %vm115_vm1, %v14382_v59  ;;  %35538 = vmatpush1.msk.msra.mxu1 %vm115_vm1, %v14384_v60 }
 0x2f0   :  { %35540 = vmatprep.subr.msk.mxu0 %vm115_vm1, %v14387_v58  ;;  %14631 = vmatprep.mubr.f32.mxu0 %v38228_v11  ;;  %v14373_v61 = vpop.permute.xlu0 %14372 }
 0x2f1   :  { %14702 = vmatprep.mubr.f32.mxu1 %v38228_v11  ;;  %v14389_v4 = vsel %vm96_vm0, %v14371_v51, %v14373_v61  ;;  %v14390_v6 = vsel %vm96_vm0, %v14373_v61, %v14375_v0  ;;  %37990 = vset.pattern.permute.xlu0 %v38248_v38 }
 0x2f2   :  { %35536 = vmatmul.mubr.msk.f32.vlgmr.msra.gmra.mrb[0].mxu0 %vm111_vm2, %v14324_v54  ;;  %35539 = vmatmul.mubr.msk.f32.vlgmr.msra.gmra.mrb[4].mxu1 %vm111_vm2, %v14324_v54  ;;  %v15034_v17 = vpop.permute.xlu1 %15033 }
 0x2f3   :  { %35541 = vmatpush1.msk.msra.mxu0 %vm115_vm1, %v14386_v16  ;;  %35543 = vmatprep.subr.msk.mxu1 %vm115_vm1, %v14389_v4 }
 0x2f4   :  { %35544 = vmatpush1.msk.msra.mxu1 %vm115_vm1, %v14388_v3  ;;  %14844 = vmatprep.mubr.f32.mxu1 %v38228_v11  ;;  %v14377_v19 = vpop.permute.xlu0 %14376 }
 0x2f5   :  { %36668 = vmatprep.subr.mxu1 %v38228_v11  ;;  %14773 = vmatprep.mubr.f32.mxu0 %v38228_v11  ;;  %v14391_v20 = vsel %vm96_vm0, %v14375_v0, %v14377_v19 }
 0x2f6   :  { %35545 = vmatmul.mubr.msk.f32.vlgmr.msra.gmra.mrb[6].mxu1 %vm111_vm2, %v14324_v54  ;;  %v15032_v2 = vpop.permute.xlu1 %15031  ;;  %35546 = vmatprep.subr.msk.mxu0 %vm115_vm1, %v14391_v20 }
 0x2f7   :  { %36669 = vmatpush3.msk.msra.mxu1 %vm115_vm1, %v14377_v19  ;;  %35542 = vmatmul.mubr.msk.f32.vlgmr.msra.gmra.mrb[2].mxu0 %vm111_vm2, %v14324_v54  ;;  %v15061_v10 = vsel %vm1367_vm4, %v15032_v2, %v15034_v17 }
 0x2f8   :  { %35547 = vmatpush1.msk.msra.mxu0 %vm115_vm1, %v14390_v6  ;;  %36670 = vmatprep.mubr.msk.f32.mxu1 %vm38233_vm3, %v38228_v11  ;;  %v15036_v5 = vpop.permute.xlu0 %15035 }
 0x2f9   :  { %14915 = vmatprep.mubr.f32.mxu0 %v38228_v11  ;;  %v15062_v7 = vsel %vm1367_vm4, %v15034_v17, %v15036_v5  ;;  %17059 = vperm.xlu0 %37990, %v17056_v35  }
 0x2fa   :  { %36671 = vmatmul.mubr.msk.f32.vlgmr.msra.gmra.mrb[50].mxu1 %vm111_vm2, %v14324_v54  ;;  %v15040_v8 = vpop.permute.xlu1 %15039  ;;  %35551 = vmatprep.subr.msk.mxu0 %vm115_vm1, %v15062_v7 }
 0x2fb   :  { %35548 = vmatmul.mubr.msk.f32.vlgmr.msra.gmra.mrb[4].mxu0 %vm111_vm2, %v14324_v54  ;;  %15243 = vmatprep.mubr.f32.mxu1 %v38228_v11 }
 0x2fc   :  { %35552 = vmatpush1.msk.msra.mxu0 %vm115_vm1, %v15061_v10  ;;  %v15038_v9 = vpop.permute.xlu0 %15037  ;;  %15172 = vmatprep.mubr.f32.mxu0 %v38228_v11 }
 0x2fd   :  { %v15063_v13 = vsel %vm1367_vm4, %v15036_v5, %v15038_v9  ;;  %v15064_v15 = vsel %vm1367_vm4, %v15038_v9, %v15040_v8  ;;  %37991 = vset.pattern.permute.xlu1 %v38248_v38 }
 0x2fe   :  { %v15044_v1 = vpop.permute.xlu1 %15043  ;;  %35554 = vmatprep.subr.msk.mxu1 %vm115_vm1, %v15064_v15 }
 0x2ff   :  { %35555 = vmatpush1.msk.msra.mxu1 %vm115_vm1, %v15063_v13  ;;  %35553 = vmatmul.mubr.msk.f32.vlgmr.msra.gmra.mrb[6].mxu0 %vm111_vm2, %v15007_v12 }
 0x300   :  { %v15042_v21 = vpop.permute.xlu0 %15041  ;;  %35556 = vmatmul.mubr.msk.f32.vlgmr.msra.gmra.mrb[2].mxu1 %vm111_vm2, %v15007_v12  ;;  %15314 = vmatprep.mubr.f32.mxu0 %v38228_v11 }
 0x301   :  { %v15065_v14 = vsel %vm1367_vm4, %v15040_v8, %v15042_v21  ;;  %v15066_v18 = vsel %vm1367_vm4, %v15042_v21, %v15044_v1  ;;  %15385 = vmatprep.mubr.f32.mxu1 %v38228_v11  ;;  %v16373_v21 = vld [vmem:[%s45635_s1 + $0x90] sm:$0x3f]  ;;  %s38249_s1 = smov 122  }
 0x302   :  { %v15048_v22 = vpop.permute.xlu1 %15047  ;;  %35557 = vmatprep.subr.msk.mxu0 %vm115_vm1, %v15066_v18 }
 0x303   :  { %35558 = vmatpush1.msk.msra.mxu0 %vm115_vm1, %v15065_v14 }
 0x304   :  { %v15046_v23 = vpop.permute.xlu0 %15045  ;;  %35559 = vmatmul.mubr.msk.f32.vlgmr.msra.gmra.mrb[0].mxu0 %vm111_vm2, %v15007_v12 }
 0x305   :  { %v15067_v24 = vsel %vm1367_vm4, %v15044_v1, %v15046_v23  ;;  %v15068_v25 = vsel %vm1367_vm4, %v15046_v23, %v15048_v22  ;;  %15456 = vmatprep.mubr.f32.mxu0 %v38228_v11 }
 0x306   :  { %v15052_v26 = vpop.permute.xlu1 %15051  ;;  %35560 = vmatprep.subr.msk.mxu1 %vm115_vm1, %v15068_v25 }
 0x307   :  { %35561 = vmatpush1.msk.msra.mxu1 %vm115_vm1, %v15067_v24 }
 0x308   :  { %v15050_v27 = vpop.permute.xlu0 %15049  ;;  %35562 = vmatmul.mubr.msk.f32.vlgmr.msra.gmra.mrb[4].mxu1 %vm111_vm2, %v15007_v12 }
 0x309   :  { %v15069_v28 = vsel %vm1367_vm4, %v15048_v22, %v15050_v27  ;;  %v15070_v29 = vsel %vm1367_vm4, %v15050_v27, %v15052_v26  ;;  %15527 = vmatprep.mubr.f32.mxu1 %v38228_v11 }
 0x30a   :  { %v15056_v30 = vpop.permute.xlu1 %15055  ;;  %35563 = vmatprep.subr.msk.mxu0 %vm115_vm1, %v15070_v29 }
 0x30b   :  { %v10226_v31 = vpop.f32.mrb[36].mxu1  ;;  %35564 = vmatpush1.msk.msra.mxu0 %vm115_vm1, %v15069_v28 }
 0x30c   :  { %v40704_v32 = vadd.f32 %v10226_v31, %v40633_v55  ;;  %v15054_v33 = vpop.permute.xlu0 %15053  ;;  %35565 = vmatmul.mubr.msk.f32.vlgmr.msra.gmra.mrb[2].mxu0 %vm111_vm2, %v15007_v12  ;;  %v36637_v34 = vpop.f32.mrb[37].mxu1 }
 0x30d   :  { %v15071_v36 = vsel %vm1367_vm4, %v15052_v26, %v15054_v33  ;;  %v15072_v37 = vsel %vm1367_vm4, %v15054_v33, %v15056_v30  ;;  %15598 = vmatprep.mubr.f32.mxu0 %v38228_v11 }
 0x30e   :  { %v15060_v39 = vpop.permute.xlu1 %15059  ;;  %35566 = vmatprep.subr.msk.mxu1 %vm115_vm1, %v15072_v37 }
 0x30f   :  { %35567 = vmatpush1.msk.msra.mxu1 %vm115_vm1, %v15071_v36 }
 0x310   :  { %v15058_v40 = vpop.permute.xlu0 %15057  ;;  %35568 = vmatmul.mubr.msk.f32.vlgmr.msra.gmra.mrb[6].mxu1 %vm111_vm2, %v15007_v12  ;;  %36673 = vmatprep.subr.mxu1 %v38228_v11 }
 0x311   :  { %v15073_v41 = vsel %vm1367_vm4, %v15056_v30, %v15058_v40  ;;  %36674 = vmatpush3.msk.msra.mxu1 %vm115_vm1, %v15060_v39  ;;  %v15074_v42 = vsel %vm1367_vm4, %v15058_v40, %v15060_v39  ;;  %36675 = vmatprep.mubr.msk.f32.mxu1 %vm38233_vm3, %v38228_v11 }
 0x312   :  { %v15719_v43 = vpop.permute.xlu1 %15718  ;;  %35569 = vmatprep.subr.msk.mxu0 %vm115_vm1, %v15074_v42 }
 0x313   :  { %35570 = vmatpush1.msk.msra.mxu0 %vm115_vm1, %v15073_v41 }
 0x314   :  { %v15717_v44 = vpop.permute.xlu0 %15716  ;;  %36676 = vmatmul.mubr.msk.f32.vlgmr.msra.gmra.mrb[52].mxu1 %vm111_vm2, %v15007_v12  ;;  %35571 = vmatmul.mubr.msk.f32.vlgmr.msra.gmra.mrb[4].mxu0 %vm111_vm2, %v15007_v12 }
 0x315   :  { %v15745_v45 = vsel %vm2051_vm5, %v15717_v44, %v15719_v43  ;;  %15855 = vmatprep.mubr.f32.mxu0 %v38228_v11  ;;  %15926 = vmatprep.mubr.f32.mxu1 %v38228_v11 }
 0x316   :  { %v15721_v46 = vpop.permute.xlu1 %15720  ;;  %35574 = vmatprep.subr.msk.mxu0 %vm115_vm1, %v15745_v45 }
 0x317   :  { %v15746_v53 = vsel %vm2051_vm5, %v15719_v43, %v15721_v46 }
 0x318   :  { %v15715_v47 = vpop.permute.xlu0 %15714 }
 0x319   :  { %v15744_v49 = vsel %vm2051_vm5, %v15715_v47, %v15717_v44 }
 0x31a   :  { %v15725_v50 = vpop.permute.xlu1 %15724  ;;  %35575 = vmatpush1.msk.msra.mxu0 %vm115_vm1, %v15744_v49 }
 0x31b   :  { %35576 = vmatmul.mubr.msk.f32.vlgmr.msra.gmra.mrb[6].mxu0 %vm111_vm2, %v15690_v48 }
 0x31c   :  { %v15723_v51 = vpop.permute.xlu0 %15722  ;;  %15997 = vmatprep.mubr.f32.mxu0 %v38228_v11 }
 0x31d   :  { %v15747_v52 = vsel %vm2051_vm5, %v15721_v46, %v15723_v51  ;;  %v15748_v57 = vsel %vm2051_vm5, %v15723_v51, %v15725_v50 }
 0x31e   :  { %v15729_v54 = vpop.permute.xlu1 %15728  ;;  %35577 = vmatprep.subr.msk.mxu1 %vm115_vm1, %v15747_v52 }
 0x31f   :  { %35578 = vmatpush1.msk.msra.mxu1 %vm115_vm1, %v15746_v53 }
 0x320   :  { %v15727_v55 = vpop.permute.xlu0 %15726  ;;  %35579 = vmatmul.mubr.msk.f32.vlgmr.msra.gmra.mrb[2].mxu1 %vm111_vm2, %v15690_v48 }
 0x321   :  { %v15749_v56 = vsel %vm2051_vm5, %v15725_v50, %v15727_v55  ;;  %16068 = vmatprep.mubr.f32.mxu1 %v38228_v11  ;;  %v15750_v0 = vsel %vm2051_vm5, %v15727_v55, %v15729_v54 }
 0x322   :  { %v15733_v58 = vpop.permute.xlu1 %15732  ;;  %35580 = vmatprep.subr.msk.mxu0 %vm115_vm1, %v15749_v56 }
 0x323   :  { %35581 = vmatpush1.msk.msra.mxu0 %vm115_vm1, %v15748_v57 }
 0x324   :  { %v15731_v59 = vpop.permute.xlu0 %15730  ;;  %35582 = vmatmul.mubr.msk.f32.vlgmr.msra.gmra.mrb[0].mxu0 %vm111_vm2, %v15690_v48 }
 0x325   :  { %v15751_v60 = vsel %vm2051_vm5, %v15729_v54, %v15731_v59  ;;  %16139 = vmatprep.mubr.f32.mxu0 %v38228_v11  ;;  %v15752_v17 = vsel %vm2051_vm5, %v15731_v59, %v15733_v58 }
 0x326   :  { %v15737_v61 = vpop.permute.xlu1 %15736  ;;  %35583 = vmatprep.subr.msk.mxu1 %vm115_vm1, %v15751_v60 }
 0x327   :  { %35584 = vmatpush1.msk.msra.mxu1 %vm115_vm1, %v15750_v0 }
 0x328   :  { %v15735_v4 = vpop.permute.xlu0 %15734  ;;  %35585 = vmatmul.mubr.msk.f32.vlgmr.msra.gmra.mrb[4].mxu1 %vm111_vm2, %v15690_v48 }
 0x329   :  { %v15753_v16 = vsel %vm2051_vm5, %v15733_v58, %v15735_v4  ;;  %16210 = vmatprep.mubr.f32.mxu1 %v38228_v11  ;;  %v15754_v7 = vsel %vm2051_vm5, %v15735_v4, %v15737_v61 }
 0x32a   :  { %v15741_v3 = vpop.permute.xlu1 %15740  ;;  %35586 = vmatprep.subr.msk.mxu0 %vm115_vm1, %v15753_v16 }
 0x32b   :  { %v10914_v19 = vpop.f32.mrb[38].mxu1  ;;  %35587 = vmatpush1.msk.msra.mxu0 %vm115_vm1, %v15752_v17 }
 0x32c   :  { %v40760_v20 = vadd.f32 %v10914_v19, %v40704_v32  ;;  %v15739_v2 = vpop.permute.xlu0 %15738  ;;  %35588 = vmatmul.mubr.msk.f32.vlgmr.msra.gmra.mrb[2].mxu0 %vm111_vm2, %v15690_v48  ;;  %v36642_v6 = vpop.f32.mrb[39].mxu1 }
 0x32d   :  { %v15755_v5 = vsel %vm2051_vm5, %v15737_v61, %v15739_v2  ;;  %16281 = vmatprep.mubr.f32.mxu0 %v38228_v11  ;;  %v15756_v12 = vsel %vm2051_vm5, %v15739_v2, %v15741_v3 }
 0x32e   :  { %v16400_v8 = vpop.permute.xlu1 %16399  ;;  %35589 = vmatprep.subr.msk.mxu1 %vm115_vm1, %v15755_v5 }
 0x32f   :  { %35590 = vmatpush1.msk.msra.mxu1 %vm115_vm1, %v15754_v7 }
 0x330   :  { %v15743_v10 = vpop.permute.xlu0 %15742  ;;  %35591 = vmatmul.mubr.msk.f32.vlgmr.msra.gmra.mrb[6].mxu1 %vm111_vm2, %v15690_v48  ;;  %36678 = vmatprep.subr.mxu1 %v38228_v11 }
 0x331   :  { %36679 = vmatpush3.msk.msra.mxu1 %vm115_vm1, %v15743_v10  ;;  %v15757_v9 = vsel %vm2051_vm5, %v15741_v3, %v15743_v10  ;;  %36680 = vmatprep.mubr.msk.f32.mxu1 %vm38233_vm3, %v38228_v11  ;;  %vm17315_vm5 = vcmask 742400  }
 0x332   :  { %v16398_v13 = vpop.permute.xlu1 %16397  ;;  %35592 = vmatprep.subr.msk.mxu0 %vm115_vm1, %v15757_v9 }
 0x333   :  { %35593 = vmatpush1.msk.msra.mxu0 %vm115_vm1, %v15756_v12  ;;  %v16427_v14 = vsel %vm2735_vm6, %v16398_v13, %v16400_v8 }
 0x334   :  { %v16402_v15 = vpop.permute.xlu0 %16401  ;;  %35594 = vmatmul.mubr.msk.f32.vlgmr.msra.gmra.mrb[4].mxu0 %vm111_vm2, %v15690_v48  ;;  %36681 = vmatmul.mubr.msk.f32.vlgmr.msra.gmra.mrb[54].mxu1 %vm111_vm2, %v15690_v48 }
 0x335   :  { %v16428_v1 = vsel %vm2735_vm6, %v16400_v8, %v16402_v15  ;;  %16538 = vmatprep.mubr.f32.mxu0 %v38228_v11  ;;  %16609 = vmatprep.mubr.f32.mxu1 %v38228_v11 }
 0x336   :  { %35597 = vmatprep.subr.msk.mxu0 %vm115_vm1, %v16428_v1  ;;  %v16406_v18 = vpop.permute.xlu1 %16405 }
 0x337   :  { %35598 = vmatpush1.msk.msra.mxu0 %vm115_vm1, %v16427_v14 }
 0x338   :  { %v16404_v22 = vpop.permute.xlu0 %16403  ;;  %35599 = vmatmul.mubr.msk.f32.vlgmr.msra.gmra.mrb[6].mxu0 %vm111_vm2, %v16373_v21 }
 0x339   :  { %v16429_v23 = vsel %vm2735_vm6, %v16402_v15, %v16404_v22  ;;  %v16430_v24 = vsel %vm2735_vm6, %v16404_v22, %v16406_v18  ;;  %16680 = vmatprep.mubr.f32.mxu0 %v38228_v11 }
 0x33a   :  { %35600 = vmatprep.subr.msk.mxu1 %vm115_vm1, %v16430_v24  ;;  %v16410_v25 = vpop.permute.xlu1 %16409 }
 0x33b   :  { %35601 = vmatpush1.msk.msra.mxu1 %vm115_vm1, %v16429_v23 }
 0x33c   :  { %v16408_v26 = vpop.permute.xlu0 %16407  ;;  %35602 = vmatmul.mubr.msk.f32.vlgmr.msra.gmra.mrb[2].mxu1 %vm111_vm2, %v16373_v21 }
 0x33d   :  { %v16431_v27 = vsel %vm2735_vm6, %v16406_v18, %v16408_v26  ;;  %v16432_v28 = vsel %vm2735_vm6, %v16408_v26, %v16410_v25  ;;  %16751 = vmatprep.mubr.f32.mxu1 %v38228_v11 }
 0x33e   :  { %35603 = vmatprep.subr.msk.mxu0 %vm115_vm1, %v16432_v28  ;;  %v16414_v29 = vpop.permute.xlu1 %16413 }
 0x33f   :  { %35604 = vmatpush1.msk.msra.mxu0 %vm115_vm1, %v16431_v27 }
 0x340   :  { %v16412_v30 = vpop.permute.xlu0 %16411  ;;  %35605 = vmatmul.mubr.msk.f32.vlgmr.msra.gmra.mrb[0].mxu0 %vm111_vm2, %v16373_v21 }
 0x341   :  { %v16433_v31 = vsel %vm2735_vm6, %v16410_v25, %v16412_v30  ;;  %v16434_v32 = vsel %vm2735_vm6, %v16412_v30, %v16414_v29  ;;  %16822 = vmatprep.mubr.f32.mxu0 %v38228_v11 }
 0x342   :  { %35606 = vmatprep.subr.msk.mxu1 %vm115_vm1, %v16434_v32  ;;  %v16418_v33 = vpop.permute.xlu1 %16417 }
 0x343   :  { %35607 = vmatpush1.msk.msra.mxu1 %vm115_vm1, %v16433_v31 }
 0x344   :  { %v16416_v34 = vpop.permute.xlu0 %16415  ;;  %35608 = vmatmul.mubr.msk.f32.vlgmr.msra.gmra.mrb[4].mxu1 %vm111_vm2, %v16373_v21 }
 0x345   :  { %v16435_v35 = vsel %vm2735_vm6, %v16414_v29, %v16416_v34  ;;  %v16436_v36 = vsel %vm2735_vm6, %v16416_v34, %v16418_v33  ;;  %16893 = vmatprep.mubr.f32.mxu1 %v38228_v11 }
 0x346   :  { %35609 = vmatprep.subr.msk.mxu0 %vm115_vm1, %v16436_v36 }
 0x347   :  { %35610 = vmatpush1.msk.msra.mxu0 %vm115_vm1, %v16435_v35  ;;  %v16422_v37 = vpop.permute.xlu1 %16421 }
 0x348   :  { %v16420_v38 = vpop.permute.xlu0 %16419  ;;  %35611 = vmatmul.mubr.msk.f32.vlgmr.msra.gmra.mrb[2].mxu0 %vm111_vm2, %v16373_v21 }
 0x349   :  { %v16437_v39 = vsel %vm2735_vm6, %v16418_v33, %v16420_v38  ;;  %v16438_v40 = vsel %vm2735_vm6, %v16420_v38, %v16422_v37  ;;  %16964 = vmatprep.mubr.f32.mxu0 %v38228_v11 }
 0x34a   :  { %35612 = vmatprep.subr.msk.mxu1 %vm115_vm1, %v16438_v40 }
 0x34b   :  { %v11602_v41 = vpop.f32.mrb[40].mxu1  ;;  %35613 = vmatpush1.msk.msra.mxu1 %vm115_vm1, %v16437_v39  ;;  %v16426_v42 = vpop.permute.xlu1 %16425 }
 0x34c   :  { %v11620_v43 = vadd.f32 %v11602_v41, %v40760_v20  ;;  %v16424_v44 = vpop.permute.xlu0 %16423  ;;  %35614 = vmatmul.mubr.msk.f32.vlgmr.msra.gmra.mrb[6].mxu1 %vm111_vm2, %v16373_v21  ;;  %36683 = vmatprep.subr.mxu1 %v38228_v11  ;;  %v36647_v45 = vpop.f32.mrb[41].mxu1 }
 0x34d   :  { %v16439_v46 = vsel %vm2735_vm6, %v16422_v37, %v16424_v44  ;;  %v16440_v47 = vsel %vm2735_vm6, %v16424_v44, %v16426_v42  ;;  %36684 = vmatpush3.msk.msra.mxu1 %vm115_vm1, %v16426_v42  ;;  %36685 = vmatprep.mubr.msk.f32.mxu1 %vm38233_vm3, %v38228_v11 }
 0x34e   :  { %35615 = vmatprep.subr.msk.mxu0 %vm115_vm1, %v16440_v47 }
 0x34f   :  { %35616 = vmatpush1.msk.msra.mxu0 %vm115_vm1, %v16439_v46  ;;  %vm17106_vm1 = vcmask 1012736  }
 0x350   :  { %35617 = vmatmul.mubr.msk.f32.vlgmr.msra.gmra.mrb[4].mxu0 %vm111_vm2, %v16373_v21  ;;  %36686 = vmatmul.mubr.msk.f32.vlgmr.msra.gmra.mrb[56].mxu1 %vm111_vm2, %v16373_v21  ;;  %vm17385_vm2 = vcmask 48128  }
 0x351   :  { %17637 = vmatprep.mubr.f32.mxu0 %v38228_v11  ;;  %17483 = vmatprep.mubr.f32.mxu1 %v38228_v11 }
 0x36b   :  { %v12290_v48 = vpop.f32.mrb[42].mxu1 }
 0x36c   :  { %v12308_v49 = vadd.f32 %v12290_v48, %v11620_v43  ;;  %v36652_v50 = vpop.f32.mrb[43].mxu1 }
 0x378   :  { %v40832_v6 = vpop.permute.xlu0 %17059 }
 0x38b   :  { %v12978_v51 = vpop.f32.mrb[44].mxu1 }
 0x38c   :  { %v12996_v52 = vadd.f32 %v12978_v51, %v12308_v49  ;;  %v36657_v53 = vpop.f32.mrb[45].mxu1 }
 0x3ab   :  { %v13666_v54 = vpop.f32.mrb[46].mxu1 }
 0x3ac   :  { %v13684_v55 = vadd.f32 %v13666_v54, %v12996_v52  ;;  %v36662_v56 = vpop.f32.mrb[47].mxu1 }
 0x3bd   :  { %v14305_v57 = vpop.f32.mrb[48].mxu1 }
 0x3be   :  { %v14323_v58 = vadd.f32 %v14305_v57, %v13684_v55  ;;  %v36667_v59 = vpop.f32.mrb[49].mxu1 }
 0x3cd   :  { %v14988_v60 = vpop.f32.mrb[50].mxu1 }
 0x3ce   :  { %v15006_v0 = vadd.f32 %v14988_v60, %v14323_v58  ;;  %v36672_v61 = vpop.f32.mrb[51].mxu1 }
 0x3e7   :  { %v15671_v4 = vpop.f32.mrb[52].mxu1 }
 0x3e8   :  { %v15689_v16 = vadd.f32 %v15671_v4, %v15006_v0  ;;  %v36677_v17 = vpop.f32.mrb[53].mxu1 }
 0x407   :  { %v16354_v3 = vpop.f32.mrb[54].mxu1 }
 0x408   :  { %v16372_v19 = vadd.f32 %v16354_v3, %v15689_v16  ;;  %v36682_v20 = vpop.f32.mrb[55].mxu1 }
 0x40b   :  { %v16540_v2 = vpop.f32.mrb[6].mxu0 }
 0x40c   :  { %v36996_v5 = vadd.f32 %v16540_v2, %v39915_v62  ;;  %v16542_v7 = vpop.f32.mrb[7].mxu0 }
 0x40d   :  { %v36997_v8 = vadd.f32 %v16542_v7, %v39919_v63 }
 0x40e   :  { %v17062_v10 = vadd.f32 %v36996_v5, %v40832_v6 }
 0x40f   :  { %v16611_v9 = vpop.f32.mrb[2].mxu1  ;;  %v17063_v12 = vadd.f32 %v36997_v8, %v40832_v6 }
 0x410   :  { %v17064_v13 = vadd.f32 %v40832_v6, %v16611_v9  ;;  %v16613_v15 = vpop.f32.mrb[3].mxu1  ;;  %v17077_v1 = vmax.f32 %v17062_v10, 0.0 }
 0x411   :  { %v17065_v21 = vadd.f32 %v40832_v6, %v16613_v15  ;;  %v17078_v14 = vmax.f32 %v17063_v12, 0.0 }
 0x412   :  { %v17079_v18 = vmax.f32 %v17064_v13, 0.0  ;;  %17092 = vst [vmem:[#allocation2] sm:$0x3f] %v17077_v1 }
 0x413   :  { %v17080_v22 = vmax.f32 %v17065_v21, 0.0  ;;  %v16682_v23 = vpop.f32.mrb[0].mxu0  ;;  %17093 = vst [vmem:[#allocation2 + $0x8] sm:$0x3f] %v17078_v14 }
 0x414   :  { %17094 = vst [vmem:[#allocation2 + $0x10] sm:$0x3f] %v17079_v18  ;;  %v17066_v62 = vadd.f32 %v40832_v6, %v16682_v23  ;;  %v16684_v63 = vpop.f32.mrb[1].mxu0 }
 0x415   :  { %17095 = vst [vmem:[#allocation2 + $0x18] sm:$0x3f] %v17080_v22  ;;  %v17067_v24 = vadd.f32 %v40832_v6, %v16684_v63 }
 0x416   :  { %v17081_v25 = vmax.f32 %v17066_v62, 0.0 }
 0x417   :  { %v17082_v26 = vmax.f32 %v17067_v24, 0.0  ;;  %v16753_v27 = vpop.f32.mrb[4].mxu1 }
 0x418   :  { %17096 = vst [vmem:[#allocation2 + $0x20] sm:$0x3f] %v17081_v25  ;;  %v17068_v28 = vadd.f32 %v40832_v6, %v16753_v27  ;;  %v16755_v29 = vpop.f32.mrb[5].mxu1 }
 0x419   :  { %17097 = vst [vmem:[#allocation2 + $0x28] sm:$0x3f] %v17082_v26  ;;  %v17069_v30 = vadd.f32 %v40832_v6, %v16755_v29  ;;  %v17108_v20 = vld [vmem:[#allocation2] sm:$0x3f] }
 0x41a   :  { %v17083_v31 = vmax.f32 %v17068_v28, 0.0  ;;  %v17109_v2 = vld [vmem:[#allocation2 + $0x8] sm:$0x3f] }
 0x41b   :  { %v17084_v32 = vmax.f32 %v17069_v30, 0.0  ;;  %v16824_v33 = vpop.f32.mrb[2].mxu0  ;;  %v17110_v3 = vld [vmem:[#allocation2 + $0x10] sm:$0x3f] }
 0x41c   :  { %17098 = vst [vmem:[#allocation2 + $0x30] sm:$0x3f] %v17083_v31  ;;  %v17070_v34 = vadd.f32 %v40832_v6, %v16824_v33  ;;  %v16826_v35 = vpop.f32.mrb[3].mxu0 }
 0x41d   :  { %17099 = vst [vmem:[#allocation2 + $0x38] sm:$0x3f] %v17084_v32  ;;  %v17071_v36 = vadd.f32 %v40832_v6, %v16826_v35 }
 0x41e   :  { %v17085_v37 = vmax.f32 %v17070_v34, 0.0 }
 0x41f   :  { %v17086_v38 = vmax.f32 %v17071_v36, 0.0  ;;  %v16895_v39 = vpop.f32.mrb[6].mxu1  ;;  %v40846_v40 = vld [vmem:[#allocation2 + $0x20] sm:$0x3f] }
 0x420   :  { %17100 = vst [vmem:[#allocation2 + $0x40] sm:$0x3f] %v17085_v37  ;;  %v17072_v41 = vadd.f32 %v40832_v6, %v16895_v39  ;;  %v16897_v42 = vpop.f32.mrb[7].mxu1  ;;  %17146 = vrot.lane.b32.xlu0 %v40846_v40, %s38227_s23  ;;  %v17113_v43 = vld [vmem:[#allocation2 + $0x28] sm:$0x3f] }
 0x421   :  { %17101 = vst [vmem:[#allocation2 + $0x48] sm:$0x3f] %v17086_v38  ;;  %v17073_v44 = vadd.f32 %v40832_v6, %v16897_v42  ;;  %17148 = vrot.lane.b32.xlu1 %v17113_v43, %s38227_s23 }
 0x422   :  { %v17087_v45 = vmax.f32 %v17072_v41, 0.0 }
 0x423   :  { %v17088_v46 = vmax.f32 %v17073_v44, 0.0  ;;  %v16966_v47 = vpop.f32.mrb[4].mxu0  ;;  %v17037_v48 = vpop.f32.mrb[56].mxu1  ;;  %v17114_v0 = vld [vmem:[#allocation2 + $0x30] sm:$0x3f] }
 0x424   :  { %17102 = vst [vmem:[#allocation2 + $0x50] sm:$0x3f] %v17087_v45  ;;  %v17074_v49 = vadd.f32 %v40832_v6, %v16966_v47  ;;  %v17055_v50 = vadd.f32 %v17037_v48, %v16372_v19  ;;  %v16968_v51 = vpop.f32.mrb[5].mxu0  ;;  %v17115_v52 = vld [vmem:[#allocation2 + $0x38] sm:$0x3f]  ;;  %v36687_v53 = vpop.f32.mrb[57].mxu1 }
 0x425   :  { %17103 = vst [vmem:[#allocation2 + $0x58] sm:$0x3f] %v17088_v46  ;;  %v17075_v54 = vadd.f32 %v40832_v6, %v16968_v51  ;;  %17152 = vrot.lane.b32.xlu0 %v17115_v52, %s38227_s23 }
 0x426   :  { %v17089_v55 = vmax.f32 %v17074_v49, 0.0  ;;  %v17076_v56 = vadd.f32 %v40832_v6, %v17055_v50  ;;  %v17111_v6 = vld [vmem:[#allocation2 + $0x18] sm:$0x3f] }
 0x427   :  { %v17090_v57 = vmax.f32 %v17075_v54, 0.0  ;;  %v17116_v58 = vld [vmem:[#allocation2 + $0x40] sm:$0x3f] }
 0x428   :  { %17104 = vst [vmem:[#allocation2 + $0x60] sm:$0x3f] %v17089_v55  ;;  %v17091_v59 = vmax.f32 %v17076_v56, 0.0  ;;  %17154 = vrot.lane.b32.xlu1 %v17116_v58, %s38227_s23  ;;  %v17117_v61 = vld [vmem:[#allocation2 + $0x48] sm:$0x3f] }
 0x429   :  { %17105 = vst [vmem:[#allocation2 + $0x68] sm:$0x3f] %v17090_v57 }
 0x42a   :  { %17107 = vst.msk [vmem:[#allocation2 + $0x70] sm:$0x3f] %vm17106_vm1, %v17091_v59 }
 0x42b   :  { %v17118_v60 = vld [vmem:[#allocation2 + $0x50] sm:$0x3f] }
 0x42c   :  { %17158 = vrot.lane.b32.xlu0 %v17118_v60, %s38227_s23  ;;  %17150 = vrot.lane.b32.xlu1 %v17114_v0, %s38227_s23  ;;  %v17119_v16 = vld [vmem:[#allocation2 + $0x58] sm:$0x3f] }
 0x42f   :  { %v17120_v4 = vld [vmem:[#allocation2 + $0x60] sm:$0x3f] }
 0x430   :  { %17156 = vrot.lane.b32.xlu1 %v17117_v61, %s38227_s23  ;;  %17162 = vrot.lane.b32.xlu0 %v17120_v4, %s38227_s23  ;;  %v17121_v19 = vld [vmem:[#allocation2 + $0x68] sm:$0x3f] }
 0x431   :  { %v40862_v17 = vld [vmem:[#allocation2 + $0x70] sm:$0x3f] }
 0x434   :  { %17160 = vrot.lane.b32.xlu1 %v17119_v16, %s38227_s23  ;;  %17166 = vrot.lane.b32.xlu0 %v40862_v17, %s38227_s23 }
 0x438   :  { %17142 = vrot.lane.b32.xlu0 %v17110_v3, %s38227_s23  ;;  %17164 = vrot.lane.b32.xlu1 %v17121_v19, %s38227_s23 }
 0x43c   :  { %17138 = vrot.lane.b32.xlu0 %v17108_v20, %s38227_s23  ;;  %17140 = vrot.lane.b32.xlu1 %v17109_v2, %s38227_s23 }
 0x440   :  { %17144 = vrot.lane.b32.xlu1 %v17111_v6, %s38227_s23  ;;  %s38250_s23 = smov 120  }
 0x492   :  { %v17147_v5 = vpop.permute.xlu0 %17146 }
 0x493   :  { %v17149_v7 = vpop.permute.xlu1 %17148 }
 0x494   :  { %v17172_v14 = vsel %vm96_vm0, %v17147_v5, %v17149_v7 }
 0x495   :  { %v17201_v62 = vmax.f32 %v40846_v40, %v17172_v14 }
 0x497   :  { %v17153_v8 = vpop.permute.xlu0 %17152 }
 0x49a   :  { %v17155_v10 = vpop.permute.xlu1 %17154 }
 0x49b   :  { %v17175_v18 = vsel %vm96_vm0, %v17153_v8, %v17155_v10 }
 0x49c   :  { %v40879_v63 = vmax.f32 %v17115_v52, %v17175_v18 }
 0x49e   :  { %v17159_v9 = vpop.permute.xlu0 %17158  ;;  %v17151_v12 = vpop.permute.xlu1 %17150 }
 0x49f   :  { %v17173_v13 = vsel %vm96_vm0, %v17149_v7, %v17151_v12  ;;  %v17174_v15 = vsel %vm96_vm0, %v17151_v12, %v17153_v8 }
 0x4a0   :  { %v17202_v1 = vmax.f32 %v17113_v43, %v17173_v13  ;;  %v17203_v21 = vmax.f32 %v17114_v0, %v17174_v15 }
 0x4a2   :  { %v17157_v22 = vpop.permute.xlu1 %17156  ;;  %17239 = vrot.lane.b32.xlu0 %v17203_v21, %s38232_s20  ;;  %v17163_v23 = vpop.permute.xlu0 %17162  ;;  %17237 = vrot.lane.b32.xlu1 %v17202_v1, %s38232_s20 }
 0x4a3   :  { %v17177_v24 = vsel %vm96_vm0, %v17157_v22, %v17159_v9  ;;  %v17176_v30 = vsel %vm96_vm0, %v17155_v10, %v17157_v22 }
 0x4a4   :  { %v17206_v28 = vmax.f32 %v17117_v61, %v17177_v24  ;;  %v17205_v33 = vmax.f32 %v17116_v58, %v17176_v30 }
 0x4a6   :  { %v17161_v25 = vpop.permute.xlu1 %17160  ;;  %17235 = vrot.lane.b32.xlu0 %v17201_v62, %s38232_s20  ;;  %v40883_v26 = vpop.permute.xlu0 %17166  ;;  %17241 = vrot.lane.b32.xlu1 %v40879_v63, %s38232_s20 }
 0x4a7   :  { %v17178_v27 = vsel %vm96_vm0, %v17159_v9, %v17161_v25  ;;  %v17179_v31 = vsel %vm96_vm0, %v17161_v25, %v17163_v23 }
 0x4a8   :  { %v40888_v29 = vmax.f32 %v17118_v60, %v17178_v27  ;;  %v40895_v34 = vmax.f32 %v17119_v16, %v17179_v31 }
 0x4aa   :  { %17247 = vrot.lane.b32.xlu0 %v40888_v29, %s38232_s20  ;;  %17245 = vrot.lane.b32.xlu1 %v17206_v28, %s38232_s20  ;;  %v17165_v32 = vpop.permute.xlu1 %17164  ;;  %v17143_v35 = vpop.permute.xlu0 %17142 }
 0x4ab   :  { %v17180_v36 = vsel %vm96_vm0, %v17163_v23, %v17165_v32  ;;  %v17181_v37 = vsel %vm96_vm0, %v17165_v32, %v40883_v26 }
 0x4ac   :  { %v17209_v39 = vmax.f32 %v17120_v4, %v17180_v36  ;;  %v40903_v40 = vmax.f32 %v17121_v19, %v17181_v37 }
 0x4ae   :  { %17243 = vrot.lane.b32.xlu0 %v17205_v33, %s38232_s20  ;;  %17249 = vrot.lane.b32.xlu1 %v40895_v34, %s38232_s20  ;;  %v17141_v38 = vpop.permute.xlu1 %17140  ;;  %v17139_v42 = vpop.permute.xlu0 %17138 }
 0x4af   :  { %v17169_v41 = vsel %vm96_vm0, %v17141_v38, %v17143_v35  ;;  %v17168_v47 = vsel %vm96_vm0, %v17139_v42, %v17141_v38 }
 0x4b0   :  { %v17198_v45 = vmax.f32 %v17109_v2, %v17169_v41  ;;  %v40917_v49 = vmax.f32 %v17108_v20, %v17168_v47  ;;  %v41021_v41 = vmax.f32 %v40862_v17, %v40883_v26 }
 0x4b2   :  { %17253 = vrot.lane.b32.xlu0 %v40903_v40, %s38232_s20  ;;  %17251 = vrot.lane.b32.xlu1 %v17209_v39, %s38232_s20  ;;  %v17145_v43 = vpop.permute.xlu1 %17144 }
 0x4b3   :  { %v17170_v44 = vsel %vm96_vm0, %v17143_v35, %v17145_v43  ;;  %v17171_v48 = vsel %vm96_vm0, %v17145_v43, %v17147_v5  ;;  %vm17392_vm0 = vcmask 1045504  }
 0x4b4   :  { %v40910_v46 = vmax.f32 %v17110_v3, %v17170_v44  ;;  %v40919_v50 = vmax.f32 %v17111_v6, %v17171_v48 }
 0x4b6   :  { %17229 = vrot.lane.b32.xlu1 %v17198_v45, %s38232_s20  ;;  %17231 = vrot.lane.b32.xlu0 %v40910_v46, %s38232_s20 }
 0x4ba   :  { %17233 = vrot.lane.b32.xlu1 %v40919_v50, %s38232_s20  ;;  %17227 = vrot.lane.b32.xlu0 %v40917_v49, %s38232_s20 }
 0x514   :  { %v17240_v51 = vpop.permute.xlu0 %17239  ;;  %v17238_v52 = vpop.permute.xlu1 %17237 }
 0x515   :  { %v17262_v53 = vsel %vm3422_vm7, %v17238_v52, %v17240_v51 }
 0x516   :  { %v17291_v54 = vmax.f32 %v17202_v1, %v17262_v53 }
 0x518   :  { %17306 = vst [vmem:[#allocation3 + $0x28] sm:$0x3f] %v17291_v54  ;;  %v17236_v55 = vpop.permute.xlu0 %17235  ;;  %v17242_v56 = vpop.permute.xlu1 %17241 }
 0x519   :  { %v17261_v57 = vsel %vm3422_vm7, %v17236_v55, %v17238_v52  ;;  %v17263_v58 = vsel %vm3422_vm7, %v17240_v51, %v17242_v56 }
 0x51a   :  { %v17290_v59 = vmax.f32 %v17201_v62, %v17261_v57  ;;  %v17292_v60 = vmax.f32 %v17203_v21, %v17263_v58  ;;  %v41122_v57 = vld [vmem:[%s45637_s3 + $0x10] sm:$0xff] }
 0x51c   :  { %17305 = vst [vmem:[#allocation3 + $0x20] sm:$0x3f] %v17290_v59  ;;  %17307 = vst [vmem:[#allocation3 + $0x30] sm:$0x3f] %v17292_v60  ;;  %v17248_v0 = vpop.permute.xlu0 %17247  ;;  %v17246_v61 = vpop.permute.xlu1 %17245  ;;  %v41136_v60 = vld [vmem:[%s45637_s3 + $0x18] sm:$0xff] }
 0x51d   :  { %v17266_v4 = vsel %vm3422_vm7, %v17246_v61, %v17248_v0 }
 0x51e   :  { %v17295_v16 = vmax.f32 %v17206_v28, %v17266_v4 }
 0x51f   :  { %v40929_v3 = vld [vmem:[#allocation3 + $0x28] sm:$0x3f] }
 0x520   :  { %17310 = vst [vmem:[#allocation3 + $0x48] sm:$0x3f] %v17295_v16  ;;  %v17244_v19 = vpop.permute.xlu0 %17243  ;;  %17357 = vrot.lane.b32.xlu1 %v40929_v3, %s38229_s18  ;;  %v17250_v20 = vpop.permute.xlu1 %17249  ;;  %v41081_v47 = vld [vmem:[#allocation3 + $0x28] sm:$0x3f] }
 0x521   :  { %v17264_v2 = vsel %vm3422_vm7, %v17242_v56, %v17244_v19  ;;  %v17265_v6 = vsel %vm3422_vm7, %v17244_v19, %v17246_v61  ;;  %v17267_v5 = vsel %vm3422_vm7, %v17248_v0, %v17250_v20 }
 0x522   :  { %v17293_v7 = vmax.f32 %v40879_v63, %v17264_v2  ;;  %v17294_v8 = vmax.f32 %v17205_v33, %v17265_v6  ;;  %v17296_v10 = vmax.f32 %v40888_v29, %v17267_v5  ;;  %v41183_v5 = vld [vmem:[%s45637_s3] sm:$0xff] }
 0x523   :  { %v40938_v9 = vld [vmem:[#allocation3 + $0x20] sm:$0x3f]  ;;  %v40940_v12 = vld [vmem:[#allocation3 + $0x30] sm:$0x3f] }
 0x524   :  { %17308 = vst [vmem:[#allocation3 + $0x38] sm:$0x3f] %v17293_v7  ;;  %17309 = vst [vmem:[#allocation3 + $0x40] sm:$0x3f] %v17294_v8  ;;  %v40942_v13 = vpop.permute.xlu0 %17253  ;;  %17355 = vrot.lane.b32.xlu1 %v40938_v9, %s38229_s18  ;;  %17359 = vrot.lane.b32.xlu0 %v40940_v12, %s38229_s18  ;;  %v17252_v15 = vpop.permute.xlu1 %17251  ;;  %v41087_v48 = vld [vmem:[#allocation3 + $0x20] sm:$0x3f] }
 0x525   :  { %17311 = vst [vmem:[#allocation3 + $0x50] sm:$0x3f] %v17296_v10  ;;  %v17268_v1 = vsel %vm3422_vm7, %v17250_v20, %v17252_v15  ;;  %v17269_v21 = vsel %vm3422_vm7, %v17252_v15, %v40942_v13  ;;  %v41199_v10 = vld [vmem:[%s45637_s3 + $0x8] sm:$0xff] }
 0x526   :  { %v17297_v14 = vmax.f32 %v40895_v34, %v17268_v1  ;;  %v17298_v18 = vmax.f32 %v17209_v39, %v17269_v21 }
 0x527   :  { %v40952_v22 = vld [vmem:[#allocation3 + $0x48] sm:$0x3f] }
 0x528   :  { %17312 = vst [vmem:[#allocation3 + $0x58] sm:$0x3f] %v17297_v14  ;;  %17313 = vst [vmem:[#allocation3 + $0x60] sm:$0x3f] %v17298_v18  ;;  %v17232_v23 = vpop.permute.xlu0 %17231  ;;  %17365 = vrot.lane.b32.xlu0 %v40952_v22, %s38229_s18  ;;  %v17230_v62 = vpop.permute.xlu1 %17229 }
 0x529   :  { %v17258_v63 = vsel %vm3422_vm7, %v17230_v62, %v17232_v23 }
 0x52a   :  { %v17287_v24 = vmax.f32 %v17198_v45, %v17258_v63 }
 0x52b   :  { %v40957_v25 = vld [vmem:[#allocation3 + $0x40] sm:$0x3f]  ;;  %v41033_v43 = vld [vmem:[#allocation3 + $0x38] sm:$0x3f] }
 0x52c   :  { %v40959_v27 = vld [vmem:[#allocation3 + $0x50] sm:$0x3f]  ;;  %17302 = vst [vmem:[#allocation3 + $0x8] sm:$0x3f] %v17287_v24  ;;  %v17228_v28 = vpop.permute.xlu0 %17227  ;;  %17363 = vrot.lane.b32.xlu0 %v40957_v25, %s38229_s18  ;;  %v17234_v29 = vpop.permute.xlu1 %17233  ;;  %v41101_v52 = vld [vmem:[#allocation3 + $0x40] sm:$0x3f] }
 0x52d   :  { %17367 = vrot.lane.b32.xlu1 %v40959_v27, %s38229_s18  ;;  %v17257_v30 = vsel %vm3422_vm7, %v17228_v28, %v17230_v62  ;;  %v17259_v31 = vsel %vm3422_vm7, %v17232_v23, %v17234_v29  ;;  %v17260_v32 = vsel %vm3422_vm7, %v17234_v29, %v17236_v55 }
 0x52e   :  { %v17286_v33 = vmax.f32 %v40917_v49, %v17257_v30  ;;  %v17288_v34 = vmax.f32 %v40910_v46, %v17259_v31  ;;  %v17289_v35 = vmax.f32 %v40919_v50, %v17260_v32  ;;  %v41079_v46 = vld [vmem:[#allocation3 + $0x30] sm:$0x3f]  ;;  %v41095_v50 = vld [vmem:[#allocation3 + $0x48] sm:$0x3f] }
 0x52f   :  { %v40971_v36 = vld [vmem:[#allocation3 + $0x60] sm:$0x3f]  ;;  %v41039_v17 = vld [vmem:[#allocation3 + $0x58] sm:$0x3f]  ;;  %v41093_v49 = vld [vmem:[#allocation3 + $0x50] sm:$0x3f] }
 0x530   :  { %17301 = vst [vmem:[#allocation3] sm:$0x3f] %v17286_v33  ;;  %17303 = vst [vmem:[#allocation3 + $0x10] sm:$0x3f] %v17288_v34  ;;  %v41128_v59 = vld [vmem:[#allocation3 + $0x60] sm:$0x3f] }
 0x531   :  { %17304 = vst [vmem:[#allocation3 + $0x18] sm:$0x3f] %v17289_v35  ;;  %17371 = vrot.lane.b32.xlu1 %v40971_v36, %s38229_s18  ;;  %v41262_v32 = vld [vmem:[%s45637_s3 + $0x20] sm:$0xff] }
 0x533   :  { %v40975_v37 = vld [vmem:[#allocation3 + $0x8] sm:$0x3f] }
 0x534   :  { %18529 = vrot.lane.b32.xlu0 %v40975_v37, %s38231_s15  ;;  %v41067_v44 = vld [vmem:[#allocation3 + $0x8] sm:$0x3f] }
 0x537   :  { %v40979_v38 = vld [vmem:[#allocation3] sm:$0x3f]  ;;  %v40981_v39 = vld [vmem:[#allocation3 + $0x10] sm:$0x3f] }
 0x538   :  { %18527 = vrot.lane.b32.xlu0 %v40979_v38, %s38231_s15  ;;  %18531 = vrot.lane.b32.xlu1 %v40981_v39, %s38231_s15  ;;  %v41023_v42 = vld [vmem:[#allocation3 + $0x18] sm:$0x3f]  ;;  %v41061_v26 = vld [vmem:[#allocation3 + $0x10] sm:$0x3f]  ;;  %v41073_v45 = vld [vmem:[#allocation3] sm:$0x3f] }
 0x53c   :  { %18539 = vrot.lane.b32.xlu0 %v40940_v12, %s38231_s15  ;;  %18537 = vrot.lane.b32.xlu1 %v40929_v3, %s38231_s15 }
 0x540   :  { %18545 = vrot.lane.b32.xlu0 %v40952_v22, %s38231_s15  ;;  %18535 = vrot.lane.b32.xlu1 %v40938_v9, %s38231_s15 }
 0x544   :  { %18543 = vrot.lane.b32.xlu0 %v40957_v25, %s38231_s15  ;;  %18547 = vrot.lane.b32.xlu1 %v40959_v27, %s38231_s15 }
 0x548   :  { %19164 = vrot.lane.b32.xlu0 %v40975_v37, %s38249_s1  ;;  %19166 = vrot.lane.b32.xlu1 %v40981_v39, %s38249_s1 }
 0x54c   :  { %19162 = vrot.lane.b32.xlu0 %v40979_v38, %s38249_s1  ;;  %17349 = vrot.lane.b32.xlu1 %v40975_v37, %s38229_s18 }
 0x550   :  { %17351 = vrot.lane.b32.xlu0 %v40981_v39, %s38229_s18  ;;  %18551 = vrot.lane.b32.xlu1 %v40971_v36, %s38231_s15 }
 0x554   :  { %19172 = vrot.lane.b32.xlu0 %v40929_v3, %s38249_s1  ;;  %17347 = vrot.lane.b32.xlu1 %v40979_v38, %s38229_s18 }
 0x558   :  { %19170 = vrot.lane.b32.xlu0 %v40938_v9, %s38249_s1  ;;  %19174 = vrot.lane.b32.xlu1 %v40940_v12, %s38249_s1 }
 0x55c   :  { %17353 = vrot.lane.b32.xlu0 %v41023_v42, %s38229_s18  ;;  %17255 = vrot.lane.b32.xlu1 %v41021_v41, %s38232_s20 }
 0x560   :  { %19182 = vrot.lane.b32.xlu0 %v40959_v27, %s38249_s1  ;;  %19180 = vrot.lane.b32.xlu1 %v40952_v22, %s38249_s1 }
 0x564   :  { %17361 = vrot.lane.b32.xlu0 %v41033_v43, %s38229_s18  ;;  %19178 = vrot.lane.b32.xlu1 %v40957_v25, %s38249_s1 }
 0x568   :  { %17369 = vrot.lane.b32.xlu0 %v41039_v17, %s38229_s18  ;;  %19800 = vrot.lane.b32.xlu1 %v40975_v37, %s38250_s23 }
 0x56c   :  { %19802 = vrot.lane.b32.xlu0 %v40981_v39, %s38250_s23  ;;  %19186 = vrot.lane.b32.xlu1 %v40971_v36, %s38249_s1 }
 0x570   :  { %19808 = vrot.lane.b32.xlu0 %v40929_v3, %s38250_s23  ;;  %19798 = vrot.lane.b32.xlu1 %v40979_v38, %s38250_s23 }
 0x574   :  { %19806 = vrot.lane.b32.xlu0 %v40938_v9, %s38250_s23  ;;  %19810 = vrot.lane.b32.xlu1 %v40940_v12, %s38250_s23 }
 0x578   :  { %19818 = vrot.lane.b32.xlu0 %v40959_v27, %s38250_s23  ;;  %19816 = vrot.lane.b32.xlu1 %v40952_v22, %s38250_s23 }
 0x57c   :  { %20466 = vrot.lane.b32.xlu0 %v41061_v26, %s38238_s12  ;;  %19814 = vrot.lane.b32.xlu1 %v40957_v25, %s38250_s23 }
 0x580   :  { %19822 = vrot.lane.b32.xlu0 %v40971_v36, %s38250_s23  ;;  %20464 = vrot.lane.b32.xlu1 %v41067_v44, %s38238_s12 }
 0x584   :  { %18533 = vrot.lane.b32.xlu0 %v41023_v42, %s38231_s15  ;;  %20462 = vrot.lane.b32.xlu1 %v41073_v45, %s38238_s12 }
 0x588   :  { %20474 = vrot.lane.b32.xlu0 %v41079_v46, %s38238_s12  ;;  %20472 = vrot.lane.b32.xlu1 %v41081_v47, %s38238_s12 }
 0x58c   :  { %18541 = vrot.lane.b32.xlu0 %v41033_v43, %s38231_s15  ;;  %20470 = vrot.lane.b32.xlu1 %v41087_v48, %s38238_s12 }
 0x590   :  { %20482 = vrot.lane.b32.xlu0 %v41093_v49, %s38238_s12  ;;  %20480 = vrot.lane.b32.xlu1 %v41095_v50, %s38238_s12 }
 0x592   :  { %v17358_v51 = vpop.permute.xlu1 %17357 }
 0x594   :  { %18549 = vrot.lane.b32.xlu0 %v41039_v17, %s38231_s15  ;;  %20478 = vrot.lane.b32.xlu1 %v41101_v52, %s38238_s12 }
 0x596   :  { %v41107_v53 = vpop.permute.xlu0 %17359  ;;  %v41109_v54 = vpop.permute.xlu1 %17355 }
 0x597   :  { %v17377_v55 = vsel %vm1367_vm4, %v41109_v54, %v17358_v51  ;;  %v17378_v56 = vsel %vm1367_vm4, %v17358_v51, %v41107_v53 }
 0x598   :  { %21102 = vrot.lane.b32.xlu0 %v41067_v44, %s38240_s28  ;;  %19168 = vrot.lane.b32.xlu1 %v41023_v42, %s38249_s1 }
 0x599   :  { %35628 = vmatprep.subr.msk.mxu0 %vm17392_vm0, %v17378_v56 }
 0x59a   :  { %35629 = vmatpush1.msk.msra.mxu0 %vm17392_vm0, %v17377_v55  ;;  %v17366_v58 = vpop.permute.xlu0 %17365 }
 0x59b   :  { %35630 = vmatmul.mubr.msk.f32.vlgmr.msra.gmra.mrb[8].mxu0 %vm17385_vm2, %v41122_v57 }
 0x59c   :  { %20486 = vrot.lane.b32.xlu1 %v41128_v59, %s38238_s12  ;;  %17643 = vmatprep.mubr.f32.mxu0 %v38228_v11 }
 0x59e   :  { %v41138_v0 = vpop.permute.xlu0 %17363 }
 0x59f   :  { %v41140_v61 = vpop.permute.xlu1 %17367  ;;  %v17381_v4 = vsel %vm1367_vm4, %v41138_v0, %v17366_v58  ;;  %35631 = vmatmul.mubr.msk.f32.gmra.mrb[10].mxu0 %vm17385_vm2, %v41136_v60 }
 0x5a0   :  { %v17382_v16 = vsel %vm1367_vm4, %v17366_v58, %v41140_v61  ;;  %21104 = vrot.lane.b32.xlu1 %v41061_v26, %s38240_s28  ;;  %17791 = vmatprep.mubr.f32.mxu0 %v38228_v11 }
 0x5a1   :  { %35636 = vmatprep.subr.msk.mxu0 %vm17392_vm0, %v17382_v16 }
 0x5a2   :  { %35637 = vmatpush1.msk.msra.mxu0 %vm17392_vm0, %v17381_v4 }
 0x5a3   :  { %v41153_v19 = vpop.permute.xlu1 %17371  ;;  %35638 = vmatmul.mubr.msk.f32.vlgmr.msra.gmra.mrb[12].mxu0 %vm17385_vm2, %v41122_v57 }
 0x5a4   :  { %36688 = vmatprep.subr.msk.mxu0 %vm17392_vm0, %v41153_v19  ;;  %19176 = vrot.lane.b32.xlu1 %v41033_v43, %s38249_s1 }
 0x5a5   :  { %36689 = vmatpush3.msk.msra.mxu0 %vm17392_vm0, %v41153_v19  ;;  %17797 = vmatprep.mubr.f32.mxu0 %v38228_v11 }
 0x5a6   :  { %35647 = vmatprep.subr.msk.mxu0 %vm17392_vm0, %v40975_v37  ;;  %v18530_v20 = vpop.permute.xlu0 %18529  ;;  %v41285_v37 = vld [vmem:[%s45637_s3 + $0x28] sm:$0xff] }
 0x5a7   :  { %35639 = vmatmul.mubr.msk.f32.gmra.mrb[14].mxu0 %vm17385_vm2, %v41136_v60 }
 0x5a8   :  { %21112 = vrot.lane.b32.xlu1 %v41079_v46, %s38240_s28  ;;  %36690 = vmatprep.mubr.msk.f32.mxu0 %vm17385_vm2, %v41122_v57 }
 0x5aa   :  { %v18528_v2 = vpop.permute.xlu0 %18527  ;;  %v41172_v6 = vpop.permute.xlu1 %18531 }
 0x5ab   :  { %36691 = vmatmul.mubr.msk.f32.vlgmr.msra.gmra.mrb[16].mxu0 %vm17385_vm2, %v41136_v60  ;;  %v18554_v23 = vsel %vm2735_vm6, %v18530_v20, %v41172_v6  ;;  %v18553_v29 = vsel %vm2735_vm6, %v18528_v2, %v18530_v20 }
 0x5ac   :  { %35648 = vmatpush1.msk.msra.mxu0 %vm17392_vm0, %v40979_v38  ;;  %19184 = vrot.lane.b32.xlu1 %v41039_v17, %s38249_s1 }
 0x5ad   :  { %35655 = vmatprep.subr.msk.mxu0 %vm17392_vm0, %v40929_v3  ;;  %18052 = vmatprep.mubr.f32.mxu0 %v38228_v11 }
 0x5ae   :  { %v41188_v7 = vpop.permute.xlu0 %18539  ;;  %v18538_v8 = vpop.permute.xlu1 %18537 }
 0x5af   :  { %35649 = vmatmul.mubr.msk.f32.vlgmr.msra.gmra.mrb[18].mxu0 %vm17385_vm2, %v41183_v5  ;;  %v18558_v31 = vsel %vm2735_vm6, %v18538_v8, %v41188_v7 }
 0x5b0   :  { %35656 = vmatpush1.msk.msra.mxu0 %vm17392_vm0, %v40938_v9  ;;  %21120 = vrot.lane.b32.xlu1 %v41093_v49, %s38240_s28 }
 0x5b1   :  { %35663 = vmatprep.subr.msk.mxu0 %vm17392_vm0, %v40952_v22  ;;  %18058 = vmatprep.mubr.f32.mxu0 %v38228_v11 }
 0x5b2   :  { %v41204_v3 = vpop.permute.xlu0 %18545  ;;  %v41206_v15 = vpop.permute.xlu1 %18535 }
 0x5b3   :  { %35650 = vmatmul.mubr.msk.f32.gmra.mrb[20].mxu0 %vm17385_vm2, %v41199_v10  ;;  %v18557_v35 = vsel %vm2735_vm6, %v41206_v15, %v18538_v8 }
 0x5b4   :  { %19804 = vrot.lane.b32.xlu1 %v41023_v42, %s38250_s23  ;;  %18206 = vmatprep.mubr.f32.mxu0 %v38228_v11 }
 0x5b6   :  { %v41213_v9 = vpop.permute.xlu0 %18543  ;;  %v41215_v1 = vpop.permute.xlu1 %18547 }
 0x5b7   :  { %35657 = vmatmul.mubr.msk.f32.vlgmr.msra.gmra.mrb[8].mxu0 %vm17385_vm2, %v41183_v5 }
 0x5b8   :  { %35664 = vmatpush1.msk.msra.mxu0 %vm17392_vm0, %v40957_v25  ;;  %18212 = vmatprep.mubr.f32.mxu0 %v38228_v11 }
 0x5b9   :  { %36693 = vmatprep.subr.msk.mxu0 %vm17392_vm0, %v40971_v36 }
 0x5ba   :  { %v41224_v21 = vpop.permute.xlu0 %19164  ;;  %v41226_v14 = vpop.permute.xlu1 %19166 }
 0x5bb   :  { %35658 = vmatmul.mubr.msk.f32.gmra.mrb[10].mxu0 %vm17385_vm2, %v41199_v10 }
 0x5bc   :  { %18360 = vmatprep.mubr.f32.mxu0 %v38228_v11 }
 0x5be   :  { %v41231_v18 = vpop.permute.xlu0 %19162  ;;  %v17350_v22 = vpop.permute.xlu1 %17349 }
 0x5bf   :  { %35665 = vmatmul.mubr.msk.f32.vlgmr.msra.gmra.mrb[12].mxu0 %vm17385_vm2, %v41183_v5 }
 0x5c0   :  { %36694 = vmatpush3.msk.msra.mxu0 %vm17392_vm0, %v40971_v36  ;;  %18366 = vmatprep.mubr.f32.mxu0 %v38228_v11  ;;  %v18562_v36 = vsel %vm2735_vm6, %v41204_v3, %v41215_v1 }
 0x5c1   :  { %35674 = vmatprep.subr.msk.mxu0 %vm17392_vm0, %v18554_v23 }
 0x5c2   :  { %v17352_v62 = vpop.permute.xlu0 %17351  ;;  %v41241_v63 = vpop.permute.xlu1 %18551 }
 0x5c3   :  { %35666 = vmatmul.mubr.msk.f32.gmra.mrb[14].mxu0 %vm17385_vm2, %v41199_v10  ;;  %v17374_v24 = vsel %vm1367_vm4, %v17350_v22, %v17352_v62 }
 0x5c4   :  { %35620 = vmatprep.subr.msk.mxu1 %vm17392_vm0, %v17374_v24  ;;  %36695 = vmatprep.mubr.msk.f32.mxu0 %vm17385_vm2, %v41183_v5 }
 0x5c6   :  { %v41249_v25 = vpop.permute.xlu0 %19172  ;;  %v17348_v28 = vpop.permute.xlu1 %17347 }
 0x5c7   :  { %36696 = vmatmul.mubr.msk.f32.vlgmr.msra.gmra.mrb[16].mxu0 %vm17385_vm2, %v41199_v10  ;;  %v17373_v30 = vsel %vm1367_vm4, %v17348_v28, %v17350_v22 }
 0x5c8   :  { %35675 = vmatpush1.msk.msra.mxu0 %vm17392_vm0, %v18553_v29  ;;  %35621 = vmatpush1.msk.msra.mxu1 %vm17392_vm0, %v17373_v30 }
 0x5c9   :  { %35682 = vmatprep.subr.msk.mxu0 %vm17392_vm0, %v18558_v31  ;;  %18661 = vmatprep.mubr.f32.mxu0 %v38228_v11 }
 0x5ca   :  { %v41266_v33 = vpop.permute.xlu0 %19170  ;;  %35622 = vmatmul.mubr.msk.f32.vlgmr.msra.gmra.mrb[58].mxu1 %vm17385_vm2, %v41122_v57  ;;  %v41270_v34 = vpop.permute.xlu1 %19174 }
 0x5cb   :  { %35676 = vmatmul.mubr.msk.f32.vlgmr.msra.gmra.mrb[18].mxu0 %vm17385_vm2, %v41262_v32  ;;  %17489 = vmatprep.mubr.f32.mxu1 %v38228_v11 }
 0x5cc   :  { %35683 = vmatpush1.msk.msra.mxu0 %vm17392_vm0, %v18557_v35  ;;  %18667 = vmatprep.mubr.f32.mxu0 %v38228_v11 }
 0x5cd   :  { %35690 = vmatprep.subr.msk.mxu0 %vm17392_vm0, %v18562_v36 }
 0x5ce   :  { %v17354_v38 = vpop.permute.xlu0 %17353  ;;  %35623 = vmatmul.mubr.msk.f32.gmra.mrb[60].mxu1 %vm17385_vm2, %v41136_v60  ;;  %v17256_v51 = vpop.permute.xlu1 %17255 }
 0x5cf   :  { %v17375_v55 = vsel %vm1367_vm4, %v17352_v62, %v17354_v38  ;;  %35677 = vmatmul.mubr.msk.f32.gmra.mrb[20].mxu0 %vm17385_vm2, %v41285_v37  ;;  %v17270_v56 = vsel %vm3422_vm7, %v40942_v13, %v17256_v51  ;;  %v17300_v58 = vmax.f32 %v41021_v41, %v17256_v51  ;;  %v17376_v4 = vsel %vm1367_vm4, %v17354_v38, %v41109_v54  ;;  %v41482_v38 = vld [vmem:[#allocation3 + $0x18] sm:$0x3f] }
 0x5d0   :  { %v17299_v16 = vmax.f32 %v40903_v40, %v17270_v56  ;;  %35624 = vmatprep.subr.msk.mxu1 %vm17392_vm0, %v17376_v4  ;;  %17560 = vmatprep.mubr.f32.mxu1 %v38228_v11  ;;  %v18561_v40 = vsel %vm2735_vm6, %v41213_v9, %v41204_v3  ;;  %vm19188_vm7 = vcmask 998400  }
 0x5d1   :  { %17316 = vst.msk [vmem:[#allocation3 + $0x70] sm:$0x3f] %vm17315_vm5, %v17300_v58  ;;  %35625 = vmatpush1.msk.msra.mxu1 %vm17392_vm0, %v17375_v55  ;;  %18815 = vmatprep.mubr.f32.mxu0 %v38228_v11  ;;  %v19190_v62 = vsel %vm19188_vm7, %v41224_v21, %v41226_v14 }
 0x5d2   :  { %17314 = vst [vmem:[#allocation3 + $0x68] sm:$0x3f] %v17299_v16  ;;  %v41303_v20 = vpop.permute.xlu0 %19182  ;;  %35626 = vmatmul.mubr.msk.f32.vlgmr.msra.gmra.mrb[62].mxu1 %vm17385_vm2, %v41122_v57  ;;  %v41307_v13 = vpop.permute.xlu1 %19180 }
 0x5d3   :  { %35684 = vmatmul.mubr.msk.f32.vlgmr.msra.gmra.mrb[8].mxu0 %vm17385_vm2, %v41262_v32  ;;  %17566 = vmatprep.mubr.f32.mxu1 %v38228_v11  ;;  %v19198_v29 = vsel %vm19188_vm7, %v41307_v13, %v41303_v20 }
 0x5d4   :  { %35691 = vmatpush1.msk.msra.mxu0 %vm17392_vm0, %v18561_v40  ;;  %18821 = vmatprep.mubr.f32.mxu0 %v38228_v11 }
 0x5d5   :  { %36698 = vmatprep.subr.msk.mxu0 %vm17392_vm0, %v41241_v63 }
 0x5d6   :  { %v17362_v41 = vpop.permute.xlu0 %17361  ;;  %35627 = vmatmul.mubr.msk.f32.gmra.mrb[64].mxu1 %vm17385_vm2, %v41136_v60  ;;  %v41321_v54 = vpop.permute.xlu1 %19178 }
 0x5d7   :  { %v17379_v2 = vsel %vm1367_vm4, %v41107_v53, %v17362_v41  ;;  %35685 = vmatmul.mubr.msk.f32.gmra.mrb[10].mxu0 %vm17385_vm2, %v41285_v37  ;;  %v17380_v8 = vsel %vm1367_vm4, %v17362_v41, %v41138_v0  ;;  %17714 = vmatprep.mubr.f32.mxu1 %v38228_v11 }
 0x5d8   :  { %35632 = vmatprep.subr.msk.mxu1 %vm17392_vm0, %v17380_v8  ;;  %18969 = vmatprep.mubr.f32.mxu0 %v38228_v11 }
 0x5d9   :  { %35633 = vmatpush1.msk.msra.mxu1 %vm17392_vm0, %v17379_v2  ;;  %v41333_v3 = vld [vmem:[#allocation3 + $0x68] sm:$0x3f] }
 0x5da   :  { %v17370_v22 = vpop.permute.xlu0 %17369  ;;  %35634 = vmatmul.mubr.msk.f32.vlgmr.msra.gmra.mrb[66].mxu1 %vm17385_vm2, %v41122_v57  ;;  %21126 = vrot.lane.b32.xlu1 %v41333_v3, %s38240_s28  ;;  %v41339_v53 = vpop.permute.xlu1 %19800 }
 0x5db   :  { %v17383_v0 = vsel %vm1367_vm4, %v41140_v61, %v17370_v22  ;;  %35692 = vmatmul.mubr.msk.f32.vlgmr.msra.gmra.mrb[12].mxu0 %vm17385_vm2, %v41262_v32  ;;  %20488 = vrot.lane.b32.xlu0 %v41333_v3, %s38238_s12  ;;  %v17384_v23 = vsel %vm1367_vm4, %v17370_v22, %v41153_v19  ;;  %v41578_v22 = vld [vmem:[%s45637_s3 + $0x48] sm:$0xff] }
 0x5dc   :  { %36699 = vmatpush3.msk.msra.mxu0 %vm17392_vm0, %v41241_v63  ;;  %35640 = vmatprep.subr.msk.mxu1 %vm17392_vm0, %v17384_v23 }
 0x5dd   :  { %35701 = vmatprep.subr.msk.mxu0 %vm17392_vm0, %v19190_v62  ;;  %17720 = vmatprep.mubr.f32.mxu1 %v38228_v11 }
 0x5de   :  { %35641 = vmatpush1.msk.msra.mxu1 %vm17392_vm0, %v17383_v0  ;;  %18975 = vmatprep.mubr.f32.mxu0 %v38228_v11  ;;  %v41359_v61 = vpop.permute.xlu0 %19802  ;;  %v41361_v19 = vpop.permute.xlu1 %19186 }
 0x5df   :  { %35635 = vmatmul.mubr.msk.f32.gmra.mrb[68].mxu1 %vm17385_vm2, %v41136_v60  ;;  %35651 = vmatprep.subr.msk.mxu1 %vm17392_vm0, %v41023_v42  ;;  %v19189_v42 = vsel %vm19188_vm7, %v41231_v18, %v41224_v21  ;;  %v19826_v58 = vsel %vm19824_vm9, %v41339_v53, %v41359_v61 }
 0x5e0   :  { %35693 = vmatmul.mubr.msk.f32.gmra.mrb[14].mxu0 %vm17385_vm2, %v41285_v37  ;;  %21742 = vrot.lane.b32.xlu1 %v41061_v26, %s38242_s25 }
 0x5e1   :  { %21100 = vrot.lane.b32.xlu0 %v41073_v45, %s38240_s28  ;;  %17868 = vmatprep.mubr.f32.mxu1 %v38228_v11 }
 0x5e2   :  { %36700 = vmatprep.mubr.msk.f32.mxu0 %vm17385_vm2, %v41262_v32  ;;  %v41376_v24 = vpop.permute.xlu0 %19808  ;;  %v41378_v28 = vpop.permute.xlu1 %19798 }
 0x5e3   :  { %35642 = vmatmul.mubr.msk.f32.vlgmr.msra.gmra.mrb[70].mxu1 %vm17385_vm2, %v41122_v57  ;;  %v19194_v57 = vsel %vm19188_vm7, %v41249_v25, %v41270_v34 }
 0x5e4   :  { %35652 = vmatpush1.msk.msra.mxu1 %vm17392_vm0, %v40981_v39  ;;  %36701 = vmatmul.mubr.msk.f32.vlgmr.msra.gmra.mrb[16].mxu0 %vm17385_vm2, %v41285_v37  ;;  %v41404_v39 = vld [vmem:[%s45637_s3 + $0x30] sm:$0xff] }
 0x5e5   :  { %35702 = vmatpush1.msk.msra.mxu0 %vm17392_vm0, %v19189_v42  ;;  %19812 = vrot.lane.b32.xlu1 %v41033_v43, %s38250_s23 }
 0x5e6   :  { %21110 = vrot.lane.b32.xlu0 %v41081_v47, %s38240_s28  ;;  %35659 = vmatprep.subr.msk.mxu1 %vm17392_vm0, %v41033_v43  ;;  %v41399_v21 = vpop.permute.xlu0 %19806  ;;  %v41406_v18 = vpop.permute.xlu1 %19810  ;;  %v19193_v43 = vsel %vm19188_vm7, %v41266_v33, %v41249_v25  ;;  %v41431_v25 = vld [vmem:[%s45637_s3 + $0x38] sm:$0xff] }
 0x5e7   :  { %35709 = vmatprep.subr.msk.mxu0 %vm17392_vm0, %v19194_v57  ;;  %17874 = vmatprep.mubr.f32.mxu1 %v38228_v11  ;;  %v19830_v41 = vsel %vm19824_vm9, %v41376_v24, %v41406_v18  ;;  %v19829_v8 = vsel %vm19824_vm9, %v41399_v21, %v41376_v24 }
 0x5e8   :  { %19297 = vmatprep.mubr.f32.mxu0 %v38228_v11  ;;  %35643 = vmatmul.mubr.msk.f32.gmra.mrb[72].mxu1 %vm17385_vm2, %v41136_v60 }
 0x5e9   :  { %35703 = vmatmul.mubr.msk.f32.vlgmr.msra.gmra.mrb[18].mxu0 %vm17385_vm2, %v41404_v39  ;;  %21750 = vrot.lane.b32.xlu1 %v41079_v46, %s38242_s25 }
 0x5ea   :  { %35710 = vmatpush1.msk.msra.mxu0 %vm17392_vm0, %v19193_v43  ;;  %21108 = vrot.lane.b32.xlu0 %v41087_v48, %s38240_s28  ;;  %v41426_v60 = vpop.permute.xlu0 %19818  ;;  %v41433_v30 = vpop.permute.xlu1 %19816 }
 0x5eb   :  { %35717 = vmatprep.subr.msk.mxu0 %vm17392_vm0, %v19198_v29  ;;  %18129 = vmatprep.mubr.f32.mxu1 %v38228_v11  ;;  %v19834_v0 = vsel %vm19824_vm9, %v41433_v30, %v41426_v60 }
 0x5ec   :  { %19303 = vmatprep.mubr.f32.mxu0 %v38228_v11  ;;  %35653 = vmatmul.mubr.msk.f32.vlgmr.msra.gmra.mrb[62].mxu1 %vm17385_vm2, %v41183_v5 }
 0x5ed   :  { %35660 = vmatpush1.msk.msra.mxu1 %vm17392_vm0, %v40940_v12  ;;  %35704 = vmatmul.mubr.msk.f32.gmra.mrb[20].mxu0 %vm17385_vm2, %v41431_v25  ;;  %v19197_v12 = vsel %vm19188_vm7, %v41321_v54, %v41307_v13 }
 0x5ee   :  { %19820 = vrot.lane.b32.xlu1 %v41039_v17, %s38250_s23  ;;  %21118 = vrot.lane.b32.xlu0 %v41095_v50, %s38240_s28  ;;  %v41448_v31 = vpop.permute.xlu0 %20466  ;;  %v41450_v35 = vpop.permute.xlu1 %19814 }
 0x5ef   :  { %35667 = vmatprep.subr.msk.mxu1 %vm17392_vm0, %v41039_v17  ;;  %18135 = vmatprep.mubr.f32.mxu1 %v38228_v11 }
 0x5f0   :  { %19451 = vmatprep.mubr.f32.mxu0 %v38228_v11  ;;  %35654 = vmatmul.mubr.msk.f32.gmra.mrb[64].mxu1 %vm17385_vm2, %v41199_v10 }
 0x5f1   :  { %35711 = vmatmul.mubr.msk.f32.vlgmr.msra.gmra.mrb[8].mxu0 %vm17385_vm2, %v41404_v39  ;;  %18283 = vmatprep.mubr.f32.mxu1 %v38228_v11 }
 0x5f2   :  { %21758 = vrot.lane.b32.xlu1 %v41093_v49, %s38242_s25  ;;  %21116 = vrot.lane.b32.xlu0 %v41101_v52, %s38240_s28  ;;  %v41468_v17 = vpop.permute.xlu0 %19822  ;;  %v41470_v36 = vpop.permute.xlu1 %20464 }
 0x5f3   :  { %35718 = vmatpush1.msk.msra.mxu0 %vm17392_vm0, %v19197_v12  ;;  %19457 = vmatprep.mubr.f32.mxu0 %v38228_v11 }
 0x5f4   :  { %36703 = vmatprep.subr.msk.mxu0 %vm17392_vm0, %v41361_v19  ;;  %35661 = vmatmul.mubr.msk.f32.vlgmr.msra.gmra.mrb[66].mxu1 %vm17385_vm2, %v41183_v5 }
 0x5f5   :  { %35668 = vmatpush1.msk.msra.mxu1 %vm17392_vm0, %v40959_v27  ;;  %35712 = vmatmul.mubr.msk.f32.gmra.mrb[10].mxu0 %vm17385_vm2, %v41431_v25 }
 0x5f6   :  { %20468 = vrot.lane.b32.xlu1 %v41482_v38, %s38238_s12  ;;  %21740 = vrot.lane.b32.xlu0 %v41067_v44, %s38242_s25  ;;  %v18534_v51 = vpop.permute.xlu0 %18533  ;;  %v41488_v55 = vpop.permute.xlu1 %20462 }
 0x5f7   :  { %18289 = vmatprep.mubr.f32.mxu1 %v38228_v11  ;;  %19605 = vmatprep.mubr.f32.mxu0 %v38228_v11  ;;  %v18556_v27 = vsel %vm2735_vm6, %v18534_v51, %v41206_v15  ;;  %v18555_v4 = vsel %vm2735_vm6, %v41172_v6, %v18534_v51  ;;  %v20490_v12 = vsel %vm6862_vm12, %v41488_v55, %v41470_v36 }
 0x5f8   :  { %35662 = vmatmul.mubr.msk.f32.gmra.mrb[68].mxu1 %vm17385_vm2, %v41199_v10  ;;  %35678 = vmatprep.subr.msk.mxu1 %vm17392_vm0, %v18556_v27  ;;  %v41728_v27 = vld [vmem:[%s45637_s3 + $0x58] sm:$0xff] }
 0x5f9   :  { %35719 = vmatmul.mubr.msk.f32.vlgmr.msra.gmra.mrb[12].mxu0 %vm17385_vm2, %v41404_v39  ;;  %18437 = vmatprep.mubr.f32.mxu1 %v38228_v11 }
 0x5fa   :  { %21764 = vrot.lane.b32.xlu1 %v41333_v3, %s38242_s25  ;;  %21124 = vrot.lane.b32.xlu0 %v41128_v59, %s38240_s28  ;;  %v41504_v56 = vpop.permute.xlu0 %20474  ;;  %v41506_v15 = vpop.permute.xlu1 %20472 }
 0x5fb   :  { %36704 = vmatpush3.msk.msra.mxu0 %vm17392_vm0, %v41361_v19  ;;  %19611 = vmatprep.mubr.f32.mxu0 %v38228_v11 }
 0x5fc   :  { %35728 = vmatprep.subr.msk.mxu0 %vm17392_vm0, %v19826_v58  ;;  %35669 = vmatmul.mubr.msk.f32.vlgmr.msra.gmra.mrb[70].mxu1 %vm17385_vm2, %v41183_v5  ;;  %v19825_v5 = vsel %vm19824_vm9, %v41378_v28, %v41339_v53  ;;  %v19833_v28 = vsel %vm19824_vm9, %v41450_v35, %v41433_v30 }
 0x5fd   :  { %35679 = vmatpush1.msk.msra.mxu1 %vm17392_vm0, %v18555_v4  ;;  %35720 = vmatmul.mubr.msk.f32.gmra.mrb[14].mxu0 %vm17385_vm2, %v41431_v25 }
 0x5fe   :  { %22378 = vrot.lane.b32.xlu1 %v41067_v44, %s38251_s27  ;;  %21738 = vrot.lane.b32.xlu0 %v41073_v45, %s38242_s25  ;;  %v18542_v16 = vpop.permute.xlu0 %18541  ;;  %v41526_v13 = vpop.permute.xlu1 %20470 }
 0x5ff   :  { %18443 = vmatprep.mubr.f32.mxu1 %v38228_v11  ;;  %36705 = vmatprep.mubr.msk.f32.mxu0 %vm17385_vm2, %v41404_v39  ;;  %v18560_v6 = vsel %vm2735_vm6, %v18542_v16, %v41213_v9  ;;  %v18559_v2 = vsel %vm2735_vm6, %v41188_v7, %v18542_v16  ;;  %v20494_v55 = vsel %vm6862_vm12, %v41526_v13, %v41506_v15 }
 0x600   :  { %35670 = vmatmul.mubr.msk.f32.gmra.mrb[72].mxu1 %vm17385_vm2, %v41199_v10  ;;  %35686 = vmatprep.subr.msk.mxu1 %vm17392_vm0, %v18560_v6  ;;  %v41551_v10 = vld [vmem:[%s45637_s3 + $0x40] sm:$0xff] }
 0x601   :  { %36706 = vmatmul.mubr.msk.f32.vlgmr.msra.gmra.mrb[16].mxu0 %vm17385_vm2, %v41431_v25  ;;  %18738 = vmatprep.mubr.f32.mxu1 %v38228_v11 }
 0x602   :  { %22376 = vrot.lane.b32.xlu1 %v41073_v45, %s38251_s27  ;;  %21748 = vrot.lane.b32.xlu0 %v41081_v47, %s38242_s25  ;;  %v41546_v9 = vpop.permute.xlu0 %20482  ;;  %v41553_v40 = vpop.permute.xlu1 %20480 }
 0x603   :  { %35729 = vmatpush1.msk.msra.mxu0 %vm17392_vm0, %v19825_v5  ;;  %19933 = vmatprep.mubr.f32.mxu0 %v38228_v11 }
 0x604   :  { %35736 = vmatprep.subr.msk.mxu0 %vm17392_vm0, %v19830_v41  ;;  %35680 = vmatmul.mubr.msk.f32.vlgmr.msra.gmra.mrb[62].mxu1 %vm17385_vm2, %v41262_v32  ;;  %v41861_v41 = vld [vmem:[%s45637_s3 + $0x68] sm:$0xff] }
 0x605   :  { %35687 = vmatpush1.msk.msra.mxu1 %vm17392_vm0, %v18559_v2  ;;  %35730 = vmatmul.mubr.msk.f32.vlgmr.msra.gmra.mrb[18].mxu0 %vm17385_vm2, %v41551_v10 }
 0x606   :  { %22386 = vrot.lane.b32.xlu1 %v41081_v47, %s38251_s27  ;;  %21746 = vrot.lane.b32.xlu0 %v41087_v48, %s38242_s25  ;;  %v18550_v7 = vpop.permute.xlu0 %18549  ;;  %v41580_v53 = vpop.permute.xlu1 %20478 }
 0x607   :  { %35737 = vmatpush1.msk.msra.mxu0 %vm17392_vm0, %v19829_v8  ;;  %18744 = vmatprep.mubr.f32.mxu1 %v38228_v11  ;;  %v18564_v23 = vsel %vm2735_vm6, %v18550_v7, %v41241_v63  ;;  %v18563_v63 = vsel %vm2735_vm6, %v41215_v1, %v18550_v7  ;;  %v41630_v1 = vld [vmem:[#allocation3 + $0x38] sm:$0x3f] }
 0x608   :  { %35744 = vmatprep.subr.msk.mxu0 %vm17392_vm0, %v19834_v0  ;;  %19939 = vmatprep.mubr.f32.mxu0 %v38228_v11 }
 0x609   :  { %35681 = vmatmul.mubr.msk.f32.gmra.mrb[64].mxu1 %vm17385_vm2, %v41285_v37  ;;  %35731 = vmatmul.mubr.msk.f32.gmra.mrb[20].mxu0 %vm17385_vm2, %v41578_v22 }
 0x60a   :  { %22384 = vrot.lane.b32.xlu1 %v41087_v48, %s38251_s27  ;;  %21756 = vrot.lane.b32.xlu0 %v41095_v50, %s38242_s25  ;;  %v19169_v62 = vpop.permute.xlu1 %19168 }
 0x60b   :  { %35694 = vmatprep.subr.msk.mxu1 %vm17392_vm0, %v18564_v23  ;;  %18892 = vmatprep.mubr.f32.mxu1 %v38228_v11  ;;  %v19192_v24 = vsel %vm19188_vm7, %v19169_v62, %v41266_v33  ;;  %v19191_v57 = vsel %vm19188_vm7, %v41226_v14, %v19169_v62  ;;  %v20491_v14 = vsel %vm6862_vm12, %v41470_v36, %v41448_v31 }
 0x60c   :  { %20087 = vmatprep.mubr.f32.mxu0 %v38228_v11 }
 0x60d   :  { %35688 = vmatmul.mubr.msk.f32.vlgmr.msra.gmra.mrb[66].mxu1 %vm17385_vm2, %v41262_v32  ;;  %35738 = vmatmul.mubr.msk.f32.vlgmr.msra.gmra.mrb[8].mxu0 %vm17385_vm2, %v41551_v10 }
 0x60e   :  { %35695 = vmatpush1.msk.msra.mxu1 %vm17392_vm0, %v18563_v63  ;;  %22394 = vrot.lane.b32.xlu1 %v41095_v50, %s38251_s27  ;;  %v41616_v42 = vpop.permute.xlu1 %20486 }
 0x60f   :  { %21754 = vrot.lane.b32.xlu0 %v41101_v52, %s38242_s25  ;;  %35745 = vmatpush1.msk.msra.mxu0 %vm17392_vm0, %v19833_v28 }
 0x610   :  { %36708 = vmatprep.subr.msk.mxu0 %vm17392_vm0, %v41468_v17  ;;  %35705 = vmatprep.subr.msk.mxu1 %vm17392_vm0, %v19192_v24 }
 0x611   :  { %18898 = vmatprep.mubr.f32.mxu1 %v38228_v11  ;;  %20093 = vmatprep.mubr.f32.mxu0 %v38228_v11 }
 0x612   :  { %35689 = vmatmul.mubr.msk.f32.gmra.mrb[68].mxu1 %vm17385_vm2, %v41285_v37  ;;  %22392 = vrot.lane.b32.xlu1 %v41101_v52, %s38251_s27  ;;  %v41632_v33 = vpop.permute.xlu1 %21104 }
 0x613   :  { %20476 = vrot.lane.b32.xlu0 %v41630_v1, %s38238_s12  ;;  %35739 = vmatmul.mubr.msk.f32.gmra.mrb[10].mxu0 %vm17385_vm2, %v41578_v22 }
 0x614   :  { %19046 = vmatprep.mubr.f32.mxu1 %v38228_v11  ;;  %20241 = vmatprep.mubr.f32.mxu0 %v38228_v11 }
 0x616   :  { %35696 = vmatmul.mubr.msk.f32.vlgmr.msra.gmra.mrb[70].mxu1 %vm17385_vm2, %v41262_v32  ;;  %22400 = vrot.lane.b32.xlu1 %v41128_v59, %s38251_s27  ;;  %v19177_v43 = vpop.permute.xlu1 %19176 }
 0x617   :  { %21762 = vrot.lane.b32.xlu0 %v41128_v59, %s38242_s25  ;;  %35706 = vmatpush1.msk.msra.mxu1 %vm17392_vm0, %v19191_v57  ;;  %v19196_v32 = vsel %vm19188_vm7, %v19177_v43, %v41321_v54  ;;  %v19195_v30 = vsel %vm19188_vm7, %v41270_v34, %v19177_v43  ;;  %v20495_v34 = vsel %vm6862_vm12, %v41506_v15, %v41504_v56 }
 0x618   :  { %35746 = vmatmul.mubr.msk.f32.vlgmr.msra.gmra.mrb[12].mxu0 %vm17385_vm2, %v41551_v10  ;;  %19052 = vmatprep.mubr.f32.mxu1 %v38228_v11 }
 0x619   :  { %36709 = vmatpush3.msk.msra.mxu0 %vm17392_vm0, %v41468_v17  ;;  %20247 = vmatprep.mubr.f32.mxu0 %v38228_v11 }
 0x61a   :  { %35755 = vmatprep.subr.msk.mxu0 %vm17392_vm0, %v20491_v14  ;;  %35697 = vmatmul.mubr.msk.f32.gmra.mrb[72].mxu1 %vm17385_vm2, %v41285_v37  ;;  %v41663_v29 = vpop.permute.xlu1 %21112  ;;  %v41675_v37 = vld [vmem:[#allocation3 + $0x58] sm:$0x3f] }
 0x61b   :  { %23017 = vrot.lane.b32.xlu1 %v41067_v44, %s38252_s10  ;;  %22380 = vrot.lane.b32.xlu0 %v41061_v26, %s38251_s27 }
 0x61c   :  { %35747 = vmatmul.mubr.msk.f32.gmra.mrb[14].mxu0 %vm17385_vm2, %v41578_v22  ;;  %35713 = vmatprep.subr.msk.mxu1 %vm17392_vm0, %v19196_v32 }
 0x61d   :  { %19374 = vmatprep.mubr.f32.mxu1 %v38228_v11  ;;  %36710 = vmatprep.mubr.msk.f32.mxu0 %vm17385_vm2, %v41551_v10 }
 0x61e   :  { %35707 = vmatmul.mubr.msk.f32.vlgmr.msra.gmra.mrb[62].mxu1 %vm17385_vm2, %v41404_v39  ;;  %v19185_v54 = vpop.permute.xlu1 %19184 }
 0x61f   :  { %23015 = vrot.lane.b32.xlu1 %v41073_v45, %s38252_s10  ;;  %20484 = vrot.lane.b32.xlu0 %v41675_v37, %s38238_s12  ;;  %v41699_v45 = vld [vmem:[%s45637_s3 + $0x50] sm:$0xff]  ;;  %v19200_v36 = vsel %vm19188_vm7, %v19185_v54, %v41361_v19  ;;  %v20499_v19 = vsel %vm6862_vm12, %v41553_v40, %v41546_v9  ;;  %v19199_v58 = vsel %vm19188_vm7, %v41303_v20, %v19185_v54 }
 0x620   :  { %35714 = vmatpush1.msk.msra.mxu1 %vm17392_vm0, %v19195_v30  ;;  %36711 = vmatmul.mubr.msk.f32.vlgmr.msra.gmra.mrb[16].mxu0 %vm17385_vm2, %v41578_v22  ;;  %v20498_v20 = vsel %vm6862_vm12, %v41580_v53, %v41553_v40  ;;  %v41974_v54 = vld [vmem:[%s45637_s3 + $0x70] sm:$0xff]  ;;  %v41978_v30 = vld [vmem:[#allocation3 + $0x8] sm:$0x3f] }
 0x621   :  { %35756 = vmatpush1.msk.msra.mxu0 %vm17392_vm0, %v20490_v12  ;;  %19380 = vmatprep.mubr.f32.mxu1 %v38228_v11 }
 0x622   :  { %35763 = vmatprep.subr.msk.mxu0 %vm17392_vm0, %v20495_v34  ;;  %20599 = vmatprep.mubr.f32.mxu0 %v38228_v11  ;;  %v41705_v51 = vpop.permute.xlu1 %21120 }
 0x623   :  { %23025 = vrot.lane.b32.xlu1 %v41081_v47, %s38252_s10  ;;  %22388 = vrot.lane.b32.xlu0 %v41079_v46, %s38251_s27 }
 0x624   :  { %35708 = vmatmul.mubr.msk.f32.gmra.mrb[64].mxu1 %vm17385_vm2, %v41431_v25  ;;  %35757 = vmatmul.mubr.msk.f32.vlgmr.msra.gmra.mrb[18].mxu0 %vm17385_vm2, %v41699_v45 }
 0x625   :  { %35764 = vmatpush1.msk.msra.mxu0 %vm17392_vm0, %v20494_v55  ;;  %35721 = vmatprep.subr.msk.mxu1 %vm17392_vm0, %v19200_v36  ;;  %v41996_v55 = vld [vmem:[%s45637_s3 + $0x78] sm:$0xff] }
 0x626   :  { %35771 = vmatprep.subr.msk.mxu0 %vm17392_vm0, %v20499_v19  ;;  %19528 = vmatprep.mubr.f32.mxu1 %v38228_v11  ;;  %v19805_v15 = vpop.permute.xlu1 %19804  ;;  %v42000_v19 = vld [vmem:[#allocation3 + $0x30] sm:$0x3f] }
 0x627   :  { %20605 = vmatprep.mubr.f32.mxu0 %v38228_v11  ;;  %23023 = vrot.lane.b32.xlu1 %v41087_v48, %s38252_s10  ;;  %v19828_v4 = vsel %vm19824_vm9, %v19805_v15, %v41399_v21  ;;  %v19827_v21 = vsel %vm19824_vm9, %v41359_v61, %v19805_v15 }
 0x628   :  { %21106 = vrot.lane.b32.xlu0 %v41482_v38, %s38240_s28  ;;  %35715 = vmatmul.mubr.msk.f32.vlgmr.msra.gmra.mrb[66].mxu1 %vm17385_vm2, %v41404_v39 }
 0x629   :  { %35722 = vmatpush1.msk.msra.mxu1 %vm17392_vm0, %v19199_v58  ;;  %35758 = vmatmul.mubr.msk.f32.gmra.mrb[20].mxu0 %vm17385_vm2, %v41728_v27 }
 0x62a   :  { %19534 = vmatprep.mubr.f32.mxu1 %v38228_v11  ;;  %20753 = vmatprep.mubr.f32.mxu0 %v38228_v11 }
 0x62b   :  { %23033 = vrot.lane.b32.xlu1 %v41095_v50, %s38252_s10  ;;  %35732 = vmatprep.subr.msk.mxu1 %vm17392_vm0, %v19828_v4 }
 0x62c   :  { %22396 = vrot.lane.b32.xlu0 %v41093_v49, %s38251_s27  ;;  %35716 = vmatmul.mubr.msk.f32.gmra.mrb[68].mxu1 %vm17385_vm2, %v41431_v25 }
 0x62d   :  { %35765 = vmatmul.mubr.msk.f32.vlgmr.msra.gmra.mrb[8].mxu0 %vm17385_vm2, %v41699_v45  ;;  %19682 = vmatprep.mubr.f32.mxu1 %v38228_v11 }
 0x62e   :  { %35772 = vmatpush1.msk.msra.mxu0 %vm17392_vm0, %v20498_v20  ;;  %20759 = vmatprep.mubr.f32.mxu0 %v38228_v11  ;;  %v42016_v20 = vld [vmem:[#allocation3 + $0x28] sm:$0x3f] }
 0x62f   :  { %23031 = vrot.lane.b32.xlu1 %v41101_v52, %s38252_s10  ;;  %v21103_v52 = vpop.permute.xlu0 %21102 }
 0x630   :  { %21114 = vrot.lane.b32.xlu0 %v41630_v1, %s38240_s28  ;;  %35723 = vmatmul.mubr.msk.f32.vlgmr.msra.gmra.mrb[70].mxu1 %vm17385_vm2, %v41404_v39  ;;  %v21129_v61 = vsel %vm8238_vm14, %v21103_v52, %v41632_v33 }
 0x631   :  { %35733 = vmatpush1.msk.msra.mxu1 %vm17392_vm0, %v19827_v21  ;;  %35766 = vmatmul.mubr.msk.f32.gmra.mrb[10].mxu0 %vm17385_vm2, %v41728_v27 }
 0x632   :  { %20907 = vmatprep.mubr.f32.mxu0 %v38228_v11  ;;  %19688 = vmatprep.mubr.f32.mxu1 %v38228_v11 }
 0x633   :  { %23039 = vrot.lane.b32.xlu1 %v41128_v59, %s38252_s10 }
 0x634   :  { %22402 = vrot.lane.b32.xlu0 %v41333_v3, %s38251_s27  ;;  %35724 = vmatmul.mubr.msk.f32.gmra.mrb[72].mxu1 %vm17385_vm2, %v41431_v25  ;;  %v41841_v25 = vld [vmem:[%s45637_s3 + $0x60] sm:$0xff] }
 0x635   :  { %35773 = vmatmul.mubr.msk.f32.vlgmr.msra.gmra.mrb[12].mxu0 %vm17385_vm2, %v41699_v45  ;;  %20010 = vmatprep.mubr.f32.mxu1 %v38228_v11 }
 0x636   :  { %20913 = vmatprep.mubr.f32.mxu0 %v38228_v11 }
 0x637   :  { %21760 = vrot.lane.b32.xlu1 %v41675_v37, %s38242_s25 }
 0x638   :  { %23019 = vrot.lane.b32.xlu0 %v41061_v26, %s38252_s10  ;;  %35734 = vmatmul.mubr.msk.f32.vlgmr.msra.gmra.mrb[62].mxu1 %vm17385_vm2, %v41551_v10 }
 0x639   :  { %35774 = vmatmul.mubr.msk.f32.gmra.mrb[14].mxu0 %vm17385_vm2, %v41728_v27  ;;  %20016 = vmatprep.mubr.f32.mxu1 %v38228_v11 }
 0x63a   :  { %36715 = vmatprep.mubr.msk.f32.mxu0 %vm17385_vm2, %v41699_v45 }
 0x63b   :  { %22390 = vrot.lane.b32.xlu1 %v41630_v1, %s38251_s27 }
 0x63c   :  { %21122 = vrot.lane.b32.xlu0 %v41675_v37, %s38240_s28  ;;  %35735 = vmatmul.mubr.msk.f32.gmra.mrb[64].mxu1 %vm17385_vm2, %v41578_v22 }
 0x63d   :  { %20164 = vmatprep.mubr.f32.mxu1 %v38228_v11 }
 0x63f   :  { %24253 = vrot.lane.b32.xlu1 %v41061_v26, %s38229_s18 }
 0x640   :  { %23027 = vrot.lane.b32.xlu0 %v41079_v46, %s38252_s10 }
 0x643   :  { %24251 = vrot.lane.b32.xlu1 %v41067_v44, %s38229_s18 }
 0x644   :  { %21744 = vrot.lane.b32.xlu0 %v41482_v38, %s38242_s25 }
 0x647   :  { %24261 = vrot.lane.b32.xlu1 %v41079_v46, %s38229_s18 }
 0x648   :  { %23035 = vrot.lane.b32.xlu0 %v41093_v49, %s38252_s10 }
 0x64b   :  { %24259 = vrot.lane.b32.xlu1 %v41081_v47, %s38229_s18 }
 0x64c   :  { %21752 = vrot.lane.b32.xlu0 %v41630_v1, %s38242_s25  ;;  %v41818_v26 = vpop.permute.xlu1 %21126 }
 0x64d   :  { %v20489_v59 = vpop.permute.xlu0 %20488 }
 0x64e   :  { %v20502_v44 = vsel %vm6862_vm12, %v41616_v42, %v20489_v59  ;;  %v42030_v59 = vld [vmem:[#allocation3 + $0x50] sm:$0x3f] }
 0x64f   :  { %24269 = vrot.lane.b32.xlu1 %v41093_v49, %s38229_s18  ;;  %36713 = vmatprep.subr.msk.mxu0 %vm17392_vm0, %v20502_v44 }
 0x650   :  { %23041 = vrot.lane.b32.xlu0 %v41333_v3, %s38252_s10  ;;  %36714 = vmatpush3.msk.msra.mxu0 %vm17392_vm0, %v20502_v44 }
 0x651   :  { %36716 = vmatmul.mubr.msk.f32.vlgmr.msra.gmra.mrb[16].mxu0 %vm17385_vm2, %v41728_v27  ;;  %35782 = vmatprep.subr.msk.mxu0 %vm17392_vm0, %v21129_v61 }
 0x652   :  { %v41833_v39 = vpop.permute.xlu1 %21742  ;;  %21237 = vmatprep.mubr.f32.mxu0 %v38228_v11 }
 0x653   :  { %24267 = vrot.lane.b32.xlu1 %v41095_v50, %s38229_s18  ;;  %v21101_v49 = vpop.permute.xlu0 %21100 }
 0x654   :  { %22382 = vrot.lane.b32.xlu0 %v41482_v38, %s38251_s27  ;;  %v21128_v16 = vsel %vm8238_vm14, %v21101_v49, %v21103_v52 }
 0x655   :  { %35783 = vmatpush1.msk.msra.mxu0 %vm17392_vm0, %v21128_v16  ;;  %v42045_v16 = vld [vmem:[#allocation3 + $0x48] sm:$0x3f] }
 0x656   :  { %35784 = vmatmul.mubr.msk.f32.vlgmr.msra.gmra.mrb[18].mxu0 %vm17385_vm2, %v41841_v25 }
 0x657   :  { %24275 = vrot.lane.b32.xlu1 %v41333_v3, %s38229_s18  ;;  %v19813_v50 = vpop.permute.xlu1 %19812  ;;  %21243 = vmatprep.mubr.f32.mxu0 %v38228_v11 }
 0x658   :  { %22398 = vrot.lane.b32.xlu0 %v41675_v37, %s38251_s27  ;;  %v21111_v6 = vpop.permute.xlu0 %21110  ;;  %v19831_v5 = vsel %vm19824_vm9, %v41406_v18, %v19813_v50  ;;  %v19832_v40 = vsel %vm19824_vm9, %v19813_v50, %v41450_v35 }
 0x659   :  { %35740 = vmatprep.subr.msk.mxu1 %vm17392_vm0, %v19832_v40  ;;  %v21133_v2 = vsel %vm8238_vm14, %v21111_v6, %v41663_v29 }
 0x65a   :  { %35790 = vmatprep.subr.msk.mxu0 %vm17392_vm0, %v21133_v2  ;;  %35741 = vmatpush1.msk.msra.mxu1 %vm17392_vm0, %v19831_v5 }
 0x65b   :  { %24890 = vrot.lane.b32.xlu1 %v41482_v38, %s38231_s15  ;;  %35785 = vmatmul.mubr.msk.f32.gmra.mrb[20].mxu0 %vm17385_vm2, %v41861_v41  ;;  %v41872_v18 = vpop.permute.xlu1 %21750 }
 0x65c   :  { %24255 = vrot.lane.b32.xlu0 %v41482_v38, %s38229_s18  ;;  %v41876_v35 = vpop.permute.xlu0 %21108  ;;  %21391 = vmatprep.mubr.f32.mxu0 %v38228_v11 }
 0x65d   :  { %v21132_v8 = vsel %vm8238_vm14, %v41876_v35, %v21111_v6  ;;  %35742 = vmatmul.mubr.msk.f32.vlgmr.msra.gmra.mrb[66].mxu1 %vm17385_vm2, %v41551_v10 }
 0x65e   :  { %35791 = vmatpush1.msk.msra.mxu0 %vm17392_vm0, %v21132_v8  ;;  %20170 = vmatprep.mubr.f32.mxu1 %v38228_v11 }
 0x65f   :  { %24896 = vrot.lane.b32.xlu1 %v41079_v46, %s38231_s15  ;;  %35792 = vmatmul.mubr.msk.f32.vlgmr.msra.gmra.mrb[8].mxu0 %vm17385_vm2, %v41841_v25 }
 0x660   :  { %23021 = vrot.lane.b32.xlu0 %v41482_v38, %s38252_s10  ;;  %v21119_v7 = vpop.permute.xlu0 %21118  ;;  %v19821_v0 = vpop.permute.xlu1 %19820  ;;  %21397 = vmatprep.mubr.f32.mxu0 %v38228_v11 }
 0x661   :  { %v19835_v23 = vsel %vm19824_vm9, %v41426_v60, %v19821_v0  ;;  %v19836_v62 = vsel %vm19824_vm9, %v19821_v0, %v41468_v17  ;;  %v21137_v63 = vsel %vm8238_vm14, %v21119_v7, %v41705_v51  ;;  %35743 = vmatmul.mubr.msk.f32.gmra.mrb[68].mxu1 %vm17385_vm2, %v41578_v22 }
 0x662   :  { %35748 = vmatprep.subr.msk.mxu1 %vm17392_vm0, %v19836_v62  ;;  %35798 = vmatprep.subr.msk.mxu0 %vm17392_vm0, %v21137_v63  ;;  %v42111_v63 = vld [vmem:[#allocation3 + $0x40] sm:$0x3f] }
 0x663   :  { %24894 = vrot.lane.b32.xlu1 %v41081_v47, %s38231_s15  ;;  %35749 = vmatpush1.msk.msra.mxu1 %vm17392_vm0, %v19835_v23  ;;  %v42102_v23 = vld [vmem:[%s45637_s3 + $0x80] sm:$0xff] }
 0x664   :  { %24263 = vrot.lane.b32.xlu0 %v41630_v1, %s38229_s18  ;;  %v41907_v46 = vpop.permute.xlu0 %21116  ;;  %35793 = vmatmul.mubr.msk.f32.gmra.mrb[10].mxu0 %vm17385_vm2, %v41861_v41  ;;  %v41911_v60 = vpop.permute.xlu1 %21758 }
 0x665   :  { %v21136_v17 = vsel %vm8238_vm14, %v41907_v46, %v21119_v7  ;;  %21545 = vmatprep.mubr.f32.mxu0 %v38228_v11  ;;  %20318 = vmatprep.mubr.f32.mxu1 %v38228_v11 }
 0x666   :  { %35799 = vmatpush1.msk.msra.mxu0 %vm17392_vm0, %v21136_v17  ;;  %35750 = vmatmul.mubr.msk.f32.vlgmr.msra.gmra.mrb[70].mxu1 %vm17385_vm2, %v41551_v10 }
 0x667   :  { %24906 = vrot.lane.b32.xlu1 %v41675_v37, %s38231_s15  ;;  %20324 = vmatprep.mubr.f32.mxu1 %v38228_v11 }
 0x668   :  { %23029 = vrot.lane.b32.xlu0 %v41630_v1, %s38252_s10  ;;  %v21741_v47 = vpop.permute.xlu0 %21740  ;;  %35800 = vmatmul.mubr.msk.f32.vlgmr.msra.gmra.mrb[12].mxu0 %vm17385_vm2, %v41841_v25  ;;  %v20469_v24 = vpop.permute.xlu1 %20468 }
 0x669   :  { %v20492_v28 = vsel %vm6862_vm12, %v41448_v31, %v20469_v24  ;;  %v20493_v57 = vsel %vm6862_vm12, %v20469_v24, %v41526_v13  ;;  %21551 = vmatprep.mubr.f32.mxu0 %v38228_v11  ;;  %v21767_v43 = vsel %vm9614_vm8, %v21741_v47, %v41833_v39 }
 0x66a   :  { %35759 = vmatprep.subr.msk.mxu1 %vm17392_vm0, %v20493_v57  ;;  %35751 = vmatmul.mubr.msk.f32.gmra.mrb[72].mxu1 %vm17385_vm2, %v41578_v22  ;;  %v42128_v57 = vld [vmem:[%s45637_s3 + $0x88] sm:$0xff] }
 0x66b   :  { %24257 = vrot.lane.b32.xlu1 %v41087_v48, %s38229_s18  ;;  %35760 = vmatpush1.msk.msra.mxu1 %vm17392_vm0, %v20492_v28  ;;  %v41955_v48 = vld [vmem:[#allocation3 + $0x10] sm:$0x3f] }
 0x66c   :  { %24271 = vrot.lane.b32.xlu0 %v41675_v37, %s38229_s18  ;;  %v41940_v10 = vpop.permute.xlu0 %21124  ;;  %35801 = vmatmul.mubr.msk.f32.gmra.mrb[14].mxu0 %vm17385_vm2, %v41861_v41  ;;  %v41944_v31 = vpop.permute.xlu1 %21764 }
 0x66d   :  { %v21140_v13 = vsel %vm8238_vm14, %v41940_v10, %v41818_v26  ;;  %36720 = vmatprep.mubr.msk.f32.mxu0 %vm17385_vm2, %v41841_v25  ;;  %20676 = vmatprep.mubr.f32.mxu1 %v38228_v11 }
 0x66e   :  { %36718 = vmatprep.subr.msk.mxu0 %vm17392_vm0, %v21140_v13  ;;  %35761 = vmatmul.mubr.msk.f32.vlgmr.msra.gmra.mrb[62].mxu1 %vm17385_vm2, %v41699_v45 }
 0x66f   :  { %25523 = vrot.lane.b32.xlu1 %v41955_v48, %s38249_s1  ;;  %36719 = vmatpush3.msk.msra.mxu0 %vm17392_vm0, %v21140_v13 }
 0x670   :  { %23037 = vrot.lane.b32.xlu0 %v41675_v37, %s38252_s10  ;;  %v21739_v22 = vpop.permute.xlu0 %21738  ;;  %36721 = vmatmul.mubr.msk.f32.vlgmr.msra.gmra.mrb[16].mxu0 %vm17385_vm2, %v41861_v41  ;;  %v41966_v14 = vpop.permute.xlu1 %22378 }
 0x671   :  { %v21766_v32 = vsel %vm9614_vm8, %v21739_v22, %v21741_v47  ;;  %35809 = vmatprep.subr.msk.mxu0 %vm17392_vm0, %v21767_v43  ;;  %21875 = vmatprep.mubr.f32.mxu0 %v38228_v11  ;;  %v42155_v22 = vld [vmem:[#allocation3 + $0x60] sm:$0x3f] }
 0x672   :  { %35810 = vmatpush1.msk.msra.mxu0 %vm17392_vm0, %v21766_v32  ;;  %20682 = vmatprep.mubr.f32.mxu1 %v38228_v11 }
 0x673   :  { %25521 = vrot.lane.b32.xlu1 %v41978_v30, %s38249_s1  ;;  %35762 = vmatmul.mubr.msk.f32.gmra.mrb[64].mxu1 %vm17385_vm2, %v41728_v27 }
 0x674   :  { %24888 = vrot.lane.b32.xlu0 %v41955_v48, %s38231_s15  ;;  %v21749_v12 = vpop.permute.xlu0 %21748  ;;  %35811 = vmatmul.mubr.msk.f32.vlgmr.msra.gmra.mrb[18].mxu0 %vm17385_vm2, %v41974_v54  ;;  %v41988_v34 = vpop.permute.xlu1 %22376 }
 0x675   :  { %v21771_v36 = vsel %vm9614_vm8, %v21749_v12, %v41872_v18  ;;  %21881 = vmatprep.mubr.f32.mxu0 %v38228_v11  ;;  %20830 = vmatprep.mubr.f32.mxu1 %v38228_v11  ;;  %v22405_v62 = vsel %vm22404_vm10, %v41988_v34, %v41966_v14 }
 0x676   :  { %35817 = vmatprep.subr.msk.mxu0 %vm17392_vm0, %v21771_v36 }
 0x677   :  { %25531 = vrot.lane.b32.xlu1 %v42000_v19, %s38249_s1 }
 0x678   :  { %24886 = vrot.lane.b32.xlu0 %v41978_v30, %s38231_s15  ;;  %v42006_v15 = vpop.permute.xlu0 %21746  ;;  %35812 = vmatmul.mubr.msk.f32.gmra.mrb[20].mxu0 %vm17385_vm2, %v41996_v55  ;;  %v42010_v58 = vpop.permute.xlu1 %22386 }
 0x679   :  { %v21770_v4 = vsel %vm9614_vm8, %v42006_v15, %v21749_v12  ;;  %22029 = vmatprep.mubr.f32.mxu0 %v38228_v11 }
 0x67a   :  { %35818 = vmatpush1.msk.msra.mxu0 %vm17392_vm0, %v21770_v4 }
 0x67b   :  { %25529 = vrot.lane.b32.xlu1 %v42016_v20, %s38249_s1 }
 0x67c   :  { %24898 = vrot.lane.b32.xlu0 %v41630_v1, %s38231_s15  ;;  %v21757_v21 = vpop.permute.xlu0 %21756  ;;  %35819 = vmatmul.mubr.msk.f32.vlgmr.msra.gmra.mrb[8].mxu0 %vm17385_vm2, %v41974_v54  ;;  %v42024_v52 = vpop.permute.xlu1 %22384 }
 0x67d   :  { %v21775_v26 = vsel %vm9614_vm8, %v21757_v21, %v41911_v60  ;;  %22035 = vmatprep.mubr.f32.mxu0 %v38228_v11  ;;  %v22409_v13 = vsel %vm22404_vm10, %v42024_v52, %v42010_v58 }
 0x67e   :  { %35825 = vmatprep.subr.msk.mxu0 %vm17392_vm0, %v21775_v26 }
 0x67f   :  { %25539 = vrot.lane.b32.xlu1 %v42030_v59, %s38249_s1 }
 0x680   :  { %24904 = vrot.lane.b32.xlu0 %v42030_v59, %s38231_s15  ;;  %35820 = vmatmul.mubr.msk.f32.gmra.mrb[10].mxu0 %vm17385_vm2, %v41996_v55  ;;  %v42038_v44 = vpop.permute.xlu1 %22394 }
 0x681   :  { %v42040_v61 = vpop.permute.xlu0 %21754  ;;  %22183 = vmatprep.mubr.f32.mxu0 %v38228_v11 }
 0x682   :  { %v21774_v49 = vsel %vm9614_vm8, %v42040_v61, %v21757_v21 }
 0x683   :  { %25537 = vrot.lane.b32.xlu1 %v42045_v16, %s38249_s1  ;;  %35826 = vmatpush1.msk.msra.mxu0 %vm17392_vm0, %v21774_v49 }
 0x684   :  { %24902 = vrot.lane.b32.xlu0 %v42045_v16, %s38231_s15  ;;  %35827 = vmatmul.mubr.msk.f32.vlgmr.msra.gmra.mrb[12].mxu0 %vm17385_vm2, %v41974_v54  ;;  %v42054_v50 = vpop.permute.xlu1 %22392 }
 0x685   :  { %v20477_v6 = vpop.permute.xlu0 %20476  ;;  %22189 = vmatprep.mubr.f32.mxu0 %v38228_v11  ;;  %v22413_v36 = vsel %vm22404_vm10, %v42054_v50, %v42038_v44 }
 0x686   :  { %v20496_v5 = vsel %vm6862_vm12, %v41504_v56, %v20477_v6  ;;  %v20497_v40 = vsel %vm6862_vm12, %v20477_v6, %v41580_v53 }
 0x687   :  { %25545 = vrot.lane.b32.xlu1 %v41333_v3, %s38249_s1  ;;  %35767 = vmatprep.subr.msk.mxu1 %vm17392_vm0, %v20497_v40 }
 0x688   :  { %24910 = vrot.lane.b32.xlu0 %v41333_v3, %s38231_s15  ;;  %35768 = vmatpush1.msk.msra.mxu1 %vm17392_vm0, %v20496_v5  ;;  %v42067_v2 = vpop.permute.xlu1 %22400 }
 0x689   :  { %v42069_v8 = vpop.permute.xlu0 %21762  ;;  %35828 = vmatmul.mubr.msk.f32.gmra.mrb[14].mxu0 %vm17385_vm2, %v41996_v55  ;;  %35769 = vmatmul.mubr.msk.f32.vlgmr.msra.gmra.mrb[66].mxu1 %vm17385_vm2, %v41699_v45 }
 0x68a   :  { %v21778_v56 = vsel %vm9614_vm8, %v42069_v8, %v41944_v31  ;;  %36725 = vmatprep.mubr.msk.f32.mxu0 %vm17385_vm2, %v41974_v54  ;;  %20836 = vmatprep.mubr.f32.mxu1 %v38228_v11 }
 0x68b   :  { %26158 = vrot.lane.b32.xlu1 %v41955_v48, %s38250_s23  ;;  %36723 = vmatprep.subr.msk.mxu0 %vm17392_vm0, %v21778_v56 }
 0x68c   :  { %25525 = vrot.lane.b32.xlu0 %v41482_v38, %s38249_s1  ;;  %36724 = vmatpush3.msk.msra.mxu0 %vm17392_vm0, %v21778_v56 }
 0x68d   :  { %v42087_v53 = vpop.permute.xlu0 %22380  ;;  %36726 = vmatmul.mubr.msk.f32.vlgmr.msra.gmra.mrb[16].mxu0 %vm17385_vm2, %v41996_v55  ;;  %v42091_v7 = vpop.permute.xlu1 %23017  ;;  %35770 = vmatmul.mubr.msk.f32.gmra.mrb[68].mxu1 %vm17385_vm2, %v41728_v27 }
 0x68e   :  { %v22406_v0 = vsel %vm22404_vm10, %v41966_v14, %v42087_v53  ;;  %22514 = vmatprep.mubr.f32.mxu0 %v38228_v11  ;;  %20984 = vmatprep.mubr.f32.mxu1 %v38228_v11 }
 0x68f   :  { %26156 = vrot.lane.b32.xlu1 %v41978_v30, %s38250_s23  ;;  %35836 = vmatprep.subr.msk.mxu0 %vm17392_vm0, %v22406_v0  ;;  %v42264_v0 = vld [vmem:[%s45637_s3 + $0x90] sm:$0xff] }
 0x690   :  { %24265 = vrot.lane.b32.xlu0 %v42111_v63, %s38229_s18  ;;  %35837 = vmatpush1.msk.msra.mxu0 %vm17392_vm0, %v22405_v62 }
 0x691   :  { %v20485_v17 = vpop.permute.xlu0 %20484  ;;  %35838 = vmatmul.mubr.msk.f32.vlgmr.msra.gmra.mrb[18].mxu0 %vm17385_vm2, %v42102_v23  ;;  %v42118_v47 = vpop.permute.xlu1 %23015 }
 0x692   :  { %v20500_v24 = vsel %vm6862_vm12, %v41546_v9, %v20485_v17  ;;  %v20501_v28 = vsel %vm6862_vm12, %v20485_v17, %v41616_v42  ;;  %22520 = vmatprep.mubr.f32.mxu0 %v38228_v11  ;;  %v23044_v62 = vsel %vm23043_vm11, %v42118_v47, %v42091_v7 }
 0x693   :  { %26166 = vrot.lane.b32.xlu1 %v42000_v19, %s38250_s23  ;;  %35775 = vmatprep.subr.msk.mxu1 %vm17392_vm0, %v20501_v28  ;;  %v42278_v28 = vld [vmem:[#allocation3 + $0x38] sm:$0x3f] }
 0x694   :  { %25533 = vrot.lane.b32.xlu0 %v41630_v1, %s38249_s1  ;;  %35776 = vmatpush1.msk.msra.mxu1 %vm17392_vm0, %v20500_v24 }
 0x695   :  { %v42136_v9 = vpop.permute.xlu0 %22388  ;;  %35839 = vmatmul.mubr.msk.f32.gmra.mrb[20].mxu0 %vm17385_vm2, %v42128_v57  ;;  %v42140_v42 = vpop.permute.xlu1 %23025  ;;  %35777 = vmatmul.mubr.msk.f32.vlgmr.msra.gmra.mrb[70].mxu1 %vm17385_vm2, %v41699_v45 }
 0x696   :  { %v22410_v31 = vsel %vm22404_vm10, %v42010_v58, %v42136_v9  ;;  %22668 = vmatprep.mubr.f32.mxu0 %v38228_v11  ;;  %20990 = vmatprep.mubr.f32.mxu1 %v38228_v11  ;;  %v42200_v58 = vld [vmem:[#allocation3 + $0x20] sm:$0x3f] }
 0x697   :  { %26164 = vrot.lane.b32.xlu1 %v42016_v20, %s38250_s23  ;;  %35844 = vmatprep.subr.msk.mxu0 %vm17392_vm0, %v22410_v31  ;;  %v42290_v31 = vld [vmem:[%s45637_s3 + $0x98] sm:$0xff] }
 0x698   :  { %24273 = vrot.lane.b32.xlu0 %v42155_v22, %s38229_s18  ;;  %35845 = vmatpush1.msk.msra.mxu0 %vm17392_vm0, %v22409_v13 }
 0x699   :  { %35846 = vmatmul.mubr.msk.f32.vlgmr.msra.gmra.mrb[8].mxu0 %vm17385_vm2, %v42102_v23  ;;  %v42162_v45 = vpop.permute.xlu1 %23023  ;;  %35778 = vmatmul.mubr.msk.f32.gmra.mrb[72].mxu1 %vm17385_vm2, %v41728_v27 }
 0x69a   :  { %v21107_v43 = vpop.permute.xlu0 %21106  ;;  %22674 = vmatprep.mubr.f32.mxu0 %v38228_v11  ;;  %21314 = vmatprep.mubr.f32.mxu1 %v38228_v11 }
 0x69b   :  { %v21130_v14 = vsel %vm8238_vm14, %v41632_v33, %v21107_v43  ;;  %26174 = vrot.lane.b32.xlu1 %v42030_v59, %s38250_s23  ;;  %v21131_v32 = vsel %vm8238_vm14, %v21107_v43, %v41876_v35 }
 0x69c   :  { %25541 = vrot.lane.b32.xlu0 %v41675_v37, %s38249_s1  ;;  %35786 = vmatprep.subr.msk.mxu1 %vm17392_vm0, %v21131_v32 }
 0x69d   :  { %35787 = vmatpush1.msk.msra.mxu1 %vm17392_vm0, %v21130_v14  ;;  %35847 = vmatmul.mubr.msk.f32.gmra.mrb[10].mxu0 %vm17385_vm2, %v42128_v57  ;;  %v42180_v27 = vpop.permute.xlu1 %23033  ;;  %v42182_v12 = vpop.f32.mrb[58].mxu1  ;;  %v42324_v14 = vld [vmem:[#allocation3 + $0x58] sm:$0x3f] }
 0x69e   :  { %v42184_v33 = vpop.permute.xlu0 %22396  ;;  %22822 = vmatprep.mubr.f32.mxu0 %v38228_v11  ;;  %35788 = vmatmul.mubr.msk.f32.vlgmr.msra.gmra.mrb[62].mxu1 %vm17385_vm2, %v41841_v25  ;;  %v42189_v35 = vpop.f32.mrb[59].mxu1 }
 0x69f   :  { %26172 = vrot.lane.b32.xlu1 %v42045_v16, %s38250_s23  ;;  %v22414_v34 = vsel %vm22404_vm10, %v42038_v44, %v42184_v33  ;;  %21320 = vmatprep.mubr.f32.mxu1 %v38228_v11 }
 0x6a0   :  { %24892 = vrot.lane.b32.xlu0 %v42200_v58, %s38231_s15  ;;  %35852 = vmatprep.subr.msk.mxu0 %vm17392_vm0, %v22414_v34 }
 0x6a1   :  { %35853 = vmatpush1.msk.msra.mxu0 %vm17392_vm0, %v22413_v36  ;;  %v42206_v4 = vpop.permute.xlu1 %23031  ;;  %v42208_v21 = vpop.f32.mrb[60].mxu1 }
 0x6a2   :  { %v21115_v26 = vpop.permute.xlu0 %21114  ;;  %35854 = vmatmul.mubr.msk.f32.vlgmr.msra.gmra.mrb[12].mxu0 %vm17385_vm2, %v42102_v23  ;;  %35789 = vmatmul.mubr.msk.f32.gmra.mrb[64].mxu1 %vm17385_vm2, %v41861_v41  ;;  %v42214_v44 = vpop.f32.mrb[61].mxu1 }
 0x6a3   :  { %v21134_v49 = vsel %vm8238_vm14, %v41663_v29, %v21115_v26  ;;  %26180 = vrot.lane.b32.xlu1 %v41333_v3, %s38250_s23  ;;  %v21135_v6 = vsel %vm8238_vm14, %v21115_v26, %v41907_v46  ;;  %22828 = vmatprep.mubr.f32.mxu0 %v38228_v11  ;;  %v42232_v3 = vld [vmem:[#allocation3 + $0x18] sm:$0x3f]  ;;  %v42366_v26 = vld [vmem:[#allocation3 + $0x70] sm:$0x3f] }
 0x6a4   :  { %24900 = vrot.lane.b32.xlu0 %v42111_v63, %s38231_s15  ;;  %35794 = vmatprep.subr.msk.mxu1 %vm17392_vm0, %v21135_v6 }
 0x6a5   :  { %35795 = vmatpush1.msk.msra.mxu1 %vm17392_vm0, %v21134_v49  ;;  %v42227_v5 = vpop.permute.xlu1 %23039  ;;  %21468 = vmatprep.mubr.f32.mxu1 %v38228_v11  ;;  %v42370_v49 = vld [vmem:[#allocation3 + $0x10] sm:$0x3f] }
 0x6a6   :  { %v22403_v29 = vpop.permute.xlu0 %22402  ;;  %35855 = vmatmul.mubr.msk.f32.gmra.mrb[14].mxu0 %vm17385_vm2, %v42128_v57  ;;  %35796 = vmatmul.mubr.msk.f32.vlgmr.msra.gmra.mrb[66].mxu1 %vm17385_vm2, %v41841_v25 }
 0x6a7   :  { %v22417_v46 = vsel %vm22404_vm10, %v42067_v2, %v22403_v29  ;;  %26823 = vrot.lane.b32.xlu1 %v42232_v3, %s38238_s12  ;;  %36730 = vmatprep.mubr.msk.f32.mxu0 %vm17385_vm2, %v42102_v23 }
 0x6a8   :  { %26160 = vrot.lane.b32.xlu0 %v41482_v38, %s38250_s23  ;;  %36728 = vmatprep.subr.msk.mxu0 %vm17392_vm0, %v22417_v46 }
 0x6a9   :  { %36729 = vmatpush3.msk.msra.mxu0 %vm17392_vm0, %v22417_v46  ;;  %v42246_v40 = vpop.permute.xlu1 %21760  ;;  %21474 = vmatprep.mubr.f32.mxu1 %v38228_v11 }
 0x6aa   :  { %v42249_v56 = vpop.permute.xlu0 %23019  ;;  %36731 = vmatmul.mubr.msk.f32.vlgmr.msra.gmra.mrb[16].mxu0 %vm17385_vm2, %v42128_v57  ;;  %35797 = vmatmul.mubr.msk.f32.gmra.mrb[68].mxu1 %vm17385_vm2, %v41861_v41 }
 0x6ab   :  { %25543 = vrot.lane.b32.xlu1 %v42155_v22, %s38249_s1  ;;  %v23045_v38 = vsel %vm23043_vm11, %v42091_v7, %v42249_v56  ;;  %23153 = vmatprep.mubr.f32.mxu0 %v38228_v11 }
 0x6ac   :  { %24908 = vrot.lane.b32.xlu0 %v42155_v22, %s38231_s15  ;;  %35863 = vmatprep.subr.msk.mxu0 %vm17392_vm0, %v23045_v38 }
 0x6ad   :  { %35864 = vmatpush1.msk.msra.mxu0 %vm17392_vm0, %v23044_v62  ;;  %v42273_v17 = vpop.permute.xlu1 %22390  ;;  %21622 = vmatprep.mubr.f32.mxu1 %v38228_v11  ;;  %v42415_v62 = vld [vmem:[#allocation3 + $0x30] sm:$0x3f] }
 0x6ae   :  { %v21123_v24 = vpop.permute.xlu0 %21122  ;;  %35865 = vmatmul.mubr.msk.f32.vlgmr.msra.gmra.mrb[18].mxu0 %vm17385_vm2, %v42264_v0 }
 0x6af   :  { %v21138_v7 = vsel %vm8238_vm14, %v41705_v51, %v21123_v24  ;;  %26831 = vrot.lane.b32.xlu1 %v42278_v28, %s38238_s12  ;;  %v21139_v47 = vsel %vm8238_vm14, %v21123_v24, %v41940_v10  ;;  %23159 = vmatprep.mubr.f32.mxu0 %v38228_v11  ;;  %v23048_v10 = vsel %vm23043_vm11, %v42162_v45, %v42140_v42 }
 0x6b0   :  { %26168 = vrot.lane.b32.xlu0 %v41630_v1, %s38250_s23  ;;  %35802 = vmatprep.subr.msk.mxu1 %vm17392_vm0, %v21139_v47 }
 0x6b1   :  { %35803 = vmatpush1.msk.msra.mxu1 %vm17392_vm0, %v21138_v7  ;;  %v42296_v51 = vpop.permute.xlu1 %24253  ;;  %v42430_v7 = vld [vmem:[%s45637_s3 + $0xa0] sm:$0xff] }
 0x6b2   :  { %v42298_v13 = vpop.permute.xlu0 %23027  ;;  %35804 = vmatmul.mubr.msk.f32.vlgmr.msra.gmra.mrb[70].mxu1 %vm17385_vm2, %v41841_v25  ;;  %35866 = vmatmul.mubr.msk.f32.gmra.mrb[20].mxu0 %vm17385_vm2, %v42290_v31 }
 0x6b3   :  { %26162 = vrot.lane.b32.xlu1 %v42200_v58, %s38250_s23  ;;  %v23049_v1 = vsel %vm23043_vm11, %v42140_v42, %v42298_v13  ;;  %21628 = vmatprep.mubr.f32.mxu1 %v38228_v11 }
 0x6b4   :  { %25527 = vrot.lane.b32.xlu0 %v42200_v58, %s38249_s1  ;;  %35871 = vmatprep.subr.msk.mxu0 %vm17392_vm0, %v23049_v1  ;;  %v42463_v1 = vld [vmem:[%s45637_s3 + $0xa8] sm:$0xff] }
 0x6b5   :  { %35872 = vmatpush1.msk.msra.mxu0 %vm17392_vm0, %v23048_v10  ;;  %23307 = vmatprep.mubr.f32.mxu0 %v38228_v11  ;;  %v42318_v25 = vpop.permute.xlu1 %24251 }
 0x6b6   :  { %v21745_v43 = vpop.permute.xlu0 %21744  ;;  %35805 = vmatmul.mubr.msk.f32.gmra.mrb[72].mxu1 %vm17385_vm2, %v41861_v41  ;;  %35873 = vmatmul.mubr.msk.f32.vlgmr.msra.gmra.mrb[8].mxu0 %vm17385_vm2, %v42264_v0 }
 0x6b7   :  { %v21768_v42 = vsel %vm9614_vm8, %v41833_v39, %v21745_v43  ;;  %26839 = vrot.lane.b32.xlu1 %v42324_v14, %s38238_s12  ;;  %v21769_v32 = vsel %vm9614_vm8, %v21745_v43, %v42006_v15  ;;  %21952 = vmatprep.mubr.f32.mxu1 %v38228_v11  ;;  %v23052_v15 = vsel %vm23043_vm11, %v42206_v4, %v42180_v27 }
 0x6b8   :  { %26176 = vrot.lane.b32.xlu0 %v41675_v37, %s38250_s23  ;;  %35813 = vmatprep.subr.msk.mxu1 %vm17392_vm0, %v21769_v32  ;;  %v42519_v32 = vld [vmem:[#allocation3 + $0x68] sm:$0x3f] }
 0x6b9   :  { %35814 = vmatpush1.msk.msra.mxu1 %vm17392_vm0, %v21768_v42  ;;  %23313 = vmatprep.mubr.f32.mxu0 %v38228_v11  ;;  %v42338_v41 = vpop.permute.xlu1 %24261 }
 0x6ba   :  { %v42340_v39 = vpop.permute.xlu0 %23035  ;;  %35815 = vmatmul.mubr.msk.f32.vlgmr.msra.gmra.mrb[62].mxu1 %vm17385_vm2, %v41974_v54  ;;  %35874 = vmatmul.mubr.msk.f32.gmra.mrb[10].mxu0 %vm17385_vm2, %v42290_v31 }
 0x6bb   :  { %26170 = vrot.lane.b32.xlu1 %v42111_v63, %s38250_s23  ;;  %v23053_v37 = vsel %vm23043_vm11, %v42180_v27, %v42340_v39  ;;  %21958 = vmatprep.mubr.f32.mxu1 %v38228_v11 }
 0x6bc   :  { %25535 = vrot.lane.b32.xlu0 %v42111_v63, %s38249_s1  ;;  %35879 = vmatprep.subr.msk.mxu0 %vm17392_vm0, %v23053_v37 }
 0x6bd   :  { %35880 = vmatpush1.msk.msra.mxu0 %vm17392_vm0, %v23052_v15  ;;  %23461 = vmatprep.mubr.f32.mxu0 %v38228_v11  ;;  %v42360_v34 = vpop.permute.xlu1 %24259 }
 0x6be   :  { %v21753_v36 = vpop.permute.xlu0 %21752  ;;  %35816 = vmatmul.mubr.msk.f32.gmra.mrb[64].mxu1 %vm17385_vm2, %v41996_v55  ;;  %35881 = vmatmul.mubr.msk.f32.vlgmr.msra.gmra.mrb[12].mxu0 %vm17385_vm2, %v42264_v0 }
 0x6bf   :  { %v21772_v27 = vsel %vm9614_vm8, %v41872_v18, %v21753_v36  ;;  %v21773_v6 = vsel %vm9614_vm8, %v21753_v36, %v42040_v61  ;;  %26845 = vrot.lane.b32.xlu1 %v42366_v26, %s38238_s12  ;;  %22106 = vmatprep.mubr.f32.mxu1 %v38228_v11  ;;  %v21777_v18 = vsel %vm9614_vm8, %v42246_v40, %v42069_v8  ;;  %v42398_v8 = vld [vmem:[#allocation3 + $0x8] sm:$0x3f] }
 0x6c0   :  { %26821 = vrot.lane.b32.xlu0 %v42370_v49, %s38238_s12  ;;  %35821 = vmatprep.subr.msk.mxu1 %vm17392_vm0, %v21773_v6  ;;  %v21776_v61 = vsel %vm9614_vm8, %v41911_v60, %v42246_v40 }
 0x6c1   :  { %35822 = vmatpush1.msk.msra.mxu1 %vm17392_vm0, %v21772_v27  ;;  %23467 = vmatprep.mubr.f32.mxu0 %v38228_v11  ;;  %v42385_v29 = vpop.permute.xlu1 %24269 }
 0x6c2   :  { %v23042_v46 = vpop.permute.xlu0 %23041  ;;  %35823 = vmatmul.mubr.msk.f32.vlgmr.msra.gmra.mrb[66].mxu1 %vm17385_vm2, %v41974_v54  ;;  %35829 = vmatprep.subr.msk.mxu1 %vm17392_vm0, %v21777_v18 }
 0x6c3   :  { %v23056_v38 = vsel %vm23043_vm11, %v42227_v5, %v23042_v46  ;;  %35882 = vmatmul.mubr.msk.f32.gmra.mrb[14].mxu0 %vm17385_vm2, %v42290_v31  ;;  %35830 = vmatpush1.msk.msra.mxu1 %vm17392_vm0, %v21776_v61  ;;  %v24277_v46 = vsel %vm1367_vm4, %v42318_v25, %v42296_v51 }
 0x6c4   :  { %26819 = vrot.lane.b32.xlu0 %v42398_v8, %s38238_s12  ;;  %27459 = vrot.lane.b32.xlu1 %v42370_v49, %s38240_s28 }
 0x6c5   :  { %36733 = vmatprep.subr.msk.mxu0 %vm17392_vm0, %v23056_v38  ;;  %22112 = vmatprep.mubr.f32.mxu1 %v38228_v11  ;;  %v42406_v60 = vpop.permute.xlu1 %24267 }
 0x6c6   :  { %36734 = vmatpush3.msk.msra.mxu0 %vm17392_vm0, %v23056_v38  ;;  %36735 = vmatprep.mubr.msk.f32.mxu0 %vm17385_vm2, %v42264_v0  ;;  %v22383_v40 = vpop.permute.xlu0 %22382 }
 0x6c7   :  { %35824 = vmatmul.mubr.msk.f32.gmra.mrb[68].mxu1 %vm17385_vm2, %v41996_v55  ;;  %36736 = vmatmul.mubr.msk.f32.vlgmr.msra.gmra.mrb[16].mxu0 %vm17385_vm2, %v42290_v31  ;;  %v22408_v24 = vsel %vm22404_vm10, %v22383_v40, %v42024_v52 }
 0x6c8   :  { %35890 = vmatprep.subr.msk.mxu0 %vm17392_vm0, %v41955_v48  ;;  %26829 = vrot.lane.b32.xlu0 %v42415_v62, %s38238_s12 }
 0x6c9   :  { %35891 = vmatpush1.msk.msra.mxu0 %vm17392_vm0, %v41978_v30  ;;  %27457 = vrot.lane.b32.xlu1 %v42398_v8, %s38240_s28  ;;  %v42432_v47 = vpop.permute.xlu1 %24275  ;;  %v22407_v30 = vsel %vm22404_vm10, %v42087_v53, %v22383_v40 }
 0x6ca   :  { %35840 = vmatprep.subr.msk.mxu1 %vm17392_vm0, %v22408_v24  ;;  %35898 = vmatprep.subr.msk.mxu0 %vm17392_vm0, %v42000_v19  ;;  %v22399_v48 = vpop.permute.xlu0 %22398  ;;  %v22412_v19 = vsel %vm22404_vm10, %v42273_v17, %v42054_v50  ;;  %v24281_v24 = vsel %vm1367_vm4, %v42360_v34, %v42338_v41 }
 0x6cb   :  { %22260 = vmatprep.mubr.f32.mxu1 %v38228_v11  ;;  %23750 = vmatprep.mubr.f32.mxu0 %v38228_v11  ;;  %v22416_v43 = vsel %vm22404_vm10, %v22399_v48, %v42067_v2  ;;  %v22415_v15 = vsel %vm22404_vm10, %v42184_v33, %v22399_v48 }
 0x6cc   :  { %35831 = vmatmul.mubr.msk.f32.vlgmr.msra.gmra.mrb[70].mxu1 %vm17385_vm2, %v41974_v54  ;;  %35892 = vmatmul.mubr.msk.f32.vlgmr.msra.gmra.mrb[18].mxu0 %vm17385_vm2, %v42430_v7  ;;  %v42456_v54 = vld [vmem:[#allocation3 + $0x28] sm:$0x3f] }
 0x6cd   :  { %35841 = vmatpush1.msk.msra.mxu1 %vm17392_vm0, %v22407_v30  ;;  %35899 = vmatpush1.msk.msra.mxu0 %vm17392_vm0, %v42016_v20  ;;  %v42451_v52 = vpop.permute.xlu1 %24890  ;;  %v42622_v30 = vld [vmem:[%s45637_s3 + $0xb8] sm:$0xff] }
 0x6ce   :  { %35848 = vmatprep.subr.msk.mxu1 %vm17392_vm0, %v22412_v19  ;;  %35906 = vmatprep.subr.msk.mxu0 %vm17392_vm0, %v42030_v59  ;;  %v42458_v53 = vpop.permute.xlu0 %24255  ;;  %v42477_v59 = vld [vmem:[#allocation3 + $0x50] sm:$0x3f] }
 0x6cf   :  { %26827 = vrot.lane.b32.xlu0 %v42456_v54, %s38238_s12  ;;  %27467 = vrot.lane.b32.xlu1 %v42415_v62, %s38240_s28  ;;  %v24278_v6 = vsel %vm1367_vm4, %v42296_v51, %v42458_v53 }
 0x6d0   :  { %22266 = vmatprep.mubr.f32.mxu1 %v38228_v11  ;;  %23756 = vmatprep.mubr.f32.mxu0 %v38228_v11 }
 0x6d1   :  { %35832 = vmatmul.mubr.msk.f32.gmra.mrb[72].mxu1 %vm17385_vm2, %v41996_v55  ;;  %35893 = vmatmul.mubr.msk.f32.gmra.mrb[20].mxu0 %vm17385_vm2, %v42463_v1  ;;  %v42475_v20 = vpop.permute.xlu1 %24896  ;;  %v22411_v55 = vsel %vm22404_vm10, %v42136_v9, %v42273_v17  ;;  %v38184_v9 = vld [vmem:[#allocation3 + $0x68] sm:$0x3f] }
 0x6d2   :  { %22591 = vmatprep.mubr.f32.mxu1 %v38228_v11  ;;  %23904 = vmatprep.mubr.f32.mxu0 %v38228_v11  ;;  %v23022_v50 = vpop.permute.xlu0 %23021  ;;  %v42503_v17 = vld [vmem:[#allocation3 + $0x48] sm:$0x3f] }
 0x6d3   :  { %26837 = vrot.lane.b32.xlu0 %v42477_v59, %s38238_s12  ;;  %27465 = vrot.lane.b32.xlu1 %v42456_v54, %s38240_s28  ;;  %v23047_v27 = vsel %vm23043_vm11, %v23022_v50, %v42162_v45  ;;  %v23046_v38 = vsel %vm23043_vm11, %v42249_v56, %v23022_v50  ;;  %v42595_v56 = vld [vmem:[%s45637_s3 + $0xb0] sm:$0xff] }
 0x6d5   :  { %35842 = vmatmul.mubr.msk.f32.vlgmr.msra.gmra.mrb[62].mxu1 %vm17385_vm2, %v42102_v23  ;;  %35900 = vmatmul.mubr.msk.f32.vlgmr.msra.gmra.mrb[8].mxu0 %vm17385_vm2, %v42430_v7  ;;  %v42492_v10 = vpop.permute.xlu1 %24894 }
 0x6d6   :  { %35849 = vmatpush1.msk.msra.mxu1 %vm17392_vm0, %v22411_v55  ;;  %35907 = vmatpush1.msk.msra.mxu0 %vm17392_vm0, %v42045_v16  ;;  %v42499_v42 = vpop.permute.xlu0 %24263  ;;  %v42645_v55 = vld [vmem:[#allocation3 + $0x40] sm:$0x3f] }
 0x6d7   :  { %35856 = vmatprep.subr.msk.mxu1 %vm17392_vm0, %v22416_v43  ;;  %36738 = vmatprep.subr.msk.mxu0 %vm17392_vm0, %v38184_v9  ;;  %v24282_v51 = vsel %vm1367_vm4, %v42338_v41, %v42499_v42 }
 0x6d8   :  { %26835 = vrot.lane.b32.xlu0 %v42503_v17, %s38238_s12  ;;  %27475 = vrot.lane.b32.xlu1 %v42477_v59, %s38240_s28 }
 0x6d9   :  { %22597 = vmatprep.mubr.f32.mxu1 %v38228_v11  ;;  %23910 = vmatprep.mubr.f32.mxu0 %v38228_v11  ;;  %v42511_v16 = vpop.permute.xlu1 %24906 }
 0x6da   :  { %35843 = vmatmul.mubr.msk.f32.gmra.mrb[64].mxu1 %vm17385_vm2, %v42128_v57  ;;  %35901 = vmatmul.mubr.msk.f32.gmra.mrb[10].mxu0 %vm17385_vm2, %v42463_v1  ;;  %v42517_v2 = vpop.permute.xlu0 %23029 }
 0x6db   :  { %22745 = vmatprep.mubr.f32.mxu1 %v38228_v11  ;;  %24058 = vmatprep.mubr.f32.mxu0 %v38228_v11  ;;  %v23051_v40 = vsel %vm23043_vm11, %v42517_v2, %v42206_v4  ;;  %v23050_v19 = vsel %vm23043_vm11, %v42298_v13, %v42517_v2 }
 0x6dc   :  { %26843 = vrot.lane.b32.xlu0 %v42519_v32, %s38238_s12  ;;  %27473 = vrot.lane.b32.xlu1 %v42503_v17, %s38240_s28 }
 0x6dd   :  { %v42527_v37 = vpop.permute.xlu1 %24257 }
 0x6de   :  { %35850 = vmatmul.mubr.msk.f32.vlgmr.msra.gmra.mrb[66].mxu1 %vm17385_vm2, %v42102_v23  ;;  %35908 = vmatmul.mubr.msk.f32.vlgmr.msra.gmra.mrb[12].mxu0 %vm17385_vm2, %v42430_v7  ;;  %v42535_v36 = vpop.permute.xlu0 %24271 }
 0x6df   :  { %35857 = vmatpush1.msk.msra.mxu1 %vm17392_vm0, %v22415_v15  ;;  %36739 = vmatpush3.msk.msra.mxu0 %vm17392_vm0, %v38184_v9  ;;  %v24286_v48 = vsel %vm1367_vm4, %v42385_v29, %v42535_v36  ;;  %v42686_v15 = vld [vmem:[#allocation3 + $0x60] sm:$0x3f] }
 0x6e0   :  { %35867 = vmatprep.subr.msk.mxu1 %vm17392_vm0, %v23047_v27  ;;  %35917 = vmatprep.subr.msk.mxu0 %vm17392_vm0, %v24278_v6 }
 0x6e1   :  { %26178 = vrot.lane.b32.xlu0 %v42155_v22, %s38250_s23  ;;  %27481 = vrot.lane.b32.xlu1 %v42519_v32, %s38240_s28  ;;  %v42550_v33 = vpop.permute.xlu1 %25523 }
 0x6e2   :  { %22751 = vmatprep.mubr.f32.mxu1 %v38228_v11  ;;  %24064 = vmatprep.mubr.f32.mxu0 %v38228_v11  ;;  %v42554_v45 = vpop.permute.xlu0 %23037 }
 0x6e3   :  { %35851 = vmatmul.mubr.msk.f32.gmra.mrb[68].mxu1 %vm17385_vm2, %v42128_v57  ;;  %35909 = vmatmul.mubr.msk.f32.gmra.mrb[14].mxu0 %vm17385_vm2, %v42463_v1  ;;  %v23055_v50 = vsel %vm23043_vm11, %v42554_v45, %v42227_v5  ;;  %v24285_v5 = vsel %vm1367_vm4, %v42406_v60, %v42385_v29  ;;  %v23054_v29 = vsel %vm23043_vm11, %v42340_v39, %v42554_v45 }
 0x6e4   :  { %22899 = vmatprep.mubr.f32.mxu1 %v38228_v11  ;;  %36740 = vmatprep.mubr.msk.f32.mxu0 %vm17385_vm2, %v42430_v7 }
 0x6e5   :  { %27461 = vrot.lane.b32.xlu0 %v42232_v3, %s38240_s28  ;;  %28097 = vrot.lane.b32.xlu1 %v42370_v49, %s38242_s25  ;;  %v42567_v18 = vpop.permute.xlu1 %25521 }
 0x6e6   :  { %v42569_v61 = vpop.permute.xlu0 %24888 }
 0x6e7   :  { %35858 = vmatmul.mubr.msk.f32.vlgmr.msra.gmra.mrb[70].mxu1 %vm17385_vm2, %v42102_v23  ;;  %36741 = vmatmul.mubr.msk.f32.vlgmr.msra.gmra.mrb[16].mxu0 %vm17385_vm2, %v42463_v1  ;;  %v42590_v23 = vld [vmem:[#allocation3 + $0x20] sm:$0x3f] }
 0x6e8   :  { %35868 = vmatpush1.msk.msra.mxu1 %vm17392_vm0, %v23046_v38  ;;  %35918 = vmatpush1.msk.msra.mxu0 %vm17392_vm0, %v24277_v46  ;;  %v38185_v46 = vld [vmem:[#allocation3 + $0x18] sm:$0x3f] }
 0x6e9   :  { %35875 = vmatprep.subr.msk.mxu1 %vm17392_vm0, %v23051_v40  ;;  %35925 = vmatprep.subr.msk.mxu0 %vm17392_vm0, %v24282_v51  ;;  %v42597_v25 = vpop.permute.xlu1 %25531  ;;  %v42753_v51 = vld [vmem:[%s45637_s3 + $0xc0] sm:$0xff] }
 0x6ea   :  { %26825 = vrot.lane.b32.xlu0 %v42590_v23, %s38238_s12  ;;  %28095 = vrot.lane.b32.xlu1 %v42398_v8, %s38242_s25  ;;  %v42603_v4 = vpop.permute.xlu0 %24886 }
 0x6eb   :  { %22905 = vmatprep.mubr.f32.mxu1 %v38228_v11  ;;  %24385 = vmatprep.mubr.f32.mxu0 %v38228_v11 }
 0x6ec   :  { %35859 = vmatmul.mubr.msk.f32.gmra.mrb[72].mxu1 %vm17385_vm2, %v42128_v57  ;;  %35919 = vmatmul.mubr.msk.f32.vlgmr.msra.gmra.mrb[18].mxu0 %vm17385_vm2, %v42595_v56 }
 0x6ed   :  { %35926 = vmatpush1.msk.msra.mxu0 %vm17392_vm0, %v24281_v24  ;;  %23230 = vmatprep.mubr.f32.mxu1 %v38228_v11  ;;  %v42624_v41 = vpop.permute.xlu1 %25529  ;;  %v38186_v24 = vld [vmem:[#allocation3 + $0x38] sm:$0x3f] }
 0x6ee   :  { %35933 = vmatprep.subr.msk.mxu0 %vm17392_vm0, %v24286_v48  ;;  %27469 = vrot.lane.b32.xlu0 %v42278_v28, %s38240_s28  ;;  %v42629_v57 = vpop.permute.xlu0 %24898 }
 0x6ef   :  { %28105 = vrot.lane.b32.xlu1 %v42415_v62, %s38242_s25  ;;  %24391 = vmatprep.mubr.f32.mxu0 %v38228_v11 }
 0x6f0   :  { %35869 = vmatmul.mubr.msk.f32.vlgmr.msra.gmra.mrb[62].mxu1 %vm17385_vm2, %v42264_v0  ;;  %35920 = vmatmul.mubr.msk.f32.gmra.mrb[20].mxu0 %vm17385_vm2, %v42622_v30 }
 0x6f1   :  { %35876 = vmatpush1.msk.msra.mxu1 %vm17392_vm0, %v23050_v19  ;;  %23236 = vmatprep.mubr.f32.mxu1 %v38228_v11  ;;  %v42648_v43 = vpop.permute.xlu1 %25539 }
 0x6f2   :  { %35883 = vmatprep.subr.msk.mxu1 %vm17392_vm0, %v23055_v50  ;;  %26833 = vrot.lane.b32.xlu0 %v42645_v55, %s38238_s12  ;;  %v42653_v13 = vpop.permute.xlu0 %24904 }
 0x6f3   :  { %28103 = vrot.lane.b32.xlu1 %v42456_v54, %s38242_s25  ;;  %24539 = vmatprep.mubr.f32.mxu0 %v38228_v11  ;;  %v24921_v48 = vsel %vm2735_vm6, %v42653_v13, %v42511_v16 }
 0x6f4   :  { %35870 = vmatmul.mubr.msk.f32.gmra.mrb[64].mxu1 %vm17385_vm2, %v42290_v31  ;;  %35927 = vmatmul.mubr.msk.f32.vlgmr.msra.gmra.mrb[8].mxu0 %vm17385_vm2, %v42595_v56 }
 0x6f5   :  { %35934 = vmatpush1.msk.msra.mxu0 %vm17392_vm0, %v24285_v5  ;;  %23384 = vmatprep.mubr.f32.mxu1 %v38228_v11  ;;  %v42667_v9 = vpop.permute.xlu1 %25537 }
 0x6f6   :  { %36743 = vmatprep.subr.msk.mxu0 %vm17392_vm0, %v42432_v47  ;;  %27477 = vrot.lane.b32.xlu0 %v42324_v14, %s38240_s28  ;;  %v42673_v2 = vpop.permute.xlu0 %24902 }
 0x6f7   :  { %28113 = vrot.lane.b32.xlu1 %v42477_v59, %s38242_s25  ;;  %24545 = vmatprep.mubr.f32.mxu0 %v38228_v11 }
 0x6f8   :  { %35877 = vmatmul.mubr.msk.f32.vlgmr.msra.gmra.mrb[66].mxu1 %vm17385_vm2, %v42264_v0  ;;  %35928 = vmatmul.mubr.msk.f32.gmra.mrb[10].mxu0 %vm17385_vm2, %v42622_v30 }
 0x6f9   :  { %35884 = vmatpush1.msk.msra.mxu1 %vm17392_vm0, %v23054_v29  ;;  %23390 = vmatprep.mubr.f32.mxu1 %v38228_v11  ;;  %v42689_v27 = vpop.permute.xlu1 %25545  ;;  %v24920_v29 = vsel %vm2735_vm6, %v42673_v2, %v42653_v13 }
 0x6fa   :  { %35894 = vmatprep.subr.msk.mxu1 %vm17392_vm0, %v42200_v58  ;;  %26841 = vrot.lane.b32.xlu0 %v42686_v15, %s38238_s12  ;;  %v42695_v39 = vpop.permute.xlu0 %24910  ;;  %v24913_v58 = vsel %vm2735_vm6, %v42569_v61, %v42451_v52 }
 0x6fb   :  { %28111 = vrot.lane.b32.xlu1 %v42503_v17, %s38242_s25  ;;  %24693 = vmatprep.mubr.f32.mxu0 %v38228_v11 }
 0x6fc   :  { %35878 = vmatmul.mubr.msk.f32.gmra.mrb[68].mxu1 %vm17385_vm2, %v42290_v31  ;;  %35935 = vmatmul.mubr.msk.f32.vlgmr.msra.gmra.mrb[12].mxu0 %vm17385_vm2, %v42595_v56 }
 0x6fd   :  { %36744 = vmatpush3.msk.msra.mxu0 %vm17392_vm0, %v42432_v47  ;;  %23538 = vmatprep.mubr.f32.mxu1 %v38228_v11  ;;  %v42710_v6 = vpop.permute.xlu1 %26158 }
 0x6fe   :  { %35944 = vmatprep.subr.msk.mxu0 %vm17392_vm0, %v24913_v58  ;;  %27483 = vrot.lane.b32.xlu0 %v42366_v26, %s38240_s28  ;;  %v42715_v45 = vpop.permute.xlu0 %25525 }
 0x6ff   :  { %28119 = vrot.lane.b32.xlu1 %v42519_v32, %s38242_s25  ;;  %24699 = vmatprep.mubr.f32.mxu0 %v38228_v11 }
 0x700   :  { %35885 = vmatmul.mubr.msk.f32.vlgmr.msra.gmra.mrb[70].mxu1 %vm17385_vm2, %v42264_v0  ;;  %35936 = vmatmul.mubr.msk.f32.gmra.mrb[14].mxu0 %vm17385_vm2, %v42622_v30  ;;  %v24912_v0 = vsel %vm2735_vm6, %v42603_v4, %v42569_v61  ;;  %v24916_v4 = vsel %vm2735_vm6, %v42492_v10, %v42475_v20 }
 0x701   :  { %35895 = vmatpush1.msk.msra.mxu1 %vm17392_vm0, %v38185_v46  ;;  %23544 = vmatprep.mubr.f32.mxu1 %v38228_v11  ;;  %v42726_v38 = vpop.permute.xlu1 %26156  ;;  %v38187_v46 = vld [vmem:[#allocation3 + $0x58] sm:$0x3f] }
 0x702   :  { %35902 = vmatprep.subr.msk.mxu1 %vm17392_vm0, %v42111_v63  ;;  %28099 = vrot.lane.b32.xlu0 %v42232_v3, %s38242_s25  ;;  %v42732_v40 = vpop.permute.xlu0 %24265  ;;  %v24917_v63 = vsel %vm2735_vm6, %v42475_v20, %v42629_v57  ;;  %v42785_v20 = vld [vmem:[%s45637_s3 + $0xc8] sm:$0xff] }
 0x703   :  { %28101 = vrot.lane.b32.xlu1 %v42590_v23, %s38242_s25  ;;  %36745 = vmatprep.mubr.msk.f32.mxu0 %vm17385_vm2, %v42595_v56 }
 0x704   :  { %35886 = vmatmul.mubr.msk.f32.gmra.mrb[72].mxu1 %vm17385_vm2, %v42290_v31  ;;  %36746 = vmatmul.mubr.msk.f32.vlgmr.msra.gmra.mrb[16].mxu0 %vm17385_vm2, %v42622_v30 }
 0x705   :  { %35945 = vmatpush1.msk.msra.mxu0 %vm17392_vm0, %v24912_v0  ;;  %23827 = vmatprep.mubr.f32.mxu1 %v38228_v11  ;;  %v42755_v61 = vpop.permute.xlu1 %26166  ;;  %v24280_v0 = vsel %vm1367_vm4, %v42527_v37, %v42360_v34 }
 0x706   :  { %35952 = vmatprep.subr.msk.mxu0 %vm17392_vm0, %v24917_v63  ;;  %27463 = vrot.lane.b32.xlu0 %v42590_v23, %s38240_s28  ;;  %v42760_v31 = vpop.permute.xlu0 %25533 }
 0x707   :  { %28737 = vrot.lane.b32.xlu1 %v42232_v3, %s38251_s27  ;;  %25020 = vmatprep.mubr.f32.mxu0 %v38228_v11 }
 0x708   :  { %35896 = vmatmul.mubr.msk.f32.vlgmr.msra.gmra.mrb[62].mxu1 %vm17385_vm2, %v42430_v7  ;;  %35946 = vmatmul.mubr.msk.f32.vlgmr.msra.gmra.mrb[18].mxu0 %vm17385_vm2, %v42753_v51 }
 0x709   :  { %35903 = vmatpush1.msk.msra.mxu1 %vm17392_vm0, %v38186_v24  ;;  %35953 = vmatpush1.msk.msra.mxu0 %vm17392_vm0, %v24916_v4  ;;  %v42777_v19 = vpop.permute.xlu1 %26164  ;;  %v24279_v24 = vsel %vm1367_vm4, %v42458_v53, %v42527_v37  ;;  %v25548_v53 = vsel %vm19188_vm7, %v42550_v33, %v42715_v45 }
 0x70a   :  { %35910 = vmatprep.subr.msk.mxu1 %vm17392_vm0, %v42155_v22  ;;  %35960 = vmatprep.subr.msk.mxu0 %vm17392_vm0, %v24921_v48  ;;  %v42787_v50 = vpop.permute.xlu0 %24273 }
 0x70b   :  { %28107 = vrot.lane.b32.xlu0 %v42278_v28, %s38242_s25  ;;  %28109 = vrot.lane.b32.xlu1 %v42645_v55, %s38242_s25 }
 0x70c   :  { %23833 = vmatprep.mubr.f32.mxu1 %v38228_v11  ;;  %25026 = vmatprep.mubr.f32.mxu0 %v38228_v11 }
 0x70d   :  { %35897 = vmatmul.mubr.msk.f32.gmra.mrb[64].mxu1 %vm17385_vm2, %v42463_v1  ;;  %35947 = vmatmul.mubr.msk.f32.gmra.mrb[20].mxu0 %vm17385_vm2, %v42785_v20  ;;  %v42799_v22 = vpop.permute.xlu1 %26174 }
 0x70e   :  { %23981 = vmatprep.mubr.f32.mxu1 %v38228_v11  ;;  %25174 = vmatprep.mubr.f32.mxu0 %v38228_v11  ;;  %v42803_v5 = vpop.permute.xlu0 %25541 }
 0x70f   :  { %27471 = vrot.lane.b32.xlu0 %v42645_v55, %s38240_s28  ;;  %28745 = vrot.lane.b32.xlu1 %v42278_v28, %s38251_s27 }
 0x711   :  { %35904 = vmatmul.mubr.msk.f32.vlgmr.msra.gmra.mrb[66].mxu1 %vm17385_vm2, %v42430_v7  ;;  %35954 = vmatmul.mubr.msk.f32.vlgmr.msra.gmra.mrb[8].mxu0 %vm17385_vm2, %v42753_v51  ;;  %v42816_v58 = vpop.permute.xlu1 %26172 }
 0x712   :  { %35911 = vmatpush1.msk.msra.mxu1 %vm17392_vm0, %v38187_v46  ;;  %35961 = vmatpush1.msk.msra.mxu0 %vm17392_vm0, %v24920_v29  ;;  %v42823_v63 = vpop.permute.xlu0 %24892  ;;  %v24284_v29 = vsel %vm1367_vm4, %v42732_v40, %v42406_v60 }
 0x713   :  { %35921 = vmatprep.subr.msk.mxu1 %vm17392_vm0, %v24280_v0  ;;  %36748 = vmatprep.subr.msk.mxu0 %vm17392_vm0, %v42695_v39  ;;  %v24283_v0 = vsel %vm1367_vm4, %v42499_v42, %v42732_v40  ;;  %v42918_v42 = vld [vmem:[%s45637_s3 + $0xd0] sm:$0xff]  ;;  %v25551_v40 = vsel %vm19188_vm7, %v42624_v41, %v42597_v25 }
 0x714   :  { %28115 = vrot.lane.b32.xlu0 %v42324_v14, %s38242_s25  ;;  %28117 = vrot.lane.b32.xlu1 %v42686_v15, %s38242_s25 }
 0x715   :  { %23987 = vmatprep.mubr.f32.mxu1 %v38228_v11  ;;  %25180 = vmatprep.mubr.f32.mxu0 %v38228_v11  ;;  %v42834_v13 = vpop.permute.xlu1 %26180 }
 0x716   :  { %35905 = vmatmul.mubr.msk.f32.gmra.mrb[68].mxu1 %vm17385_vm2, %v42463_v1  ;;  %35955 = vmatmul.mubr.msk.f32.gmra.mrb[10].mxu0 %vm17385_vm2, %v42785_v20  ;;  %v42840_v34 = vpop.permute.xlu0 %24900 }
 0x717   :  { %24135 = vmatprep.mubr.f32.mxu1 %v38228_v11  ;;  %25328 = vmatprep.mubr.f32.mxu0 %v38228_v11 }
 0x718   :  { %27479 = vrot.lane.b32.xlu0 %v42686_v15, %s38240_s28  ;;  %28753 = vrot.lane.b32.xlu1 %v42324_v14, %s38251_s27  ;;  %s38256_s28 = smov 1  }
 0x719   :  { %v42848_v4 = vpop.permute.xlu1 %26823 }
 0x71a   :  { %35912 = vmatmul.mubr.msk.f32.vlgmr.msra.gmra.mrb[70].mxu1 %vm17385_vm2, %v42430_v7  ;;  %35962 = vmatmul.mubr.msk.f32.vlgmr.msra.gmra.mrb[12].mxu0 %vm17385_vm2, %v42753_v51  ;;  %v42857_v48 = vpop.permute.xlu0 %26160 }
 0x71b   :  { %35922 = vmatpush1.msk.msra.mxu1 %vm17392_vm0, %v24279_v24  ;;  %36749 = vmatpush3.msk.msra.mxu0 %vm17392_vm0, %v42695_v39  ;;  %v24288_v24 = vsel %vm1367_vm4, %v42787_v50, %v42432_v47 }
 0x71c   :  { %35929 = vmatprep.subr.msk.mxu1 %vm17392_vm0, %v24284_v29  ;;  %35971 = vmatprep.subr.msk.mxu0 %vm17392_vm0, %v25548_v53  ;;  %v42945_v29 = vld [vmem:[%s45637_s3 + $0xd8] sm:$0xff] }
 0x71d   :  { %28121 = vrot.lane.b32.xlu0 %v42366_v26, %s38242_s25  ;;  %28739 = vrot.lane.b32.xlu1 %v42590_v23, %s38251_s27  ;;  %v42874_v7 = vpop.permute.xlu1 %25543  ;;  %s38258_s25 = smov 121  }
 0x71e   :  { %24141 = vmatprep.mubr.f32.mxu1 %v38228_v11  ;;  %25334 = vmatprep.mubr.f32.mxu0 %v38228_v11  ;;  %v42878_v60 = vpop.permute.xlu0 %24908 }
 0x71f   :  { %35913 = vmatmul.mubr.msk.f32.gmra.mrb[72].mxu1 %vm17385_vm2, %v42463_v1  ;;  %35963 = vmatmul.mubr.msk.f32.gmra.mrb[14].mxu0 %vm17385_vm2, %v42785_v20  ;;  %v25547_v1 = vsel %vm19188_vm7, %v42567_v18, %v42550_v33  ;;  %v25552_v33 = vsel %vm19188_vm7, %v42597_v25, %v42760_v31 }
 0x720   :  { %24462 = vmatprep.mubr.f32.mxu1 %v38228_v11  ;;  %36750 = vmatprep.mubr.msk.f32.mxu0 %vm17385_vm2, %v42753_v51 }
 0x721   :  { %28735 = vrot.lane.b32.xlu0 %v42370_v49, %s38251_s27  ;;  %28759 = vrot.lane.b32.xlu1 %v42366_v26, %s38251_s27  ;;  %v42891_v37 = vpop.permute.xlu1 %26831 }
 0x722   :  { %v42893_v46 = vpop.permute.xlu0 %26168 }
 0x723   :  { %35923 = vmatmul.mubr.msk.f32.vlgmr.msra.gmra.mrb[62].mxu1 %vm17385_vm2, %v42595_v56  ;;  %36751 = vmatmul.mubr.msk.f32.vlgmr.msra.gmra.mrb[16].mxu0 %vm17385_vm2, %v42785_v20 }
 0x724   :  { %35930 = vmatpush1.msk.msra.mxu1 %vm17392_vm0, %v24283_v0  ;;  %35972 = vmatpush1.msk.msra.mxu0 %vm17392_vm0, %v25547_v1  ;;  %v24287_v1 = vsel %vm1367_vm4, %v42535_v36, %v42787_v50  ;;  %v24915_v0 = vsel %vm2735_vm6, %v42823_v63, %v42492_v10  ;;  %v25555_v10 = vsel %vm19188_vm7, %v42667_v9, %v42648_v43 }
 0x725   :  { %35937 = vmatprep.subr.msk.mxu1 %vm17392_vm0, %v24288_v24  ;;  %35979 = vmatprep.subr.msk.mxu0 %vm17392_vm0, %v25552_v33  ;;  %v42920_v18 = vpop.permute.xlu1 %26162 }
 0x726   :  { %28733 = vrot.lane.b32.xlu0 %v42398_v8, %s38251_s27  ;;  %29375 = vrot.lane.b32.xlu1 %v42232_v3, %s38252_s10  ;;  %v42926_v47 = vpop.permute.xlu0 %25527  ;;  %v25556_v3 = vsel %vm19188_vm7, %v42648_v43, %v42803_v5  ;;  %v24914_v43 = vsel %vm2735_vm6, %v42451_v52, %v42823_v63 }
 0x727   :  { %24468 = vmatprep.mubr.f32.mxu1 %v38228_v11  ;;  %25655 = vmatprep.mubr.f32.mxu0 %v38228_v11 }
 0x728   :  { %35924 = vmatmul.mubr.msk.f32.gmra.mrb[64].mxu1 %vm17385_vm2, %v42622_v30  ;;  %35973 = vmatmul.mubr.msk.f32.vlgmr.msra.gmra.mrb[18].mxu0 %vm17385_vm2, %v42918_v42 }
 0x729   :  { %35980 = vmatpush1.msk.msra.mxu0 %vm17392_vm0, %v25551_v40  ;;  %24616 = vmatprep.mubr.f32.mxu1 %v38228_v11  ;;  %v42947_v25 = vpop.permute.xlu1 %26839  ;;  %v24919_v40 = vsel %vm2735_vm6, %v42840_v34, %v42673_v2 }
 0x72a   :  { %35987 = vmatprep.subr.msk.mxu0 %vm17392_vm0, %v25556_v3  ;;  %28743 = vrot.lane.b32.xlu0 %v42415_v62, %s38251_s27  ;;  %v42952_v53 = vpop.permute.xlu0 %26176  ;;  %v24918_v3 = vsel %vm2735_vm6, %v42629_v57, %v42840_v34  ;;  %v26182_v57 = vsel %vm19824_vm9, %v42726_v38, %v42710_v6  ;;  %v43075_v34 = vld [vmem:[%s45637_s3 + $0xe0] sm:$0xff] }
 0x72b   :  { %28747 = vrot.lane.b32.xlu1 %v42645_v55, %s38251_s27  ;;  %25661 = vmatprep.mubr.f32.mxu0 %v38228_v11 }
 0x72c   :  { %35931 = vmatmul.mubr.msk.f32.vlgmr.msra.gmra.mrb[66].mxu1 %vm17385_vm2, %v42595_v56  ;;  %35974 = vmatmul.mubr.msk.f32.gmra.mrb[20].mxu0 %vm17385_vm2, %v42945_v29 }
 0x72d   :  { %35938 = vmatpush1.msk.msra.mxu1 %vm17392_vm0, %v24287_v1  ;;  %24622 = vmatprep.mubr.f32.mxu1 %v38228_v11  ;;  %v42969_v24 = vpop.permute.xlu1 %26170  ;;  %v24923_v1 = vsel %vm2735_vm6, %v42878_v60, %v42695_v39  ;;  %v26187_v39 = vsel %vm19824_vm9, %v42755_v61, %v42893_v46 }
 0x72e   :  { %35948 = vmatprep.subr.msk.mxu1 %vm17392_vm0, %v24915_v0  ;;  %28741 = vrot.lane.b32.xlu0 %v42456_v54, %s38251_s27  ;;  %v42974_v36 = vpop.permute.xlu0 %25535  ;;  %v26186_v0 = vsel %vm19824_vm9, %v42777_v19, %v42755_v61  ;;  %v26191_v61 = vsel %vm19824_vm9, %v42799_v22, %v42952_v53 }
 0x72f   :  { %29383 = vrot.lane.b32.xlu1 %v42278_v28, %s38252_s10  ;;  %25809 = vmatprep.mubr.f32.mxu0 %v38228_v11 }
 0x730   :  { %35932 = vmatmul.mubr.msk.f32.gmra.mrb[68].mxu1 %vm17385_vm2, %v42622_v30  ;;  %35981 = vmatmul.mubr.msk.f32.vlgmr.msra.gmra.mrb[8].mxu0 %vm17385_vm2, %v42918_v42 }
 0x731   :  { %35988 = vmatpush1.msk.msra.mxu0 %vm17392_vm0, %v25555_v10  ;;  %24770 = vmatprep.mubr.f32.mxu1 %v38228_v11  ;;  %v42988_v50 = vpop.permute.xlu1 %26845  ;;  %v24922_v10 = vsel %vm2735_vm6, %v42511_v16, %v42878_v60  ;;  %v43114_v60 = vld [vmem:[%s45637_s3 + $0xe8] sm:$0xff] }
 0x732   :  { %36753 = vmatprep.subr.msk.mxu0 %vm17392_vm0, %v42689_v27  ;;  %28751 = vrot.lane.b32.xlu0 %v42477_v59, %s38251_s27  ;;  %v42994_v33 = vpop.permute.xlu0 %26821 }
 0x733   :  { %28755 = vrot.lane.b32.xlu1 %v42686_v15, %s38251_s27  ;;  %25815 = vmatprep.mubr.f32.mxu0 %v38228_v11 }
 0x734   :  { %35939 = vmatmul.mubr.msk.f32.vlgmr.msra.gmra.mrb[70].mxu1 %vm17385_vm2, %v42595_v56  ;;  %35982 = vmatmul.mubr.msk.f32.gmra.mrb[10].mxu0 %vm17385_vm2, %v42945_v29  ;;  %v26183_v56 = vsel %vm19824_vm9, %v42710_v6, %v42857_v48 }
 0x735   :  { %35949 = vmatpush1.msk.msra.mxu1 %vm17392_vm0, %v24914_v43  ;;  %24776 = vmatprep.mubr.f32.mxu1 %v38228_v11 }
 0x736   :  { %35956 = vmatprep.subr.msk.mxu1 %vm17392_vm0, %v24919_v40  ;;  %28749 = vrot.lane.b32.xlu0 %v42503_v17, %s38251_s27  ;;  %v43014_v52 = vpop.permute.xlu0 %26819  ;;  %v43016_v63 = vpop.permute.xlu1 %27459 }
 0x737   :  { %29391 = vrot.lane.b32.xlu1 %v42324_v14, %s38252_s10  ;;  %25963 = vmatprep.mubr.f32.mxu0 %v38228_v11 }
 0x738   :  { %35940 = vmatmul.mubr.msk.f32.gmra.mrb[72].mxu1 %vm17385_vm2, %v42622_v30  ;;  %35989 = vmatmul.mubr.msk.f32.vlgmr.msra.gmra.mrb[12].mxu0 %vm17385_vm2, %v42918_v42 }
 0x739   :  { %36754 = vmatpush3.msk.msra.mxu0 %vm17392_vm0, %v42689_v27  ;;  %25097 = vmatprep.mubr.f32.mxu1 %v38228_v11 }
 0x73a   :  { %35998 = vmatprep.subr.msk.mxu0 %vm17392_vm0, %v26183_v56  ;;  %28757 = vrot.lane.b32.xlu0 %v42519_v32, %s38251_s27  ;;  %v43037_v30 = vpop.permute.xlu0 %26829  ;;  %v26190_v56 = vsel %vm19824_vm9, %v42816_v58, %v42799_v22 }
 0x73b   :  { %29377 = vrot.lane.b32.xlu1 %v42590_v23, %s38252_s10  ;;  %25969 = vmatprep.mubr.f32.mxu0 %v38228_v11  ;;  %v43039_v2 = vpop.permute.xlu1 %27457 }
 0x73c   :  { %35950 = vmatmul.mubr.msk.f32.vlgmr.msra.gmra.mrb[62].mxu1 %vm17385_vm2, %v42753_v51  ;;  %35990 = vmatmul.mubr.msk.f32.gmra.mrb[14].mxu0 %vm17385_vm2, %v42945_v29 }
 0x73d   :  { %35957 = vmatpush1.msk.msra.mxu1 %vm17392_vm0, %v24918_v3  ;;  %25103 = vmatprep.mubr.f32.mxu1 %v38228_v11  ;;  %v25549_v3 = vsel %vm19188_vm7, %v42715_v45, %v42926_v47 }
 0x73e   :  { %35964 = vmatprep.subr.msk.mxu1 %vm17392_vm0, %v24923_v1  ;;  %29373 = vrot.lane.b32.xlu0 %v42370_v49, %s38252_s10 }
 0x73f   :  { %29397 = vrot.lane.b32.xlu1 %v42366_v26, %s38252_s10  ;;  %36755 = vmatprep.mubr.msk.f32.mxu0 %vm17385_vm2, %v42918_v42 }
 0x740   :  { %35951 = vmatmul.mubr.msk.f32.gmra.mrb[64].mxu1 %vm17385_vm2, %v42785_v20  ;;  %36756 = vmatmul.mubr.msk.f32.vlgmr.msra.gmra.mrb[16].mxu0 %vm17385_vm2, %v42945_v29 }
 0x741   :  { %35999 = vmatpush1.msk.msra.mxu0 %vm17392_vm0, %v26182_v57  ;;  %25251 = vmatprep.mubr.f32.mxu1 %v38228_v11  ;;  %v43077_v6 = vpop.permute.xlu0 %26827  ;;  %v43079_v38 = vpop.permute.xlu1 %27467  ;;  %v25557_v57 = vsel %vm19188_vm7, %v42803_v5, %v42874_v7  ;;  %v26852_v5 = vsel %vm6862_vm12, %v43037_v30, %v42891_v37 }
 0x742   :  { %36006 = vmatprep.subr.msk.mxu0 %vm17392_vm0, %v26187_v39  ;;  %29371 = vrot.lane.b32.xlu0 %v42398_v8, %s38252_s10  ;;  %v25550_v8 = vsel %vm19188_vm7, %v42926_v47, %v42624_v41  ;;  %v26847_v39 = vsel %vm6862_vm12, %v43014_v52, %v42994_v33 }
 0x743   :  { %29393 = vrot.lane.b32.xlu1 %v42686_v15, %s38252_s10  ;;  %26290 = vmatprep.mubr.f32.mxu0 %v38228_v11 }
 0x744   :  { %35958 = vmatmul.mubr.msk.f32.vlgmr.msra.gmra.mrb[66].mxu1 %vm17385_vm2, %v42753_v51  ;;  %36000 = vmatmul.mubr.msk.f32.vlgmr.msra.gmra.mrb[18].mxu0 %vm17385_vm2, %v43075_v34 }
 0x745   :  { %35965 = vmatpush1.msk.msra.mxu1 %vm17392_vm0, %v24922_v10  ;;  %36007 = vmatpush1.msk.msra.mxu0 %vm17392_vm0, %v26186_v0  ;;  %v43105_v43 = vpop.permute.xlu0 %26837  ;;  %v43107_v16 = vpop.permute.xlu1 %27465  ;;  %v43250_v0 = vld [vmem:[#allocation3 + $0x18] sm:$0x3f] }
 0x746   :  { %35975 = vmatprep.subr.msk.mxu1 %vm17392_vm0, %v25550_v8  ;;  %36014 = vmatprep.subr.msk.mxu0 %vm17392_vm0, %v26191_v61  ;;  %v26856_v8 = vsel %vm6862_vm12, %v43105_v43, %v42947_v25 }
 0x747   :  { %29381 = vrot.lane.b32.xlu0 %v42415_v62, %s38252_s10  ;;  %30610 = vrot.lane.b32.xlu1 %v42590_v23, %s38229_s18 }
 0x748   :  { %25257 = vmatprep.mubr.f32.mxu1 %v38228_v11  ;;  %26296 = vmatprep.mubr.f32.mxu0 %v38228_v11 }
 0x749   :  { %35959 = vmatmul.mubr.msk.f32.gmra.mrb[68].mxu1 %vm17385_vm2, %v42785_v20  ;;  %36001 = vmatmul.mubr.msk.f32.gmra.mrb[20].mxu0 %vm17385_vm2, %v43114_v60 }
 0x74a   :  { %25405 = vmatprep.mubr.f32.mxu1 %v38228_v11  ;;  %26444 = vmatprep.mubr.f32.mxu0 %v38228_v11  ;;  %v43128_v41 = vpop.permute.xlu0 %26835  ;;  %v43130_v40 = vpop.permute.xlu1 %27475 }
 0x74b   :  { %29379 = vrot.lane.b32.xlu0 %v42456_v54, %s38252_s10  ;;  %30616 = vrot.lane.b32.xlu1 %v42278_v28, %s38229_s18  ;;  %v25554_v28 = vsel %vm19188_vm7, %v42974_v36, %v42667_v9 }
 0x74d   :  { %35966 = vmatmul.mubr.msk.f32.vlgmr.msra.gmra.mrb[70].mxu1 %vm17385_vm2, %v42753_v51  ;;  %36008 = vmatmul.mubr.msk.f32.vlgmr.msra.gmra.mrb[8].mxu0 %vm17385_vm2, %v43075_v34  ;;  %v25553_v51 = vsel %vm19188_vm7, %v42760_v31, %v42974_v36 }
 0x74e   :  { %35976 = vmatpush1.msk.msra.mxu1 %vm17392_vm0, %v25549_v3  ;;  %36015 = vmatpush1.msk.msra.mxu0 %vm17392_vm0, %v26190_v56  ;;  %v43151_v1 = vpop.permute.xlu0 %26843  ;;  %v43153_v22 = vpop.permute.xlu1 %27473  ;;  %v26184_v56 = vsel %vm19824_vm9, %v42857_v48, %v42920_v18  ;;  %v26855_v48 = vsel %vm6862_vm12, %v43128_v41, %v43105_v43  ;;  %v43410_v43 = vld [vmem:[%s45637_s3 + $0x100] sm:$0xff] }
 0x74f   :  { %35983 = vmatprep.subr.msk.mxu1 %vm17392_vm0, %v25554_v28  ;;  %36758 = vmatprep.subr.msk.mxu0 %vm17392_vm0, %v42834_v13 }
 0x750   :  { %29389 = vrot.lane.b32.xlu0 %v42477_v59, %s38252_s10  ;;  %30614 = vrot.lane.b32.xlu1 %v42415_v62, %s38229_s18 }
 0x751   :  { %25411 = vmatprep.mubr.f32.mxu1 %v38228_v11  ;;  %26450 = vmatprep.mubr.f32.mxu0 %v38228_v11 }
 0x752   :  { %35967 = vmatmul.mubr.msk.f32.gmra.mrb[72].mxu1 %vm17385_vm2, %v42785_v20  ;;  %36009 = vmatmul.mubr.msk.f32.gmra.mrb[10].mxu0 %vm17385_vm2, %v43114_v60  ;;  %v25558_v20 = vsel %vm19188_vm7, %v42874_v7, %v42689_v27 }
 0x753   :  { %25732 = vmatprep.mubr.f32.mxu1 %v38228_v11  ;;  %26598 = vmatprep.mubr.f32.mxu0 %v38228_v11  ;;  %v43170_v9 = vpop.permute.xlu0 %26178  ;;  %v43172_v45 = vpop.permute.xlu1 %27481 }
 0x754   :  { %29387 = vrot.lane.b32.xlu0 %v42503_v17, %s38252_s10  ;;  %30624 = vrot.lane.b32.xlu1 %v42324_v14, %s38229_s18  ;;  %v26848_v14 = vsel %vm6862_vm12, %v42994_v33, %v42848_v4  ;;  %v43246_v33 = vld [vmem:[%s45637_s3 + $0xf0] sm:$0xff] }
 0x756   :  { %35977 = vmatmul.mubr.msk.f32.vlgmr.msra.gmra.mrb[62].mxu1 %vm17385_vm2, %v42918_v42  ;;  %36016 = vmatmul.mubr.msk.f32.vlgmr.msra.gmra.mrb[12].mxu0 %vm17385_vm2, %v43075_v34 }
 0x757   :  { %35984 = vmatpush1.msk.msra.mxu1 %vm17392_vm0, %v25553_v51  ;;  %36759 = vmatpush3.msk.msra.mxu0 %vm17392_vm0, %v42834_v13  ;;  %v43194_v31 = vpop.permute.xlu0 %27461  ;;  %v43196_v47 = vpop.permute.xlu1 %28097 }
 0x758   :  { %35991 = vmatprep.subr.msk.mxu1 %vm17392_vm0, %v25558_v20  ;;  %36025 = vmatprep.subr.msk.mxu0 %vm17392_vm0, %v26848_v14  ;;  %v43451_v14 = vld [vmem:[#allocation3 + $0x28] sm:$0x3f] }
 0x759   :  { %29395 = vrot.lane.b32.xlu0 %v42519_v32, %s38252_s10  ;;  %30622 = vrot.lane.b32.xlu1 %v42477_v59, %s38229_s18 }
 0x75a   :  { %25738 = vmatprep.mubr.f32.mxu1 %v38228_v11  ;;  %26604 = vmatprep.mubr.f32.mxu0 %v38228_v11 }
 0x75b   :  { %35978 = vmatmul.mubr.msk.f32.gmra.mrb[64].mxu1 %vm17385_vm2, %v42945_v29  ;;  %36017 = vmatmul.mubr.msk.f32.gmra.mrb[14].mxu0 %vm17385_vm2, %v43114_v60 }
 0x75c   :  { %25886 = vmatprep.mubr.f32.mxu1 %v38228_v11  ;;  %36760 = vmatprep.mubr.msk.f32.mxu0 %vm17385_vm2, %v43075_v34  ;;  %v43213_v27 = vpop.permute.xlu0 %26825  ;;  %v43215_v36 = vpop.permute.xlu1 %28095 }
 0x75d   :  { %29385 = vrot.lane.b32.xlu0 %v42645_v55, %s38252_s10  ;;  %30630 = vrot.lane.b32.xlu1 %v42366_v26, %s38229_s18  ;;  %v26185_v26 = vsel %vm19824_vm9, %v42920_v18, %v42777_v19  ;;  %v26851_v19 = vsel %vm6862_vm12, %v43077_v6, %v43037_v30  ;;  %v43275_v30 = vld [vmem:[%s45637_s3 + $0xf8] sm:$0xff]  ;;  %v26188_v18 = vsel %vm19824_vm9, %v42893_v46, %v42969_v24 }
 0x75e   :  { %v27486_v46 = vsel %vm8238_vm14, %v43016_v63, %v43194_v31  ;;  %v26849_v51 = vsel %vm6862_vm12, %v42848_v4, %v43213_v27 }
 0x75f   :  { %35985 = vmatmul.mubr.msk.f32.vlgmr.msra.gmra.mrb[66].mxu1 %vm17385_vm2, %v42918_v42  ;;  %36761 = vmatmul.mubr.msk.f32.vlgmr.msra.gmra.mrb[16].mxu0 %vm17385_vm2, %v43114_v60 }
 0x760   :  { %35992 = vmatpush1.msk.msra.mxu1 %vm17392_vm0, %v25557_v57  ;;  %36026 = vmatpush1.msk.msra.mxu0 %vm17392_vm0, %v26847_v39  ;;  %v43239_v7 = vpop.permute.xlu0 %27469 }
 0x761   :  { %36002 = vmatprep.subr.msk.mxu1 %vm17392_vm0, %v26185_v26  ;;  %36033 = vmatprep.subr.msk.mxu0 %vm17392_vm0, %v26852_v5  ;;  %v43248_v52 = vpop.permute.xlu1 %28105 }
 0x762   :  { %30608 = vrot.lane.b32.xlu0 %v43250_v0, %s38229_s18  ;;  %31243 = vrot.lane.b32.xlu1 %v43250_v0, %s38231_s15 }
 0x763   :  { %25892 = vmatprep.mubr.f32.mxu1 %v38228_v11  ;;  %26956 = vmatprep.mubr.f32.mxu0 %v38228_v11 }
 0x764   :  { %35986 = vmatmul.mubr.msk.f32.gmra.mrb[68].mxu1 %vm17385_vm2, %v42945_v29  ;;  %36027 = vmatmul.mubr.msk.f32.vlgmr.msra.gmra.mrb[18].mxu0 %vm17385_vm2, %v43246_v33  ;;  %v43265_v10 = vpop.permute.xlu0 %26833 }
 0x765   :  { %36034 = vmatpush1.msk.msra.mxu0 %vm17392_vm0, %v26851_v19  ;;  %26040 = vmatprep.mubr.f32.mxu1 %v38228_v11  ;;  %v43277_v61 = vpop.permute.xlu1 %28103  ;;  %v26853_v39 = vsel %vm6862_vm12, %v42891_v37, %v43265_v10  ;;  %v43497_v37 = vld [vmem:[#allocation3 + $0x48] sm:$0x3f] }
 0x766   :  { %36041 = vmatprep.subr.msk.mxu0 %vm17392_vm0, %v26856_v8  ;;  %30606 = vrot.lane.b32.xlu0 %v42370_v49, %s38229_s18 }
 0x767   :  { %31241 = vrot.lane.b32.xlu1 %v42370_v49, %s38231_s15  ;;  %26962 = vmatprep.mubr.f32.mxu0 %v38228_v11  ;;  %v26189_v49 = vsel %vm19824_vm9, %v42969_v24, %v42816_v58 }
 0x768   :  { %35993 = vmatmul.mubr.msk.f32.vlgmr.msra.gmra.mrb[70].mxu1 %vm17385_vm2, %v42918_v42  ;;  %36028 = vmatmul.mubr.msk.f32.gmra.mrb[20].mxu0 %vm17385_vm2, %v43275_v30  ;;  %v43292_v3 = vpop.permute.xlu0 %27477 }
 0x769   :  { %36003 = vmatpush1.msk.msra.mxu1 %vm17392_vm0, %v26184_v56  ;;  %26046 = vmatprep.mubr.f32.mxu1 %v38228_v11  ;;  %v43299_v28 = vpop.permute.xlu1 %28113 }
 0x76a   :  { %36010 = vmatprep.subr.msk.mxu1 %vm17392_vm0, %v26189_v49  ;;  %30618 = vrot.lane.b32.xlu0 %v42645_v55, %s38229_s18 }
 0x76b   :  { %31249 = vrot.lane.b32.xlu1 %v42415_v62, %s38231_s15  ;;  %27110 = vmatprep.mubr.f32.mxu0 %v38228_v11  ;;  %v26859_v62 = vsel %vm6862_vm12, %v43151_v1, %v42988_v50 }
 0x76c   :  { %35994 = vmatmul.mubr.msk.f32.gmra.mrb[72].mxu1 %vm17385_vm2, %v42945_v29  ;;  %36035 = vmatmul.mubr.msk.f32.vlgmr.msra.gmra.mrb[8].mxu0 %vm17385_vm2, %v43246_v33  ;;  %v43314_v58 = vpop.permute.xlu0 %26841 }
 0x76d   :  { %36042 = vmatpush1.msk.msra.mxu0 %vm17392_vm0, %v26855_v48  ;;  %26367 = vmatprep.mubr.f32.mxu1 %v38228_v11  ;;  %v43321_v42 = vpop.permute.xlu1 %28111  ;;  %v26857_v8 = vsel %vm6862_vm12, %v42947_v25, %v43314_v58 }
 0x76e   :  { %36763 = vmatprep.subr.msk.mxu0 %vm17392_vm0, %v26859_v62  ;;  %30612 = vrot.lane.b32.xlu0 %v42456_v54, %s38229_s18  ;;  %v26193_v54 = vsel %vm19824_vm9, %v43170_v9, %v42834_v13 }
 0x76f   :  { %31253 = vrot.lane.b32.xlu1 %v42645_v55, %s38231_s15  ;;  %27116 = vmatprep.mubr.f32.mxu0 %v38228_v11 }
 0x770   :  { %36004 = vmatmul.mubr.msk.f32.vlgmr.msra.gmra.mrb[62].mxu1 %vm17385_vm2, %v43075_v34  ;;  %36036 = vmatmul.mubr.msk.f32.gmra.mrb[10].mxu0 %vm17385_vm2, %v43275_v30  ;;  %v43336_v29 = vpop.permute.xlu0 %27483 }
 0x771   :  { %36011 = vmatpush1.msk.msra.mxu1 %vm17392_vm0, %v26188_v18  ;;  %26373 = vmatprep.mubr.f32.mxu1 %v38228_v11  ;;  %v43343_v55 = vpop.permute.xlu1 %28119  ;;  %v27497_v26 = vsel %vm8238_vm14, %v43172_v45, %v43336_v29  ;;  %v28123_v18 = vsel %vm9614_vm8, %v43215_v36, %v43196_v47 }
 0x772   :  { %36018 = vmatprep.subr.msk.mxu1 %vm17392_vm0, %v26193_v54  ;;  %30626 = vrot.lane.b32.xlu0 %v42686_v15, %s38229_s18 }
 0x773   :  { %31257 = vrot.lane.b32.xlu1 %v42477_v59, %s38231_s15  ;;  %27264 = vmatprep.mubr.f32.mxu0 %v38228_v11  ;;  %v26192_v59 = vsel %vm19824_vm9, %v42952_v53, %v43170_v9  ;;  %v43389_v53 = vld [vmem:[#allocation3 + $0x70] sm:$0x3f]  ;;  %v27489_v9 = vsel %vm8238_vm14, %v43107_v16, %v43079_v38 }
 0x774   :  { %36005 = vmatmul.mubr.msk.f32.gmra.mrb[64].mxu1 %vm17385_vm2, %v43114_v60  ;;  %36043 = vmatmul.mubr.msk.f32.vlgmr.msra.gmra.mrb[12].mxu0 %vm17385_vm2, %v43246_v33  ;;  %v43355_v13 = vpop.permute.xlu0 %28099 }
 0x775   :  { %36764 = vmatpush3.msk.msra.mxu0 %vm17392_vm0, %v26859_v62  ;;  %26521 = vmatprep.mubr.f32.mxu1 %v38228_v11  ;;  %v43362_v24 = vpop.permute.xlu1 %28101  ;;  %v28124_v49 = vsel %vm9614_vm8, %v43196_v47, %v43355_v13 }
 0x776   :  { %36052 = vmatprep.subr.msk.mxu0 %vm17392_vm0, %v27486_v46  ;;  %30620 = vrot.lane.b32.xlu0 %v42503_v17, %s38229_s18  ;;  %v26850_v17 = vsel %vm6862_vm12, %v43213_v27, %v43077_v6  ;;  %v27485_v6 = vsel %vm8238_vm14, %v43039_v2, %v43016_v63  ;;  %v43467_v27 = vld [vmem:[#allocation3 + $0x38] sm:$0x3f]  ;;  %v28127_v46 = vsel %vm9614_vm8, %v43277_v61, %v43248_v52 }
 0x777   :  { %31261 = vrot.lane.b32.xlu1 %v42686_v15, %s38231_s15  ;;  %27270 = vmatprep.mubr.f32.mxu0 %v38228_v11 }
 0x778   :  { %36012 = vmatmul.mubr.msk.f32.vlgmr.msra.gmra.mrb[66].mxu1 %vm17385_vm2, %v43075_v34  ;;  %36044 = vmatmul.mubr.msk.f32.gmra.mrb[14].mxu0 %vm17385_vm2, %v43275_v30  ;;  %v43377_v50 = vpop.permute.xlu0 %27463 }
 0x779   :  { %36019 = vmatpush1.msk.msra.mxu1 %vm17392_vm0, %v26192_v59  ;;  %26527 = vmatprep.mubr.f32.mxu1 %v38228_v11  ;;  %v43384_v15 = vpop.permute.xlu1 %28737  ;;  %v27488_v56 = vsel %vm8238_vm14, %v43377_v50, %v43107_v16  ;;  %v27487_v29 = vsel %vm8238_vm14, %v43194_v31, %v43377_v50  ;;  %v43590_v31 = vld [vmem:[%s45637_s3 + $0x110] sm:$0xff] }
 0x77a   :  { %36029 = vmatprep.subr.msk.mxu1 %vm17392_vm0, %v26850_v17  ;;  %30628 = vrot.lane.b32.xlu0 %v42519_v32, %s38229_s18  ;;  %v27490_v32 = vsel %vm8238_vm14, %v43079_v38, %v43239_v7  ;;  %v27494_v38 = vsel %vm8238_vm14, %v43130_v40, %v43292_v3 }
 0x77b   :  { %31265 = vrot.lane.b32.xlu1 %v43389_v53, %s38231_s15  ;;  %36765 = vmatprep.mubr.msk.f32.mxu0 %vm17385_vm2, %v43246_v33 }
 0x77c   :  { %36013 = vmatmul.mubr.msk.f32.gmra.mrb[68].mxu1 %vm17385_vm2, %v43114_v60  ;;  %36766 = vmatmul.mubr.msk.f32.vlgmr.msra.gmra.mrb[16].mxu0 %vm17385_vm2, %v43275_v30 }
 0x77d   :  { %36053 = vmatpush1.msk.msra.mxu0 %vm17392_vm0, %v27485_v6  ;;  %26675 = vmatprep.mubr.f32.mxu1 %v38228_v11  ;;  %v43412_v63 = vpop.permute.xlu0 %28107  ;;  %v43414_v2 = vpop.permute.xlu1 %28109 }
 0x77e   :  { %36060 = vmatprep.subr.msk.mxu0 %vm17392_vm0, %v27490_v32  ;;  %31245 = vrot.lane.b32.xlu0 %v42590_v23, %s38231_s15  ;;  %v28128_v47 = vsel %vm9614_vm8, %v43248_v52, %v43412_v63  ;;  %v43619_v52 = vld [vmem:[%s45637_s3 + $0x118] sm:$0xff] }
 0x77f   :  { %31880 = vrot.lane.b32.xlu1 %v42590_v23, %s38249_s1  ;;  %27594 = vmatprep.mubr.f32.mxu0 %v38228_v11  ;;  %v26854_v23 = vsel %vm6862_vm12, %v43265_v10, %v43128_v41  ;;  %v43515_v10 = vld [vmem:[#allocation3 + $0x58] sm:$0x3f] }
 0x780   :  { %36020 = vmatmul.mubr.msk.f32.vlgmr.msra.gmra.mrb[70].mxu1 %vm17385_vm2, %v43075_v34  ;;  %36054 = vmatmul.mubr.msk.f32.vlgmr.msra.gmra.mrb[18].mxu0 %vm17385_vm2, %v43410_v43  ;;  %v43449_v34 = vld [vmem:[%s45637_s3 + $0x108] sm:$0xff] }
 0x781   :  { %36030 = vmatpush1.msk.msra.mxu1 %vm17392_vm0, %v26849_v51  ;;  %36061 = vmatpush1.msk.msra.mxu0 %vm17392_vm0, %v27489_v9  ;;  %v43440_v20 = vpop.permute.xlu0 %27471  ;;  %v43442_v4 = vpop.permute.xlu1 %28745  ;;  %v28131_v51 = vsel %vm9614_vm8, %v43321_v42, %v43299_v28 }
 0x782   :  { %36037 = vmatprep.subr.msk.mxu1 %vm17392_vm0, %v26854_v23  ;;  %36068 = vmatprep.subr.msk.mxu0 %vm17392_vm0, %v27494_v38  ;;  %v27492_v54 = vsel %vm8238_vm14, %v43440_v20, %v43153_v22  ;;  %v27491_v17 = vsel %vm8238_vm14, %v43239_v7, %v43440_v20  ;;  %v43646_v7 = vld [vmem:[#allocation3 + $0x40] sm:$0x3f]  ;;  %v43668_v38 = vld [vmem:[#allocation3 + $0x50] sm:$0x3f] }
 0x783   :  { %31247 = vrot.lane.b32.xlu0 %v43451_v14, %s38231_s15  ;;  %31882 = vrot.lane.b32.xlu1 %v43451_v14, %s38249_s1 }
 0x784   :  { %26681 = vmatprep.mubr.f32.mxu1 %v38228_v11  ;;  %27600 = vmatprep.mubr.f32.mxu0 %v38228_v11 }
 0x785   :  { %36021 = vmatmul.mubr.msk.f32.gmra.mrb[72].mxu1 %vm17385_vm2, %v43114_v60  ;;  %36055 = vmatmul.mubr.msk.f32.gmra.mrb[20].mxu0 %vm17385_vm2, %v43449_v34  ;;  %v27493_v60 = vsel %vm8238_vm14, %v43153_v22, %v43130_v40  ;;  %v26858_v40 = vsel %vm6862_vm12, %v43314_v58, %v43151_v1  ;;  %v43542_v58 = vld [vmem:[#allocation3 + $0x68] sm:$0x3f] }
 0x786   :  { %27033 = vmatprep.mubr.f32.mxu1 %v38228_v11  ;;  %27748 = vmatprep.mubr.f32.mxu0 %v38228_v11  ;;  %v43465_v41 = vpop.permute.xlu0 %28115  ;;  %v43473_v57 = vpop.permute.xlu1 %28117 }
 0x787   :  { %31251 = vrot.lane.b32.xlu0 %v43467_v27, %s38231_s15  ;;  %31886 = vrot.lane.b32.xlu1 %v43467_v27, %s38249_s1  ;;  %v28132_v50 = vsel %vm9614_vm8, %v43299_v28, %v43465_v41 }
 0x789   :  { %36031 = vmatmul.mubr.msk.f32.vlgmr.msra.gmra.mrb[62].mxu1 %vm17385_vm2, %v43246_v33  ;;  %36062 = vmatmul.mubr.msk.f32.vlgmr.msra.gmra.mrb[8].mxu0 %vm17385_vm2, %v43410_v43 }
 0x78a   :  { %36038 = vmatpush1.msk.msra.mxu1 %vm17392_vm0, %v26853_v39  ;;  %36069 = vmatpush1.msk.msra.mxu0 %vm17392_vm0, %v27493_v60  ;;  %v43493_v5 = vpop.permute.xlu0 %27479  ;;  %v43505_v19 = vpop.permute.xlu1 %28753  ;;  %v28126_v39 = vsel %vm9614_vm8, %v43362_v24, %v43277_v61 }
 0x78b   :  { %36045 = vmatprep.subr.msk.mxu1 %vm17392_vm0, %v26858_v40  ;;  %36768 = vmatprep.subr.msk.mxu0 %vm17392_vm0, %v27497_v26  ;;  %v27496_v9 = vsel %vm8238_vm14, %v43493_v5, %v43172_v45  ;;  %v27495_v20 = vsel %vm8238_vm14, %v43292_v3, %v43493_v5  ;;  %v28125_v5 = vsel %vm9614_vm8, %v43355_v13, %v43362_v24  ;;  %vm33598_vm14 = vcmask 7168  }
 0x78c   :  { %31255 = vrot.lane.b32.xlu0 %v43497_v37, %s38231_s15  ;;  %31890 = vrot.lane.b32.xlu1 %v43497_v37, %s38249_s1 }
 0x78d   :  { %27039 = vmatprep.mubr.f32.mxu1 %v38228_v11  ;;  %27754 = vmatprep.mubr.f32.mxu0 %v38228_v11 }
 0x78e   :  { %36032 = vmatmul.mubr.msk.f32.gmra.mrb[64].mxu1 %vm17385_vm2, %v43275_v30  ;;  %36063 = vmatmul.mubr.msk.f32.gmra.mrb[10].mxu0 %vm17385_vm2, %v43449_v34 }
 0x78f   :  { %27187 = vmatprep.mubr.f32.mxu1 %v38228_v11  ;;  %27902 = vmatprep.mubr.f32.mxu0 %v38228_v11  ;;  %v43513_v1 = vpop.permute.xlu0 %28121  ;;  %v43536_v48 = vpop.permute.xlu1 %28739 }
 0x790   :  { %31259 = vrot.lane.b32.xlu0 %v43515_v10, %s38231_s15  ;;  %31894 = vrot.lane.b32.xlu1 %v43515_v10, %s38249_s1  ;;  %v28135_v23 = vsel %vm9614_vm8, %v43343_v55, %v43513_v1 }
 0x792   :  { %36039 = vmatmul.mubr.msk.f32.vlgmr.msra.gmra.mrb[66].mxu1 %vm17385_vm2, %v43246_v33  ;;  %36070 = vmatmul.mubr.msk.f32.vlgmr.msra.gmra.mrb[12].mxu0 %vm17385_vm2, %v43410_v43 }
 0x793   :  { %36046 = vmatpush1.msk.msra.mxu1 %vm17392_vm0, %v26857_v8  ;;  %36769 = vmatpush3.msk.msra.mxu0 %vm17392_vm0, %v27497_v26  ;;  %v43538_v25 = vpop.permute.xlu0 %28735  ;;  %v43563_v62 = vpop.permute.xlu1 %28759  ;;  %v43692_v26 = vld [vmem:[#allocation3 + $0x60] sm:$0x3f]  ;;  %v28130_v8 = vsel %vm9614_vm8, %v43414_v2, %v43321_v42 }
 0x794   :  { %36056 = vmatprep.subr.msk.mxu1 %vm17392_vm0, %v27488_v56  ;;  %36079 = vmatprep.subr.msk.mxu0 %vm17392_vm0, %v28124_v49  ;;  %v28762_v40 = vsel %vm22404_vm10, %v43538_v25, %v43384_v15  ;;  %v43733_v56 = vld [vmem:[#allocation3 + $0x20] sm:$0x3f] }
 0x795   :  { %31263 = vrot.lane.b32.xlu0 %v43542_v58, %s38231_s15  ;;  %31898 = vrot.lane.b32.xlu1 %v43542_v58, %s38249_s1 }
 0x796   :  { %27193 = vmatprep.mubr.f32.mxu1 %v38228_v11  ;;  %27908 = vmatprep.mubr.f32.mxu0 %v38228_v11 }
 0x797   :  { %36040 = vmatmul.mubr.msk.f32.gmra.mrb[68].mxu1 %vm17385_vm2, %v43275_v30  ;;  %36071 = vmatmul.mubr.msk.f32.gmra.mrb[14].mxu0 %vm17385_vm2, %v43449_v34 }
 0x798   :  { %27341 = vmatprep.mubr.f32.mxu1 %v38228_v11  ;;  %36770 = vmatprep.mubr.msk.f32.mxu0 %vm17385_vm2, %v43410_v43  ;;  %v43557_v16 = vpop.permute.xlu0 %28733  ;;  %v43600_v22 = vpop.permute.xlu1 %29375 }
 0x799   :  { %31878 = vrot.lane.b32.xlu0 %v43250_v0, %s38249_s1  ;;  %32513 = vrot.lane.b32.xlu1 %v43250_v0, %s38250_s23  ;;  %v28761_v24 = vsel %vm22404_vm10, %v43557_v16, %v43538_v25 }
 0x79b   :  { %36047 = vmatmul.mubr.msk.f32.vlgmr.msra.gmra.mrb[70].mxu1 %vm17385_vm2, %v43246_v33  ;;  %36771 = vmatmul.mubr.msk.f32.vlgmr.msra.gmra.mrb[16].mxu0 %vm17385_vm2, %v43449_v34  ;;  %v43592_v33 = vld [vmem:[#allocation3 + $0x10] sm:$0x3f] }
 0x79c   :  { %36057 = vmatpush1.msk.msra.mxu1 %vm17392_vm0, %v27487_v29  ;;  %36080 = vmatpush1.msk.msra.mxu0 %vm17392_vm0, %v28123_v18  ;;  %v43583_v36 = vpop.permute.xlu0 %28743  ;;  %v43791_v29 = vld [vmem:[%s45637_s3 + $0x128] sm:$0xff] }
 0x79d   :  { %36064 = vmatprep.subr.msk.mxu1 %vm17392_vm0, %v27492_v54  ;;  %36087 = vmatprep.subr.msk.mxu0 %vm17392_vm0, %v28128_v47  ;;  %v43639_v32 = vpop.permute.xlu1 %28747  ;;  %v28766_v42 = vsel %vm22404_vm10, %v43583_v36, %v43442_v4  ;;  %v28133_v47 = vsel %vm9614_vm8, %v43465_v41, %v43473_v57 }
 0x79e   :  { %31876 = vrot.lane.b32.xlu0 %v43592_v33, %s38249_s1  ;;  %32517 = vrot.lane.b32.xlu1 %v43451_v14, %s38250_s23 }
 0x79f   :  { %27347 = vmatprep.mubr.f32.mxu1 %v38228_v11  ;;  %28232 = vmatprep.mubr.f32.mxu0 %v38228_v11 }
 0x7a0   :  { %36048 = vmatmul.mubr.msk.f32.gmra.mrb[72].mxu1 %vm17385_vm2, %v43275_v30  ;;  %36081 = vmatmul.mubr.msk.f32.vlgmr.msra.gmra.mrb[18].mxu0 %vm17385_vm2, %v43590_v31  ;;  %v43609_v59 = vpop.permute.xlu0 %28741  ;;  %v43622_v30 = vld [vmem:[#allocation3 + $0x30] sm:$0x3f] }
 0x7a1   :  { %36088 = vmatpush1.msk.msra.mxu0 %vm17392_vm0, %v28127_v46  ;;  %27671 = vmatprep.mubr.f32.mxu1 %v38228_v11  ;;  %v43672_v28 = vpop.permute.xlu1 %29383  ;;  %v28765_v25 = vsel %vm22404_vm10, %v43609_v59, %v43583_v36  ;;  %v28764_v46 = vsel %vm22404_vm10, %v43536_v48, %v43609_v59 }
 0x7a2   :  { %36095 = vmatprep.subr.msk.mxu0 %vm17392_vm0, %v28132_v50  ;;  %31884 = vrot.lane.b32.xlu0 %v43622_v30, %s38249_s1  ;;  %v28763_v50 = vsel %vm22404_vm10, %v43384_v15, %v43536_v48 }
 0x7a3   :  { %32511 = vrot.lane.b32.xlu1 %v43592_v33, %s38250_s23  ;;  %28238 = vmatprep.mubr.f32.mxu0 %v38228_v11 }
 0x7a4   :  { %36058 = vmatmul.mubr.msk.f32.vlgmr.msra.gmra.mrb[62].mxu1 %vm17385_vm2, %v43410_v43  ;;  %36082 = vmatmul.mubr.msk.f32.gmra.mrb[20].mxu0 %vm17385_vm2, %v43619_v52  ;;  %v43636_v6 = vpop.permute.xlu0 %28751 }
 0x7a5   :  { %36065 = vmatpush1.msk.msra.mxu1 %vm17392_vm0, %v27491_v17  ;;  %27677 = vmatprep.mubr.f32.mxu1 %v38228_v11  ;;  %v43705_v3 = vpop.permute.xlu1 %28755  ;;  %v33144_v17 = vld [vmem:[%s45638_s4] sm:$0xff] }
 0x7a6   :  { %36072 = vmatprep.subr.msk.mxu1 %vm17392_vm0, %v27496_v9  ;;  %31888 = vrot.lane.b32.xlu0 %v43646_v7, %s38249_s1 }
 0x7a7   :  { %32523 = vrot.lane.b32.xlu1 %v43646_v7, %s38250_s23  ;;  %28386 = vmatprep.mubr.f32.mxu0 %v38228_v11 }
 0x7a8   :  { %36059 = vmatmul.mubr.msk.f32.gmra.mrb[64].mxu1 %vm17385_vm2, %v43449_v34  ;;  %36089 = vmatmul.mubr.msk.f32.vlgmr.msra.gmra.mrb[8].mxu0 %vm17385_vm2, %v43590_v31  ;;  %v43660_v45 = vpop.permute.xlu0 %28749 }
 0x7a9   :  { %36096 = vmatpush1.msk.msra.mxu0 %vm17392_vm0, %v28131_v51  ;;  %27825 = vmatprep.mubr.f32.mxu1 %v38228_v11  ;;  %v43737_v13 = vpop.permute.xlu1 %29391  ;;  %v28769_v36 = vsel %vm22404_vm10, %v43660_v45, %v43636_v6  ;;  %v28767_v51 = vsel %vm22404_vm10, %v43442_v4, %v43639_v32 }
 0x7aa   :  { %36773 = vmatprep.subr.msk.mxu0 %vm17392_vm0, %v28135_v23  ;;  %31892 = vrot.lane.b32.xlu0 %v43668_v38, %s38249_s1 }
 0x7ab   :  { %32527 = vrot.lane.b32.xlu1 %v43668_v38, %s38250_s23  ;;  %28392 = vmatprep.mubr.f32.mxu0 %v38228_v11 }
 0x7ac   :  { %36066 = vmatmul.mubr.msk.f32.vlgmr.msra.gmra.mrb[66].mxu1 %vm17385_vm2, %v43410_v43  ;;  %36090 = vmatmul.mubr.msk.f32.gmra.mrb[10].mxu0 %vm17385_vm2, %v43619_v52  ;;  %v43684_v60 = vpop.permute.xlu0 %28757 }
 0x7ad   :  { %36073 = vmatpush1.msk.msra.mxu1 %vm17392_vm0, %v27495_v20  ;;  %27831 = vmatprep.mubr.f32.mxu1 %v38228_v11  ;;  %v43774_v16 = vpop.permute.xlu1 %29377  ;;  %v28773_v41 = vsel %vm22404_vm10, %v43684_v60, %v43563_v62 }
 0x7ae   :  { %36083 = vmatprep.subr.msk.mxu1 %vm17392_vm0, %v28126_v39  ;;  %31896 = vrot.lane.b32.xlu0 %v43692_v26, %s38249_s1 }
 0x7af   :  { %32531 = vrot.lane.b32.xlu1 %v43692_v26, %s38250_s23  ;;  %28540 = vmatprep.mubr.f32.mxu0 %v38228_v11 }
 0x7b0   :  { %36067 = vmatmul.mubr.msk.f32.gmra.mrb[68].mxu1 %vm17385_vm2, %v43449_v34  ;;  %36097 = vmatmul.mubr.msk.f32.vlgmr.msra.gmra.mrb[12].mxu0 %vm17385_vm2, %v43590_v31  ;;  %v43703_v61 = vpop.permute.xlu0 %29373 }
 0x7b1   :  { %36774 = vmatpush3.msk.msra.mxu0 %vm17392_vm0, %v28135_v23  ;;  %27979 = vmatprep.mubr.f32.mxu1 %v38228_v11  ;;  %v43805_v54 = vpop.permute.xlu1 %29397  ;;  %v29400_v15 = vsel %vm23043_vm11, %v43703_v61, %v43600_v22  ;;  %v28772_v23 = vsel %vm22404_vm10, %v43705_v3, %v43684_v60 }
 0x7b2   :  { %36106 = vmatprep.subr.msk.mxu0 %vm17392_vm0, %v28762_v40  ;;  %31900 = vrot.lane.b32.xlu0 %v43389_v53, %s38249_s1  ;;  %v43931_v40 = vld [vmem:[%s45637_s3 + $0x138] sm:$0xff] }
 0x7b3   :  { %32535 = vrot.lane.b32.xlu1 %v43389_v53, %s38250_s23  ;;  %28546 = vmatprep.mubr.f32.mxu0 %v38228_v11 }
 0x7b4   :  { %36074 = vmatmul.mubr.msk.f32.vlgmr.msra.gmra.mrb[70].mxu1 %vm17385_vm2, %v43410_v43  ;;  %36098 = vmatmul.mubr.msk.f32.gmra.mrb[14].mxu0 %vm17385_vm2, %v43619_v52  ;;  %v43725_v1 = vpop.permute.xlu0 %29371  ;;  %v43756_v43 = vld [vmem:[%s45637_s3 + $0x120] sm:$0xff] }
 0x7b5   :  { %36084 = vmatpush1.msk.msra.mxu1 %vm17392_vm0, %v28125_v5  ;;  %27985 = vmatprep.mubr.f32.mxu1 %v38228_v11  ;;  %v43835_v59 = vpop.permute.xlu1 %29393 }
 0x7b6   :  { %36091 = vmatprep.subr.msk.mxu1 %vm17392_vm0, %v28130_v8  ;;  %32515 = vrot.lane.b32.xlu0 %v43733_v56, %s38250_s23 }
 0x7b7   :  { %36775 = vmatprep.mubr.msk.f32.mxu0 %vm17385_vm2, %v43590_v31 }
 0x7b8   :  { %36075 = vmatmul.mubr.msk.f32.gmra.mrb[72].mxu1 %vm17385_vm2, %v43449_v34  ;;  %36776 = vmatmul.mubr.msk.f32.vlgmr.msra.gmra.mrb[16].mxu0 %vm17385_vm2, %v43619_v52  ;;  %v28129_v34 = vsel %vm9614_vm8, %v43412_v63, %v43414_v2  ;;  %v28134_v63 = vsel %vm9614_vm8, %v43473_v57, %v43343_v55  ;;  %v28770_v2 = vsel %vm22404_vm10, %v43636_v6, %v43505_v19  ;;  %vm33581_vm8 = vcmask 138240  }
 0x7b9   :  { %36107 = vmatpush1.msk.msra.mxu0 %vm17392_vm0, %v28761_v24  ;;  %28309 = vmatprep.mubr.f32.mxu1 %v38228_v11  ;;  %v43758_v49 = vpop.permute.xlu0 %29381  ;;  %v28768_v6 = vsel %vm22404_vm10, %v43639_v32, %v43660_v45  ;;  %v43865_v48 = vpop.permute.xlu1 %30610  ;;  %v43906_v32 = vld [vmem:[%s45637_s3 + $0x130] sm:$0xff] }
 0x7ba   :  { %36114 = vmatprep.subr.msk.mxu0 %vm17392_vm0, %v28766_v42  ;;  %32519 = vrot.lane.b32.xlu0 %v43622_v30, %s38250_s23  ;;  %v29404_v4 = vsel %vm23043_vm11, %v43758_v49, %v43672_v28 }
 0x7bb   :  { %28870 = vmatprep.mubr.f32.mxu0 %v38228_v11 }
 0x7bc   :  { %36085 = vmatmul.mubr.msk.f32.vlgmr.msra.gmra.mrb[62].mxu1 %vm17385_vm2, %v43590_v31  ;;  %36108 = vmatmul.mubr.msk.f32.vlgmr.msra.gmra.mrb[18].mxu0 %vm17385_vm2, %v43756_v43 }
 0x7bd   :  { %36092 = vmatpush1.msk.msra.mxu1 %vm17392_vm0, %v28129_v34  ;;  %36115 = vmatpush1.msk.msra.mxu0 %vm17392_vm0, %v28765_v25  ;;  %v43784_v18 = vpop.permute.xlu0 %29379  ;;  %v43885_v45 = vpop.permute.xlu1 %30616 }
 0x7be   :  { %36099 = vmatprep.subr.msk.mxu1 %vm17392_vm0, %v28134_v63  ;;  %36122 = vmatprep.subr.msk.mxu0 %vm17392_vm0, %v28770_v2  ;;  %v29403_v60 = vsel %vm23043_vm11, %v43784_v18, %v43758_v49  ;;  %v29402_v8 = vsel %vm23043_vm11, %v43774_v16, %v43784_v18  ;;  %v29401_v49 = vsel %vm23043_vm11, %v43600_v22, %v43774_v16  ;;  %v44029_v18 = vld [vmem:[%s45637_s3 + $0x140] sm:$0xff] }
 0x7bf   :  { %32521 = vrot.lane.b32.xlu0 %v43467_v27, %s38250_s23  ;;  %28315 = vmatprep.mubr.f32.mxu1 %v38228_v11 }
 0x7c0   :  { %28876 = vmatprep.mubr.f32.mxu0 %v38228_v11  ;;  %36086 = vmatmul.mubr.msk.f32.gmra.mrb[64].mxu1 %vm17385_vm2, %v43619_v52 }
 0x7c1   :  { %36109 = vmatmul.mubr.msk.f32.gmra.mrb[20].mxu0 %vm17385_vm2, %v43791_v29  ;;  %28463 = vmatprep.mubr.f32.mxu1 %v38228_v11 }
 0x7c2   :  { %29024 = vmatprep.mubr.f32.mxu0 %v38228_v11  ;;  %v43803_v55 = vpop.permute.xlu0 %29389  ;;  %v43921_v39 = vpop.permute.xlu1 %30614 }
 0x7c3   :  { %32525 = vrot.lane.b32.xlu0 %v43497_v37, %s38250_s23 }
 0x7c4   :  { %36093 = vmatmul.mubr.msk.f32.vlgmr.msra.gmra.mrb[66].mxu1 %vm17385_vm2, %v43590_v31 }
 0x7c5   :  { %36100 = vmatpush1.msk.msra.mxu1 %vm17392_vm0, %v28133_v47  ;;  %36116 = vmatmul.mubr.msk.f32.vlgmr.msra.gmra.mrb[8].mxu0 %vm17385_vm2, %v43756_v43 }
 0x7c6   :  { %36123 = vmatpush1.msk.msra.mxu0 %vm17392_vm0, %v28769_v36  ;;  %36110 = vmatprep.subr.msk.mxu1 %vm17392_vm0, %v28764_v46  ;;  %v43828_v57 = vpop.permute.xlu0 %29387  ;;  %v30636_v46 = vsel %vm1367_vm4, %v43921_v39, %v43885_v45 }
 0x7c7   :  { %36778 = vmatprep.subr.msk.mxu0 %vm17392_vm0, %v28773_v41  ;;  %32529 = vrot.lane.b32.xlu0 %v43515_v10, %s38250_s23 }
 0x7c8   :  { %28469 = vmatprep.mubr.f32.mxu1 %v38228_v11  ;;  %29030 = vmatprep.mubr.f32.mxu0 %v38228_v11 }
 0x7c9   :  { %36094 = vmatmul.mubr.msk.f32.gmra.mrb[68].mxu1 %vm17385_vm2, %v43619_v52  ;;  %36117 = vmatmul.mubr.msk.f32.gmra.mrb[10].mxu0 %vm17385_vm2, %v43791_v29 }
 0x7ca   :  { %28617 = vmatprep.mubr.f32.mxu1 %v38228_v11  ;;  %29178 = vmatprep.mubr.f32.mxu0 %v38228_v11 }
 0x7cb   :  { %32533 = vrot.lane.b32.xlu0 %v43542_v58, %s38250_s23  ;;  %v43845_v62 = vpop.permute.xlu0 %29395 }
 0x7cc   :  { %v29411_v42 = vsel %vm23043_vm11, %v43845_v62, %v43805_v54  ;;  %v29410_v2 = vsel %vm23043_vm11, %v43835_v59, %v43845_v62 }
 0x7cd   :  { %36101 = vmatmul.mubr.msk.f32.vlgmr.msra.gmra.mrb[70].mxu1 %vm17385_vm2, %v43590_v31  ;;  %36124 = vmatmul.mubr.msk.f32.vlgmr.msra.gmra.mrb[12].mxu0 %vm17385_vm2, %v43756_v43 }
 0x7ce   :  { %36111 = vmatpush1.msk.msra.mxu1 %vm17392_vm0, %v28763_v50  ;;  %36779 = vmatpush3.msk.msra.mxu0 %vm17392_vm0, %v28773_v41 }
 0x7cf   :  { %36118 = vmatprep.subr.msk.mxu1 %vm17392_vm0, %v28768_v6  ;;  %36133 = vmatprep.subr.msk.mxu0 %vm17392_vm0, %v29400_v15  ;;  %v43869_v31 = vpop.permute.xlu0 %29385 }
 0x7d0   :  { %33148 = vperm.xlu0 %37990, %v33144_v17   ;;  %28623 = vmatprep.mubr.f32.mxu1 %v38228_v11  ;;  %v29406_v25 = vsel %vm23043_vm11, %v43869_v31, %v43828_v57 }
 0x7d1   :  { %29184 = vmatprep.mubr.f32.mxu0 %v38228_v11  ;;  %36102 = vmatmul.mubr.msk.f32.gmra.mrb[72].mxu1 %vm17385_vm2, %v43619_v52  ;;  %v29399_v52 = vsel %vm23043_vm11, %v43725_v1, %v43703_v61  ;;  %v29408_v61 = vsel %vm23043_vm11, %v43803_v55, %v43737_v13  ;;  %v28771_v1 = vsel %vm22404_vm10, %v43505_v19, %v43705_v3  ;;  %v43952_v19 = vpop.permute.xlu1 %30624 }
 0x7d2   :  { %36125 = vmatmul.mubr.msk.f32.gmra.mrb[14].mxu0 %vm17385_vm2, %v43791_v29  ;;  %28947 = vmatprep.mubr.f32.mxu1 %v38228_v11  ;;  %v29407_v3 = vsel %vm23043_vm11, %v43828_v57, %v43803_v55  ;;  %v44167_v57 = vld [vmem:[%s45637_s3 + $0x158] sm:$0xff] }
 0x7d3   :  { %36780 = vmatprep.mubr.msk.f32.mxu0 %vm17385_vm2, %v43756_v43 }
 0x7d4   :  { %v43880_v9 = vpop.permute.xlu0 %30608 }
 0x7d5   :  { %36112 = vmatmul.mubr.msk.f32.vlgmr.msra.gmra.mrb[62].mxu1 %vm17385_vm2, %v43756_v43  ;;  %v43981_v63 = vpop.permute.xlu1 %30622 }
 0x7d6   :  { %36119 = vmatpush1.msk.msra.mxu1 %vm17392_vm0, %v28767_v51  ;;  %36781 = vmatmul.mubr.msk.f32.vlgmr.msra.gmra.mrb[16].mxu0 %vm17385_vm2, %v43791_v29  ;;  %v30640_v6 = vsel %vm1367_vm4, %v43981_v63, %v43952_v19 }
 0x7d7   :  { %36134 = vmatpush1.msk.msra.mxu0 %vm17392_vm0, %v29399_v52  ;;  %36126 = vmatprep.subr.msk.mxu1 %vm17392_vm0, %v28772_v23 }
 0x7d8   :  { %36141 = vmatprep.subr.msk.mxu0 %vm17392_vm0, %v29404_v4  ;;  %28953 = vmatprep.mubr.f32.mxu1 %v38228_v11  ;;  %v43910_v20 = vpop.permute.xlu0 %30606 }
 0x7d9   :  { %29508 = vmatprep.mubr.f32.mxu0 %v38228_v11  ;;  %36113 = vmatmul.mubr.msk.f32.gmra.mrb[64].mxu1 %vm17385_vm2, %v43791_v29  ;;  %v44000_v16 = vpop.permute.xlu1 %30630 }
 0x7da   :  { %36135 = vmatmul.mubr.msk.f32.vlgmr.msra.gmra.mrb[18].mxu0 %vm17385_vm2, %v43906_v32  ;;  %29101 = vmatprep.mubr.f32.mxu1 %v38228_v11 }
 0x7db   :  { %36142 = vmatpush1.msk.msra.mxu0 %vm17392_vm0, %v29403_v60  ;;  %29514 = vmatprep.mubr.f32.mxu0 %v38228_v11 }
 0x7dc   :  { %36149 = vmatprep.subr.msk.mxu0 %vm17392_vm0, %v29408_v61  ;;  %v43934_v5 = vpop.permute.xlu0 %30618  ;;  %v31239_v61 = vld [vmem:[%s45637_s3 + $0x160] sm:$0xff] }
 0x7dd   :  { %36120 = vmatmul.mubr.msk.f32.vlgmr.msra.gmra.mrb[66].mxu1 %vm17385_vm2, %v43756_v43  ;;  %v30637_v47 = vsel %vm1367_vm4, %v43885_v45, %v43934_v5 }
 0x7de   :  { %36127 = vmatpush1.msk.msra.mxu1 %vm17392_vm0, %v28771_v1  ;;  %36136 = vmatmul.mubr.msk.f32.gmra.mrb[20].mxu0 %vm17385_vm2, %v43931_v40 }
 0x7df   :  { %36137 = vmatprep.subr.msk.mxu1 %vm17392_vm0, %v29402_v8  ;;  %29107 = vmatprep.mubr.f32.mxu1 %v38228_v11 }
 0x7e0   :  { %29662 = vmatprep.mubr.f32.mxu0 %v38228_v11  ;;  %v43950_v24 = vpop.permute.xlu0 %30612 }
 0x7e1   :  { %36121 = vmatmul.mubr.msk.f32.gmra.mrb[68].mxu1 %vm17385_vm2, %v43791_v29 }
 0x7e2   :  { %36143 = vmatmul.mubr.msk.f32.vlgmr.msra.gmra.mrb[8].mxu0 %vm17385_vm2, %v43906_v32  ;;  %29255 = vmatprep.mubr.f32.mxu1 %v38228_v11 }
 0x7e3   :  { %36150 = vmatpush1.msk.msra.mxu0 %vm17392_vm0, %v29407_v3  ;;  %29668 = vmatprep.mubr.f32.mxu0 %v38228_v11  ;;  %v31240_v3 = vld [vmem:[%s45637_s3 + $0x168] sm:$0xff] }
 0x7e4   :  { %36783 = vmatprep.subr.msk.mxu0 %vm17392_vm0, %v29411_v42  ;;  %v43973_v34 = vpop.permute.xlu0 %30626 }
 0x7e5   :  { %36128 = vmatmul.mubr.msk.f32.vlgmr.msra.gmra.mrb[70].mxu1 %vm17385_vm2, %v43756_v43  ;;  %v29405_v43 = vsel %vm23043_vm11, %v43672_v28, %v43869_v31  ;;  %v44021_v28 = vpop.permute.xlu1 %31243  ;;  %v30641_v41 = vsel %vm1367_vm4, %v43952_v19, %v43973_v34 }
 0x7e6   :  { %36138 = vmatpush1.msk.msra.mxu1 %vm17392_vm0, %v29401_v49  ;;  %36144 = vmatmul.mubr.msk.f32.gmra.mrb[10].mxu0 %vm17385_vm2, %v43931_v40 }
 0x7e7   :  { %36145 = vmatprep.subr.msk.mxu1 %vm17392_vm0, %v29406_v25  ;;  %29261 = vmatprep.mubr.f32.mxu1 %v38228_v11 }
 0x7e8   :  { %29816 = vmatprep.mubr.f32.mxu0 %v38228_v11  ;;  %v43993_v22 = vpop.permute.xlu0 %30620 }
 0x7e9   :  { %36129 = vmatmul.mubr.msk.f32.gmra.mrb[72].mxu1 %vm17385_vm2, %v43791_v29  ;;  %v29409_v29 = vsel %vm23043_vm11, %v43737_v13, %v43835_v59  ;;  %v44055_v13 = vpop.permute.xlu1 %31241  ;;  %v30634_v59 = vsel %vm1367_vm4, %v43865_v48, %v43950_v24  ;;  %v30639_v50 = vsel %vm1367_vm4, %v43993_v22, %v43981_v63 }
 0x7ea   :  { %36151 = vmatmul.mubr.msk.f32.vlgmr.msra.gmra.mrb[12].mxu0 %vm17385_vm2, %v43906_v32  ;;  %29585 = vmatprep.mubr.f32.mxu1 %v38228_v11  ;;  %v31267_v60 = vsel %vm2735_vm6, %v44055_v13, %v44021_v28 }
 0x7eb   :  { %36784 = vmatpush3.msk.msra.mxu0 %vm17392_vm0, %v29411_v42  ;;  %29822 = vmatprep.mubr.f32.mxu0 %v38228_v11 }
 0x7ec   :  { %36160 = vmatprep.subr.msk.mxu0 %vm17392_vm0, %v43250_v0  ;;  %v44014_v0 = vpop.permute.xlu0 %30628 }
 0x7ed   :  { %36139 = vmatmul.mubr.msk.f32.vlgmr.msra.gmra.mrb[62].mxu1 %vm17385_vm2, %v43906_v32  ;;  %v30642_v23 = vsel %vm1367_vm4, %v43973_v34, %v44014_v0 }
 0x7ee   :  { %36146 = vmatpush1.msk.msra.mxu1 %vm17392_vm0, %v29405_v43  ;;  %36152 = vmatmul.mubr.msk.f32.gmra.mrb[14].mxu0 %vm17385_vm2, %v43931_v40 }
 0x7ef   :  { %36153 = vmatprep.subr.msk.mxu1 %vm17392_vm0, %v29410_v2  ;;  %29591 = vmatprep.mubr.f32.mxu1 %v38228_v11 }
 0x7f0   :  { %36785 = vmatprep.mubr.msk.f32.mxu0 %vm17385_vm2, %v43906_v32 }
 0x7f1   :  { %36140 = vmatmul.mubr.msk.f32.gmra.mrb[64].mxu1 %vm17385_vm2, %v43931_v40 }
 0x7f2   :  { %36786 = vmatmul.mubr.msk.f32.vlgmr.msra.gmra.mrb[16].mxu0 %vm17385_vm2, %v43931_v40  ;;  %29739 = vmatprep.mubr.f32.mxu1 %v38228_v11 }
 0x7f3   :  { %36161 = vmatpush1.msk.msra.mxu0 %vm17392_vm0, %v43592_v33  ;;  %30105 = vmatprep.mubr.f32.mxu0 %v38228_v11  ;;  %v44041_v33 = vpop.permute.xlu0 %31245 }
 0x7f4   :  { %36168 = vmatprep.subr.msk.mxu0 %vm17392_vm0, %v43467_v27  ;;  %v44050_v27 = vld [vmem:[%s45637_s3 + $0x148] sm:$0xff]  ;;  %v31268_v52 = vsel %vm2735_vm6, %v44021_v28, %v44041_v33 }
 0x7f5   :  { %36147 = vmatmul.mubr.msk.f32.vlgmr.msra.gmra.mrb[66].mxu1 %vm17385_vm2, %v43906_v32 }
 0x7f6   :  { %36154 = vmatpush1.msk.msra.mxu1 %vm17392_vm0, %v29409_v29  ;;  %36162 = vmatmul.mubr.msk.f32.vlgmr.msra.gmra.mrb[18].mxu0 %vm17385_vm2, %v44029_v18 }
 0x7f7   :  { %36169 = vmatpush1.msk.msra.mxu0 %vm17392_vm0, %v43622_v30  ;;  %36164 = vmatprep.subr.msk.mxu1 %vm17392_vm0, %v43451_v14  ;;  %v44064_v14 = vpop.permute.xlu0 %31247  ;;  %v33145_v30 = vld [vmem:[%s45638_s4 + $0x8] sm:$0xff]  ;;  %s38257_s4 = smov 113  }
 0x7f8   :  { %36176 = vmatprep.subr.msk.mxu0 %vm17392_vm0, %v43515_v10  ;;  %29745 = vmatprep.mubr.f32.mxu1 %v38228_v11  ;;  %v44072_v10 = vpop.permute.xlu1 %31249 }
 0x7f9   :  { %30111 = vmatprep.mubr.f32.mxu0 %v38228_v11  ;;  %36148 = vmatmul.mubr.msk.f32.gmra.mrb[68].mxu1 %vm17385_vm2, %v43931_v40  ;;  %v31270_v4 = vsel %vm2735_vm6, %v44064_v14, %v44072_v10 }
 0x7fa   :  { %36163 = vmatmul.mubr.msk.f32.gmra.mrb[20].mxu0 %vm17385_vm2, %v44050_v27  ;;  %29893 = vmatprep.mubr.f32.mxu1 %v38228_v11 }
 0x7fb   :  { %30259 = vmatprep.mubr.f32.mxu0 %v38228_v11  ;;  %33153 = vperm.xlu1 %37991, %v33145_v30   ;;  %v31874_v30 = vld [vmem:[%s45637_s3 + $0x170] sm:$0xff] }
 0x7fd   :  { %36155 = vmatmul.mubr.msk.f32.vlgmr.msra.gmra.mrb[70].mxu1 %vm17385_vm2, %v43906_v32 }
 0x7fe   :  { %36165 = vmatpush1.msk.msra.mxu1 %vm17392_vm0, %v43733_v56  ;;  %36170 = vmatmul.mubr.msk.f32.vlgmr.msra.gmra.mrb[8].mxu0 %vm17385_vm2, %v44029_v18  ;;  %v30633_v56 = vsel %vm1367_vm4, %v43880_v9, %v43865_v48  ;;  %v30638_v48 = vsel %vm1367_vm4, %v43934_v5, %v43993_v22 }
 0x7ff   :  { %36177 = vmatpush1.msk.msra.mxu0 %vm17392_vm0, %v43668_v38  ;;  %36172 = vmatprep.subr.msk.mxu1 %vm17392_vm0, %v43497_v37  ;;  %v44090_v37 = vpop.permute.xlu0 %31251  ;;  %v44093_v38 = vpop.permute.xlu1 %31253 }
 0x800   :  { %36788 = vmatprep.subr.msk.mxu0 %vm17392_vm0, %v43389_v53  ;;  %29899 = vmatprep.mubr.f32.mxu1 %v38228_v11  ;;  %v31271_v1 = vsel %vm2735_vm6, %v44072_v10, %v44090_v37 }
 0x801   :  { %30265 = vmatprep.mubr.f32.mxu0 %v38228_v11  ;;  %36156 = vmatmul.mubr.msk.f32.gmra.mrb[72].mxu1 %vm17385_vm2, %v43931_v40  ;;  %v31269_v40 = vsel %vm2735_vm6, %v44041_v33, %v44064_v14 }
 0x802   :  { %36171 = vmatmul.mubr.msk.f32.gmra.mrb[10].mxu0 %vm17385_vm2, %v44050_v27  ;;  %30182 = vmatprep.mubr.f32.mxu1 %v38228_v11 }
 0x803   :  { %30413 = vmatprep.mubr.f32.mxu0 %v38228_v11  ;;  %v44110_v55 = vpop.permute.xlu0 %31255 }
 0x804   :  { %v31273_v49 = vsel %vm2735_vm6, %v44093_v38, %v44110_v55 }
 0x805   :  { %36166 = vmatmul.mubr.msk.f32.vlgmr.msra.gmra.mrb[62].mxu1 %vm17385_vm2, %v44029_v18 }
 0x806   :  { %36173 = vmatpush1.msk.msra.mxu1 %vm17392_vm0, %v43646_v7  ;;  %36178 = vmatmul.mubr.msk.f32.vlgmr.msra.gmra.mrb[12].mxu0 %vm17385_vm2, %v44029_v18  ;;  %v30635_v7 = vsel %vm1367_vm4, %v43950_v24, %v43921_v39  ;;  %v31272_v39 = vsel %vm2735_vm6, %v44090_v37, %v44093_v38 }
 0x807   :  { %36789 = vmatpush3.msk.msra.mxu0 %vm17392_vm0, %v43389_v53  ;;  %36180 = vmatprep.subr.msk.mxu1 %vm17392_vm0, %v43542_v58  ;;  %v44118_v53 = vpop.permute.xlu1 %31257  ;;  %v30632_v58 = vsel %vm1367_vm4, %v43910_v20, %v43880_v9  ;;  %v44134_v54 = vpop.permute.xlu0 %31259  ;;  %v30643_v9 = vsel %vm1367_vm4, %v44014_v0, %v44000_v16 }
 0x808   :  { %36187 = vmatprep.subr.msk.mxu0 %vm17392_vm0, %v30633_v56  ;;  %30188 = vmatprep.mubr.f32.mxu1 %v38228_v11  ;;  %v31274_v8 = vsel %vm2735_vm6, %v44110_v55, %v44118_v53  ;;  %v31275_v25 = vsel %vm2735_vm6, %v44118_v53, %v44134_v54  ;;  %v31875_v55 = vld [vmem:[%s45637_s3 + $0x178] sm:$0xff] }
 0x809   :  { %30419 = vmatprep.mubr.f32.mxu0 %v38228_v11  ;;  %36167 = vmatmul.mubr.msk.f32.gmra.mrb[64].mxu1 %vm17385_vm2, %v44050_v27 }
 0x80a   :  { %36179 = vmatmul.mubr.msk.f32.gmra.mrb[14].mxu0 %vm17385_vm2, %v44050_v27  ;;  %30336 = vmatprep.mubr.f32.mxu1 %v38228_v11 }
 0x80b   :  { %36790 = vmatprep.mubr.msk.f32.mxu0 %vm17385_vm2, %v44029_v18  ;;  %v44148_v36 = vpop.permute.xlu1 %31261  ;;  %v44173_v62 = vpop.permute.xlu0 %31263 }
 0x80c   :  { %v31276_v19 = vsel %vm2735_vm6, %v44134_v54, %v44148_v36 }
 0x80d   :  { %36174 = vmatmul.mubr.msk.f32.vlgmr.msra.gmra.mrb[66].mxu1 %vm17385_vm2, %v44029_v18 }
 0x80e   :  { %36181 = vmatpush1.msk.msra.mxu1 %vm17392_vm0, %v43692_v26  ;;  %36791 = vmatmul.mubr.msk.f32.vlgmr.msra.gmra.mrb[16].mxu0 %vm17385_vm2, %v44050_v27  ;;  %v44144_v26 = vld [vmem:[%s45637_s3 + $0x150] sm:$0xff] }
 0x80f   :  { %36188 = vmatpush1.msk.msra.mxu0 %vm17392_vm0, %v30632_v58  ;;  %36191 = vmatprep.subr.msk.mxu1 %vm17392_vm0, %v30635_v7  ;;  %v44183_v17 = vpop.permute.xlu1 %31265  ;;  %v44196_v15 = vpop.permute.xlu0 %31878 }
 0x810   :  { %36195 = vmatprep.subr.msk.mxu0 %vm17392_vm0, %v30637_v47  ;;  %30342 = vmatprep.mubr.f32.mxu1 %v38228_v11  ;;  %v31278_v63 = vsel %vm2735_vm6, %v44173_v62, %v44183_v17 }
 0x811   :  { %30740 = vmatprep.mubr.f32.mxu0 %v38228_v11  ;;  %36175 = vmatmul.mubr.msk.f32.gmra.mrb[68].mxu1 %vm17385_vm2, %v44050_v27 }
 0x812   :  { %36189 = vmatmul.mubr.msk.f32.vlgmr.msra.gmra.mrb[18].mxu0 %vm17385_vm2, %v44144_v26  ;;  %30490 = vmatprep.mubr.f32.mxu1 %v38228_v11 }
 0x813   :  { %36196 = vmatpush1.msk.msra.mxu0 %vm17392_vm0, %v30636_v46  ;;  %30746 = vmatprep.mubr.f32.mxu0 %v38228_v11  ;;  %v44205_v31 = vpop.permute.xlu1 %31880  ;;  %v44218_v51 = vpop.permute.xlu0 %31876 }
 0x814   :  { %36203 = vmatprep.subr.msk.mxu0 %vm17392_vm0, %v30641_v41  ;;  %v31903_v28 = vsel %vm19188_vm7, %v44196_v15, %v44205_v31 }
 0x815   :  { %36182 = vmatmul.mubr.msk.f32.vlgmr.msra.gmra.mrb[70].mxu1 %vm17385_vm2, %v44029_v18 }
 0x816   :  { %36190 = vmatmul.mubr.msk.f32.gmra.mrb[20].mxu0 %vm17385_vm2, %v44167_v57  ;;  %36192 = vmatpush1.msk.msra.mxu1 %vm17392_vm0, %v30634_v59 }
 0x817   :  { %36199 = vmatprep.subr.msk.mxu1 %vm17392_vm0, %v30639_v50  ;;  %30496 = vmatprep.mubr.f32.mxu1 %v38228_v11  ;;  %v44225_v45 = vpop.permute.xlu1 %31882  ;;  %v44245_v32 = vpop.permute.xlu0 %31884 }
 0x818   :  { %30894 = vmatprep.mubr.f32.mxu0 %v38228_v11  ;;  %v31905_v2 = vsel %vm19188_vm7, %v44225_v45, %v44245_v32  ;;  %v31904_v29 = vsel %vm19188_vm7, %v44205_v31, %v44225_v45 }
 0x819   :  { %36183 = vmatmul.mubr.msk.f32.gmra.mrb[72].mxu1 %vm17385_vm2, %v44050_v27  ;;  %v31902_v27 = vsel %vm19188_vm7, %v44218_v51, %v44196_v15 }
 0x81a   :  { %36197 = vmatmul.mubr.msk.f32.vlgmr.msra.gmra.mrb[8].mxu0 %vm17385_vm2, %v44144_v26  ;;  %30817 = vmatprep.mubr.f32.mxu1 %v38228_v11 }
 0x81b   :  { %36204 = vmatpush1.msk.msra.mxu0 %vm17392_vm0, %v30640_v6  ;;  %30900 = vmatprep.mubr.f32.mxu0 %v38228_v11  ;;  %v44251_v20 = vpop.permute.xlu1 %31886  ;;  %v44273_v5 = vpop.permute.xlu0 %31888 }
 0x81c   :  { %36793 = vmatprep.subr.msk.mxu0 %vm17392_vm0, %v44000_v16  ;;  %v31907_v10 = vsel %vm19188_vm7, %v44251_v20, %v44273_v5  ;;  %v31906_v37 = vsel %vm19188_vm7, %v44245_v32, %v44251_v20  ;;  %v32510_v32 = vld [vmem:[%s45637_s3 + $0x188] sm:$0xff] }
 0x81d   :  { %36193 = vmatmul.mubr.msk.f32.vlgmr.msra.gmra.mrb[62].mxu1 %vm17385_vm2, %v44144_v26 }
 0x81e   :  { %36198 = vmatmul.mubr.msk.f32.gmra.mrb[10].mxu0 %vm17385_vm2, %v44167_v57  ;;  %36200 = vmatpush1.msk.msra.mxu1 %vm17392_vm0, %v30638_v48  ;;  %v32509_v48 = vld [vmem:[%s45637_s3 + $0x180] sm:$0xff]  ;;  %s38253_s3 = smov 116  }
 0x81f   :  { %36207 = vmatprep.subr.msk.mxu1 %vm17392_vm0, %v30643_v9  ;;  %30823 = vmatprep.mubr.f32.mxu1 %v38228_v11  ;;  %v44285_v24 = vpop.permute.xlu1 %31890  ;;  %v44302_v42 = vpop.permute.xlu0 %31892 }
 0x820   :  { %31048 = vmatprep.mubr.f32.mxu0 %v38228_v11  ;;  %v31909_v13 = vsel %vm19188_vm7, %v44285_v24, %v44302_v42  ;;  %v31908_v58 = vsel %vm19188_vm7, %v44273_v5, %v44285_v24 }
 0x821   :  { %36194 = vmatmul.mubr.msk.f32.gmra.mrb[64].mxu1 %vm17385_vm2, %v44167_v57 }
 0x822   :  { %36205 = vmatmul.mubr.msk.f32.vlgmr.msra.gmra.mrb[12].mxu0 %vm17385_vm2, %v44144_v26  ;;  %30971 = vmatprep.mubr.f32.mxu1 %v38228_v11 }
 0x823   :  { %36794 = vmatpush3.msk.msra.mxu0 %vm17392_vm0, %v44000_v16  ;;  %31054 = vmatprep.mubr.f32.mxu0 %v38228_v11  ;;  %v44308_v34 = vpop.permute.xlu1 %31894  ;;  %v44324_v22 = vpop.permute.xlu0 %31896  ;;  %v31277_v16 = vsel %vm2735_vm6, %v44148_v36, %v44173_v62  ;;  %vm33220_vm6 = vcmask 678912  }
 0x824   :  { %36214 = vmatprep.subr.msk.mxu0 %vm17392_vm0, %v31268_v52  ;;  %v31911_v56 = vsel %vm19188_vm7, %v44308_v34, %v44324_v22  ;;  %v31910_v47 = vsel %vm19188_vm7, %v44302_v42, %v44308_v34 }
 0x825   :  { %36201 = vmatmul.mubr.msk.f32.vlgmr.msra.gmra.mrb[66].mxu1 %vm17385_vm2, %v44144_v26 }
 0x826   :  { %36206 = vmatmul.mubr.msk.f32.gmra.mrb[14].mxu0 %vm17385_vm2, %v44167_v57  ;;  %36208 = vmatpush1.msk.msra.mxu1 %vm17392_vm0, %v30642_v23 }
 0x827   :  { %36218 = vmatprep.subr.msk.mxu1 %vm17392_vm0, %v31270_v4  ;;  %30977 = vmatprep.mubr.f32.mxu1 %v38228_v11  ;;  %v44330_v43 = vpop.permute.xlu1 %31898  ;;  %v44342_v0 = vpop.permute.xlu0 %31900 }
 0x828   :  { %36795 = vmatprep.mubr.msk.f32.mxu0 %vm17385_vm2, %v44144_v26  ;;  %v31913_v7 = vsel %vm19188_vm7, %v44330_v43, %v44342_v0  ;;  %v31912_v36 = vsel %vm19188_vm7, %v44324_v22, %v44330_v43 }
 0x829   :  { %36202 = vmatmul.mubr.msk.f32.gmra.mrb[68].mxu1 %vm17385_vm2, %v44167_v57 }
 0x82a   :  { %36796 = vmatmul.mubr.msk.f32.vlgmr.msra.gmra.mrb[16].mxu0 %vm17385_vm2, %v44167_v57  ;;  %31125 = vmatprep.mubr.f32.mxu1 %v38228_v11 }
 0x82b   :  { %36215 = vmatpush1.msk.msra.mxu0 %vm17392_vm0, %v31267_v60  ;;  %31375 = vmatprep.mubr.f32.mxu0 %v38228_v11  ;;  %v44352_v18 = vpop.permute.xlu1 %32513  ;;  %v32516_v33 = vpop.permute.xlu0 %32515 }
 0x82c   :  { %36222 = vmatprep.subr.msk.mxu0 %vm17392_vm0, %v31272_v39  ;;  %v32538_v59 = vsel %vm19824_vm9, %v44352_v18, %v32516_v33 }
 0x82d   :  { %36209 = vmatmul.mubr.msk.f32.vlgmr.msra.gmra.mrb[70].mxu1 %vm17385_vm2, %v44144_v26 }
 0x82e   :  { %36216 = vmatmul.mubr.msk.f32.vlgmr.msra.gmra.mrb[18].mxu0 %vm17385_vm2, %v31239_v61  ;;  %36219 = vmatpush1.msk.msra.mxu1 %vm17392_vm0, %v31269_v40 }
 0x82f   :  { %36223 = vmatpush1.msk.msra.mxu0 %vm17392_vm0, %v31271_v1  ;;  %36226 = vmatprep.subr.msk.mxu1 %vm17392_vm0, %v31274_v8  ;;  %v32518_v14 = vpop.permute.xlu1 %32517  ;;  %v44388_v38 = vpop.permute.xlu0 %32519 }
 0x830   :  { %36230 = vmatprep.subr.msk.mxu0 %vm17392_vm0, %v31276_v19  ;;  %31131 = vmatprep.mubr.f32.mxu1 %v38228_v11  ;;  %v32540_v46 = vsel %vm19824_vm9, %v32518_v14, %v44388_v38  ;;  %v32539_v62 = vsel %vm19824_vm9, %v32516_v33, %v32518_v14 }
 0x831   :  { %31381 = vmatprep.mubr.f32.mxu0 %v38228_v11  ;;  %36210 = vmatmul.mubr.msk.f32.gmra.mrb[72].mxu1 %vm17385_vm2, %v44167_v57 }
 0x832   :  { %36217 = vmatmul.mubr.msk.f32.gmra.mrb[20].mxu0 %vm17385_vm2, %v31240_v3  ;;  %31452 = vmatprep.mubr.f32.mxu1 %v38228_v11 }
 0x833   :  { %31529 = vmatprep.mubr.f32.mxu0 %v38228_v11  ;;  %v32512_v53 = vpop.permute.xlu1 %32511  ;;  %v32522_v54 = vpop.permute.xlu0 %32521 }
 0x834   :  { %v32537_v15 = vsel %vm19824_vm9, %v32512_v53, %v44352_v18  ;;  %v32541_v52 = vsel %vm19824_vm9, %v44388_v38, %v32522_v54 }
 0x835   :  { %36220 = vmatmul.mubr.msk.f32.vlgmr.msra.gmra.mrb[62].mxu1 %vm17385_vm2, %v31239_v61 }
 0x836   :  { %36224 = vmatmul.mubr.msk.f32.vlgmr.msra.gmra.mrb[8].mxu0 %vm17385_vm2, %v31239_v61  ;;  %36227 = vmatpush1.msk.msra.mxu1 %vm17392_vm0, %v31273_v49 }
 0x837   :  { %36231 = vmatpush1.msk.msra.mxu0 %vm17392_vm0, %v31275_v25  ;;  %36234 = vmatprep.subr.msk.mxu1 %vm17392_vm0, %v31278_v63  ;;  %v32524_v26 = vpop.permute.xlu1 %32523  ;;  %v32526_v41 = vpop.permute.xlu0 %32525 }
 0x838   :  { %36798 = vmatprep.subr.msk.mxu0 %vm17392_vm0, %v44183_v17  ;;  %31458 = vmatprep.mubr.f32.mxu1 %v38228_v11  ;;  %v32542_v9 = vsel %vm19824_vm9, %v32522_v54, %v32524_v26  ;;  %v32543_v45 = vsel %vm19824_vm9, %v32524_v26, %v32526_v41 }
 0x839   :  { %31535 = vmatprep.mubr.f32.mxu0 %v38228_v11  ;;  %36221 = vmatmul.mubr.msk.f32.gmra.mrb[64].mxu1 %vm17385_vm2, %v31240_v3 }
 0x83a   :  { %36225 = vmatmul.mubr.msk.f32.gmra.mrb[10].mxu0 %vm17385_vm2, %v31240_v3  ;;  %31606 = vmatprep.mubr.f32.mxu1 %v38228_v11 }
 0x83b   :  { %31683 = vmatprep.mubr.f32.mxu0 %v38228_v11  ;;  %v32528_v57 = vpop.permute.xlu1 %32527  ;;  %v32530_v50 = vpop.permute.xlu0 %32529 }
 0x83c   :  { %v32545_v20 = vsel %vm19824_vm9, %v32528_v57, %v32530_v50 }
 0x83d   :  { %36228 = vmatmul.mubr.msk.f32.vlgmr.msra.gmra.mrb[66].mxu1 %vm17385_vm2, %v31239_v61 }
 0x83e   :  { %36232 = vmatmul.mubr.msk.f32.vlgmr.msra.gmra.mrb[12].mxu0 %vm17385_vm2, %v31239_v61  ;;  %36235 = vmatpush1.msk.msra.mxu1 %vm17392_vm0, %v31277_v16 }
 0x83f   :  { %36799 = vmatpush3.msk.msra.mxu0 %vm17392_vm0, %v44183_v17  ;;  %36245 = vmatprep.subr.msk.mxu1 %vm17392_vm0, %v31905_v2  ;;  %v32544_v17 = vsel %vm19824_vm9, %v32526_v41, %v32528_v57  ;;  %v32532_v6 = vpop.permute.xlu1 %32531  ;;  %v32534_v31 = vpop.permute.xlu0 %32533 }
 0x840   :  { %36241 = vmatprep.subr.msk.mxu0 %vm17392_vm0, %v31903_v28  ;;  %31612 = vmatprep.mubr.f32.mxu1 %v38228_v11  ;;  %v32546_v4 = vsel %vm19824_vm9, %v32530_v50, %v32532_v6  ;;  %v32547_v60 = vsel %vm19824_vm9, %v32532_v6, %v32534_v31 }
 0x841   :  { %31689 = vmatprep.mubr.f32.mxu0 %v38228_v11  ;;  %36229 = vmatmul.mubr.msk.f32.gmra.mrb[68].mxu1 %vm17385_vm2, %v31240_v3 }
 0x842   :  { %36233 = vmatmul.mubr.msk.f32.gmra.mrb[14].mxu0 %vm17385_vm2, %v31240_v3  ;;  %31760 = vmatprep.mubr.f32.mxu1 %v38228_v11 }
 0x843   :  { %36800 = vmatprep.mubr.msk.f32.mxu0 %vm17385_vm2, %v31239_v61  ;;  %v32536_v51 = vpop.permute.xlu1 %32535 }
 0x844   :  { %v32548_v23 = vsel %vm19824_vm9, %v32534_v31, %v32536_v51 }
 0x845   :  { %36236 = vmatmul.mubr.msk.f32.vlgmr.msra.gmra.mrb[70].mxu1 %vm17385_vm2, %v31239_v61 }
 0x846   :  { %36801 = vmatmul.mubr.msk.f32.vlgmr.msra.gmra.mrb[16].mxu0 %vm17385_vm2, %v31240_v3  ;;  %36246 = vmatpush1.msk.msra.mxu1 %vm17392_vm0, %v31904_v29 }
 0x847   :  { %36242 = vmatpush1.msk.msra.mxu0 %vm17392_vm0, %v31902_v27  ;;  %36253 = vmatprep.subr.msk.mxu1 %vm17392_vm0, %v31909_v13 }
 0x848   :  { %36249 = vmatprep.subr.msk.mxu0 %vm17392_vm0, %v31907_v10  ;;  %31766 = vmatprep.mubr.f32.mxu1 %v38228_v11 }
 0x849   :  { %32010 = vmatprep.mubr.f32.mxu0 %v38228_v11  ;;  %36237 = vmatmul.mubr.msk.f32.gmra.mrb[72].mxu1 %vm17385_vm2, %v31240_v3 }
 0x84a   :  { %36243 = vmatmul.mubr.msk.f32.vlgmr.msra.gmra.mrb[18].mxu0 %vm17385_vm2, %v31874_v30  ;;  %32087 = vmatprep.mubr.f32.mxu1 %v38228_v11 }
 0x84b   :  { %36250 = vmatpush1.msk.msra.mxu0 %vm17392_vm0, %v31906_v37  ;;  %32016 = vmatprep.mubr.f32.mxu0 %v38228_v11 }
 0x84c   :  { %36257 = vmatprep.subr.msk.mxu0 %vm17392_vm0, %v31911_v56 }
 0x84d   :  { %36247 = vmatmul.mubr.msk.f32.vlgmr.msra.gmra.mrb[62].mxu1 %vm17385_vm2, %v31874_v30 }
 0x84e   :  { %36244 = vmatmul.mubr.msk.f32.gmra.mrb[20].mxu0 %vm17385_vm2, %v31875_v55  ;;  %36254 = vmatpush1.msk.msra.mxu1 %vm17392_vm0, %v31908_v58 }
 0x84f   :  { %36261 = vmatprep.subr.msk.mxu1 %vm17392_vm0, %v31913_v7  ;;  %32093 = vmatprep.mubr.f32.mxu1 %v38228_v11  ;;  %v44505_v39 = vpop.permute.xlu0 %33148 }
 0x850   :  { %32164 = vmatprep.mubr.f32.mxu0 %v38228_v11 }
 0x851   :  { %36248 = vmatmul.mubr.msk.f32.gmra.mrb[64].mxu1 %vm17385_vm2, %v31875_v55 }
 0x852   :  { %36251 = vmatmul.mubr.msk.f32.vlgmr.msra.gmra.mrb[8].mxu0 %vm17385_vm2, %v31874_v30  ;;  %32241 = vmatprep.mubr.f32.mxu1 %v38228_v11 }
 0x853   :  { %36258 = vmatpush1.msk.msra.mxu0 %vm17392_vm0, %v31910_v47  ;;  %32170 = vmatprep.mubr.f32.mxu0 %v38228_v11 }
 0x854   :  { %36803 = vmatprep.subr.msk.mxu0 %vm17392_vm0, %v44342_v0 }
 0x855   :  { %36255 = vmatmul.mubr.msk.f32.vlgmr.msra.gmra.mrb[66].mxu1 %vm17385_vm2, %v31874_v30 }
 0x856   :  { %36252 = vmatmul.mubr.msk.f32.gmra.mrb[10].mxu0 %vm17385_vm2, %v31875_v55  ;;  %36262 = vmatpush1.msk.msra.mxu1 %vm17392_vm0, %v31912_v36 }
 0x857   :  { %36272 = vmatprep.subr.msk.mxu1 %vm17392_vm0, %v32540_v46  ;;  %32247 = vmatprep.mubr.f32.mxu1 %v38228_v11 }
 0x858   :  { %32318 = vmatprep.mubr.f32.mxu0 %v38228_v11 }
 0x859   :  { %36256 = vmatmul.mubr.msk.f32.gmra.mrb[68].mxu1 %vm17385_vm2, %v31875_v55 }
 0x85a   :  { %36259 = vmatmul.mubr.msk.f32.vlgmr.msra.gmra.mrb[12].mxu0 %vm17385_vm2, %v31874_v30  ;;  %32395 = vmatprep.mubr.f32.mxu1 %v38228_v11 }
 0x85b   :  { %36804 = vmatpush3.msk.msra.mxu0 %vm17392_vm0, %v44342_v0  ;;  %32324 = vmatprep.mubr.f32.mxu0 %v38228_v11 }
 0x85c   :  { %36268 = vmatprep.subr.msk.mxu0 %vm17392_vm0, %v32538_v59 }
 0x85d   :  { %36263 = vmatmul.mubr.msk.f32.vlgmr.msra.gmra.mrb[70].mxu1 %vm17385_vm2, %v31874_v30 }
 0x85e   :  { %36260 = vmatmul.mubr.msk.f32.gmra.mrb[14].mxu0 %vm17385_vm2, %v31875_v55  ;;  %36273 = vmatpush1.msk.msra.mxu1 %vm17392_vm0, %v32539_v62 }
 0x85f   :  { %36280 = vmatprep.subr.msk.mxu1 %vm17392_vm0, %v32544_v17  ;;  %32401 = vmatprep.mubr.f32.mxu1 %v38228_v11 }
 0x860   :  { %36805 = vmatprep.mubr.msk.f32.mxu0 %vm17385_vm2, %v31874_v30 }
 0x861   :  { %36264 = vmatmul.mubr.msk.f32.gmra.mrb[72].mxu1 %vm17385_vm2, %v31875_v55 }
 0x862   :  { %36806 = vmatmul.mubr.msk.f32.vlgmr.msra.gmra.mrb[16].mxu0 %vm17385_vm2, %v31875_v55  ;;  %32722 = vmatprep.mubr.f32.mxu1 %v38228_v11 }
 0x863   :  { %36269 = vmatpush1.msk.msra.mxu0 %vm17392_vm0, %v32537_v15  ;;  %32645 = vmatprep.mubr.f32.mxu0 %v38228_v11 }
 0x864   :  { %36276 = vmatprep.subr.msk.mxu0 %vm17392_vm0, %v32542_v9 }
 0x865   :  { %36274 = vmatmul.mubr.msk.f32.vlgmr.msra.gmra.mrb[62].mxu1 %vm17385_vm2, %v32509_v48 }
 0x866   :  { %36270 = vmatmul.mubr.msk.f32.vlgmr.msra.gmra.mrb[18].mxu0 %vm17385_vm2, %v32509_v48  ;;  %36281 = vmatpush1.msk.msra.mxu1 %vm17392_vm0, %v32543_v45 }
 0x867   :  { %36277 = vmatpush1.msk.msra.mxu0 %vm17392_vm0, %v32541_v52  ;;  %36288 = vmatprep.subr.msk.mxu1 %vm17392_vm0, %v32548_v23 }
 0x868   :  { %36284 = vmatprep.subr.msk.mxu0 %vm17392_vm0, %v32546_v4  ;;  %32651 = vmatprep.mubr.f32.mxu0 %v38228_v11 }
 0x869   :  { %32728 = vmatprep.mubr.f32.mxu1 %v38228_v11 }
 0x86a   :  { %36271 = vmatmul.mubr.msk.f32.gmra.mrb[20].mxu0 %vm17385_vm2, %v32510_v32  ;;  %36275 = vmatmul.mubr.msk.f32.gmra.mrb[64].mxu1 %vm17385_vm2, %v32510_v32 }
 0x86b   :  { %32799 = vmatprep.mubr.f32.mxu0 %v38228_v11  ;;  %32876 = vmatprep.mubr.f32.mxu1 %v38228_v11 }
 0x86e   :  { %36278 = vmatmul.mubr.msk.f32.vlgmr.msra.gmra.mrb[8].mxu0 %vm17385_vm2, %v32509_v48  ;;  %36282 = vmatmul.mubr.msk.f32.vlgmr.msra.gmra.mrb[66].mxu1 %vm17385_vm2, %v32509_v48 }
 0x86f   :  { %36285 = vmatpush1.msk.msra.mxu0 %vm17392_vm0, %v32545_v20  ;;  %36289 = vmatpush1.msk.msra.mxu1 %vm17392_vm0, %v32547_v60 }
 0x870   :  { %36808 = vmatprep.subr.msk.mxu0 %vm17392_vm0, %v32536_v51  ;;  %32805 = vmatprep.mubr.f32.mxu0 %v38228_v11 }
 0x871   :  { %32882 = vmatprep.mubr.f32.mxu1 %v38228_v11 }
 0x872   :  { %36279 = vmatmul.mubr.msk.f32.gmra.mrb[10].mxu0 %vm17385_vm2, %v32510_v32  ;;  %36283 = vmatmul.mubr.msk.f32.gmra.mrb[68].mxu1 %vm17385_vm2, %v32510_v32 }
 0x873   :  { %32953 = vmatprep.mubr.f32.mxu0 %v38228_v11  ;;  %33030 = vmatprep.mubr.f32.mxu1 %v38228_v11 }
 0x876   :  { %36286 = vmatmul.mubr.msk.f32.vlgmr.msra.gmra.mrb[12].mxu0 %vm17385_vm2, %v32509_v48  ;;  %36290 = vmatmul.mubr.msk.f32.vlgmr.msra.gmra.mrb[70].mxu1 %vm17385_vm2, %v32509_v48 }
 0x877   :  { %36809 = vmatpush3.msk.msra.mxu0 %vm17392_vm0, %v32536_v51  ;;  %32959 = vmatprep.mubr.f32.mxu0 %v38228_v11 }
 0x878   :  { %33036 = vmatprep.mubr.f32.mxu1 %v38228_v11 }
 0x87a   :  { %36287 = vmatmul.mubr.msk.f32.gmra.mrb[14].mxu0 %vm17385_vm2, %v32510_v32  ;;  %36291 = vmatmul.mubr.msk.f32.gmra.mrb[72].mxu1 %vm17385_vm2, %v32510_v32  ;;  %v44516_v49 = vpop.permute.xlu1 %33153 }
 0x87b   :  { %36810 = vmatprep.mubr.msk.f32.mxu0 %vm17385_vm2, %v32509_v48 }
 0x87e   :  { %36811 = vmatmul.mubr.msk.f32.vlgmr.msra.gmra.mrb[16].mxu0 %vm17385_vm2, %v32510_v32 }
 0x87f   :  { %36843 = vmatprep.mubr.msk.f32.mxu0 %vm38233_vm3, %v38228_v11 }
 0x938   :  { %v32724_v61 = vpop.f32.mrb[62].mxu1 }
 0x939   :  { %v32647_v40 = vpop.f32.mrb[18].mxu0  ;;  %v44508_v5 = vadd.f32 %v44505_v39, %v32724_v61  ;;  %v32726_v1 = vpop.f32.mrb[63].mxu1 }
 0x93a   :  { %v36998_v8 = vadd.f32 %v32647_v40, %v42182_v12  ;;  %v32649_v24 = vpop.f32.mrb[19].mxu0  ;;  %v44512_v19 = vadd.f32 %v44505_v39, %v32726_v1 }
 0x93b   :  { %v33184_v3 = vmax.f32 %v44508_v5, 0.0  ;;  %v36999_v42 = vadd.f32 %v32649_v24, %v42189_v35 }
 0x93c   :  { %v44519_v34 = vadd.f32 %v36998_v8, %v44505_v39  ;;  %v33185_v25 = vmax.f32 %v44512_v19, 0.0 }
 0x93d   :  { %v44523_v63 = vadd.f32 %v36999_v42, %v44505_v39  ;;  %v32653_v22 = vpop.f32.mrb[20].mxu0  ;;  %v32730_v12 = vpop.f32.mrb[64].mxu1  ;;  %33291 = vrot.lane.b32.xlu1 %v33184_v3, %s38229_s18 }
 0x93e   :  { %v33182_v43 = vmax.f32 %v44519_v34, 0.0  ;;  %v37000_v35 = vadd.f32 %v32653_v22, %v42208_v21  ;;  %v32655_v16 = vpop.f32.mrb[21].mxu0  ;;  %v32732_v2 = vpop.f32.mrb[65].mxu1  ;;  %33293 = vrot.lane.b32.xlu0 %v33185_v25, %s38229_s18  ;;  %v44534_v0 = vadd.f32 %v44516_v49, %v32730_v12 }
 0x93f   :  { %v33183_v28 = vmax.f32 %v44523_v63, 0.0  ;;  %v37001_v18 = vadd.f32 %v32655_v16, %v42214_v44  ;;  %v44539_v29 = vadd.f32 %v44516_v49, %v32732_v2 }
 0x940   :  { %v33197_v33 = vmax.f32 %v44534_v0, 0.0  ;;  %v44543_v21 = vadd.f32 %v37000_v35, %v44516_v49 }
 0x941   :  { %v44546_v27 = vadd.f32 %v37001_v18, %v44516_v49  ;;  %v33198_v13 = vmax.f32 %v44539_v29, 0.0  ;;  %v32801_v14 = vpop.f32.mrb[8].mxu0  ;;  %v32878_v10 = vpop.f32.mrb[66].mxu1 }
 0x942   :  { %v44550_v30 = vadd.f32 %v44505_v39, %v32801_v14  ;;  %v33162_v44 = vadd.f32 %v44505_v39, %v32878_v10  ;;  %v32803_v37 = vpop.f32.mrb[9].mxu0  ;;  %v32880_v38 = vpop.f32.mrb[67].mxu1  ;;  %33317 = vrot.lane.b32.xlu0 %v33197_v33, %s38229_s18  ;;  %v33195_v56 = vmax.f32 %v44543_v21, 0.0 }
 0x943   :  { %v33196_v55 = vmax.f32 %v44546_v27, 0.0  ;;  %v44559_v53 = vadd.f32 %v44505_v39, %v32803_v37  ;;  %v33163_v58 = vadd.f32 %v44505_v39, %v32880_v38  ;;  %33319 = vrot.lane.b32.xlu1 %v33198_v13, %s38229_s18 }
 0x944   :  { %v33186_v7 = vmax.f32 %v44550_v30, 0.0  ;;  %v33188_v54 = vmax.f32 %v33162_v44, 0.0 }
 0x945   :  { %v33187_v47 = vmax.f32 %v44559_v53, 0.0  ;;  %v33189_v26 = vmax.f32 %v33163_v58, 0.0  ;;  %v32807_v36 = vpop.f32.mrb[10].mxu0  ;;  %v32884_v46 = vpop.f32.mrb[68].mxu1 }
 0x946   :  { %33214 = vst [vmem:[#allocation4 + $0x30] sm:$0xff] %v33188_v54  ;;  %v44568_v41 = vadd.f32 %v44516_v49, %v32807_v36  ;;  %v33175_v57 = vadd.f32 %v44516_v49, %v32884_v46  ;;  %v32809_v59 = vpop.f32.mrb[11].mxu0  ;;  %v32886_v62 = vpop.f32.mrb[69].mxu1  ;;  %33299 = vrot.lane.b32.xlu0 %v33188_v54, %s38229_s18 }
 0x947   :  { %33215 = vst [vmem:[#allocation4 + $0x38] sm:$0xff] %v33189_v26  ;;  %v44573_v50 = vadd.f32 %v44516_v49, %v32809_v59  ;;  %v33176_v17 = vadd.f32 %v44516_v49, %v32886_v62 }
 0x948   :  { %v33199_v6 = vmax.f32 %v44568_v41, 0.0  ;;  %v33201_v15 = vmax.f32 %v33175_v57, 0.0 }
 0x949   :  { %v33200_v48 = vmax.f32 %v44573_v50, 0.0  ;;  %v33202_v31 = vmax.f32 %v33176_v17, 0.0  ;;  %v32955_v9 = vpop.f32.mrb[12].mxu0  ;;  %v33032_v51 = vpop.f32.mrb[70].mxu1 }
 0x94a   :  { %33228 = vst [vmem:[#allocation4 + $0x98] sm:$0xff] %v33201_v15  ;;  %v44579_v45 = vadd.f32 %v44505_v39, %v32955_v9  ;;  %v44582_v52 = vadd.f32 %v44505_v39, %v33032_v51  ;;  %v32957_v23 = vpop.f32.mrb[13].mxu0  ;;  %v33034_v4 = vpop.f32.mrb[71].mxu1  ;;  %33325 = vrot.lane.b32.xlu1 %v33201_v15, %s38229_s18 }
 0x94b   :  { %33229 = vst [vmem:[#allocation4 + $0xa0] sm:$0xff] %v33202_v31  ;;  %v44586_v32 = vadd.f32 %v44505_v39, %v32957_v23  ;;  %v44589_v20 = vadd.f32 %v44505_v39, %v33034_v4 }
 0x94c   :  { %v33190_v60 = vmax.f32 %v44579_v45, 0.0  ;;  %v33192_v61 = vmax.f32 %v44582_v52, 0.0 }
 0x94d   :  { %v33191_v40 = vmax.f32 %v44586_v32, 0.0  ;;  %v33193_v1 = vmax.f32 %v44589_v20, 0.0  ;;  %v32961_v8 = vpop.f32.mrb[14].mxu0  ;;  %v33038_v24 = vpop.f32.mrb[72].mxu1 }
 0x94e   :  { %v44596_v42 = vadd.f32 %v44516_v49, %v32961_v8  ;;  %v33179_v22 = vadd.f32 %v44516_v49, %v33038_v24  ;;  %v32963_v12 = vpop.f32.mrb[15].mxu0  ;;  %v33040_v35 = vpop.f32.mrb[73].mxu1  ;;  %33307 = vrot.lane.b32.xlu1 %v33192_v61, %s38229_s18 }
 0x94f   :  { %v44601_v16 = vadd.f32 %v44516_v49, %v32963_v12  ;;  %v44604_v2 = vadd.f32 %v44516_v49, %v33040_v35  ;;  %33309 = vrot.lane.b32.xlu0 %v33193_v1, %s38229_s18 }
 0x950   :  { %v33203_v18 = vmax.f32 %v44596_v42, 0.0  ;;  %v33205_v14 = vmax.f32 %v33179_v22, 0.0 }
 0x951   :  { %v33204_v10 = vmax.f32 %v44601_v16, 0.0  ;;  %v33206_v44 = vmax.f32 %v44604_v2, 0.0  ;;  %v36812_v37 = vpop.f32.mrb[16].mxu0 }
 0x952   :  { %v33181_v38 = vadd.f32 %v36812_v37, %v44516_v49  ;;  %v33109_v58 = vpop.f32.mrb[17].mxu0 }
 0x953   :  { %v33168_v54 = vadd.f32 %v44505_v39, %v33109_v58  ;;  %33335 = vrot.lane.b32.xlu1 %v33206_v44, %s38229_s18  ;;  %33333 = vrot.lane.b32.xlu0 %v33205_v14, %s38229_s18 }
 0x954   :  { %v33207_v26 = vmax.f32 %v33181_v38, 0.0 }
 0x955   :  { %v33194_v36 = vmax.f32 %v33168_v54, 0.0 }
 0x956   :  { %33234 = vst.msk [vmem:[#allocation4 + $0xc8] sm:$0xff] %vm33220_vm6, %v33207_v26 }
 0x957   :  { %33221 = vst.msk [vmem:[#allocation4 + $0x60] sm:$0xff] %vm33220_vm6, %v33194_v36  ;;  %33313 = vrot.lane.b32.xlu1 %v33195_v56, %s38229_s18  ;;  %33287 = vrot.lane.b32.xlu0 %v33182_v43, %s38229_s18 }
 0x95b   :  { %33315 = vrot.lane.b32.xlu1 %v33196_v55, %s38229_s18  ;;  %33289 = vrot.lane.b32.xlu0 %v33183_v28, %s38229_s18 }
 0x95d   :  { %v44654_v39 = vld [vmem:[#allocation4 + $0xc8] sm:$0xff] }
 0x95e   :  { %v44656_v49 = vld [vmem:[#allocation4 + $0x60] sm:$0xff] }
 0x95f   :  { %33321 = vrot.lane.b32.xlu1 %v33199_v6, %s38229_s18  ;;  %33295 = vrot.lane.b32.xlu0 %v33186_v7, %s38229_s18 }
 0x963   :  { %33323 = vrot.lane.b32.xlu1 %v33200_v48, %s38229_s18  ;;  %33297 = vrot.lane.b32.xlu0 %v33187_v47, %s38229_s18 }
 0x967   :  { %33329 = vrot.lane.b32.xlu1 %v33203_v18, %s38229_s18  ;;  %33303 = vrot.lane.b32.xlu0 %v33190_v60, %s38229_s18 }
 0x96b   :  { %33331 = vrot.lane.b32.xlu1 %v33204_v10, %s38229_s18  ;;  %33305 = vrot.lane.b32.xlu0 %v33191_v40, %s38229_s18 }
 0x96f   :  { %33337 = vrot.lane.b32.xlu1 %v44654_v39, %s38229_s18  ;;  %33311 = vrot.lane.b32.xlu0 %v44656_v49, %s38229_s18 }
 0x9af   :  { %v33292_v46 = vpop.permute.xlu1 %33291 }
 0x9b0   :  { %v33294_v57 = vpop.permute.xlu0 %33293 }
 0x9b1   :  { %v33341_v59 = vsel %vm1367_vm4, %v33292_v46, %v33294_v57 }
 0x9b2   :  { %v44665_v62 = vmax.f32 %v33184_v3, %v33341_v59 }
 0x9b4   :  { %v33318_v17 = vpop.permute.xlu0 %33317  ;;  %33445 = vrot.lane.b32.xlu1 %v44665_v62, %s38238_s12 }
 0x9b5   :  { %v33320_v15 = vpop.permute.xlu1 %33319 }
 0x9b6   :  { %v33353_v31 = vsel %vm1367_vm4, %v33318_v17, %v33320_v15 }
 0x9b7   :  { %v44672_v9 = vmax.f32 %v33197_v33, %v33353_v31 }
 0x9b8   :  { %v44678_v52 = vpop.permute.xlu0 %33299 }
 0x9b9   :  { %33471 = vrot.lane.b32.xlu1 %v44672_v9, %s38238_s12 }
 0x9bc   :  { %v44676_v51 = vpop.permute.xlu1 %33325 }
 0x9c0   :  { %v33308_v5 = vpop.permute.xlu1 %33307 }
 0x9c1   :  { %v44680_v3 = vpop.permute.xlu0 %33309 }
 0x9c2   :  { %v33349_v23 = vsel %vm1367_vm4, %v33308_v5, %v44680_v3 }
 0x9c3   :  { %v44684_v4 = vmax.f32 %v33192_v61, %v33349_v23 }
 0x9c5   :  { %v44686_v8 = vpop.permute.xlu0 %33333  ;;  %33461 = vrot.lane.b32.xlu1 %v44684_v4, %s38238_s12  ;;  %v33336_v0 = vpop.permute.xlu1 %33335 }
 0x9c6   :  { %v33361_v33 = vsel %vm1367_vm4, %v44686_v8, %v33336_v0 }
 0x9c7   :  { %v44692_v24 = vmax.f32 %v33205_v14, %v33361_v33 }
 0x9c9   :  { %v33288_v22 = vpop.permute.xlu0 %33287  ;;  %33487 = vrot.lane.b32.xlu1 %v44692_v24, %s38238_s12  ;;  %v33314_v12 = vpop.permute.xlu1 %33313 }
 0x9cd   :  { %v33290_v35 = vpop.permute.xlu0 %33289  ;;  %v33316_v37 = vpop.permute.xlu1 %33315 }
 0x9ce   :  { %v33340_v61 = vsel %vm1367_vm4, %v33290_v35, %v33292_v46  ;;  %v33351_v38 = vsel %vm1367_vm4, %v33314_v12, %v33316_v37  ;;  %v33339_v14 = vsel %vm1367_vm4, %v33288_v22, %v33290_v35  ;;  %v33352_v21 = vsel %vm1367_vm4, %v33316_v37, %v33318_v17 }
 0x9cf   :  { %v44700_v58 = vmax.f32 %v33183_v28, %v33340_v61  ;;  %v44704_v54 = vmax.f32 %v33195_v56, %v33351_v38  ;;  %v44714_v63 = vmax.f32 %v33182_v43, %v33339_v14  ;;  %v44728_v34 = vmax.f32 %v33196_v55, %v33352_v21 }
 0x9d1   :  { %v33296_v26 = vpop.permute.xlu0 %33295  ;;  %33443 = vrot.lane.b32.xlu0 %v44700_v58, %s38238_s12  ;;  %33467 = vrot.lane.b32.xlu1 %v44704_v54, %s38238_s12  ;;  %v33322_v36 = vpop.permute.xlu1 %33321 }
 0x9d2   :  { %v33354_v46 = vsel %vm1367_vm4, %v33320_v15, %v33322_v36  ;;  %v33342_v29 = vsel %vm1367_vm4, %v33294_v57, %v33296_v26 }
 0x9d3   :  { %v44718_v28 = vmax.f32 %v33198_v13, %v33354_v46  ;;  %v44745_v27 = vmax.f32 %v33185_v25, %v33342_v29 }
 0x9d5   :  { %v33298_v56 = vpop.permute.xlu0 %33297  ;;  %33441 = vrot.lane.b32.xlu0 %v44714_v63, %s38238_s12  ;;  %33473 = vrot.lane.b32.xlu1 %v44718_v28, %s38238_s12  ;;  %v33324_v59 = vpop.permute.xlu1 %33323 }
 0x9d6   :  { %v33355_v15 = vsel %vm1367_vm4, %v33322_v36, %v33324_v59  ;;  %v33356_v13 = vsel %vm1367_vm4, %v33324_v59, %v44676_v51  ;;  %v33344_v50 = vsel %vm1367_vm4, %v33298_v56, %v44678_v52 }
 0x9d7   :  { %v44732_v43 = vmax.f32 %v33199_v6, %v33355_v15  ;;  %v33407_v55 = vmax.f32 %v33200_v48, %v33356_v13  ;;  %v33343_v6 = vsel %vm1367_vm4, %v33296_v26, %v33298_v56  ;;  %v33394_v30 = vmax.f32 %v33187_v47, %v33344_v50 }
 0x9d8   :  { %v44759_v19 = vmax.f32 %v33186_v7, %v33343_v6 }
 0x9d9   :  { %33469 = vrot.lane.b32.xlu0 %v44728_v34, %s38238_s12  ;;  %33475 = vrot.lane.b32.xlu1 %v44732_v43, %s38238_s12  ;;  %v44741_v17 = vpop.permute.xlu1 %33329  ;;  %v44749_v41 = vpop.permute.xlu0 %33303 }
 0x9dd   :  { %33447 = vrot.lane.b32.xlu0 %v44745_v27, %s38238_s12  ;;  %33477 = vrot.lane.b32.xlu1 %v33407_v55, %s38238_s12  ;;  %v33332_v57 = vpop.permute.xlu1 %33331  ;;  %v33306_v48 = vpop.permute.xlu0 %33305 }
 0x9de   :  { %v33359_v31 = vsel %vm1367_vm4, %v44741_v17, %v33332_v57  ;;  %v33348_v7 = vsel %vm1367_vm4, %v33306_v48, %v33308_v5  ;;  %v33347_v53 = vsel %vm1367_vm4, %v44749_v41, %v33306_v48  ;;  %v33360_v32 = vsel %vm1367_vm4, %v33332_v57, %v44686_v8 }
 0x9df   :  { %v44763_v25 = vmax.f32 %v33203_v18, %v33359_v31  ;;  %v44783_v18 = vmax.f32 %v33191_v40, %v33348_v7  ;;  %v44797_v47 = vmax.f32 %v33190_v60, %v33347_v53  ;;  %v44805_v40 = vmax.f32 %v33204_v10, %v33360_v32 }
 0x9e1   :  { %33449 = vrot.lane.b32.xlu0 %v44759_v19, %s38238_s12  ;;  %33483 = vrot.lane.b32.xlu1 %v44763_v25, %s38238_s12  ;;  %v33338_v23 = vpop.permute.xlu1 %33337  ;;  %v33312_v2 = vpop.permute.xlu0 %33311 }
 0x9e2   :  { %v44772_v33 = vmax.f32 %v44654_v39, %v33338_v23  ;;  %v33362_v42 = vsel %vm1367_vm4, %v33336_v0, %v33338_v23  ;;  %v33350_v45 = vsel %vm1367_vm4, %v44680_v3, %v33312_v2 }
 0x9e3   :  { %v44787_v39 = vmax.f32 %v33206_v44, %v33362_v42  ;;  %v44810_v44 = vmax.f32 %v44656_v49, %v33312_v2  ;;  %v44818_v60 = vmax.f32 %v33193_v1, %v33350_v45 }
 0x9e5   :  { %33451 = vrot.lane.b32.xlu0 %v33394_v30, %s38238_s12  ;;  %33491 = vrot.lane.b32.xlu1 %v44772_v33, %s38238_s12 }
 0x9e9   :  { %33459 = vrot.lane.b32.xlu0 %v44783_v18, %s38238_s12  ;;  %33489 = vrot.lane.b32.xlu1 %v44787_v39, %s38238_s12 }
 0x9ed   :  { %33457 = vrot.lane.b32.xlu0 %v44797_v47, %s38238_s12 }
 0x9f1   :  { %33485 = vrot.lane.b32.xlu0 %v44805_v40, %s38238_s12 }
 0x9f5   :  { %33465 = vrot.lane.b32.xlu0 %v44810_v44, %s38238_s12 }
 0x9f9   :  { %33463 = vrot.lane.b32.xlu0 %v44818_v60, %s38238_s12 }
 0xa26   :  { %v33446_v16 = vpop.permute.xlu1 %33445 }
 0xa2b   :  { %v33472_v10 = vpop.permute.xlu1 %33471 }
 0xa37   :  { %v44822_v5 = vpop.permute.xlu1 %33461 }
 0xa3b   :  { %v44824_v8 = vpop.permute.xlu1 %33487 }
 0xa43   :  { %v33444_v49 = vpop.permute.xlu0 %33443  ;;  %v33468_v0 = vpop.permute.xlu1 %33467 }
 0xa44   :  { %v33494_v3 = vsel %vm6862_vm12, %v33444_v49, %v33446_v16 }
 0xa45   :  { %v44828_v22 = vmax.f32 %v44700_v58, %v33494_v3 }
 0xa47   :  { %v33442_v20 = vpop.permute.xlu0 %33441  ;;  %v33474_v1 = vpop.permute.xlu1 %33473  ;;  %33778 = vrot.lane.b32.xlu0 %v44828_v22, %s38253_s3  ;;  %33712 = vst.msk [vmem:[#allocation6 + $0x50] sm:$0xff] %vm33598_vm14, %v44828_v22 }
 0xa48   :  { %v33493_v12 = vsel %vm6862_vm12, %v33442_v20, %v33444_v49  ;;  %v33507_v35 = vsel %vm6862_vm12, %v33472_v10, %v33474_v1 }
 0xa49   :  { %v33543_v37 = vmax.f32 %v44714_v63, %v33493_v12  ;;  %v44838_v61 = vmax.f32 %v44672_v9, %v33507_v35 }
 0xa4b   :  { %v33470_v38 = vpop.permute.xlu0 %33469  ;;  %v33476_v58 = vpop.permute.xlu1 %33475  ;;  %33802 = vrot.lane.b32.xlu0 %v44828_v22, %s38254_s2  ;;  %33599 = vst.msk [vmem:[#allocation6] sm:$0xff] %vm33598_vm14, %v33543_v37  ;;  %33825 = vst.msk [vmem:[#allocation6 + $0xa8] sm:$0xff] %vm33598_vm14, %v44838_v61 }
 0xa4c   :  { %v33505_v14 = vsel %vm6862_vm12, %v33468_v0, %v33470_v38  ;;  %v33506_v26 = vsel %vm6862_vm12, %v33470_v38, %v33472_v10  ;;  %v33508_v36 = vsel %vm6862_vm12, %v33474_v1, %v33476_v58 }
 0xa4d   :  { %v33556_v9 = vmax.f32 %v44704_v54, %v33505_v14  ;;  %v33557_v46 = vmax.f32 %v44728_v34, %v33506_v26  ;;  %v44851_v63 = vmax.f32 %v44718_v28, %v33508_v36  ;;  %v38259_v14 = vmov 0.0|0.0  }
 0xa4e   :  { %36960 = vmatprep.subr.bf16.mxu0 %v38259_v14 }
 0xa4f   :  { %v33448_v21 = vpop.permute.xlu0 %33447  ;;  %v33478_v56 = vpop.permute.xlu1 %33477  ;;  %33618 = vrot.lane.b32.xlu0 %v33543_v37, %s38231_s15  ;;  %33780 = vrot.lane.b32.xlu1 %v33557_v46, %s38253_s3  ;;  %33600 = vst.msk [vmem:[#allocation6 + $0x8] sm:$0xff] %vm33598_vm14, %v33556_v9  ;;  %33713 = vst.msk [vmem:[#allocation6 + $0x58] sm:$0xff] %vm33598_vm14, %v33557_v46 }
 0xa50   :  { %33937 = vst.msk [vmem:[#allocation6 + $0xf8] sm:$0xff] %vm33598_vm14, %v44851_v63  ;;  %v33495_v54 = vsel %vm6862_vm12, %v33446_v16, %v33448_v21  ;;  %v33509_v59 = vsel %vm6862_vm12, %v33476_v58, %v33478_v56 }
 0xa51   :  { %v33545_v28 = vmax.f32 %v44665_v62, %v33495_v54  ;;  %v44863_v15 = vmax.f32 %v44732_v43, %v33509_v59 }
 0xa53   :  { %33587 = vst [vmem:[#allocation5 + $0x88] sm:$0xff] %v44863_v15  ;;  %v33450_v34 = vpop.permute.xlu0 %33449  ;;  %v33484_v29 = vpop.permute.xlu1 %33483  ;;  %33642 = vrot.lane.b32.xlu0 %v33543_v37, %s38250_s23  ;;  %33804 = vrot.lane.b32.xlu1 %v33557_v46, %s38254_s2  ;;  %33824 = vst.msk [vmem:[#allocation6 + $0xa0] sm:$0xff] %vm33598_vm14, %v33545_v28 }
 0xa54   :  { %v33496_v13 = vsel %vm6862_vm12, %v33448_v21, %v33450_v34 }
 0xa55   :  { %v44871_v55 = vmax.f32 %v44745_v27, %v33496_v13 }
 0xa57   :  { %v33452_v6 = vpop.permute.xlu0 %33451  ;;  %v33492_v62 = vpop.permute.xlu1 %33491  ;;  %33666 = vrot.lane.b32.xlu0 %v33543_v37, %s38253_s3  ;;  %33620 = vrot.lane.b32.xlu1 %v33556_v9, %s38231_s15  ;;  %33936 = vst.msk [vmem:[#allocation6 + $0xf0] sm:$0xff] %vm33598_vm14, %v44871_v55 }
 0xa58   :  { %v33497_v43 = vsel %vm6862_vm12, %v33450_v34, %v33452_v6  ;;  %v33568_v57 = vmax.f32 %v44772_v33, %v33492_v62 }
 0xa59   :  { %v44880_v31 = vmax.f32 %v44759_v19, %v33497_v43 }
 0xa5a   :  { %33595 = vst.msk [vmem:[#allocation5 + $0xc8] sm:$0xff] %vm33581_vm8, %v33568_v57  ;;  %v34047_v27 = vld [vmem:[#allocation5 + $0x88] sm:$0xff] }
 0xa5b   :  { %v33460_v50 = vpop.permute.xlu0 %33459  ;;  %v33490_v48 = vpop.permute.xlu1 %33489  ;;  %33690 = vrot.lane.b32.xlu0 %v33543_v37, %s38254_s2  ;;  %33644 = vrot.lane.b32.xlu1 %v33556_v9, %s38250_s23  ;;  %34048 = vst.msk [vmem:[#allocation6 + $0x140] sm:$0xff] %vm33598_vm14, %v44880_v31  ;;  %34049 = vst.msk [vmem:[#allocation6 + $0x148] sm:$0xff] %vm33598_vm14, %v34047_v27 }
 0xa5c   :  { %v33502_v23 = vsel %vm6862_vm12, %v33460_v50, %v44822_v5  ;;  %v33515_v19 = vsel %vm6862_vm12, %v44824_v8, %v33490_v48  ;;  %v33516_v33 = vsel %vm6862_vm12, %v33490_v48, %v33492_v62 }
 0xa5d   :  { %v33552_v30 = vmax.f32 %v44783_v18, %v33502_v23  ;;  %v44895_v7 = vmax.f32 %v44692_v24, %v33515_v19  ;;  %v44898_v42 = vmax.f32 %v44787_v39, %v33516_v33  ;;  %v34270_v23 = vld [vmem:[%s45640_s6 + $0x10] sm:$0xff] }
 0xa5f   :  { %v33458_v53 = vpop.permute.xlu0 %33457  ;;  %33730 = vrot.lane.b32.xlu0 %v44828_v22, %s38231_s15  ;;  %33668 = vrot.lane.b32.xlu1 %v33556_v9, %s38253_s3 }
 0xa60   :  { %v33501_v32 = vsel %vm6862_vm12, %v33458_v53, %v33460_v50  ;;  %v34268_v50 = vld [vmem:[%s45640_s6] sm:$0xff]  ;;  %v34269_v53 = vld [vmem:[%s45640_s6 + $0x8] sm:$0xff] }
 0xa61   :  { %v33551_v2 = vmax.f32 %v44797_v47, %v33501_v32  ;;  %v34051_v54 = vld [vmem:[#allocation5 + $0xc8] sm:$0xff] }
 0xa63   :  { %v33486_v45 = vpop.permute.xlu0 %33485  ;;  %33754 = vrot.lane.b32.xlu0 %v44828_v22, %s38250_s23  ;;  %33692 = vrot.lane.b32.xlu1 %v33556_v9, %s38254_s2 }
 0xa64   :  { %v33513_v24 = vsel %vm6862_vm12, %v33484_v29, %v33486_v45  ;;  %v33514_v18 = vsel %vm6862_vm12, %v33486_v45, %v44824_v8 }
 0xa65   :  { %v33564_v39 = vmax.f32 %v44763_v25, %v33513_v24  ;;  %v33565_v16 = vmax.f32 %v44805_v40, %v33514_v18 }
 0xa67   :  { %v33466_v10 = vpop.permute.xlu0 %33465  ;;  %33842 = vrot.lane.b32.xlu0 %v33545_v28, %s38231_s15  ;;  %33732 = vrot.lane.b32.xlu1 %v33557_v46, %s38231_s15 }
 0xa68   :  { %v33555_v47 = vmax.f32 %v44810_v44, %v33466_v10 }
 0xa6a   :  { %33582 = vst.msk [vmem:[#allocation5 + $0x60] sm:$0xff] %vm33581_vm8, %v33555_v47 }
 0xa6b   :  { %v33464_v49 = vpop.permute.xlu0 %33463  ;;  %33866 = vrot.lane.b32.xlu0 %v33545_v28, %s38250_s23  ;;  %33756 = vrot.lane.b32.xlu1 %v33557_v46, %s38250_s23 }
 0xa6c   :  { %v33503_v8 = vsel %vm6862_vm12, %v44822_v5, %v33464_v49  ;;  %v33504_v25 = vsel %vm6862_vm12, %v33464_v49, %v33466_v10  ;;  %vm33611_vm12 = vcmask 15368  }
 0xa6d   :  { %v33553_v40 = vmax.f32 %v44684_v4, %v33503_v8  ;;  %v44924_v0 = vmax.f32 %v44818_v60, %v33504_v25  ;;  %v34209_v60 = vld [vmem:[%s45639_s5 + $0x8] sm:$0xff] }
 0xa6e   :  { %34468 = vmatprep.mubr.f32.mxu1 %v34209_v60 }
 0xa6f   :  { %33890 = vrot.lane.b32.xlu0 %v33545_v28, %s38253_s3  ;;  %33844 = vrot.lane.b32.xlu1 %v44838_v61, %s38231_s15 }
 0xa71   :  { %v44996_v1 = vld [vmem:[#allocation5 + $0x60] sm:$0xff] }
 0xa73   :  { %33914 = vrot.lane.b32.xlu0 %v33545_v28, %s38254_s2  ;;  %33868 = vrot.lane.b32.xlu1 %v44838_v61, %s38250_s23 }
 0xa77   :  { %33954 = vrot.lane.b32.xlu0 %v44871_v55, %s38231_s15  ;;  %33892 = vrot.lane.b32.xlu1 %v44838_v61, %s38253_s3 }
 0xa7b   :  { %33790 = vrot.lane.b32.xlu0 %v33552_v30, %s38255_s17  ;;  %33916 = vrot.lane.b32.xlu1 %v44838_v61, %s38254_s2 }
 0xa7f   :  { %33605 = vrot.lane.b32.xlu0 %v33551_v2, %s38256_s28  ;;  %33956 = vrot.lane.b32.xlu1 %v44851_v63, %s38231_s15 }
 0xa83   :  { %33814 = vrot.lane.b32.xlu0 %v33552_v30, %s38257_s4  ;;  %33792 = vrot.lane.b32.xlu1 %v33565_v16, %s38255_s17 }
 0xa87   :  { %33630 = vrot.lane.b32.xlu0 %v33551_v2, %s38230_s19  ;;  %33607 = vrot.lane.b32.xlu1 %v33564_v39, %s38256_s28 }
 0xa8b   :  { %33654 = vrot.lane.b32.xlu0 %v33551_v2, %s38258_s25  ;;  %33816 = vrot.lane.b32.xlu1 %v33565_v16, %s38257_s4 }
 0xa8f   :  { %33678 = vrot.lane.b32.xlu0 %v33551_v2, %s38255_s17  ;;  %33632 = vrot.lane.b32.xlu1 %v33564_v39, %s38230_s19 }
 0xa93   :  { %33702 = vrot.lane.b32.xlu0 %v33551_v2, %s38257_s4  ;;  %33656 = vrot.lane.b32.xlu1 %v33564_v39, %s38258_s25 }
 0xa97   :  { %33718 = vrot.lane.b32.xlu0 %v33552_v30, %s38256_s28  ;;  %33680 = vrot.lane.b32.xlu1 %v33564_v39, %s38255_s17 }
 0xa9b   :  { %33742 = vrot.lane.b32.xlu0 %v33552_v30, %s38230_s19  ;;  %33704 = vrot.lane.b32.xlu1 %v33564_v39, %s38257_s4  ;;  %v34274_v39 = vld [vmem:[%s45640_s6 + $0x30] sm:$0xff] }
 0xa9f   :  { %33766 = vrot.lane.b32.xlu0 %v33552_v30, %s38258_s25  ;;  %33720 = vrot.lane.b32.xlu1 %v33565_v16, %s38256_s28 }
 0xaa3   :  { %33830 = vrot.lane.b32.xlu0 %v33553_v40, %s38256_s28  ;;  %33744 = vrot.lane.b32.xlu1 %v33565_v16, %s38230_s19 }
 0xaa7   :  { %33854 = vrot.lane.b32.xlu0 %v33553_v40, %s38230_s19  ;;  %33768 = vrot.lane.b32.xlu1 %v33565_v16, %s38258_s25  ;;  %v34271_v16 = vld [vmem:[%s45640_s6 + $0x18] sm:$0xff] }
 0xaab   :  { %33878 = vrot.lane.b32.xlu0 %v33553_v40, %s38258_s25  ;;  %33832 = vrot.lane.b32.xlu1 %v44895_v7, %s38256_s28 }
 0xaaf   :  { %33902 = vrot.lane.b32.xlu0 %v33553_v40, %s38255_s17  ;;  %33856 = vrot.lane.b32.xlu1 %v44895_v7, %s38230_s19 }
 0xab3   :  { %33926 = vrot.lane.b32.xlu0 %v33553_v40, %s38257_s4  ;;  %33880 = vrot.lane.b32.xlu1 %v44895_v7, %s38258_s25  ;;  %v34276_v40 = vld [vmem:[%s45640_s6 + $0x40] sm:$0xff] }
 0xab7   :  { %33942 = vrot.lane.b32.xlu0 %v44924_v0, %s38256_s28  ;;  %33904 = vrot.lane.b32.xlu1 %v44895_v7, %s38255_s17 }
 0xab9   :  { %v33779_v4 = vpop.permute.xlu0 %33778 }
 0xaba   :  { %33784 = vst.msk [vmem:[#allocation6 + $0x80] sm:$0xff] %vm33598_vm14, %v33779_v4 }
 0xabb   :  { %33978 = vrot.lane.b32.xlu0 %v44871_v55, %s38250_s23  ;;  %33928 = vrot.lane.b32.xlu1 %v44895_v7, %s38257_s4 }
 0xabd   :  { %v33803_v44 = vpop.permute.xlu0 %33802 }
 0xabe   :  { %33808 = vst.msk [vmem:[#allocation6 + $0x90] sm:$0xff] %vm33598_vm14, %v33803_v44 }
 0xabf   :  { %34002 = vrot.lane.b32.xlu0 %v44871_v55, %s38253_s3  ;;  %33944 = vrot.lane.b32.xlu1 %v44898_v42, %s38256_s28 }
 0xac1   :  { %v33619_v5 = vpop.permute.xlu0 %33618  ;;  %v33781_v3 = vpop.permute.xlu1 %33780 }
 0xac2   :  { %33624 = vst.msk [vmem:[#allocation6 + $0x10] sm:$0xff] %vm33598_vm14, %v33619_v5  ;;  %33785 = vst.msk [vmem:[#allocation6 + $0x88] sm:$0xff] %vm33598_vm14, %v33781_v3 }
 0xac3   :  { %34026 = vrot.lane.b32.xlu0 %v44871_v55, %s38254_s2  ;;  %33968 = vrot.lane.b32.xlu1 %v44898_v42, %s38230_s19 }
 0xac5   :  { %v33643_v22 = vpop.permute.xlu0 %33642  ;;  %v33805_v20 = vpop.permute.xlu1 %33804 }
 0xac6   :  { %33648 = vst.msk [vmem:[#allocation6 + $0x20] sm:$0xff] %vm33598_vm14, %v33643_v22  ;;  %33809 = vst.msk [vmem:[#allocation6 + $0x98] sm:$0xff] %vm33598_vm14, %v33805_v20  ;;  %v34278_v22 = vld [vmem:[%s45640_s6 + $0x50] sm:$0xff]  ;;  %v34275_v20 = vld [vmem:[%s45640_s6 + $0x38] sm:$0xff] }
 0xac7   :  { %34054 = vrot.lane.b32.xlu0 %v44996_v1, %s38256_s28  ;;  %33980 = vrot.lane.b32.xlu1 %v44851_v63, %s38250_s23 }
 0xac9   :  { %v33667_v12 = vpop.permute.xlu0 %33666  ;;  %v33621_v35 = vpop.permute.xlu1 %33620 }
 0xaca   :  { %33672 = vst.msk [vmem:[#allocation6 + $0x30] sm:$0xff] %vm33598_vm14, %v33667_v12  ;;  %33625 = vst.msk [vmem:[#allocation6 + $0x18] sm:$0xff] %vm33598_vm14, %v33621_v35  ;;  %v34280_v35 = vld [vmem:[%s45640_s6 + $0x60] sm:$0xff] }
 0xacb   :  { %34066 = vrot.lane.b32.xlu0 %v44880_v31, %s38231_s15  ;;  %33992 = vrot.lane.b32.xlu1 %v44898_v42, %s38258_s25 }
 0xacd   :  { %v33691_v37 = vpop.permute.xlu0 %33690  ;;  %v33645_v61 = vpop.permute.xlu1 %33644 }
 0xace   :  { %33696 = vst.msk [vmem:[#allocation6 + $0x40] sm:$0xff] %vm33598_vm14, %v33691_v37  ;;  %33649 = vst.msk [vmem:[#allocation6 + $0x28] sm:$0xff] %vm33598_vm14, %v33645_v61  ;;  %v34277_v37 = vld [vmem:[%s45640_s6 + $0x48] sm:$0xff] }
 0xacf   :  { %34078 = vrot.lane.b32.xlu0 %v44996_v1, %s38230_s19  ;;  %34004 = vrot.lane.b32.xlu1 %v44851_v63, %s38253_s3 }
 0xad1   :  { %v33731_v38 = vpop.permute.xlu0 %33730  ;;  %v33669_v58 = vpop.permute.xlu1 %33668 }
 0xad2   :  { %33736 = vst.msk [vmem:[#allocation6 + $0x60] sm:$0xff] %vm33598_vm14, %v33731_v38  ;;  %33673 = vst.msk [vmem:[#allocation6 + $0x38] sm:$0xff] %vm33598_vm14, %v33669_v58  ;;  %v34282_v58 = vld [vmem:[%s45640_s6 + $0x70] sm:$0xff] }
 0xad3   :  { %34090 = vrot.lane.b32.xlu0 %v44880_v31, %s38250_s23  ;;  %34016 = vrot.lane.b32.xlu1 %v44898_v42, %s38255_s17 }
 0xad5   :  { %v33755_v26 = vpop.permute.xlu0 %33754  ;;  %v33693_v36 = vpop.permute.xlu1 %33692 }
 0xad6   :  { %33760 = vst.msk [vmem:[#allocation6 + $0x70] sm:$0xff] %vm33598_vm14, %v33755_v26  ;;  %33697 = vst.msk [vmem:[#allocation6 + $0x48] sm:$0xff] %vm33598_vm14, %v33693_v36  ;;  %v34279_v26 = vld [vmem:[%s45640_s6 + $0x58] sm:$0xff] }
 0xad7   :  { %33966 = vrot.lane.b32.xlu0 %v44924_v0, %s38230_s19  ;;  %34028 = vrot.lane.b32.xlu1 %v44851_v63, %s38254_s2 }
 0xad9   :  { %v33843_v9 = vpop.permute.xlu0 %33842  ;;  %v33733_v46 = vpop.permute.xlu1 %33732 }
 0xada   :  { %33848 = vst.msk [vmem:[#allocation6 + $0xb0] sm:$0xff] %vm33598_vm14, %v33843_v9  ;;  %33737 = vst.msk [vmem:[#allocation6 + $0x68] sm:$0xff] %vm33598_vm14, %v33733_v46  ;;  %v34711_v46 = vld [vmem:[%s45642_s8 + $0x8] sm:$0xff] }
 0xadb   :  { %33990 = vrot.lane.b32.xlu0 %v44924_v0, %s38258_s25  ;;  %34040 = vrot.lane.b32.xlu1 %v44898_v42, %s38257_s4 }
 0xadd   :  { %v33867_v21 = vpop.permute.xlu0 %33866  ;;  %v33757_v56 = vpop.permute.xlu1 %33756 }
 0xade   :  { %33872 = vst.msk [vmem:[#allocation6 + $0xc0] sm:$0xff] %vm33598_vm14, %v33867_v21  ;;  %33761 = vst.msk [vmem:[#allocation6 + $0x78] sm:$0xff] %vm33598_vm14, %v33757_v56  ;;  %v34281_v21 = vld [vmem:[%s45640_s6 + $0x68] sm:$0xff] }
 0xadf   :  { %34014 = vrot.lane.b32.xlu0 %v44924_v0, %s38255_s17  ;;  %34056 = vrot.lane.b32.xlu1 %v34051_v54, %s38256_s28 }
 0xae1   :  { %v33891_v63 = vpop.permute.xlu0 %33890  ;;  %v33845_v59 = vpop.permute.xlu1 %33844 }
 0xae2   :  { %33896 = vst.msk [vmem:[#allocation6 + $0xd0] sm:$0xff] %vm33598_vm14, %v33891_v63  ;;  %33849 = vst.msk [vmem:[#allocation6 + $0xb8] sm:$0xff] %vm33598_vm14, %v33845_v59  ;;  %v34713_v63 = vld [vmem:[%s45642_s8 + $0x18] sm:$0xff]  ;;  %v34710_v59 = vld [vmem:[%s45642_s8] sm:$0xff] }
 0xae3   :  { %34038 = vrot.lane.b32.xlu0 %v44924_v0, %s38257_s4  ;;  %34068 = vrot.lane.b32.xlu1 %v44863_v15, %s38231_s15  ;;  %v34273_v0 = vld [vmem:[%s45640_s6 + $0x28] sm:$0xff] }
 0xae5   :  { %v33915_v28 = vpop.permute.xlu0 %33914  ;;  %v33869_v34 = vpop.permute.xlu1 %33868 }
 0xae6   :  { %33920 = vst.msk [vmem:[#allocation6 + $0xe0] sm:$0xff] %vm33598_vm14, %v33915_v28  ;;  %33873 = vst.msk [vmem:[#allocation6 + $0xc8] sm:$0xff] %vm33598_vm14, %v33869_v34 }
 0xae7   :  { %34102 = vrot.lane.b32.xlu0 %v44996_v1, %s38258_s25  ;;  %34080 = vrot.lane.b32.xlu1 %v34051_v54, %s38230_s19 }
 0xae9   :  { %v33955_v29 = vpop.permute.xlu0 %33954  ;;  %v33893_v13 = vpop.permute.xlu1 %33892 }
 0xaea   :  { %33960 = vst.msk [vmem:[#allocation6 + $0x100] sm:$0xff] %vm33598_vm14, %v33955_v29  ;;  %33897 = vst.msk [vmem:[#allocation6 + $0xd8] sm:$0xff] %vm33598_vm14, %v33893_v13  ;;  %v34715_v29 = vld [vmem:[%s45642_s8 + $0x28] sm:$0xff]  ;;  %v34712_v13 = vld [vmem:[%s45642_s8 + $0x10] sm:$0xff] }
 0xaeb   :  { %34114 = vrot.lane.b32.xlu0 %v44880_v31, %s38253_s3  ;;  %34092 = vrot.lane.b32.xlu1 %v44863_v15, %s38250_s23 }
 0xaed   :  { %v33791_v55 = vpop.permute.xlu0 %33790  ;;  %v33917_v6 = vpop.permute.xlu1 %33916 }
 0xaee   :  { %33796 = vst.msk [vmem:[#allocation6 + $0x80] sm:$0xff] %vm33611_vm12, %v33791_v55 }
 0xaef   :  { %33921 = vst.msk [vmem:[#allocation6 + $0xe8] sm:$0xff] %vm33598_vm14, %v33917_v6  ;;  %34126 = vrot.lane.b32.xlu0 %v44996_v1, %s38255_s17  ;;  %34104 = vrot.lane.b32.xlu1 %v34051_v54, %s38258_s25 }
 0xaf1   :  { %v33606_v62 = vpop.permute.xlu0 %33605  ;;  %v33957_v43 = vpop.permute.xlu1 %33956 }
 0xaf2   :  { %33612 = vst.msk [vmem:[#allocation6] sm:$0xff] %vm33611_vm12, %v33606_v62  ;;  %v34717_v62 = vld [vmem:[%s45642_s8 + $0x38] sm:$0xff] }
 0xaf3   :  { %33961 = vst.msk [vmem:[#allocation6 + $0x108] sm:$0xff] %vm33598_vm14, %v33957_v43  ;;  %34138 = vrot.lane.b32.xlu0 %v44880_v31, %s38254_s2  ;;  %34116 = vrot.lane.b32.xlu1 %v44863_v15, %s38253_s3  ;;  %v34714_v43 = vld [vmem:[%s45642_s8 + $0x20] sm:$0xff] }
 0xaf5   :  { %v33815_v57 = vpop.permute.xlu0 %33814  ;;  %v33793_v27 = vpop.permute.xlu1 %33792  ;;  %v34174_v30 = vld [vmem:[#allocation6 + $0x80] sm:$0xff] }
 0xaf6   :  { %33820 = vst.msk [vmem:[#allocation6 + $0x90] sm:$0xff] %vm33611_vm12, %v33815_v57  ;;  %33797 = vst.msk [vmem:[#allocation6 + $0x88] sm:$0xff] %vm33611_vm12, %v33793_v27 }
 0xaf7   :  { %34150 = vrot.lane.b32.xlu0 %v44996_v1, %s38257_s4  ;;  %34128 = vrot.lane.b32.xlu1 %v34051_v54, %s38255_s17 }
 0xaf9   :  { %v33631_v48 = vpop.permute.xlu0 %33630  ;;  %v33608_v31 = vpop.permute.xlu1 %33607  ;;  %v34158_v45 = vld [vmem:[#allocation6] sm:$0xff] }
 0xafa   :  { %33636 = vst.msk [vmem:[#allocation6 + $0x10] sm:$0xff] %vm33611_vm12, %v33631_v48  ;;  %33613 = vst.msk [vmem:[#allocation6 + $0x8] sm:$0xff] %vm33611_vm12, %v33608_v31 }
 0xafb   :  { %34285 = vperm.xlu0 %37990, %v34268_v50   ;;  %34140 = vrot.lane.b32.xlu1 %v44863_v15, %s38254_s2  ;;  %v34272_v15 = vld [vmem:[%s45640_s6 + $0x20] sm:$0xff]  ;;  %s35037_s6 = sshll.u32 %s38260_s22, 4  ;;  %s35038_s6 = int_to_ptr.vmem [resolvable:$true] %s35037_s6 }
 0xafc   :  { %s38203_s29 = scalar_lea.vmem %s35038_s6, 16  ;;  %s38207_s14 = scalar_lea.vmem %s35038_s6, 32 }
 0xafd   :  { %v33655_v19 = vpop.permute.xlu0 %33654  ;;  %v33817_v33 = vpop.permute.xlu1 %33816  ;;  %v34175_v7 = vld [vmem:[#allocation6 + $0x88] sm:$0xff]  ;;  %v34176_v49 = vld [vmem:[#allocation6 + $0x90] sm:$0xff]  ;;  %p38204_p0 = scmp.ne.s32.totalorder %s35038_s6, %s38203_s29  ;;  %p38208_p1 = scmp.lt.s32.totalorder %s35038_s6, %s35038_s6 }
 0xafe   :  { %33660 = vst.msk [vmem:[#allocation6 + $0x20] sm:$0xff] %vm33611_vm12, %v33655_v19  ;;  %33821 = vst.msk [vmem:[#allocation6 + $0x98] sm:$0xff] %vm33611_vm12, %v33817_v33  ;;  %v36901_v42 = vpack.c.bf16 %v34175_v7, %v34174_v30  ;;  %v34719_v30 = vld [vmem:[%s45642_s8 + $0x48] sm:$0xff]  ;;  %v34716_v7 = vld [vmem:[%s45642_s8 + $0x30] sm:$0xff]  ;;  %p38209_p2 = scmp.lt.s32.totalorder %s38207_s14, %s38203_s29 }
 0xaff   :  { %34295 = vperm.xlu0 %37990, %v34270_v23   ;;  %34152 = vrot.lane.b32.xlu1 %v34051_v54, %s38257_s4 }
 0xb00   :  { %36902 = vmatprep.subr.bf16.mxu1 %v36901_v42  ;;  %p38210_p3 = por %p38209_p2, %p38208_p1 }
 0xb01   :  { %v33679_v32 = vpop.permute.xlu0 %33678  ;;  %v33633_v2 = vpop.permute.xlu1 %33632  ;;  %v34159_v24 = vld [vmem:[#allocation6 + $0x8] sm:$0xff]  ;;  %v34160_v60 = vld [vmem:[#allocation6 + $0x10] sm:$0xff] }
 0xb02   :  { %33684 = vst.msk [vmem:[#allocation6 + $0x30] sm:$0xff] %vm33611_vm12, %v33679_v32  ;;  %33637 = vst.msk [vmem:[#allocation6 + $0x18] sm:$0xff] %vm33611_vm12, %v33633_v2  ;;  %v36903_v18 = vpack.c.bf16 %v34159_v24, %v34158_v45  ;;  %p38211_p4 = pnand %p38210_p3, %p38204_p0 }
 0xb03   :  { %34305 = vperm.xlu0 %37990, %v34272_v15   ;;  %34290 = vperm.xlu1 %37991, %v34269_v53  }
 0xb04   :  { %36904 = vmatpush3.bf16.msra.mxu1 %v36903_v18 }
 0xb05   :  { %v33703_v10 = vpop.permute.xlu0 %33702  ;;  %v33657_v47 = vpop.permute.xlu1 %33656  ;;  %v34177_v8 = vld [vmem:[#allocation6 + $0x98] sm:$0xff]  ;;  %v34162_v19 = vld [vmem:[#allocation6 + $0x20] sm:$0xff] }
 0xb06   :  { %33708 = vst.msk [vmem:[#allocation6 + $0x40] sm:$0xff] %vm33611_vm12, %v33703_v10  ;;  %33661 = vst.msk [vmem:[#allocation6 + $0x28] sm:$0xff] %vm33611_vm12, %v33657_v47  ;;  %v36905_v25 = vpack.c.bf16 %v34177_v8, %v34176_v49 }
 0xb07   :  { %34315 = vperm.xlu0 %37990, %v34274_v39   ;;  %34300 = vperm.xlu1 %37991, %v34271_v16   ;;  %v34718_v39 = vld [vmem:[%s45642_s8 + $0x40] sm:$0xff] }
 0xb08   :  { %36906 = vmatprep.subr.bf16.mxu1 %v36905_v25  ;;  %v45177_v25 = vld [vmem:[#allocation4 + $0x38] sm:$0xff] }
 0xb09   :  { %v33719_v4 = vpop.permute.xlu0 %33718  ;;  %v33681_v44 = vpop.permute.xlu1 %33680  ;;  %v34161_v5 = vld [vmem:[#allocation6 + $0x18] sm:$0xff]  ;;  %v34164_v24 = vld [vmem:[#allocation6 + $0x30] sm:$0xff] }
 0xb0a   :  { %33724 = vst.msk [vmem:[#allocation6 + $0x50] sm:$0xff] %vm33611_vm12, %v33719_v4  ;;  %33685 = vst.msk [vmem:[#allocation6 + $0x38] sm:$0xff] %vm33611_vm12, %v33681_v44  ;;  %v36907_v3 = vpack.c.bf16 %v34161_v5, %v34160_v60  ;;  %v34941_v44 = vld [vmem:[#allocation7] sm:$0x1]  ;;  %v34720_v60 = vld [vmem:[%s45642_s8 + $0x50] sm:$0xf] }
 0xb0b   :  { %34325 = vperm.xlu0 %37990, %v34276_v40   ;;  %34310 = vperm.xlu1 %37991, %v34273_v0  }
 0xb0c   :  { %36908 = vmatpush3.bf16.msra.mxu1 %v36907_v3 }
 0xb0d   :  { %v33743_v1 = vpop.permute.xlu0 %33742  ;;  %v33705_v12 = vpop.permute.xlu1 %33704  ;;  %v34163_v57 = vld [vmem:[#allocation6 + $0x28] sm:$0xff]  ;;  %v34166_v0 = vld [vmem:[#allocation6 + $0x40] sm:$0xff] }
 0xb0e   :  { %33748 = vst.msk [vmem:[#allocation6 + $0x60] sm:$0xff] %vm33611_vm12, %v33743_v1  ;;  %33709 = vst.msk [vmem:[#allocation6 + $0x48] sm:$0xff] %vm33611_vm12, %v33705_v12  ;;  %v36911_v33 = vpack.c.bf16 %v34163_v57, %v34162_v19  ;;  %v34213_v57 = vld [vmem:[%s45639_s5 + $0x28] sm:$0xff] }
 0xb0f   :  { %34335 = vperm.xlu0 %37990, %v34278_v22   ;;  %34320 = vperm.xlu1 %37991, %v34275_v20  }
 0xb11   :  { %v33767_v61 = vpop.permute.xlu0 %33766  ;;  %v33721_v38 = vpop.permute.xlu1 %33720  ;;  %v34165_v42 = vld [vmem:[#allocation6 + $0x38] sm:$0xff] }
 0xb12   :  { %33772 = vst.msk [vmem:[#allocation6 + $0x70] sm:$0xff] %vm33611_vm12, %v33767_v61  ;;  %33725 = vst.msk [vmem:[#allocation6 + $0x58] sm:$0xff] %vm33611_vm12, %v33721_v38  ;;  %v36915_v18 = vpack.c.bf16 %v34165_v42, %v34164_v24  ;;  %v34229_v24 = vld [vmem:[%s45639_s5 + $0xa8] sm:$0xff] }
 0xb13   :  { %34345 = vperm.xlu0 %37990, %v34280_v35   ;;  %34330 = vperm.xlu1 %37991, %v34277_v37   ;;  %v34168_v35 = vld [vmem:[#allocation6 + $0x50] sm:$0xff] }
 0xb15   :  { %v33831_v36 = vpop.permute.xlu0 %33830  ;;  %v33745_v9 = vpop.permute.xlu1 %33744  ;;  %v34167_v16 = vld [vmem:[#allocation6 + $0x48] sm:$0xff] }
 0xb16   :  { %33836 = vst.msk [vmem:[#allocation6 + $0xa0] sm:$0xff] %vm33611_vm12, %v33831_v36  ;;  %33749 = vst.msk [vmem:[#allocation6 + $0x68] sm:$0xff] %vm33611_vm12, %v33745_v9  ;;  %v36919_v4 = vpack.c.bf16 %v34167_v16, %v34166_v0  ;;  %v45188_v9 = vld [vmem:[#allocation4 + $0xa0] sm:$0xff]  ;;  %v34228_v16 = vld [vmem:[%s45639_s5 + $0xa0] sm:$0xff] }
 0xb17   :  { %34355 = vperm.xlu0 %37990, %v34282_v58   ;;  %34340 = vperm.xlu1 %37991, %v34279_v26  }
 0xb19   :  { %v33855_v56 = vpop.permute.xlu0 %33854  ;;  %v33769_v54 = vpop.permute.xlu1 %33768  ;;  %v34169_v5 = vld [vmem:[#allocation6 + $0x58] sm:$0xff] }
 0xb1a   :  { %33860 = vst.msk [vmem:[#allocation6 + $0xb0] sm:$0xff] %vm33611_vm12, %v33855_v56  ;;  %33773 = vst.msk [vmem:[#allocation6 + $0x78] sm:$0xff] %vm33611_vm12, %v33769_v54  ;;  %v36923_v37 = vpack.c.bf16 %v34169_v5, %v34168_v35 }
 0xb1b   :  { %34728 = vperm.xlu0 %37990, %v34711_v46   ;;  %34350 = vperm.xlu1 %37991, %v34281_v21   ;;  %v34170_v21 = vld [vmem:[#allocation6 + $0x60] sm:$0xff] }
 0xb1d   :  { %v33879_v28 = vpop.permute.xlu0 %33878  ;;  %v33833_v34 = vpop.permute.xlu1 %33832  ;;  %v34178_v48 = vld [vmem:[#allocation6 + $0xa0] sm:$0xff]  ;;  %v34171_v61 = vld [vmem:[#allocation6 + $0x68] sm:$0xff] }
 0xb1e   :  { %33884 = vst.msk [vmem:[#allocation6 + $0xc0] sm:$0xff] %vm33611_vm12, %v33879_v28  ;;  %33837 = vst.msk [vmem:[#allocation6 + $0xa8] sm:$0xff] %vm33611_vm12, %v33833_v34  ;;  %v36927_v56 = vpack.c.bf16 %v34171_v61, %v34170_v21  ;;  %v34241_v61 = vld [vmem:[%s45639_s5 + $0x108] sm:$0xff] }
 0xb1f   :  { %34738 = vperm.xlu0 %37990, %v34713_v63   ;;  %34723 = vperm.xlu1 %37991, %v34710_v59  }
 0xb21   :  { %v33903_v55 = vpop.permute.xlu0 %33902  ;;  %v33857_v6 = vpop.permute.xlu1 %33856  ;;  %v34180_v32 = vld [vmem:[#allocation6 + $0xb0] sm:$0xff]  ;;  %v34173_v54 = vld [vmem:[#allocation6 + $0x78] sm:$0xff] }
 0xb22   :  { %33908 = vst.msk [vmem:[#allocation6 + $0xd0] sm:$0xff] %vm33611_vm12, %v33903_v55  ;;  %33861 = vst.msk [vmem:[#allocation6 + $0xb8] sm:$0xff] %vm33611_vm12, %v33857_v6 }
 0xb23   :  { %34748 = vperm.xlu0 %37990, %v34715_v29   ;;  %34733 = vperm.xlu1 %37991, %v34712_v13   ;;  %v34172_v13 = vld [vmem:[#allocation6 + $0x70] sm:$0xff] }
 0xb24   :  { %v36931_v55 = vpack.c.bf16 %v34173_v54, %v34172_v13 }
 0xb25   :  { %v33927_v27 = vpop.permute.xlu0 %33926  ;;  %v33881_v50 = vpop.permute.xlu1 %33880  ;;  %v34179_v31 = vld [vmem:[#allocation6 + $0xa8] sm:$0xff]  ;;  %v34182_v49 = vld [vmem:[#allocation6 + $0xc0] sm:$0xff] }
 0xb26   :  { %33932 = vst.msk [vmem:[#allocation6 + $0xe0] sm:$0xff] %vm33611_vm12, %v33927_v27  ;;  %33885 = vst.msk [vmem:[#allocation6 + $0xc8] sm:$0xff] %vm33611_vm12, %v33881_v50  ;;  %v36909_v23 = vpack.c.bf16 %v34179_v31, %v34178_v48  ;;  %v34212_v48 = vld [vmem:[%s45639_s5 + $0x20] sm:$0xff]  ;;  %v34217_v31 = vld [vmem:[%s45639_s5 + $0x48] sm:$0xff] }
 0xb27   :  { %34758 = vperm.xlu0 %37990, %v34717_v62   ;;  %34743 = vperm.xlu1 %37991, %v34714_v43   ;;  %v34208_v43 = vld [vmem:[%s45639_s5] sm:$0xff] }
 0xb28   :  { %36910 = vmatprep.subr.bf16.mxu1 %v36909_v23 }
 0xb29   :  { %v33943_v15 = vpop.permute.xlu0 %33942  ;;  %36912 = vmatpush3.bf16.msra.mxu1 %v36911_v33  ;;  %v33905_v53 = vpop.permute.xlu1 %33904  ;;  %v34181_v2 = vld [vmem:[#allocation6 + $0xb8] sm:$0xff]  ;;  %v34184_v20 = vld [vmem:[#allocation6 + $0xd0] sm:$0xff] }
 0xb2a   :  { %33948 = vst.msk [vmem:[#allocation6 + $0xf0] sm:$0xff] %vm33611_vm12, %v33943_v15  ;;  %33909 = vst.msk [vmem:[#allocation6 + $0xd8] sm:$0xff] %vm33611_vm12, %v33905_v53  ;;  %v36913_v45 = vpack.c.bf16 %v34181_v2, %v34180_v32  ;;  %v34216_v33 = vld [vmem:[%s45639_s5 + $0x40] sm:$0xff]  ;;  %v34225_v53 = vld [vmem:[%s45639_s5 + $0x88] sm:$0xff] }
 0xb2b   :  { %34768 = vperm.xlu0 %37990, %v34719_v30   ;;  %34753 = vperm.xlu1 %37991, %v34716_v7   ;;  %v34221_v30 = vld [vmem:[%s45639_s5 + $0x68] sm:$0xff]  ;;  %v34220_v15 = vld [vmem:[%s45639_s5 + $0x60] sm:$0xff] }
 0xb2c   :  { %36914 = vmatprep.subr.bf16.mxu1 %v36913_v45  ;;  %v34224_v45 = vld [vmem:[%s45639_s5 + $0x80] sm:$0xff] }
 0xb2d   :  { %v33979_v10 = vpop.permute.xlu0 %33978  ;;  %36916 = vmatpush3.bf16.msra.mxu1 %v36915_v18  ;;  %v33929_v47 = vpop.permute.xlu1 %33928  ;;  %v34183_v8 = vld [vmem:[#allocation6 + $0xc8] sm:$0xff]  ;;  %v34186_v26 = vld [vmem:[#allocation6 + $0xe0] sm:$0xff] }
 0xb2e   :  { %33984 = vst.msk [vmem:[#allocation6 + $0x110] sm:$0xff] %vm33598_vm14, %v33979_v10  ;;  %v36917_v40 = vpack.c.bf16 %v34183_v8, %v34182_v49  ;;  %v34233_v8 = vld [vmem:[%s45639_s5 + $0xc8] sm:$0xff] }
 0xb2f   :  { %33933 = vst.msk [vmem:[#allocation6 + $0xe8] sm:$0xff] %vm33611_vm12, %v33929_v47  ;;  %33301 = vrot.lane.b32.xlu0 %v45177_v25, %s38229_s18  ;;  %34763 = vperm.xlu1 %37991, %v34718_v39  }
 0xb30   :  { %36918 = vmatprep.subr.bf16.mxu1 %v36917_v40 }
 0xb31   :  { %v34003_v3 = vpop.permute.xlu0 %34002  ;;  %36920 = vmatpush3.bf16.msra.mxu1 %v36919_v4  ;;  %v33945_v22 = vpop.permute.xlu1 %33944  ;;  %v34185_v1 = vld [vmem:[#allocation6 + $0xd8] sm:$0xff]  ;;  %v34188_v28 = vld [vmem:[#allocation6 + $0xf0] sm:$0xff] }
 0xb32   :  { %34008 = vst.msk [vmem:[#allocation6 + $0x120] sm:$0xff] %vm33598_vm14, %v34003_v3  ;;  %v36921_v12 = vpack.c.bf16 %v34185_v1, %v34184_v20  ;;  %v34232_v4 = vld [vmem:[%s45639_s5 + $0xc0] sm:$0xff]  ;;  %v34237_v3 = vld [vmem:[%s45639_s5 + $0xe8] sm:$0xff] }
 0xb33   :  { %33949 = vst.msk [vmem:[#allocation6 + $0xf8] sm:$0xff] %vm33611_vm12, %v33945_v22  ;;  %34944 = vperm.xlu0 %37990, %v34941_v44   ;;  %34773 = vperm.xlu1 %37991, %v34720_v60   ;;  %v34236_v1 = vld [vmem:[%s45639_s5 + $0xe0] sm:$0xff] }
 0xb34   :  { %36922 = vmatprep.subr.bf16.mxu1 %v36921_v12 }
 0xb35   :  { %v34027_v38 = vpop.permute.xlu0 %34026  ;;  %36924 = vmatpush3.bf16.msra.mxu1 %v36923_v37  ;;  %v33969_v58 = vpop.permute.xlu1 %33968 }
 0xb36   :  { %v34187_v36 = vld [vmem:[#allocation6 + $0xe8] sm:$0xff]  ;;  %34032 = vst.msk [vmem:[#allocation6 + $0x130] sm:$0xff] %vm33598_vm14, %v34027_v38 }
 0xb37   :  { %33973 = vst.msk [vmem:[#allocation6 + $0x108] sm:$0xff] %vm33611_vm12, %v33969_v58  ;;  %v36925_v46 = vpack.c.bf16 %v34187_v36, %v34186_v26  ;;  %33327 = vrot.lane.b32.xlu1 %v45188_v9, %s38229_s18  ;;  %v34240_v26 = vld [vmem:[%s45639_s5 + $0x100] sm:$0xff] }
 0xb39   :  { %36926 = vmatprep.subr.bf16.mxu1 %v36925_v46  ;;  %v34055_v63 = vpop.permute.xlu0 %34054  ;;  %v33981_v59 = vpop.permute.xlu1 %33980 }
 0xb3a   :  { %36928 = vmatpush3.bf16.msra.mxu1 %v36927_v56  ;;  %v34189_v34 = vld [vmem:[#allocation6 + $0xf8] sm:$0xff]  ;;  %34060 = vst.msk [vmem:[#allocation6 + $0x140] sm:$0xff] %vm33611_vm12, %v34055_v63 }
 0xb3b   :  { %33985 = vst.msk [vmem:[#allocation6 + $0x118] sm:$0xff] %vm33598_vm14, %v33981_v59  ;;  %v36929_v29 = vpack.c.bf16 %v34189_v34, %v34188_v28  ;;  %v34245_v56 = vld [vmem:[%s45639_s5 + $0x128] sm:$0xff]  ;;  %v34244_v28 = vld [vmem:[%s45639_s5 + $0x120] sm:$0xff] }
 0xb3d   :  { %36930 = vmatprep.subr.bf16.mxu1 %v36929_v29  ;;  %v34067_v6 = vpop.permute.xlu0 %34066  ;;  %v33993_v62 = vpop.permute.xlu1 %33992  ;;  %v34249_v29 = vld [vmem:[%s45639_s5 + $0x148] sm:$0xff] }
 0xb3e   :  { %36932 = vmatpush3.bf16.msra.mxu1 %v36931_v55  ;;  %34072 = vst.msk [vmem:[#allocation6 + $0x150] sm:$0xff] %vm33598_vm14, %v34067_v6  ;;  %v34191_v47 = vld [vmem:[#allocation6 + $0x108] sm:$0xff] }
 0xb3f   :  { %33997 = vst.msk [vmem:[#allocation6 + $0x118] sm:$0xff] %vm33611_vm12, %v33993_v62  ;;  %36933 = vmatprep.subr.bf16.mxu1 %v38259_v14 }
 0xb41   :  { %34469 = vmatmul.mubr.f32.vlgmr.msra.gmra.mrb[74].mxu1 %v34208_v43  ;;  %v34079_v27 = vpop.permute.xlu0 %34078  ;;  %v34005_v50 = vpop.permute.xlu1 %34004  ;;  %v34198_v34 = vld [vmem:[#allocation6 + $0x140] sm:$0xff]  ;;  %v34248_v43 = vld [vmem:[%s45639_s5 + $0x140] sm:$0xff] }
 0xb42   :  { %34473 = vmatprep.mubr.f32.mxu1 %v34213_v57  ;;  %34084 = vst.msk [vmem:[#allocation6 + $0x150] sm:$0xff] %vm33611_vm12, %v34079_v27  ;;  %v34253_v27 = vld [vmem:[%s45639_s5 + $0x168] sm:$0xff] }
 0xb43   :  { %34009 = vst.msk [vmem:[#allocation6 + $0x128] sm:$0xff] %vm33598_vm14, %v34005_v50 }
 0xb45   :  { %34474 = vmatmul.mubr.f32.gmra.mrb[76].mxu1 %v34212_v48  ;;  %v34091_v23 = vpop.permute.xlu0 %34090  ;;  %v34017_v19 = vpop.permute.xlu1 %34016 }
 0xb46   :  { %34478 = vmatprep.mubr.f32.mxu1 %v34217_v31  ;;  %34096 = vst.msk [vmem:[#allocation6 + $0x160] sm:$0xff] %vm33598_vm14, %v34091_v23  ;;  %v34193_v60 = vld [vmem:[#allocation6 + $0x118] sm:$0xff]  ;;  %v34252_v23 = vld [vmem:[%s45639_s5 + $0x160] sm:$0xff] }
 0xb47   :  { %34021 = vst.msk [vmem:[#allocation6 + $0x128] sm:$0xff] %vm33611_vm12, %v34017_v19 }
 0xb49   :  { %34479 = vmatmul.mubr.f32.gmra.mrb[78].mxu1 %v34216_v33  ;;  %v33967_v7 = vpop.permute.xlu0 %33966  ;;  %v34029_v42 = vpop.permute.xlu1 %34028  ;;  %v34200_v57 = vld [vmem:[#allocation6 + $0x150] sm:$0xff] }
 0xb4a   :  { %34483 = vmatprep.mubr.f32.mxu1 %v34221_v30  ;;  %33972 = vst.msk [vmem:[#allocation6 + $0x100] sm:$0xff] %vm33611_vm12, %v33967_v7  ;;  %v34257_v7 = vld [vmem:[%s45639_s5 + $0x188] sm:$0xff] }
 0xb4b   :  { %34033 = vst.msk [vmem:[#allocation6 + $0x138] sm:$0xff] %vm33598_vm14, %v34029_v42 }
 0xb4d   :  { %34484 = vmatmul.mubr.f32.gmra.mrb[80].mxu1 %v34220_v15  ;;  %v33991_v32 = vpop.permute.xlu0 %33990  ;;  %v34041_v2 = vpop.permute.xlu1 %34040  ;;  %v34256_v15 = vld [vmem:[%s45639_s5 + $0x180] sm:$0xff] }
 0xb4e   :  { %34488 = vmatprep.mubr.f32.mxu1 %v34225_v53  ;;  %33996 = vst.msk [vmem:[#allocation6 + $0x110] sm:$0xff] %vm33611_vm12, %v33991_v32  ;;  %34045 = vst.msk [vmem:[#allocation6 + $0x138] sm:$0xff] %vm33611_vm12, %v34041_v2  ;;  %v34195_v35 = vld [vmem:[#allocation6 + $0x128] sm:$0xff]  ;;  %v34261_v53 = vld [vmem:[%s45639_s5 + $0x1a8] sm:$0xff] }
 0xb4f   :  { %v34260_v2 = vld [vmem:[%s45639_s5 + $0x1a0] sm:$0xff] }
 0xb51   :  { %34489 = vmatmul.mubr.f32.gmra.mrb[82].mxu1 %v34224_v45  ;;  %v34015_v18 = vpop.permute.xlu0 %34014  ;;  %v34057_v39 = vpop.permute.xlu1 %34056  ;;  %v34190_v10 = vld [vmem:[#allocation6 + $0x100] sm:$0xff] }
 0xb52   :  { %34493 = vmatprep.mubr.f32.mxu1 %v34229_v24  ;;  %34020 = vst.msk [vmem:[#allocation6 + $0x120] sm:$0xff] %vm33611_vm12, %v34015_v18  ;;  %34061 = vst.msk [vmem:[#allocation6 + $0x148] sm:$0xff] %vm33611_vm12, %v34057_v39  ;;  %v36934_v49 = vpack.c.bf16 %v34191_v47, %v34190_v10  ;;  %v34265_v39 = vld [vmem:[%s45639_s5 + $0x1c8] sm:$0xff]  ;;  %v34211_v10 = vld [vmem:[%s45639_s5 + $0x18] sm:$0xff] }
 0xb54   :  { %36935 = vmatpush1.bf16.msra.mxu1 %v36934_v49 }
 0xb55   :  { %34494 = vmatmul.mubr.f32.gmra.mrb[84].mxu1 %v34228_v16  ;;  %v34039_v40 = vpop.permute.xlu0 %34038  ;;  %v34069_v0 = vpop.permute.xlu1 %34068  ;;  %v34192_v44 = vld [vmem:[#allocation6 + $0x110] sm:$0xff]  ;;  %36936 = vmatprep.subr.bf16.mxu1 %v38259_v14  ;;  %v34197_v46 = vld [vmem:[#allocation6 + $0x138] sm:$0xff] }
 0xb56   :  { %34498 = vmatprep.mubr.f32.mxu1 %v34233_v8  ;;  %34044 = vst.msk [vmem:[#allocation6 + $0x130] sm:$0xff] %vm33611_vm12, %v34039_v40  ;;  %v36937_v5 = vpack.c.bf16 %v34193_v60, %v34192_v44  ;;  %v34264_v16 = vld [vmem:[%s45639_s5 + $0x1c0] sm:$0xff]  ;;  %v34214_v60 = vld [vmem:[%s45639_s5 + $0x30] sm:$0xff] }
 0xb57   :  { %34073 = vst.msk [vmem:[#allocation6 + $0x158] sm:$0xff] %vm33598_vm14, %v34069_v0  ;;  %v34210_v0 = vld [vmem:[%s45639_s5 + $0x10] sm:$0xff] }
 0xb58   :  { %36938 = vmatpush1.bf16.msra.mxu1 %v36937_v5  ;;  %v34219_v5 = vld [vmem:[%s45639_s5 + $0x58] sm:$0xff] }
 0xb59   :  { %34499 = vmatmul.mubr.f32.gmra.mrb[86].mxu1 %v34232_v4  ;;  %v34103_v22 = vpop.permute.xlu0 %34102  ;;  %v34081_v20 = vpop.permute.xlu1 %34080  ;;  %v34194_v12 = vld [vmem:[#allocation6 + $0x120] sm:$0xff]  ;;  %36939 = vmatprep.subr.bf16.mxu1 %v38259_v14  ;;  %v34199_v54 = vld [vmem:[#allocation6 + $0x148] sm:$0xff] }
 0xb5a   :  { %34503 = vmatprep.mubr.f32.mxu1 %v34237_v3  ;;  %34108 = vst.msk [vmem:[#allocation6 + $0x160] sm:$0xff] %vm33611_vm12, %v34103_v22  ;;  %34085 = vst.msk [vmem:[#allocation6 + $0x158] sm:$0xff] %vm33611_vm12, %v34081_v20  ;;  %v36940_v37 = vpack.c.bf16 %v34195_v35, %v34194_v12  ;;  %v36946_v13 = vpack.c.bf16 %v34199_v54, %v34198_v34  ;;  %v34215_v4 = vld [vmem:[%s45639_s5 + $0x38] sm:$0xff]  ;;  %v34218_v20 = vld [vmem:[%s45639_s5 + $0x50] sm:$0xff] }
 0xb5b   :  { %v34235_v54 = vld [vmem:[%s45639_s5 + $0xd8] sm:$0xff] }
 0xb5c   :  { %36941 = vmatpush1.bf16.msra.mxu1 %v36940_v37  ;;  %v34222_v37 = vld [vmem:[%s45639_s5 + $0x70] sm:$0xff]  ;;  %v34239_v34 = vld [vmem:[%s45639_s5 + $0xf8] sm:$0xff] }
 0xb5d   :  { %34504 = vmatmul.mubr.f32.gmra.mrb[88].mxu1 %v34236_v1  ;;  %v34115_v38 = vpop.permute.xlu0 %34114  ;;  %v34093_v58 = vpop.permute.xlu1 %34092  ;;  %v34196_v36 = vld [vmem:[#allocation6 + $0x130] sm:$0xff]  ;;  %36942 = vmatprep.subr.bf16.mxu1 %v38259_v14  ;;  %v34223_v1 = vld [vmem:[%s45639_s5 + $0x78] sm:$0xff] }
 0xb5e   :  { %34508 = vmatprep.mubr.f32.mxu1 %v34241_v61  ;;  %34120 = vst.msk [vmem:[#allocation6 + $0x170] sm:$0xff] %vm33598_vm14, %v34115_v38  ;;  %34097 = vst.msk [vmem:[#allocation6 + $0x168] sm:$0xff] %vm33598_vm14, %v34093_v58  ;;  %v36943_v21 = vpack.c.bf16 %v34197_v46, %v34196_v36  ;;  %v34227_v61 = vld [vmem:[%s45639_s5 + $0x98] sm:$0xff] }
 0xb5f   :  { %v34231_v36 = vld [vmem:[%s45639_s5 + $0xb8] sm:$0xff] }
 0xb60   :  { %36944 = vmatpush1.bf16.msra.mxu1 %v36943_v21 }
 0xb61   :  { %34509 = vmatmul.mubr.f32.gmra.mrb[90].mxu1 %v34240_v26  ;;  %v34127_v63 = vpop.permute.xlu0 %34126  ;;  %v34105_v59 = vpop.permute.xlu1 %34104  ;;  %36945 = vmatprep.subr.bf16.mxu1 %v38259_v14  ;;  %v34201_v55 = vld [vmem:[#allocation6 + $0x158] sm:$0xff]  ;;  %v34202_v19 = vld [vmem:[#allocation6 + $0x160] sm:$0xff] }
 0xb62   :  { %34513 = vmatprep.mubr.f32.mxu1 %v34245_v56  ;;  %34132 = vst.msk [vmem:[#allocation6 + $0x170] sm:$0xff] %vm33611_vm12, %v34127_v63  ;;  %34109 = vst.msk [vmem:[#allocation6 + $0x168] sm:$0xff] %vm33611_vm12, %v34105_v59  ;;  %v36949_v50 = vpack.c.bf16 %v34201_v55, %v34200_v57  ;;  %v34226_v26 = vld [vmem:[%s45639_s5 + $0x90] sm:$0xff] }
 0xb63   :  { %v34230_v56 = vld [vmem:[%s45639_s5 + $0xb0] sm:$0xff] }
 0xb64   :  { %36947 = vmatpush1.bf16.msra.mxu1 %v36946_v13  ;;  %v34238_v55 = vld [vmem:[%s45639_s5 + $0xf0] sm:$0xff] }
 0xb65   :  { %34514 = vmatmul.mubr.f32.gmra.mrb[92].mxu1 %v34244_v28  ;;  %v34139_v6 = vpop.permute.xlu0 %34138  ;;  %v34117_v62 = vpop.permute.xlu1 %34116  ;;  %36948 = vmatprep.subr.bf16.mxu1 %v38259_v14  ;;  %v34234_v28 = vld [vmem:[%s45639_s5 + $0xd0] sm:$0xff] }
 0xb66   :  { %34518 = vmatprep.mubr.f32.mxu1 %v34249_v29  ;;  %34144 = vst.msk [vmem:[#allocation6 + $0x180] sm:$0xff] %vm33598_vm14, %v34139_v6  ;;  %34121 = vst.msk [vmem:[#allocation6 + $0x178] sm:$0xff] %vm33598_vm14, %v34117_v62  ;;  %v34243_v6 = vld [vmem:[%s45639_s5 + $0x118] sm:$0xff]  ;;  %v34242_v57 = vld [vmem:[%s45639_s5 + $0x110] sm:$0xff] }
 0xb68   :  { %36950 = vmatpush1.bf16.msra.mxu1 %v36949_v50 }
 0xb69   :  { %34519 = vmatmul.mubr.f32.gmra.mrb[94].mxu1 %v34248_v43  ;;  %v34151_v48 = vpop.permute.xlu0 %34150  ;;  %v34129_v31 = vpop.permute.xlu1 %34128  ;;  %v34203_v33 = vld [vmem:[#allocation6 + $0x168] sm:$0xff]  ;;  %36951 = vmatprep.subr.bf16.mxu1 %v38259_v14  ;;  %v34204_v45 = vld [vmem:[#allocation6 + $0x170] sm:$0xff] }
 0xb6a   :  { %34523 = vmatprep.mubr.f32.mxu1 %v34253_v27  ;;  %34156 = vst.msk [vmem:[#allocation6 + $0x180] sm:$0xff] %vm33611_vm12, %v34151_v48  ;;  %34133 = vst.msk [vmem:[#allocation6 + $0x178] sm:$0xff] %vm33611_vm12, %v34129_v31  ;;  %v36952_v30 = vpack.c.bf16 %v34203_v33, %v34202_v19  ;;  %v34247_v27 = vld [vmem:[%s45639_s5 + $0x138] sm:$0xff]  ;;  %v34246_v31 = vld [vmem:[%s45639_s5 + $0x130] sm:$0xff] }
 0xb6c   :  { %36953 = vmatpush1.bf16.msra.mxu1 %v36952_v30  ;;  %v34250_v30 = vld [vmem:[%s45639_s5 + $0x150] sm:$0xff] }
 0xb6d   :  { %34524 = vmatmul.mubr.f32.gmra.mrb[96].mxu1 %v34252_v23  ;;  %v34141_v42 = vpop.permute.xlu1 %34140  ;;  %36954 = vmatprep.subr.bf16.mxu1 %v38259_v14  ;;  %v34251_v23 = vld [vmem:[%s45639_s5 + $0x158] sm:$0xff] }
 0xb6e   :  { %34528 = vmatprep.mubr.f32.mxu1 %v34257_v7  ;;  %34145 = vst.msk [vmem:[#allocation6 + $0x188] sm:$0xff] %vm33598_vm14, %v34141_v42  ;;  %v34255_v7 = vld [vmem:[%s45639_s5 + $0x178] sm:$0xff] }
 0xb71   :  { %34529 = vmatmul.mubr.f32.gmra.mrb[98].mxu1 %v34256_v15  ;;  %v34153_v32 = vpop.permute.xlu1 %34152  ;;  %v34205_v24 = vld [vmem:[#allocation6 + $0x178] sm:$0xff]  ;;  %v34206_v47 = vld [vmem:[#allocation6 + $0x180] sm:$0xff] }
 0xb72   :  { %34533 = vmatprep.mubr.f32.mxu1 %v34261_v53  ;;  %34157 = vst.msk [vmem:[#allocation6 + $0x188] sm:$0xff] %vm33611_vm12, %v34153_v32  ;;  %v36955_v18 = vpack.c.bf16 %v34205_v24, %v34204_v45  ;;  %v34254_v53 = vld [vmem:[%s45639_s5 + $0x170] sm:$0xff]  ;;  %v34259_v32 = vld [vmem:[%s45639_s5 + $0x198] sm:$0xff] }
 0xb73   :  { %v34258_v24 = vld [vmem:[%s45639_s5 + $0x190] sm:$0xff] }
 0xb74   :  { %36956 = vmatpush1.bf16.msra.mxu1 %v36955_v18  ;;  %v34263_v18 = vld [vmem:[%s45639_s5 + $0x1b8] sm:$0xff] }
 0xb75   :  { %34534 = vmatmul.mubr.f32.gmra.mrb[100].mxu1 %v34260_v2  ;;  %36957 = vmatprep.subr.bf16.mxu1 %v38259_v14 }
 0xb76   :  { %34538 = vmatprep.mubr.f32.mxu1 %v34265_v39 }
 0xb79   :  { %34539 = vmatmul.mubr.f32.gmra.mrb[102].mxu1 %v34264_v16  ;;  %v34207_v49 = vld [vmem:[#allocation6 + $0x188] sm:$0xff] }
 0xb7a   :  { %36295 = vmatprep.mubr.msk.f32.mxu1 %vm34358_vm13, %v34211_v10  ;;  %v45320_v8 = vpop.permute.xlu0 %34285  ;;  %v36958_v40 = vpack.c.bf16 %v34207_v49, %v34206_v47  ;;  %v38201_v49 = vld [vmem:[#allocation4 + $0x30] sm:$0xff] }
 0xb7c   :  { %36959 = vmatpush1.bf16.msra.mxu1 %v36958_v40 }
 0xb7d   :  { %36981 = vmatprep.subr.bf16.mxu1 %v38259_v14 }
 0xb7e   :  { %v45329_v44 = vpop.permute.xlu0 %34295 }
 0xb7f   :  { %34609 = vmatmul.mubr.f32.vlgmr.msra.gmra.mrb[104].mxu1 %v34210_v0 }
 0xb80   :  { %36296 = vmatprep.mubr.msk.f32.mxu1 %vm34358_vm13, %v34215_v4  ;;  %v34262_v4 = vld [vmem:[%s45639_s5 + $0x1b0] sm:$0xff] }
 0xb82   :  { %v45338_v3 = vpop.permute.xlu0 %34305  ;;  %v45340_v22 = vpop.permute.xlu1 %34290 }
 0xb83   :  { %34614 = vmatmul.mubr.f32.gmra.mrb[106].mxu1 %v34214_v60  ;;  %v34267_v60 = vld [vmem:[%s45639_s5 + $0x1d8] sm:$0xff] }
 0xb84   :  { %36297 = vmatprep.mubr.msk.f32.mxu1 %vm34358_vm13, %v34219_v5 }
 0xb86   :  { %v45349_v12 = vpop.permute.xlu0 %34315  ;;  %v45351_v35 = vpop.permute.xlu1 %34300 }
 0xb87   :  { %34619 = vmatmul.mubr.f32.gmra.mrb[108].mxu1 %v34218_v20 }
 0xb88   :  { %36298 = vmatprep.mubr.msk.f32.mxu1 %vm34358_vm13, %v34223_v1  ;;  %v38202_v1 = vld [vmem:[#allocation4 + $0x98] sm:$0xff] }
 0xb8a   :  { %v45360_v38 = vpop.permute.xlu0 %34325  ;;  %v45362_v58 = vpop.permute.xlu1 %34310 }
 0xb8b   :  { %34624 = vmatmul.mubr.f32.gmra.mrb[110].mxu1 %v34222_v37 }
 0xb8c   :  { %36299 = vmatprep.mubr.msk.f32.mxu1 %vm34358_vm13, %v34227_v61 }
 0xb8e   :  { %v45371_v46 = vpop.permute.xlu0 %34335  ;;  %v45373_v21 = vpop.permute.xlu1 %34320 }
 0xb8f   :  { %34629 = vmatmul.mubr.f32.gmra.mrb[112].mxu1 %v34226_v26 }
 0xb90   :  { %36300 = vmatprep.mubr.msk.f32.mxu1 %vm34358_vm13, %v34231_v36 }
 0xb92   :  { %v45382_v63 = vpop.permute.xlu0 %34345  ;;  %v45384_v59 = vpop.permute.xlu1 %34330 }
 0xb93   :  { %34634 = vmatmul.mubr.f32.gmra.mrb[114].mxu1 %v34230_v56 }
 0xb94   :  { %36301 = vmatprep.mubr.msk.f32.mxu1 %vm34358_vm13, %v34235_v54 }
 0xb96   :  { %v45393_v29 = vpop.permute.xlu0 %34355  ;;  %v45395_v13 = vpop.permute.xlu1 %34340 }
 0xb97   :  { %34639 = vmatmul.mubr.f32.gmra.mrb[116].mxu1 %v34234_v28 }
 0xb98   :  { %36302 = vmatprep.mubr.msk.f32.mxu1 %vm34358_vm13, %v34239_v34 }
 0xb9a   :  { %v45404_v62 = vpop.permute.xlu0 %34728  ;;  %v45406_v43 = vpop.permute.xlu1 %34350 }
 0xb9b   :  { %34644 = vmatmul.mubr.f32.gmra.mrb[118].mxu1 %v34238_v55 }
 0xb9c   :  { %36303 = vmatprep.mubr.msk.f32.mxu1 %vm34358_vm13, %v34243_v6 }
 0xb9e   :  { %v45415_v50 = vpop.permute.xlu0 %34738  ;;  %v45417_v48 = vpop.permute.xlu1 %34723 }
 0xb9f   :  { %34649 = vmatmul.mubr.f32.gmra.mrb[120].mxu1 %v34242_v57 }
 0xba0   :  { %36304 = vmatprep.mubr.msk.f32.mxu1 %vm34358_vm13, %v34247_v27 }
 0xba2   :  { %v45426_v19 = vpop.permute.xlu0 %34748  ;;  %v45428_v33 = vpop.permute.xlu1 %34733 }
 0xba3   :  { %34654 = vmatmul.mubr.f32.gmra.mrb[122].mxu1 %v34246_v31 }
 0xba4   :  { %36305 = vmatprep.mubr.msk.f32.mxu1 %vm34358_vm13, %v34251_v23 }
 0xba6   :  { %v45437_v42 = vpop.permute.xlu0 %34758  ;;  %v45439_v15 = vpop.permute.xlu1 %34743 }
 0xba7   :  { %34659 = vmatmul.mubr.f32.gmra.mrb[124].mxu1 %v34250_v30 }
 0xba8   :  { %36306 = vmatprep.mubr.msk.f32.mxu1 %vm34358_vm13, %v34255_v7 }
 0xbaa   :  { %v45448_v2 = vpop.permute.xlu0 %34768  ;;  %v45450_v45 = vpop.permute.xlu1 %34753 }
 0xbab   :  { %34664 = vmatmul.mubr.f32.gmra.mrb[126].mxu1 %v34254_v53 }
 0xbac   :  { %36307 = vmatprep.mubr.msk.f32.mxu1 %vm34358_vm13, %v34259_v32 }
 0xbae   :  { %v33302_v39 = vpop.permute.xlu0 %33301  ;;  %v45459_v16 = vpop.permute.xlu1 %34763 }
 0xbaf   :  { %v33345_v10 = vsel %vm1367_vm4, %v44678_v52, %v33302_v39  ;;  %v33346_v47 = vsel %vm1367_vm4, %v33302_v39, %v44749_v41  ;;  %34669 = vmatmul.mubr.f32.gmra.mrb[128].mxu1 %v34258_v24  ;;  %v34266_v41 = vld [vmem:[%s45639_s5 + $0x1d0] sm:$0xff] }
 0xbb0   :  { %v33395_v40 = vmax.f32 %v38201_v49, %v33345_v10  ;;  %v33396_v0 = vmax.f32 %v45177_v25, %v33346_v47  ;;  %36308 = vmatprep.mubr.msk.f32.mxu1 %vm34358_vm13, %v34263_v18 }
 0xbb2   :  { %33455 = vrot.lane.b32.xlu0 %v33396_v0, %s38238_s12  ;;  %33453 = vrot.lane.b32.xlu1 %v33395_v40, %s38238_s12  ;;  %v45475_v52 = vpop.permute.xlu1 %34773  ;;  %v45490_v57 = vpop.permute.xlu0 %34944 }
 0xbb3   :  { %34674 = vmatmul.mubr.f32.gmra.mrb[130].mxu1 %v34262_v4 }
 0xbb4   :  { %36309 = vmatprep.mubr.msk.f32.mxu1 %vm34358_vm13, %v34267_v60 }
 0xbb6   :  { %v33328_v25 = vpop.permute.xlu1 %33327 }
 0xbb7   :  { %v33357_v5 = vsel %vm1367_vm4, %v44676_v51, %v33328_v25  ;;  %v33358_v20 = vsel %vm1367_vm4, %v33328_v25, %v44741_v17  ;;  %34679 = vmatmul.mubr.f32.gmra.mrb[132].mxu1 %v34266_v41  ;;  %vm34951_vm4 = vcmask 687104  }
 0xbb8   :  { %v33408_v37 = vmax.f32 %v38202_v1, %v33357_v5  ;;  %v33409_v61 = vmax.f32 %v45188_v9, %v33358_v20  ;;  %36898 = vmatprep.mubr.msk.f32.mxu1 %vm38233_vm3, %v38228_v11 }
 0xbba   :  { %33481 = vrot.lane.b32.xlu0 %v33409_v61, %s38238_s12  ;;  %33479 = vrot.lane.b32.xlu1 %v33408_v37, %s38238_s12 }
 0xc14   :  { %v36480_v26 = vpop.f32.mrb[74].mxu1 }
 0xc15   :  { %v36481_v36 = vpop.f32.mrb[75].mxu1 }
 0xc16   :  { %v36482_v56 = vadd.f32 %v36481_v36, %v36480_v26 }
 0xc18   :  { %v36483_v54 = vpop.f32.mrb[76].mxu1 }
 0xc19   :  { %v36484_v51 = vpop.f32.mrb[77].mxu1 }
 0xc1a   :  { %v36485_v28 = vadd.f32 %v36484_v51, %v36483_v54 }
 0xc1c   :  { %v36486_v34 = vpop.f32.mrb[78].mxu1 }
 0xc1d   :  { %v36487_v17 = vpop.f32.mrb[79].mxu1 }
 0xc1e   :  { %v36488_v55 = vadd.f32 %v36487_v17, %v36486_v34 }
 0xc20   :  { %v36489_v6 = vpop.f32.mrb[80].mxu1 }
 0xc21   :  { %v36490_v9 = vpop.f32.mrb[81].mxu1 }
 0xc22   :  { %v36491_v27 = vadd.f32 %v36490_v9, %v36489_v6 }
 0xc24   :  { %v36492_v31 = vpop.f32.mrb[82].mxu1  ;;  %v33456_v23 = vpop.permute.xlu0 %33455 }
 0xc25   :  { %v36493_v30 = vpop.f32.mrb[83].mxu1  ;;  %v33454_v53 = vpop.permute.xlu1 %33453 }
 0xc26   :  { %v36494_v7 = vadd.f32 %v36493_v30, %v36492_v31 }
 0xc28   :  { %v36495_v32 = vpop.f32.mrb[84].mxu1 }
 0xc29   :  { %v36496_v24 = vpop.f32.mrb[85].mxu1 }
 0xc2a   :  { %v36497_v18 = vadd.f32 %v36496_v24, %v36495_v32 }
 0xc2c   :  { %v36498_v39 = vpop.f32.mrb[86].mxu1  ;;  %v33482_v47 = vpop.permute.xlu0 %33481 }
 0xc2d   :  { %v36499_v10 = vpop.f32.mrb[87].mxu1  ;;  %v33480_v40 = vpop.permute.xlu1 %33479 }
 0xc2e   :  { %v36500_v49 = vadd.f32 %v36499_v10, %v36498_v39  ;;  %v34471_v39 = vadd.f32 %v36482_v56, %v45320_v8 }
 0xc30   :  { %v36501_v0 = vpop.f32.mrb[88].mxu1 }
 0xc31   :  { %v36502_v4 = vpop.f32.mrb[89].mxu1 }
 0xc32   :  { %v45492_v60 = vadd.f32 %v36502_v4, %v36501_v0  ;;  %v34476_v0 = vadd.f32 %v36485_v28, %v45340_v22 }
 0xc34   :  { %v36504_v41 = vpop.f32.mrb[90].mxu1 }
 0xc35   :  { %v36505_v25 = vpop.f32.mrb[91].mxu1 }
 0xc36   :  { %v45494_v5 = vadd.f32 %v36505_v25, %v36504_v41 }
 0xc38   :  { %v36507_v20 = vpop.f32.mrb[92].mxu1 }
 0xc39   :  { %v36508_v1 = vpop.f32.mrb[93].mxu1 }
 0xc3a   :  { %v45496_v37 = vadd.f32 %v36508_v1, %v36507_v20 }
 0xc3c   :  { %v36510_v61 = vpop.f32.mrb[94].mxu1 }
 0xc3d   :  { %v36511_v26 = vpop.f32.mrb[95].mxu1 }
 0xc3e   :  { %v45498_v36 = vadd.f32 %v36511_v26, %v36510_v61  ;;  %v34481_v61 = vadd.f32 %v36488_v55, %v45329_v44  ;;  %v34496_v55 = vadd.f32 %v36497_v18, %v45362_v58 }
 0xc40   :  { %v36513_v54 = vpop.f32.mrb[96].mxu1 }
 0xc41   :  { %v36514_v51 = vpop.f32.mrb[97].mxu1 }
 0xc42   :  { %v45500_v34 = vadd.f32 %v36514_v51, %v36513_v54 }
 0xc44   :  { %v36516_v17 = vpop.f32.mrb[98].mxu1 }
 0xc45   :  { %v36517_v6 = vpop.f32.mrb[99].mxu1 }
 0xc46   :  { %v45502_v9 = vadd.f32 %v36517_v6, %v36516_v17  ;;  %v34486_v6 = vadd.f32 %v36491_v27, %v45351_v35 }
 0xc48   :  { %v36519_v31 = vpop.f32.mrb[100].mxu1 }
 0xc49   :  { %v36520_v23 = vpop.f32.mrb[101].mxu1 }
 0xc4a   :  { %v45504_v30 = vadd.f32 %v36520_v23, %v36519_v31  ;;  %v34491_v23 = vadd.f32 %v36494_v7, %v45338_v3  ;;  %v34506_v7 = vadd.f32 %v45492_v60, %v45373_v21 }
 0xc4c   :  { %v36522_v53 = vpop.f32.mrb[102].mxu1 }
 0xc4d   :  { %v36523_v32 = vpop.f32.mrb[103].mxu1 }
 0xc4e   :  { %v45506_v24 = vadd.f32 %v36523_v32, %v36522_v53 }
 0xc52   :  { %v34610_v10 = vpop.f32.mrb[104].mxu1 }
 0xc53   :  { %v34611_v47 = vadd.f32 %v34610_v10, %v34471_v39  ;;  %v34612_v40 = vpop.f32.mrb[105].mxu1 }
 0xc55   :  { %v34684_v20 = vmax.f32 %v34611_v47, 0.0 }
 0xc56   :  { %v34615_v4 = vpop.f32.mrb[106].mxu1 }
 0xc57   :  { %v34616_v41 = vadd.f32 %v34615_v4, %v34476_v0  ;;  %v34617_v25 = vpop.f32.mrb[107].mxu1  ;;  %v34501_v0 = vadd.f32 %v36500_v49, %v45349_v12 }
 0xc59   :  { %v34685_v1 = vmax.f32 %v34616_v41, 0.0 }
 0xc5a   :  { %v34620_v26 = vpop.f32.mrb[108].mxu1 }
 0xc5b   :  { %v36961_v54 = vpack.c.bf16 %v34685_v1, %v34684_v20  ;;  %v34621_v51 = vadd.f32 %v34620_v26, %v34481_v61  ;;  %v34622_v17 = vpop.f32.mrb[109].mxu1  ;;  %v34511_v26 = vadd.f32 %v45494_v5, %v45360_v38 }
 0xc5c   :  { %v34516_v17 = vadd.f32 %v45496_v37, %v45384_v59 }
 0xc5d   :  { %36962 = vmatpush3.bf16.msra.mxu0 %v36961_v54  ;;  %v34686_v22 = vmax.f32 %v34621_v51, 0.0 }
 0xc5e   :  { %v34625_v8 = vpop.f32.mrb[110].mxu1  ;;  %36963 = vmatprep.subr.bf16.mxu0 %v38259_v14 }
 0xc5f   :  { %v34626_v56 = vadd.f32 %v34625_v8, %v34486_v6  ;;  %v34627_v31 = vpop.f32.mrb[111].mxu1 }
 0xc60   :  { %v34521_v31 = vadd.f32 %v45498_v36, %v45371_v46 }
 0xc61   :  { %v34687_v28 = vmax.f32 %v34626_v56, 0.0 }
 0xc62   :  { %v34630_v53 = vpop.f32.mrb[112].mxu1 }
 0xc63   :  { %v36964_v32 = vpack.c.bf16 %v34687_v28, %v34686_v22  ;;  %v34631_v39 = vadd.f32 %v34630_v53, %v34491_v23  ;;  %v34632_v44 = vpop.f32.mrb[113].mxu1  ;;  %v34526_v23 = vadd.f32 %v45500_v34, %v45395_v13 }
 0xc64   :  { %v34531_v44 = vadd.f32 %v45502_v9, %v45382_v63 }
 0xc65   :  { %36965 = vmatpush3.bf16.msra.mxu0 %v36964_v32  ;;  %v34688_v47 = vmax.f32 %v34631_v39, 0.0 }
 0xc66   :  { %v34635_v10 = vpop.f32.mrb[114].mxu1  ;;  %36966 = vmatprep.subr.bf16.mxu0 %v38259_v14 }
 0xc67   :  { %v34636_v35 = vadd.f32 %v34635_v10, %v34496_v55  ;;  %v34637_v27 = vpop.f32.mrb[115].mxu1 }
 0xc69   :  { %v34689_v40 = vmax.f32 %v34636_v35, 0.0  ;;  %v34536_v35 = vadd.f32 %v45504_v30, %v45406_v43  ;;  %v34699_v43 = vld [vmem:[%s45641_s7] sm:$0xff]  ;;  %v34701_v30 = vld [vmem:[%s45641_s7 + $0x10] sm:$0xff] }
 0xc6a   :  { %v34640_v4 = vpop.f32.mrb[116].mxu1 }
 0xc6b   :  { %v36967_v41 = vpack.c.bf16 %v34689_v40, %v34688_v47  ;;  %v34641_v25 = vadd.f32 %v34640_v4, %v34501_v0  ;;  %v34642_v3 = vpop.f32.mrb[117].mxu1  ;;  %v34541_v0 = vadd.f32 %v45506_v24, %v45393_v29  ;;  %v34700_v29 = vld [vmem:[%s45641_s7 + $0x8] sm:$0xff]  ;;  %v34702_v24 = vld [vmem:[%s45641_s7 + $0x18] sm:$0xff] }
 0xc6c   :  { %v34703_v3 = vld [vmem:[%s45641_s7 + $0x20] sm:$0xff] }
 0xc6d   :  { %36968 = vmatpush3.bf16.msra.mxu0 %v36967_v41  ;;  %v34690_v1 = vmax.f32 %v34641_v25, 0.0 }
 0xc6e   :  { %v34645_v20 = vpop.f32.mrb[118].mxu1  ;;  %36969 = vmatprep.subr.bf16.mxu0 %v38259_v14 }
 0xc6f   :  { %v34646_v58 = vadd.f32 %v34645_v20, %v34506_v7  ;;  %v34647_v18 = vpop.f32.mrb[119].mxu1  ;;  %v34704_v7 = vld [vmem:[%s45641_s7 + $0x28] sm:$0xff]  ;;  %v34705_v20 = vld [vmem:[%s45641_s7 + $0x30] sm:$0xff] }
 0xc70   :  { %v34707_v18 = vld [vmem:[%s45641_s7 + $0x40] sm:$0xff] }
 0xc71   :  { %v34691_v61 = vmax.f32 %v34646_v58, 0.0  ;;  %v34706_v58 = vld [vmem:[%s45641_s7 + $0x38] sm:$0xff] }
 0xc72   :  { %v34650_v54 = vpop.f32.mrb[120].mxu1 }
 0xc73   :  { %v36970_v12 = vpack.c.bf16 %v34691_v61, %v34690_v1  ;;  %v34651_v49 = vadd.f32 %v34650_v54, %v34511_v26  ;;  %v34652_v51 = vpop.f32.mrb[121].mxu1  ;;  %v34708_v1 = vld [vmem:[%s45641_s7 + $0x48] sm:$0xff]  ;;  %v34709_v61 = vld [vmem:[%s45641_s7 + $0x50] sm:$0xf] }
 0xc75   :  { %36971 = vmatpush3.bf16.msra.mxu0 %v36970_v12  ;;  %v34692_v8 = vmax.f32 %v34651_v49, 0.0 }
 0xc76   :  { %v34655_v6 = vpop.f32.mrb[122].mxu1  ;;  %36972 = vmatprep.subr.bf16.mxu0 %v38259_v14 }
 0xc77   :  { %v34656_v21 = vadd.f32 %v34655_v6, %v34516_v17  ;;  %v34657_v60 = vpop.f32.mrb[123].mxu1 }
 0xc79   :  { %v34693_v56 = vmax.f32 %v34656_v21, 0.0 }
 0xc7a   :  { %v34660_v22 = vpop.f32.mrb[124].mxu1 }
 0xc7b   :  { %v36973_v38 = vpack.c.bf16 %v34693_v56, %v34692_v8  ;;  %v34661_v5 = vadd.f32 %v34660_v22, %v34521_v31  ;;  %v34662_v28 = vpop.f32.mrb[125].mxu1 }
 0xc7d   :  { %36974 = vmatpush3.bf16.msra.mxu0 %v36973_v38  ;;  %v34694_v32 = vmax.f32 %v34661_v5, 0.0 }
 0xc7e   :  { %v34665_v53 = vpop.f32.mrb[126].mxu1  ;;  %36975 = vmatprep.subr.bf16.mxu0 %v38259_v14 }
 0xc7f   :  { %v34666_v59 = vadd.f32 %v34665_v53, %v34526_v23  ;;  %v34667_v37 = vpop.f32.mrb[127].mxu1 }
 0xc81   :  { %v34695_v39 = vmax.f32 %v34666_v59, 0.0 }
 0xc82   :  { %v34670_v55 = vpop.f32.mrb[128].mxu1 }
 0xc83   :  { %v36976_v46 = vpack.c.bf16 %v34695_v39, %v34694_v32  ;;  %v34671_v36 = vadd.f32 %v34670_v55, %v34531_v44  ;;  %v34672_v10 = vpop.f32.mrb[129].mxu1 }
 0xc85   :  { %36977 = vmatpush3.bf16.msra.mxu0 %v36976_v46  ;;  %v34696_v47 = vmax.f32 %v34671_v36, 0.0 }
 0xc86   :  { %v34675_v27 = vpop.f32.mrb[130].mxu1  ;;  %36978 = vmatprep.subr.bf16.mxu0 %v38259_v14 }
 0xc87   :  { %v34676_v13 = vadd.f32 %v34675_v27, %v34536_v35  ;;  %v34677_v34 = vpop.f32.mrb[131].mxu1 }
 0xc89   :  { %v34697_v40 = vmax.f32 %v34676_v13, 0.0 }
 0xc8a   :  { %v34680_v4 = vpop.f32.mrb[132].mxu1 }
 0xc8b   :  { %v36979_v63 = vpack.c.bf16 %v34697_v40, %v34696_v47  ;;  %v34681_v9 = vadd.f32 %v34680_v4, %v34541_v0  ;;  %v34682_v41 = vpop.f32.mrb[133].mxu1 }
 0xc8d   :  { %36980 = vmatpush3.bf16.msra.mxu0 %v36979_v63  ;;  %v34698_v25 = vmax.f32 %v34681_v9, 0.0 }
 0xc8e   :  { %36841 = vmatprep.subr.mxu0 %v38228_v11 }
 0xc91   :  { %36842 = vmatpush3.msra.mxu0 %v34698_v25 }
 0xc92   :  { %36844 = vmatmul.mubr.msk.f32.vlgmr.msra.gmra.mrb[22].mxu0 %vm19824_vm9, %v34699_v43 }
 0xc93   :  { %36846 = vmatprep.mubr.msk.f32.mxu0 %vm38233_vm3, %v38228_v11 }
 0xc96   :  { %36847 = vmatmul.mubr.msk.f32.gmra.mrb[24].mxu0 %vm19824_vm9, %v34700_v29 }
 0xc97   :  { %36849 = vmatprep.mubr.msk.f32.mxu0 %vm38233_vm3, %v38228_v11 }
 0xc9a   :  { %36850 = vmatmul.mubr.msk.f32.gmra.mrb[26].mxu0 %vm19824_vm9, %v34701_v30 }
 0xc9b   :  { %36852 = vmatprep.mubr.msk.f32.mxu0 %vm38233_vm3, %v38228_v11 }
 0xc9e   :  { %36853 = vmatmul.mubr.msk.f32.gmra.mrb[28].mxu0 %vm19824_vm9, %v34702_v24 }
 0xc9f   :  { %36855 = vmatprep.mubr.msk.f32.mxu0 %vm38233_vm3, %v38228_v11 }
 0xca2   :  { %36856 = vmatmul.mubr.msk.f32.gmra.mrb[30].mxu0 %vm19824_vm9, %v34703_v3 }
 0xca3   :  { %36858 = vmatprep.mubr.msk.f32.mxu0 %vm38233_vm3, %v38228_v11 }
 0xca6   :  { %36859 = vmatmul.mubr.msk.f32.gmra.mrb[32].mxu0 %vm19824_vm9, %v34704_v7 }
 0xca7   :  { %36861 = vmatprep.mubr.msk.f32.mxu0 %vm38233_vm3, %v38228_v11 }
 0xcaa   :  { %36862 = vmatmul.mubr.msk.f32.gmra.mrb[34].mxu0 %vm19824_vm9, %v34705_v20 }
 0xcab   :  { %36864 = vmatprep.mubr.msk.f32.mxu0 %vm38233_vm3, %v38228_v11 }
 0xcae   :  { %36865 = vmatmul.mubr.msk.f32.gmra.mrb[36].mxu0 %vm19824_vm9, %v34706_v58 }
 0xcaf   :  { %36867 = vmatprep.mubr.msk.f32.mxu0 %vm38233_vm3, %v38228_v11 }
 0xcb2   :  { %36868 = vmatmul.mubr.msk.f32.gmra.mrb[38].mxu0 %vm19824_vm9, %v34707_v18 }
 0xcb3   :  { %36870 = vmatprep.mubr.msk.f32.mxu0 %vm38233_vm3, %v38228_v11 }
 0xcb6   :  { %36871 = vmatmul.mubr.msk.f32.gmra.mrb[40].mxu0 %vm19824_vm9, %v34708_v1 }
 0xcb7   :  { %36873 = vmatprep.mubr.msk.f32.mxu0 %vm38233_vm3, %v38228_v11  ;;  %vm34955_vm3 = vcmask 1043456  }
 0xcba   :  { %36874 = vmatmul.mubr.msk.f32.gmra.mrb[42].mxu0 %vm19824_vm9, %v34709_v61 }
 0xd65   :  { %v34875_v26 = vpop.f32.mrb[22].mxu0 }
 0xd66   :  { %v36845_v54 = vpop.f32.mrb[23].mxu0  ;;  %v34876_v12 = vadd.f32 %v34875_v26, %v45417_v48 }
 0xd68   :  { %v34929_v6 = vmax.f32 %v34876_v12, 0.0 }
 0xd69   :  { %v34880_v49 = vpop.f32.mrb[24].mxu0 }
 0xd6a   :  { %v34881_v51 = vadd.f32 %v34880_v49, %v45404_v62  ;;  %v36848_v17 = vpop.f32.mrb[25].mxu0 }
 0xd6c   :  { %v34930_v21 = vmax.f32 %v34881_v51, 0.0 }
 0xd6d   :  { %v34885_v60 = vpop.f32.mrb[26].mxu0 }
 0xd6e   :  { %v36982_v8 = vpack.c.bf16 %v34930_v21, %v34929_v6  ;;  %v36851_v56 = vpop.f32.mrb[27].mxu0  ;;  %v34886_v31 = vadd.f32 %v34885_v60, %v45428_v33 }
 0xd70   :  { %36983 = vmatpush3.bf16.msra.mxu1 %v36982_v8  ;;  %v34931_v28 = vmax.f32 %v34886_v31, 0.0 }
 0xd71   :  { %v34890_v22 = vpop.f32.mrb[28].mxu0  ;;  %36984 = vmatprep.subr.bf16.mxu1 %v38259_v14 }
 0xd72   :  { %v34891_v38 = vadd.f32 %v34890_v22, %v45415_v50  ;;  %v36854_v5 = vpop.f32.mrb[29].mxu0 }
 0xd74   :  { %v34932_v48 = vmax.f32 %v34891_v38, 0.0 }
 0xd75   :  { %v34895_v23 = vpop.f32.mrb[30].mxu0 }
 0xd76   :  { %v36985_v53 = vpack.c.bf16 %v34932_v48, %v34931_v28  ;;  %v36857_v62 = vpop.f32.mrb[31].mxu0  ;;  %v34896_v59 = vadd.f32 %v34895_v23, %v45439_v15 }
 0xd78   :  { %36986 = vmatpush3.bf16.msra.mxu1 %v36985_v53  ;;  %v34933_v39 = vmax.f32 %v34896_v59, 0.0 }
 0xd79   :  { %v34900_v37 = vpop.f32.mrb[32].mxu0  ;;  %36987 = vmatprep.subr.bf16.mxu1 %v38259_v14 }
 0xd7a   :  { %v34901_v33 = vadd.f32 %v34900_v37, %v45426_v19  ;;  %v36860_v32 = vpop.f32.mrb[33].mxu0 }
 0xd7c   :  { %v34934_v44 = vmax.f32 %v34901_v33, 0.0 }
 0xd7d   :  { %v34905_v55 = vpop.f32.mrb[34].mxu0 }
 0xd7e   :  { %v36988_v46 = vpack.c.bf16 %v34934_v44, %v34933_v39  ;;  %v36863_v50 = vpop.f32.mrb[35].mxu0  ;;  %v34906_v36 = vadd.f32 %v34905_v55, %v45450_v45 }
 0xd80   :  { %36989 = vmatpush3.bf16.msra.mxu1 %v36988_v46  ;;  %v34935_v27 = vmax.f32 %v34906_v36, 0.0 }
 0xd81   :  { %v34910_v10 = vpop.f32.mrb[36].mxu0  ;;  %36990 = vmatprep.subr.bf16.mxu1 %v38259_v14 }
 0xd82   :  { %v34911_v15 = vadd.f32 %v34910_v10, %v45437_v42  ;;  %v36866_v35 = vpop.f32.mrb[37].mxu0 }
 0xd84   :  { %v34936_v13 = vmax.f32 %v34911_v15, 0.0 }
 0xd85   :  { %v34915_v34 = vpop.f32.mrb[38].mxu0 }
 0xd86   :  { %v36991_v47 = vpack.c.bf16 %v34936_v13, %v34935_v27  ;;  %v36869_v19 = vpop.f32.mrb[39].mxu0  ;;  %v34916_v40 = vadd.f32 %v34915_v34, %v45459_v16  ;;  %v34940_v16 = vld [vmem:[%s45643_s9] sm:$0x1] }
 0xd88   :  { %36992 = vmatpush3.bf16.msra.mxu1 %v36991_v47  ;;  %v34937_v63 = vmax.f32 %v34916_v40, 0.0 }
 0xd89   :  { %v34920_v0 = vpop.f32.mrb[40].mxu0  ;;  %36993 = vmatprep.subr.bf16.mxu1 %v38259_v14  ;;  %v34947_v14 = vlaneseq }
 0xd8a   :  { %v34921_v45 = vadd.f32 %v34920_v0, %v45448_v2  ;;  %v36872_v4 = vpop.f32.mrb[41].mxu0 }
 0xd8b   :  { %v34948_v2 = vshrl.u32 %v34947_v14, 7 }
 0xd8c   :  { %v34938_v9 = vmax.f32 %v34921_v45, 0.0 }
 0xd8d   :  { %v34925_v41 = vpop.f32.mrb[42].mxu0  ;;  %v34949_v30 = vsub.s32 0, %v34948_v2 }
 0xd8e   :  { %v36994_v25 = vpack.c.bf16 %v34938_v9, %v34937_v63  ;;  %v34926_v42 = vadd.f32 %v34925_v41, %v45475_v52  ;;  %v36875_v43 = vpop.f32.mrb[43].mxu0 }
 0xd8f   :  { %v34950_v52 = vrot.slane %v45490_v57, %v34949_v30 }
 0xd90   :  { %36995 = vmatpush3.bf16.msra.mxu1 %v36994_v25  ;;  %v34939_v29 = vmax.f32 %v34926_v42, 0.0 }
 0xd91   :  { %36896 = vmatprep.subr.mxu1 %v38228_v11 }
 0xd94   :  { %36897 = vmatpush3.msk.msra.mxu1 %vm34955_vm3, %v34939_v29 }
 0xd95   :  { %36899 = vmatmul.mubr.msk.f32.vlgmr.msra.gmra.mrb[134].mxu1 %vm34951_vm4, %v34940_v16 }
 0xe68   :  { %v35025_v24 = vpop.f32.mrb[134].mxu1 }
 0xe69   :  { %v35026_v3 = vadd.f32 %v35025_v24, %v34950_v52  ;;  %v36900_v11 = vpop.f32.mrb[135].mxu1 }
 0xe6b   :  { %35030 = vst.msk [vmem:[#allocation8] sm:$0x1] %vm35029_vm15, %v35026_v3 }
 0xe6c   :  { %38214 = shalt.err (!%p38211_p4)
}
 0xe6d   :  { %s38215_s5 = scalar_lea.hbm %s45645_s11, 16 }
 0xe6e   :  { %p38216_p5 = scmp.ne.s32.totalorder %s45645_s11, %s38215_s5  ;;  %p38219_p6 = scmp.lt.u32.totalorder %s38215_s5, %s45645_s11 }
 0xe70   :  { %p38221_p7 = pnand %p38219_p6, %p38216_p5 }
 0xe72   :  { %38224 = shalt.err (!%p38221_p7)
}
 0xe73   :  { %35040 = dma.vmem_to_hbm [thread:$0]  %s35038_s6, 16, %s45645_s11, [#allocation9]  }
 0xe74   :  { %38225 = dma.done.wait [#allocation9], 16  }
 0xe75   :  { %38226 = vsyncadd [#allocation9], 4294967280 }
 0xe76   :  { %35044 = vsyncpa [#allocation9], 1 }

</bundles_post_ra>
